<compile_context>
chip_gen: v6e
topology: v6e:2x2x1
jax: 0.10.0
libtpu: 0.0.40
codegen_flags: <defaults>
</compile_context>

<pallas_src>
import math

import jax
import jax.numpy as jnp
from jax.experimental import pallas as pl
from jax.experimental.pallas import tpu as pltpu

EPS = 1e-5
LANE = 128

_MM_CACHE = {}
_FS_CACHE = {}


def _round_up(v, m):
    return (v + m - 1) // m * m


def _pick_tile(dim, candidates):
    for c in candidates:
        if dim % c == 0:
            return c
    return dim


# ----------------------------------------------------------------------------
# Pallas kernels
# ----------------------------------------------------------------------------

def _get_mm_fn(Mp, Kp, Np, tm, tk, tn, has_res, relu, out_dtype):
    """Tiled fused (X @ W) * scale + shift (+residual) (+relu) kernel."""
    key = (Mp, Kp, Np, tm, tk, tn, has_res, relu, jnp.dtype(out_dtype).name)
    if key in _MM_CACHE:
        return _MM_CACHE[key]

    gm, gn, gk = Mp // tm, Np // tn, Kp // tk

    def kernel(*refs):
        if has_res:
            x_ref, w_ref, s_ref, b_ref, r_ref, o_ref, acc_ref = refs
        else:
            x_ref, w_ref, s_ref, b_ref, o_ref, acc_ref = refs
            r_ref = None
        kk = pl.program_id(2)

        @pl.when(kk == 0)
        def _():
            acc_ref[...] = jnp.zeros_like(acc_ref)

        acc_ref[...] += jnp.dot(x_ref[...], w_ref[...],
                                preferred_element_type=jnp.float32)

        @pl.when(kk == gk - 1)
        def _():
            y = acc_ref[...] * s_ref[...] + b_ref[...]
            if has_res:
                y = y + r_ref[...].astype(jnp.float32)
            if relu:
                y = jnp.maximum(y, 0.0)
            o_ref[...] = y.astype(o_ref.dtype)

    in_specs = [
        pl.BlockSpec((tm, tk), lambda i, j, k: (i, k)),
        pl.BlockSpec((tk, tn), lambda i, j, k: (k, j)),
        pl.BlockSpec((1, tn), lambda i, j, k: (0, j)),
        pl.BlockSpec((1, tn), lambda i, j, k: (0, j)),
    ]
    if has_res:
        in_specs.append(pl.BlockSpec((tm, tn), lambda i, j, k: (i, j)))

    out_bytes = Mp * Np * jnp.dtype(out_dtype).itemsize
    cost = pl.CostEstimate(
        flops=2 * Mp * Kp * Np,
        transcendentals=0,
        bytes_accessed=2 * (Mp * Kp + Kp * Np) + 8 * Np
        + (2 * Mp * Np if has_res else 0) + out_bytes)

    fn = pl.pallas_call(
        kernel,
        out_shape=jax.ShapeDtypeStruct((Mp, Np), out_dtype),
        grid=(gm, gn, gk),
        in_specs=in_specs,
        out_specs=pl.BlockSpec((tm, tn), lambda i, j, k: (i, j)),
        scratch_shapes=[pltpu.VMEM((tm, tn), jnp.float32)],
        compiler_params=pltpu.CompilerParams(
            dimension_semantics=("parallel", "parallel", "arbitrary")),
        cost_estimate=cost,
    )
    _MM_CACHE[key] = fn
    return fn


def mm_fused(x2d, w2d, scale, shift, residual=None, relu=False,
             out_dtype=jnp.bfloat16):
    """Fused conv-as-matmul.  K and N are already lane-padded (mult. of 128)."""
    M, K = x2d.shape
    K2, N = w2d.shape
    assert K == K2 and K % LANE == 0 and N % LANE == 0

    tk = _pick_tile(K, (512, 256, 128))
    tn = _pick_tile(N, (256, 128))
    Mp = _round_up(M, 8)
    if Mp > 256:
        tm = 256
        Mp = _round_up(Mp, tm)
    else:
        tm = Mp

    if Mp != M:
        x2d = jnp.pad(x2d, ((0, Mp - M), (0, 0)))
        if residual is not None:
            residual = jnp.pad(residual, ((0, Mp - M), (0, 0)))

    args = [x2d, w2d, scale, shift]
    if residual is not None:
        args.append(residual)

    fn = _get_mm_fn(Mp, K, N, tm, tk, tn, residual is not None, relu, out_dtype)
    out = fn(*args)
    if Mp != M:
        out = out[:M]
    return out


def _get_fuse_fn(Mp, Cp, tm, n_terms, out_dtype):
    """Tiled sum-over-branches + ReLU (branches passed as separate inputs)."""
    key = (Mp, Cp, tm, n_terms, jnp.dtype(out_dtype).name)
    if key in _FS_CACHE:
        return _FS_CACHE[key]

    def kernel(*refs):
        o_ref = refs[n_terms]
        acc = refs[0][...].astype(jnp.float32)
        for t in range(1, n_terms):
            acc = acc + refs[t][...].astype(jnp.float32)
        o_ref[...] = jnp.maximum(acc, 0.0).astype(o_ref.dtype)

    fn = pl.pallas_call(
        kernel,
        out_shape=jax.ShapeDtypeStruct((Mp, Cp), out_dtype),
        grid=(Mp // tm,),
        in_specs=[pl.BlockSpec((tm, Cp), lambda i: (i, 0))
                  for _ in range(n_terms)],
        out_specs=pl.BlockSpec((tm, Cp), lambda i: (i, 0)),
        compiler_params=pltpu.CompilerParams(
            dimension_semantics=("parallel",)),
        cost_estimate=pl.CostEstimate(
            flops=n_terms * Mp * Cp, transcendentals=0,
            bytes_accessed=(n_terms + 1) * Mp * Cp * 2),
    )
    _FS_CACHE[key] = fn
    return fn


def sum_relu(terms):
    """Fuse-layer epilogue: sum of branch contributions + ReLU (Pallas)."""
    N, H, W, Cp = terms[0].shape
    M = N * H * W
    Mp = _round_up(M, 8)
    if Mp > 512:
        tm = 512
        Mp = _round_up(Mp, tm)
    else:
        tm = Mp

    flat = []
    for t in terms:
        t2 = t.reshape(M, Cp)
        if Mp != M:
            t2 = jnp.pad(t2, ((0, Mp - M), (0, 0)))
        flat.append(t2)

    fn = _get_fuse_fn(Mp, Cp, tm, len(terms), jnp.bfloat16)
    out = fn(*flat)
    if Mp != M:
        out = out[:M]
    return out.reshape(N, H, W, Cp)


# ----------------------------------------------------------------------------
# Plain-JAX glue: im2col, nearest upsample (bf16 to halve HBM traffic)
# ----------------------------------------------------------------------------

def im2col(x, k, stride, pad):
    N, H, W, C = x.shape
    Ho = (H + 2 * pad - k) // stride + 1
    Wo = (W + 2 * pad - k) // stride + 1
    if k == 1:
        return x[:, ::stride, ::stride, :][:, :Ho, :Wo, :], Ho, Wo
    if pad:
        x = jnp.pad(x, ((0, 0), (pad, pad), (pad, pad), (0, 0)))
    cols = []
    for i in range(k):
        for j in range(k):
            cols.append(x[:, i:i + stride * Ho:stride,
                          j:j + stride * Wo:stride, :])
    return jnp.concatenate(cols, axis=-1), Ho, Wo


def nearest_upsample(x, factor):
    return jnp.repeat(jnp.repeat(x, factor, axis=1), factor, axis=2)


# ----------------------------------------------------------------------------
# Layer application helpers (all convs dispatched to the Pallas matmul kernel)
# ----------------------------------------------------------------------------

def apply_conv_bn(x, p, stride, pad, relu, residual=None,
                  out_dtype=jnp.bfloat16):
    k = p['k']
    N, H, W, Cp = x.shape
    coutp = p['w2d'].shape[1]
    patches, Ho, Wo = im2col(x, k, stride, pad)
    x2d = patches.reshape(N * Ho * Wo, k * k * Cp)
    res2d = None if residual is None else residual.reshape(N * Ho * Wo, coutp)
    y2d = mm_fused(x2d, p['w2d'], p['scale'], p['shift'],
                   residual=res2d, relu=relu, out_dtype=out_dtype)
    return y2d.reshape(N, Ho, Wo, coutp)


def apply_basic(x, p):
    out = apply_conv_bn(x, p['conv1'], p['stride'], 1, True)
    res = x if p.get('down') is None else \
        apply_conv_bn(x, p['down'], p['stride'], 0, False)
    out = apply_conv_bn(out, p['conv2'], 1, 1, True, residual=res)
    return out


def apply_bottleneck(x, p):
    out = apply_conv_bn(x, p['conv1'], 1, 0, True)
    out = apply_conv_bn(out, p['conv2'], p['stride'], 1, True)
    res = x if p.get('down') is None else \
        apply_conv_bn(x, p['down'], p['stride'], 0, False)
    out = apply_conv_bn(out, p['conv3'], 1, 0, True, residual=res)
    return out


def apply_transition_layer(x, t):
    if t['type'] == 'same':
        return apply_conv_bn(x, t['conv'], 1, 1, True)
    for cp in t['seq']:
        x = apply_conv_bn(x, cp, 2, 1, True)
    return x


def apply_hr_module(xs, mod):
    nb = mod['num_branches']
    xs = list(xs)
    for i in range(nb):
        y = xs[i]
        for blk in mod['branches'][i]:
            y = apply_basic(y, blk)
        xs[i] = y
    if nb == 1:
        return [xs[0]]
    outs = []
    for i in range(len(mod['fuse'])):
        terms = []
        for j in range(nb):
            f = mod['fuse'][i][j]
            if j == i:
                terms.append(xs[j])
            elif j > i:
                t = apply_conv_bn(xs[j], f['conv'], 1, 0, False)
                t = nearest_upsample(t, f['factor'])
                terms.append(t)
            else:
                t = xs[j]
                for cp in f['seq']:
                    t = apply_conv_bn(t, cp['conv'], 2, 1, cp['relu'])
                terms.append(t)
        outs.append(sum_relu(terms))
    return outs


def apply_stage(xs, modules):
    for m in modules:
        xs = apply_hr_module(xs, m)
    return xs


# ----------------------------------------------------------------------------
# Deterministic parameter construction (mirrors the PyTorch __init__ structure)
# Weights / folded-BN scale & shift are lane-padded ONCE here (no per-call pad).
# ----------------------------------------------------------------------------

class PGen:
    def __init__(self, seed):
        self._key = jax.random.PRNGKey(seed)

    def next(self):
        self._key, k = jax.random.split(self._key)
        return k


def _pack_conv(w, scale, shift, cin, cout, k):
    cin_p = _round_up(cin, LANE)
    cout_p = _round_up(cout, LANE)
    wp = jnp.zeros((k, k, cin_p, cout_p), jnp.float32)
    wp = wp.at[:, :, :cin, :cout].set(w)
    w2d = wp.reshape(k * k * cin_p, cout_p).astype(jnp.bfloat16)
    sp = jnp.zeros((1, cout_p), jnp.float32).at[0, :cout].set(scale)
    bp = jnp.zeros((1, cout_p), jnp.float32).at[0, :cout].set(shift)
    return {'k': k, 'cout': cout, 'w2d': w2d, 'scale': sp, 'shift': bp}


def make_conv_bn(gen, cin, cout, k):
    fan_in = cin * k * k
    w = jax.random.normal(gen.next(), (k, k, cin, cout),
                          jnp.float32) * (1.0 / math.sqrt(fan_in))
    gamma = 1.0 + 0.1 * jax.random.normal(gen.next(), (cout,), jnp.float32)
    beta = 0.1 * jax.random.normal(gen.next(), (cout,), jnp.float32)
    mean = 0.05 * jax.random.normal(gen.next(), (cout,), jnp.float32)
    var = jnp.abs(1.0 + 0.1 * jax.random.normal(gen.next(), (cout,),
                                                jnp.float32))
    scale = gamma / jnp.sqrt(var + EPS)
    shift = beta - mean * scale
    return _pack_conv(w, scale, shift, cin, cout, k)


def make_conv_bias(gen, cin, cout, k):
    fan_in = cin * k * k
    w = jax.random.normal(gen.next(), (k, k, cin, cout),
                          jnp.float32) * (1.0 / math.sqrt(fan_in))
    b = 0.1 * jax.random.normal(gen.next(), (cout,), jnp.float32)
    return _pack_conv(w, jnp.ones((cout,), jnp.float32), b, cin, cout, k)


def make_basic(gen, inplanes, planes, stride=1, downsample=False):
    p = {'stride': stride,
         'conv1': make_conv_bn(gen, inplanes, planes, 3),
         'conv2': make_conv_bn(gen, planes, planes, 3)}
    if downsample:
        p['down'] = make_conv_bn(gen, inplanes, planes, 1)
    return p


def make_bottleneck(gen, inplanes, planes, stride=1, downsample=False):
    p = {'stride': stride,
         'conv1': make_conv_bn(gen, inplanes, planes, 1),
         'conv2': make_conv_bn(gen, planes, planes, 3),
         'conv3': make_conv_bn(gen, planes, planes * 4, 1)}
    if downsample:
        p['down'] = make_conv_bn(gen, inplanes, planes * 4, 1)
    return p


def make_transition(gen, pre, cur):
    layers = []
    for i in range(len(cur)):
        if i < len(pre):
            if cur[i] != pre[i]:
                layers.append({'type': 'same',
                               'conv': make_conv_bn(gen, pre[i], cur[i], 3)})
            else:
                layers.append(None)
        else:
            seq = []
            for j in range(i + 1 - len(pre)):
                cin = pre[-1]
                cout = cur[i] if j == i - len(pre) else cin
                seq.append(make_conv_bn(gen, cin, cout, 3))
            layers.append({'type': 'down', 'seq': seq})
    return layers


def make_hr_module(gen, num_branches, num_blocks, num_inchannels,
                   num_channels, multi_scale_output):
    branches = []
    inchs = list(num_inchannels)
    for b in range(num_branches):
        blocks = []
        cin, cout = inchs[b], num_channels[b]
        blocks.append(make_basic(gen, cin, cout, 1, downsample=(cin != cout)))
        for _ in range(1, num_blocks[b]):
            blocks.append(make_basic(gen, cout, cout))
        branches.append(blocks)
        inchs[b] = cout
    fuse = None
    if num_branches > 1:
        fuse = []
        n_out = num_branches if multi_scale_output else 1
        for i in range(n_out):
            row = []
            for j in range(num_branches):
                if j > i:
                    row.append({'conv': make_conv_bn(gen, inchs[j], inchs[i], 1),
                                'factor': 2 ** (j - i)})
                elif j == i:
                    row.append(None)
                else:
                    seq = []
                    for k in range(i - j):
                        if k == i - j - 1:
                            seq.append({'conv': make_conv_bn(gen, inchs[j],
                                                             inchs[i], 3),
                                        'relu': False})
                        else:
                            seq.append({'conv': make_conv_bn(gen, inchs[j],
                                                             inchs[j], 3),
                                        'relu': True})
                    row.append({'seq': seq})
            fuse.append(row)
    return {'branches': branches, 'fuse': fuse, 'num_branches': num_branches,
            'out_channels': inchs}


def build_params(cfgs, gen):
    extra = cfgs['heatmapModel']['extra']
    p = {'conv1': make_conv_bn(gen, 3, 64, 3),
         'conv2': make_conv_bn(gen, 64, 64, 3)}
    # layer1: Bottleneck(64, 64) x 4, first block has 1x1 downsample 64->256
    layer1 = [make_bottleneck(gen, 64, 64, stride=1, downsample=True)]
    for _ in range(3):
        layer1.append(make_bottleneck(gen, 256, 64))
    p['layer1'] = layer1

    pre = [256]
    for si, name in enumerate(['stage2', 'stage3', 'stage4']):
        scfg = extra[name]
        assert scfg['block'] == 'basic'
        cur = list(scfg['num_channels'])  # basic block: expansion = 1
        p['transition%d' % (si + 1)] = make_transition(gen, pre, cur)
        modules, inch = [], list(cur)
        for m in range(scfg['num_modules']):
            mso = not (name == 'stage4' and m == scfg['num_modules'] - 1)
            mod = make_hr_module(gen, scfg['num_branches'], scfg['num_blocks'],
                                 inch, scfg['num_channels'], mso)
            inch = mod['out_channels']
            modules.append(mod)
        p[name] = modules
        pre = inch

    p['final'] = make_conv_bias(gen, pre[0],
                                cfgs['heatmapModel']['num_joints'],
                                extra['final_conv_kernel'])
    return p


# ----------------------------------------------------------------------------
# Full forward pass (head_type == 'heatmap', pixel_shuffle == False)
# ----------------------------------------------------------------------------

def forward(x_nchw, params):
    x = jnp.transpose(x_nchw, (0, 2, 3, 1))          # NCHW -> NHWC
    c = x.shape[-1]
    cp = _round_up(c, LANE)
    x = jnp.pad(x, ((0, 0), (0, 0), (0, 0), (0, cp - c))).astype(jnp.bfloat16)

    x = apply_conv_bn(x, params['conv1'], 2, 1, True)
    x = apply_conv_bn(x, params['conv2'], 2, 1, True)
    for blk in params['layer1']:
        x = apply_bottleneck(x, blk)

    # stage 2
    x_list = []
    for t in params['transition1']:
        x_list.append(x if t is None else apply_transition_layer(x, t))
    y_list = apply_stage(x_list, params['stage2'])

    # stage 3
    x_list = []
    for i, t in enumerate(params['transition2']):
        x_list.append(y_list[i] if t is None
                      else apply_transition_layer(y_list[-1], t))
    y_list = apply_stage(x_list, params['stage3'])

    # stage 4
    x_list = []
    for i, t in enumerate(params['transition3']):
        x_list.append(y_list[i] if t is None
                      else apply_transition_layer(y_list[-1], t))
    y_list = apply_stage(x_list, params['stage4'])

    # heatmap head: final 1x1 conv (with bias), no pixel shuffle; f32 output
    kf = params['final']['k']
    out = apply_conv_bn(y_list[0], params['final'], 1,
                        1 if kf == 3 else 0, False, out_dtype=jnp.float32)
    out = out[..., :params['final']['cout']]          # drop lane padding
    return jnp.transpose(out, (0, 3, 1, 2))           # NHWC -> NCHW


# ----------------------------------------------------------------------------
# Main
# ----------------------------------------------------------------------------

if __name__ == "__main__":
    cfgs = {
        'heatmapModel': {
            'num_joints': 4,
            'head_type': 'heatmap',
            'pixel_shuffle': False,
            'heatmap_size': [8, 8],
            'input_size': [32, 32],
            'extra': {
                'final_conv_kernel': 1,
                'pretrained_layers': ['*'],
                'stage2': {'num_modules': 1, 'num_branches': 2,
                           'block': 'basic', 'num_blocks': [1, 1],
                           'num_channels': [8, 16], 'fuse_method': 'sum'},
                'stage3': {'num_modules': 1, 'num_branches': 3,
                           'block': 'basic', 'num_blocks': [1, 1, 1],
                           'num_channels': [8, 16, 32], 'fuse_method': 'sum'},
                'stage4': {'num_modules': 1, 'num_branches': 4,
                           'block': 'basic', 'num_blocks': [1, 1, 1, 1],
                           'num_channels': [8, 16, 32, 64],
                           'fuse_method': 'sum'},
            },
        }
    }

    gen = PGen(42)
    params = build_params(cfgs, gen)

    key = jax.random.PRNGKey(0)
    x = jax.random.normal(key, (2, 3, 32, 32), jnp.float32)

    fwd = jax.jit(lambda inp: forward(inp, params))
    out = fwd(x)
    out = jax.block_until_ready(out)
    assert out.shape == (2, cfgs['heatmapModel']['num_joints'], 8, 8), out.shape
    assert bool(jnp.all(jnp.isfinite(out)))
    print("KERNEL_OK")
</pallas_src>

<mosaic_0001>
module attributes {stable_mosaic.version = 11 : i64} {
  func.func @kernel(%arg0: i32, %arg1: i32, %arg2: i32, %arg3: memref<256x128xbf16, #tpu.memory_space<vmem>>, %arg4: memref<128x128xbf16, #tpu.memory_space<vmem>>, %arg5: memref<1x128xf32, #tpu.memory_space<vmem>>, %arg6: memref<1x128xf32, #tpu.memory_space<vmem>>, %arg7: memref<256x128xbf16, #tpu.memory_space<vmem>>, %arg8: memref<256x128xf32, #tpu.memory_space<vmem>>) attributes {dimension_semantics = [#tpu.dimension_semantics<parallel>, #tpu.dimension_semantics<parallel>, #tpu.dimension_semantics<arbitrary>], iteration_bounds = array<i64: 2, 1, 9>, scalar_prefetch = 0 : i64, scratch_operands = 1 : i64, tpu.core_type = #tpu.core_type<tc>, window_params = [{transform_indices = @transform_0, window_bounds = array<i64: 256, 128>}, {transform_indices = @transform_1, window_bounds = array<i64: 128, 128>}, {transform_indices = @transform_2, window_bounds = array<i64: 1, 128>}, {transform_indices = @transform_3, window_bounds = array<i64: 1, 128>}, {transform_indices = @transform_4, window_bounds = array<i64: 256, 128>}]} {
    %c0_i32 = arith.constant 0 : i32
    %0 = arith.cmpi eq, %arg2, %c0_i32 : i32
    %1 = arith.extui %0 : i1 to i32
    %c0_i32_0 = arith.constant 0 : i32
    %2 = arith.cmpi ne, %1, %c0_i32_0 : i32
    scf.if %2 {
      %cst_9 = arith.constant 0.000000e+00 : f32
      %12 = vector.broadcast %cst_9 : f32 to vector<256x128xf32>
      %c0_10 = arith.constant 0 : index
      %c0_11 = arith.constant 0 : index
      %13 = vector.load %arg8[%c0_10, %c0_11] : memref<256x128xf32, #tpu.memory_space<vmem>>, vector<256x128xf32>
      tpu.vector_store %arg8[%c0_10, %c0_11], %12 {strides = array<i32>} : memref<256x128xf32, #tpu.memory_space<vmem>>, vector<256x128xf32>,
    } else {
    }
    %c0 = arith.constant 0 : index
    %c0_1 = arith.constant 0 : index
    %3 = vector.load %arg8[%c0, %c0_1] : memref<256x128xf32, #tpu.memory_space<vmem>>, vector<256x128xf32>
    %c0_2 = arith.constant 0 : index
    %c0_3 = arith.constant 0 : index
    %4 = vector.load %arg3[%c0_2, %c0_3] : memref<256x128xbf16, #tpu.memory_space<vmem>>, vector<256x128xbf16>
    %c0_4 = arith.constant 0 : index
    %c0_5 = arith.constant 0 : index
    %5 = vector.load %arg4[%c0_4, %c0_5] : memref<128x128xbf16, #tpu.memory_space<vmem>>, vector<128x128xbf16>
    %cst = arith.constant dense<0.000000e+00> : vector<256x128xf32>
    %6 = tpu.matmul %4, %5, %cst {dimension_numbers = #tpu.dot_dimension_numbers<[1], [0], [0], [1], [0, 0, 1, 1], [], []>} : vector<256x128xbf16>, vector<128x128xbf16>, vector<256x128xf32> -> vector<256x128xf32>
    %7 = arith.addf %3, %6 : vector<256x128xf32>
    %c0_6 = arith.constant 0 : index
    %c0_7 = arith.constant 0 : index
    %8 = vector.load %arg8[%c0_6, %c0_7] : memref<256x128xf32, #tpu.memory_space<vmem>>, vector<256x128xf32>
    tpu.vector_store %arg8[%c0_6, %c0_7], %7 {strides = array<i32>} : memref<256x128xf32, #tpu.memory_space<vmem>>, vector<256x128xf32>,
    %c8_i32 = arith.constant 8 : i32
    %9 = arith.cmpi eq, %arg2, %c8_i32 : i32
    %10 = arith.extui %9 : i1 to i32
    %c0_i32_8 = arith.constant 0 : i32
    %11 = arith.cmpi ne, %10, %c0_i32_8 : i32
    scf.if %11 {
      %c0_9 = arith.constant 0 : index
      %c0_10 = arith.constant 0 : index
      %12 = vector.load %arg8[%c0_9, %c0_10] : memref<256x128xf32, #tpu.memory_space<vmem>>, vector<256x128xf32>
      %c0_11 = arith.constant 0 : index
      %c0_12 = arith.constant 0 : index
      %13 = vector.load %arg5[%c0_11, %c0_12] : memref<1x128xf32, #tpu.memory_space<vmem>>, vector<1x128xf32>
      %14 = vector.broadcast %13 : vector<1x128xf32> to vector<256x128xf32>
      %15 = arith.mulf %12, %14 : vector<256x128xf32>
      %c0_13 = arith.constant 0 : index
      %c0_14 = arith.constant 0 : index
      %16 = vector.load %arg6[%c0_13, %c0_14] : memref<1x128xf32, #tpu.memory_space<vmem>>, vector<1x128xf32>
      %17 = vector.broadcast %16 : vector<1x128xf32> to vector<256x128xf32>
      %18 = arith.addf %15, %17 : vector<256x128xf32>
      %cst_15 = arith.constant 0.000000e+00 : f32
      %19 = vector.broadcast %cst_15 : f32 to vector<256x128xf32>
      %20 = arith.maximumf %18, %19 : vector<256x128xf32>
      %21 = arith.truncf %20 : vector<256x128xf32> to vector<256x128xbf16>
      %c0_16 = arith.constant 0 : index
      %c0_17 = arith.constant 0 : index
      %22 = vector.load %arg7[%c0_16, %c0_17] : memref<256x128xbf16, #tpu.memory_space<vmem>>, vector<256x128xbf16>
      tpu.vector_store %arg7[%c0_16, %c0_17], %21 {strides = array<i32>} : memref<256x128xbf16, #tpu.memory_space<vmem>>, vector<256x128xbf16>,
    } else {
    }
    return
  }
  func.func @transform_0(%arg0: i32, %arg1: i32, %arg2: i32) -> (i32, i32) {
    %c0_i32 = arith.constant 0 : i32
    return %arg0, %arg2 : i32, i32
  }
  func.func @transform_1(%arg0: i32, %arg1: i32, %arg2: i32) -> (i32, i32) {
    %c0_i32 = arith.constant 0 : i32
    return %arg2, %arg1 : i32, i32
  }
  func.func @transform_2(%arg0: i32, %arg1: i32, %arg2: i32) -> (i32, i32) {
    %c0_i32 = arith.constant 0 : i32
    %c0_i32_0 = arith.constant 0 : i32
    return %c0_i32, %arg1 : i32, i32
  }
  func.func @transform_3(%arg0: i32, %arg1: i32, %arg2: i32) -> (i32, i32) {
    %c0_i32 = arith.constant 0 : i32
    %c0_i32_0 = arith.constant 0 : i32
    return %c0_i32, %arg1 : i32, i32
  }
  func.func @transform_4(%arg0: i32, %arg1: i32, %arg2: i32) -> (i32, i32) {
    %c0_i32 = arith.constant 0 : i32
    return %arg0, %arg1 : i32, i32
  }
}

module attributes {stable_mosaic.version = 11 : i64} {
  func.func @kernel(%arg0: i32, %arg1: i32, %arg2: i32, %arg3: memref<128x128xbf16, #tpu.memory_space<vmem>>, %arg4: memref<128x128xbf16, #tpu.memory_space<vmem>>, %arg5: memref<1x128xf32, #tpu.memory_space<vmem>>, %arg6: memref<1x128xf32, #tpu.memory_space<vmem>>, %arg7: memref<128x128xbf16, #tpu.memory_space<vmem>>, %arg8: memref<128x128xf32, #tpu.memory_space<vmem>>) attributes {dimension_semantics = [#tpu.dimension_semantics<parallel>, #tpu.dimension_semantics<parallel>, #tpu.dimension_semantics<arbitrary>], iteration_bounds = array<i64: 1, 1, 1>, scalar_prefetch = 0 : i64, scratch_operands = 1 : i64, tpu.core_type = #tpu.core_type<tc>, window_params = [{transform_indices = @transform_0, window_bounds = array<i64: 128, 128>}, {transform_indices = @transform_1, window_bounds = array<i64: 128, 128>}, {transform_indices = @transform_2, window_bounds = array<i64: 1, 128>}, {transform_indices = @transform_3, window_bounds = array<i64: 1, 128>}, {transform_indices = @transform_4, window_bounds = array<i64: 128, 128>}]} {
    %c0_i32 = arith.constant 0 : i32
    %0 = arith.cmpi eq, %arg2, %c0_i32 : i32
    %1 = arith.extui %0 : i1 to i32
    %c0_i32_0 = arith.constant 0 : i32
    %2 = arith.cmpi ne, %1, %c0_i32_0 : i32
    scf.if %2 {
      %cst_10 = arith.constant 0.000000e+00 : f32
      %12 = vector.broadcast %cst_10 : f32 to vector<128x128xf32>
      %c0_11 = arith.constant 0 : index
      %c0_12 = arith.constant 0 : index
      %13 = vector.load %arg8[%c0_11, %c0_12] : memref<128x128xf32, #tpu.memory_space<vmem>>, vector<128x128xf32>
      tpu.vector_store %arg8[%c0_11, %c0_12], %12 {strides = array<i32>} : memref<128x128xf32, #tpu.memory_space<vmem>>, vector<128x128xf32>,
    } else {
    }
    %c0 = arith.constant 0 : index
    %c0_1 = arith.constant 0 : index
    %3 = vector.load %arg8[%c0, %c0_1] : memref<128x128xf32, #tpu.memory_space<vmem>>, vector<128x128xf32>
    %c0_2 = arith.constant 0 : index
    %c0_3 = arith.constant 0 : index
    %4 = vector.load %arg3[%c0_2, %c0_3] : memref<128x128xbf16, #tpu.memory_space<vmem>>, vector<128x128xbf16>
    %c0_4 = arith.constant 0 : index
    %c0_5 = arith.constant 0 : index
    %5 = vector.load %arg4[%c0_4, %c0_5] : memref<128x128xbf16, #tpu.memory_space<vmem>>, vector<128x128xbf16>
    %cst = arith.constant dense<0.000000e+00> : vector<128x128xf32>
    %6 = tpu.matmul %4, %5, %cst {dimension_numbers = #tpu.dot_dimension_numbers<[1], [0], [0], [1], [0, 0, 1, 1], [], []>} : vector<128x128xbf16>, vector<128x128xbf16>, vector<128x128xf32> -> vector<128x128xf32>
    %7 = arith.addf %3, %6 : vector<128x128xf32>
    %c0_6 = arith.constant 0 : index
    %c0_7 = arith.constant 0 : index
    %8 = vector.load %arg8[%c0_6, %c0_7] : memref<128x128xf32, #tpu.memory_space<vmem>>, vector<128x128xf32>
    tpu.vector_store %arg8[%c0_6, %c0_7], %7 {strides = array<i32>} : memref<128x128xf32, #tpu.memory_space<vmem>>, vector<128x128xf32>,
    %c0_i32_8 = arith.constant 0 : i32
    %9 = arith.cmpi eq, %arg2, %c0_i32_8 : i32
    %10 = arith.extui %9 : i1 to i32
    %c0_i32_9 = arith.constant 0 : i32
    %11 = arith.cmpi ne, %10, %c0_i32_9 : i32
    scf.if %11 {
      %c0_10 = arith.constant 0 : index
      %c0_11 = arith.constant 0 : index
      %12 = vector.load %arg8[%c0_10, %c0_11] : memref<128x128xf32, #tpu.memory_space<vmem>>, vector<128x128xf32>
      %c0_12 = arith.constant 0 : index
      %c0_13 = arith.constant 0 : index
      %13 = vector.load %arg5[%c0_12, %c0_13] : memref<1x128xf32, #tpu.memory_space<vmem>>, vector<1x128xf32>
      %14 = vector.broadcast %13 : vector<1x128xf32> to vector<128x128xf32>
      %15 = arith.mulf %12, %14 : vector<128x128xf32>
      %c0_14 = arith.constant 0 : index
      %c0_15 = arith.constant 0 : index
      %16 = vector.load %arg6[%c0_14, %c0_15] : memref<1x128xf32, #tpu.memory_space<vmem>>, vector<1x128xf32>
      %17 = vector.broadcast %16 : vector<1x128xf32> to vector<128x128xf32>
      %18 = arith.addf %15, %17 : vector<128x128xf32>
      %cst_16 = arith.constant 0.000000e+00 : f32
      %19 = vector.broadcast %cst_16 : f32 to vector<128x128xf32>
      %20 = arith.maximumf %18, %19 : vector<128x128xf32>
      %21 = arith.truncf %20 : vector<128x128xf32> to vector<128x128xbf16>
      %c0_17 = arith.constant 0 : index
      %c0_18 = arith.constant 0 : index
      %22 = vector.load %arg7[%c0_17, %c0_18] : memref<128x128xbf16, #tpu.memory_space<vmem>>, vector<128x128xbf16>
      tpu.vector_store %arg7[%c0_17, %c0_18], %21 {strides = array<i32>} : memref<128x128xbf16, #tpu.memory_space<vmem>>, vector<128x128xbf16>,
    } else {
    }
    return
  }
  func.func @transform_0(%arg0: i32, %arg1: i32, %arg2: i32) -> (i32, i32) {
    %c0_i32 = arith.constant 0 : i32
    return %arg0, %arg2 : i32, i32
  }
  func.func @transform_1(%arg0: i32, %arg1: i32, %arg2: i32) -> (i32, i32) {
    %c0_i32 = arith.constant 0 : i32
    return %arg2, %arg1 : i32, i32
  }
  func.func @transform_2(%arg0: i32, %arg1: i32, %arg2: i32) -> (i32, i32) {
    %c0_i32 = arith.constant 0 : i32
    %c0_i32_0 = arith.constant 0 : i32
    return %c0_i32, %arg1 : i32, i32
  }
  func.func @transform_3(%arg0: i32, %arg1: i32, %arg2: i32) -> (i32, i32) {
    %c0_i32 = arith.constant 0 : i32
    %c0_i32_0 = arith.constant 0 : i32
    return %c0_i32, %arg1 : i32, i32
  }
  func.func @transform_4(%arg0: i32, %arg1: i32, %arg2: i32) -> (i32, i32) {
    %c0_i32 = arith.constant 0 : i32
    return %arg0, %arg1 : i32, i32
  }
}

module attributes {stable_mosaic.version = 11 : i64} {
  func.func @kernel(%arg0: i32, %arg1: i32, %arg2: i32, %arg3: memref<128x128xbf16, #tpu.memory_space<vmem>>, %arg4: memref<128x128xbf16, #tpu.memory_space<vmem>>, %arg5: memref<1x128xf32, #tpu.memory_space<vmem>>, %arg6: memref<1x128xf32, #tpu.memory_space<vmem>>, %arg7: memref<128x128xbf16, #tpu.memory_space<vmem>>, %arg8: memref<128x128xf32, #tpu.memory_space<vmem>>) attributes {dimension_semantics = [#tpu.dimension_semantics<parallel>, #tpu.dimension_semantics<parallel>, #tpu.dimension_semantics<arbitrary>], iteration_bounds = array<i64: 1, 1, 9>, scalar_prefetch = 0 : i64, scratch_operands = 1 : i64, tpu.core_type = #tpu.core_type<tc>, window_params = [{transform_indices = @transform_0, window_bounds = array<i64: 128, 128>}, {transform_indices = @transform_1, window_bounds = array<i64: 128, 128>}, {transform_indices = @transform_2, window_bounds = array<i64: 1, 128>}, {transform_indices = @transform_3, window_bounds = array<i64: 1, 128>}, {transform_indices = @transform_4, window_bounds = array<i64: 128, 128>}]} {
    %c0_i32 = arith.constant 0 : i32
    %0 = arith.cmpi eq, %arg2, %c0_i32 : i32
    %1 = arith.extui %0 : i1 to i32
    %c0_i32_0 = arith.constant 0 : i32
    %2 = arith.cmpi ne, %1, %c0_i32_0 : i32
    scf.if %2 {
      %cst_9 = arith.constant 0.000000e+00 : f32
      %12 = vector.broadcast %cst_9 : f32 to vector<128x128xf32>
      %c0_10 = arith.constant 0 : index
      %c0_11 = arith.constant 0 : index
      %13 = vector.load %arg8[%c0_10, %c0_11] : memref<128x128xf32, #tpu.memory_space<vmem>>, vector<128x128xf32>
      tpu.vector_store %arg8[%c0_10, %c0_11], %12 {strides = array<i32>} : memref<128x128xf32, #tpu.memory_space<vmem>>, vector<128x128xf32>,
    } else {
    }
    %c0 = arith.constant 0 : index
    %c0_1 = arith.constant 0 : index
    %3 = vector.load %arg8[%c0, %c0_1] : memref<128x128xf32, #tpu.memory_space<vmem>>, vector<128x128xf32>
    %c0_2 = arith.constant 0 : index
    %c0_3 = arith.constant 0 : index
    %4 = vector.load %arg3[%c0_2, %c0_3] : memref<128x128xbf16, #tpu.memory_space<vmem>>, vector<128x128xbf16>
    %c0_4 = arith.constant 0 : index
    %c0_5 = arith.constant 0 : index
    %5 = vector.load %arg4[%c0_4, %c0_5] : memref<128x128xbf16, #tpu.memory_space<vmem>>, vector<128x128xbf16>
    %cst = arith.constant dense<0.000000e+00> : vector<128x128xf32>
    %6 = tpu.matmul %4, %5, %cst {dimension_numbers = #tpu.dot_dimension_numbers<[1], [0], [0], [1], [0, 0, 1, 1], [], []>} : vector<128x128xbf16>, vector<128x128xbf16>, vector<128x128xf32> -> vector<128x128xf32>
    %7 = arith.addf %3, %6 : vector<128x128xf32>
    %c0_6 = arith.constant 0 : index
    %c0_7 = arith.constant 0 : index
    %8 = vector.load %arg8[%c0_6, %c0_7] : memref<128x128xf32, #tpu.memory_space<vmem>>, vector<128x128xf32>
    tpu.vector_store %arg8[%c0_6, %c0_7], %7 {strides = array<i32>} : memref<128x128xf32, #tpu.memory_space<vmem>>, vector<128x128xf32>,
    %c8_i32 = arith.constant 8 : i32
    %9 = arith.cmpi eq, %arg2, %c8_i32 : i32
    %10 = arith.extui %9 : i1 to i32
    %c0_i32_8 = arith.constant 0 : i32
    %11 = arith.cmpi ne, %10, %c0_i32_8 : i32
    scf.if %11 {
      %c0_9 = arith.constant 0 : index
      %c0_10 = arith.constant 0 : index
      %12 = vector.load %arg8[%c0_9, %c0_10] : memref<128x128xf32, #tpu.memory_space<vmem>>, vector<128x128xf32>
      %c0_11 = arith.constant 0 : index
      %c0_12 = arith.constant 0 : index
      %13 = vector.load %arg5[%c0_11, %c0_12] : memref<1x128xf32, #tpu.memory_space<vmem>>, vector<1x128xf32>
      %14 = vector.broadcast %13 : vector<1x128xf32> to vector<128x128xf32>
      %15 = arith.mulf %12, %14 : vector<128x128xf32>
      %c0_13 = arith.constant 0 : index
      %c0_14 = arith.constant 0 : index
      %16 = vector.load %arg6[%c0_13, %c0_14] : memref<1x128xf32, #tpu.memory_space<vmem>>, vector<1x128xf32>
      %17 = vector.broadcast %16 : vector<1x128xf32> to vector<128x128xf32>
      %18 = arith.addf %15, %17 : vector<128x128xf32>
      %cst_15 = arith.constant 0.000000e+00 : f32
      %19 = vector.broadcast %cst_15 : f32 to vector<128x128xf32>
      %20 = arith.maximumf %18, %19 : vector<128x128xf32>
      %21 = arith.truncf %20 : vector<128x128xf32> to vector<128x128xbf16>
      %c0_16 = arith.constant 0 : index
      %c0_17 = arith.constant 0 : index
      %22 = vector.load %arg7[%c0_16, %c0_17] : memref<128x128xbf16, #tpu.memory_space<vmem>>, vector<128x128xbf16>
      tpu.vector_store %arg7[%c0_16, %c0_17], %21 {strides = array<i32>} : memref<128x128xbf16, #tpu.memory_space<vmem>>, vector<128x128xbf16>,
    } else {
    }
    return
  }
  func.func @transform_0(%arg0: i32, %arg1: i32, %arg2: i32) -> (i32, i32) {
    %c0_i32 = arith.constant 0 : i32
    return %arg0, %arg2 : i32, i32
  }
  func.func @transform_1(%arg0: i32, %arg1: i32, %arg2: i32) -> (i32, i32) {
    %c0_i32 = arith.constant 0 : i32
    return %arg2, %arg1 : i32, i32
  }
  func.func @transform_2(%arg0: i32, %arg1: i32, %arg2: i32) -> (i32, i32) {
    %c0_i32 = arith.constant 0 : i32
    %c0_i32_0 = arith.constant 0 : i32
    return %c0_i32, %arg1 : i32, i32
  }
  func.func @transform_3(%arg0: i32, %arg1: i32, %arg2: i32) -> (i32, i32) {
    %c0_i32 = arith.constant 0 : i32
    %c0_i32_0 = arith.constant 0 : i32
    return %c0_i32, %arg1 : i32, i32
  }
  func.func @transform_4(%arg0: i32, %arg1: i32, %arg2: i32) -> (i32, i32) {
    %c0_i32 = arith.constant 0 : i32
    return %arg0, %arg1 : i32, i32
  }
}

module attributes {stable_mosaic.version = 11 : i64} {
  func.func @kernel(%arg0: i32, %arg1: i32, %arg2: i32, %arg3: memref<128x128xbf16, #tpu.memory_space<vmem>>, %arg4: memref<128x256xbf16, #tpu.memory_space<vmem>>, %arg5: memref<1x256xf32, #tpu.memory_space<vmem>>, %arg6: memref<1x256xf32, #tpu.memory_space<vmem>>, %arg7: memref<128x256xbf16, #tpu.memory_space<vmem>>, %arg8: memref<128x256xbf16, #tpu.memory_space<vmem>>, %arg9: memref<128x256xf32, #tpu.memory_space<vmem>>) attributes {dimension_semantics = [#tpu.dimension_semantics<parallel>, #tpu.dimension_semantics<parallel>, #tpu.dimension_semantics<arbitrary>], iteration_bounds = array<i64: 1, 1, 1>, scalar_prefetch = 0 : i64, scratch_operands = 1 : i64, tpu.core_type = #tpu.core_type<tc>, window_params = [{transform_indices = @transform_0, window_bounds = array<i64: 128, 128>}, {transform_indices = @transform_1, window_bounds = array<i64: 128, 256>}, {transform_indices = @transform_2, window_bounds = array<i64: 1, 256>}, {transform_indices = @transform_3, window_bounds = array<i64: 1, 256>}, {transform_indices = @transform_4, window_bounds = array<i64: 128, 256>}, {transform_indices = @transform_5, window_bounds = array<i64: 128, 256>}]} {
    %c0_i32 = arith.constant 0 : i32
    %0 = arith.cmpi eq, %arg2, %c0_i32 : i32
    %1 = arith.extui %0 : i1 to i32
    %c0_i32_0 = arith.constant 0 : i32
    %2 = arith.cmpi ne, %1, %c0_i32_0 : i32
    scf.if %2 {
      %cst_10 = arith.constant 0.000000e+00 : f32
      %12 = vector.broadcast %cst_10 : f32 to vector<128x256xf32>
      %c0_11 = arith.constant 0 : index
      %c0_12 = arith.constant 0 : index
      %13 = vector.load %arg9[%c0_11, %c0_12] : memref<128x256xf32, #tpu.memory_space<vmem>>, vector<128x256xf32>
      tpu.vector_store %arg9[%c0_11, %c0_12], %12 {strides = array<i32>} : memref<128x256xf32, #tpu.memory_space<vmem>>, vector<128x256xf32>,
    } else {
    }
    %c0 = arith.constant 0 : index
    %c0_1 = arith.constant 0 : index
    %3 = vector.load %arg9[%c0, %c0_1] : memref<128x256xf32, #tpu.memory_space<vmem>>, vector<128x256xf32>
    %c0_2 = arith.constant 0 : index
    %c0_3 = arith.constant 0 : index
    %4 = vector.load %arg3[%c0_2, %c0_3] : memref<128x128xbf16, #tpu.memory_space<vmem>>, vector<128x128xbf16>
    %c0_4 = arith.constant 0 : index
    %c0_5 = arith.constant 0 : index
    %5 = vector.load %arg4[%c0_4, %c0_5] : memref<128x256xbf16, #tpu.memory_space<vmem>>, vector<128x256xbf16>
    %cst = arith.constant dense<0.000000e+00> : vector<128x256xf32>
    %6 = tpu.matmul %4, %5, %cst {dimension_numbers = #tpu.dot_dimension_numbers<[1], [0], [0], [1], [0, 0, 1, 1], [], []>} : vector<128x128xbf16>, vector<128x256xbf16>, vector<128x256xf32> -> vector<128x256xf32>
    %7 = arith.addf %3, %6 : vector<128x256xf32>
    %c0_6 = arith.constant 0 : index
    %c0_7 = arith.constant 0 : index
    %8 = vector.load %arg9[%c0_6, %c0_7] : memref<128x256xf32, #tpu.memory_space<vmem>>, vector<128x256xf32>
    tpu.vector_store %arg9[%c0_6, %c0_7], %7 {strides = array<i32>} : memref<128x256xf32, #tpu.memory_space<vmem>>, vector<128x256xf32>,
    %c0_i32_8 = arith.constant 0 : i32
    %9 = arith.cmpi eq, %arg2, %c0_i32_8 : i32
    %10 = arith.extui %9 : i1 to i32
    %c0_i32_9 = arith.constant 0 : i32
    %11 = arith.cmpi ne, %10, %c0_i32_9 : i32
    scf.if %11 {
      %c0_10 = arith.constant 0 : index
      %c0_11 = arith.constant 0 : index
      %12 = vector.load %arg9[%c0_10, %c0_11] : memref<128x256xf32, #tpu.memory_space<vmem>>, vector<128x256xf32>
      %c0_12 = arith.constant 0 : index
      %c0_13 = arith.constant 0 : index
      %13 = vector.load %arg5[%c0_12, %c0_13] : memref<1x256xf32, #tpu.memory_space<vmem>>, vector<1x256xf32>
      %14 = vector.broadcast %13 : vector<1x256xf32> to vector<128x256xf32>
      %15 = arith.mulf %12, %14 : vector<128x256xf32>
      %c0_14 = arith.constant 0 : index
      %c0_15 = arith.constant 0 : index
      %16 = vector.load %arg6[%c0_14, %c0_15] : memref<1x256xf32, #tpu.memory_space<vmem>>, vector<1x256xf32>
      %17 = vector.broadcast %16 : vector<1x256xf32> to vector<128x256xf32>
      %18 = arith.addf %15, %17 : vector<128x256xf32>
      %c0_16 = arith.constant 0 : index
      %c0_17 = arith.constant 0 : index
      %19 = vector.load %arg7[%c0_16, %c0_17] : memref<128x256xbf16, #tpu.memory_space<vmem>>, vector<128x256xbf16>
      %20 = arith.extf %19 : vector<128x256xbf16> to vector<128x256xf32>
      %21 = arith.addf %18, %20 : vector<128x256xf32>
      %cst_18 = arith.constant 0.000000e+00 : f32
      %22 = vector.broadcast %cst_18 : f32 to vector<128x256xf32>
      %23 = arith.maximumf %21, %22 : vector<128x256xf32>
      %24 = arith.truncf %23 : vector<128x256xf32> to vector<128x256xbf16>
      %c0_19 = arith.constant 0 : index
      %c0_20 = arith.constant 0 : index
      %25 = vector.load %arg8[%c0_19, %c0_20] : memref<128x256xbf16, #tpu.memory_space<vmem>>, vector<128x256xbf16>
      tpu.vector_store %arg8[%c0_19, %c0_20], %24 {strides = array<i32>} : memref<128x256xbf16, #tpu.memory_space<vmem>>, vector<128x256xbf16>,
    } else {
    }
    return
  }
  func.func @transform_0(%arg0: i32, %arg1: i32, %arg2: i32) -> (i32, i32) {
    %c0_i32 = arith.constant 0 : i32
    return %arg0, %arg2 : i32, i32
  }
  func.func @transform_1(%arg0: i32, %arg1: i32, %arg2: i32) -> (i32, i32) {
    %c0_i32 = arith.constant 0 : i32
    return %arg2, %arg1 : i32, i32
  }
  func.func @transform_2(%arg0: i32, %arg1: i32, %arg2: i32) -> (i32, i32) {
    %c0_i32 = arith.constant 0 : i32
    %c0_i32_0 = arith.constant 0 : i32
    return %c0_i32, %arg1 : i32, i32
  }
  func.func @transform_3(%arg0: i32, %arg1: i32, %arg2: i32) -> (i32, i32) {
    %c0_i32 = arith.constant 0 : i32
    %c0_i32_0 = arith.constant 0 : i32
    return %c0_i32, %arg1 : i32, i32
  }
  func.func @transform_4(%arg0: i32, %arg1: i32, %arg2: i32) -> (i32, i32) {
    %c0_i32 = arith.constant 0 : i32
    return %arg0, %arg1 : i32, i32
  }
  func.func @transform_5(%arg0: i32, %arg1: i32, %arg2: i32) -> (i32, i32) {
    %c0_i32 = arith.constant 0 : i32
    return %arg0, %arg1 : i32, i32
  }
}

module attributes {stable_mosaic.version = 11 : i64} {
  func.func @kernel(%arg0: i32, %arg1: i32, %arg2: i32, %arg3: memref<128x256xbf16, #tpu.memory_space<vmem>>, %arg4: memref<256x128xbf16, #tpu.memory_space<vmem>>, %arg5: memref<1x128xf32, #tpu.memory_space<vmem>>, %arg6: memref<1x128xf32, #tpu.memory_space<vmem>>, %arg7: memref<128x128xbf16, #tpu.memory_space<vmem>>, %arg8: memref<128x128xf32, #tpu.memory_space<vmem>>) attributes {dimension_semantics = [#tpu.dimension_semantics<parallel>, #tpu.dimension_semantics<parallel>, #tpu.dimension_semantics<arbitrary>], iteration_bounds = array<i64: 1, 1, 1>, scalar_prefetch = 0 : i64, scratch_operands = 1 : i64, tpu.core_type = #tpu.core_type<tc>, window_params = [{transform_indices = @transform_0, window_bounds = array<i64: 128, 256>}, {transform_indices = @transform_1, window_bounds = array<i64: 256, 128>}, {transform_indices = @transform_2, window_bounds = array<i64: 1, 128>}, {transform_indices = @transform_3, window_bounds = array<i64: 1, 128>}, {transform_indices = @transform_4, window_bounds = array<i64: 128, 128>}]} {
    %c0_i32 = arith.constant 0 : i32
    %0 = arith.cmpi eq, %arg2, %c0_i32 : i32
    %1 = arith.extui %0 : i1 to i32
    %c0_i32_0 = arith.constant 0 : i32
    %2 = arith.cmpi ne, %1, %c0_i32_0 : i32
    scf.if %2 {
      %cst_10 = arith.constant 0.000000e+00 : f32
      %12 = vector.broadcast %cst_10 : f32 to vector<128x128xf32>
      %c0_11 = arith.constant 0 : index
      %c0_12 = arith.constant 0 : index
      %13 = vector.load %arg8[%c0_11, %c0_12] : memref<128x128xf32, #tpu.memory_space<vmem>>, vector<128x128xf32>
      tpu.vector_store %arg8[%c0_11, %c0_12], %12 {strides = array<i32>} : memref<128x128xf32, #tpu.memory_space<vmem>>, vector<128x128xf32>,
    } else {
    }
    %c0 = arith.constant 0 : index
    %c0_1 = arith.constant 0 : index
    %3 = vector.load %arg8[%c0, %c0_1] : memref<128x128xf32, #tpu.memory_space<vmem>>, vector<128x128xf32>
    %c0_2 = arith.constant 0 : index
    %c0_3 = arith.constant 0 : index
    %4 = vector.load %arg3[%c0_2, %c0_3] : memref<128x256xbf16, #tpu.memory_space<vmem>>, vector<128x256xbf16>
    %c0_4 = arith.constant 0 : index
    %c0_5 = arith.constant 0 : index
    %5 = vector.load %arg4[%c0_4, %c0_5] : memref<256x128xbf16, #tpu.memory_space<vmem>>, vector<256x128xbf16>
    %cst = arith.constant dense<0.000000e+00> : vector<128x128xf32>
    %6 = tpu.matmul %4, %5, %cst {dimension_numbers = #tpu.dot_dimension_numbers<[1], [0], [0], [1], [0, 0, 1, 1], [], []>} : vector<128x256xbf16>, vector<256x128xbf16>, vector<128x128xf32> -> vector<128x128xf32>
    %7 = arith.addf %3, %6 : vector<128x128xf32>
    %c0_6 = arith.constant 0 : index
    %c0_7 = arith.constant 0 : index
    %8 = vector.load %arg8[%c0_6, %c0_7] : memref<128x128xf32, #tpu.memory_space<vmem>>, vector<128x128xf32>
    tpu.vector_store %arg8[%c0_6, %c0_7], %7 {strides = array<i32>} : memref<128x128xf32, #tpu.memory_space<vmem>>, vector<128x128xf32>,
    %c0_i32_8 = arith.constant 0 : i32
    %9 = arith.cmpi eq, %arg2, %c0_i32_8 : i32
    %10 = arith.extui %9 : i1 to i32
    %c0_i32_9 = arith.constant 0 : i32
    %11 = arith.cmpi ne, %10, %c0_i32_9 : i32
    scf.if %11 {
      %c0_10 = arith.constant 0 : index
      %c0_11 = arith.constant 0 : index
      %12 = vector.load %arg8[%c0_10, %c0_11] : memref<128x128xf32, #tpu.memory_space<vmem>>, vector<128x128xf32>
      %c0_12 = arith.constant 0 : index
      %c0_13 = arith.constant 0 : index
      %13 = vector.load %arg5[%c0_12, %c0_13] : memref<1x128xf32, #tpu.memory_space<vmem>>, vector<1x128xf32>
      %14 = vector.broadcast %13 : vector<1x128xf32> to vector<128x128xf32>
      %15 = arith.mulf %12, %14 : vector<128x128xf32>
      %c0_14 = arith.constant 0 : index
      %c0_15 = arith.constant 0 : index
      %16 = vector.load %arg6[%c0_14, %c0_15] : memref<1x128xf32, #tpu.memory_space<vmem>>, vector<1x128xf32>
      %17 = vector.broadcast %16 : vector<1x128xf32> to vector<128x128xf32>
      %18 = arith.addf %15, %17 : vector<128x128xf32>
      %cst_16 = arith.constant 0.000000e+00 : f32
      %19 = vector.broadcast %cst_16 : f32 to vector<128x128xf32>
      %20 = arith.maximumf %18, %19 : vector<128x128xf32>
      %21 = arith.truncf %20 : vector<128x128xf32> to vector<128x128xbf16>
      %c0_17 = arith.constant 0 : index
      %c0_18 = arith.constant 0 : index
      %22 = vector.load %arg7[%c0_17, %c0_18] : memref<128x128xbf16, #tpu.memory_space<vmem>>, vector<128x128xbf16>
      tpu.vector_store %arg7[%c0_17, %c0_18], %21 {strides = array<i32>} : memref<128x128xbf16, #tpu.memory_space<vmem>>, vector<128x128xbf16>,
    } else {
    }
    return
  }
  func.func @transform_0(%arg0: i32, %arg1: i32, %arg2: i32) -> (i32, i32) {
    %c0_i32 = arith.constant 0 : i32
    return %arg0, %arg2 : i32, i32
  }
  func.func @transform_1(%arg0: i32, %arg1: i32, %arg2: i32) -> (i32, i32) {
    %c0_i32 = arith.constant 0 : i32
    return %arg2, %arg1 : i32, i32
  }
  func.func @transform_2(%arg0: i32, %arg1: i32, %arg2: i32) -> (i32, i32) {
    %c0_i32 = arith.constant 0 : i32
    %c0_i32_0 = arith.constant 0 : i32
    return %c0_i32, %arg1 : i32, i32
  }
  func.func @transform_3(%arg0: i32, %arg1: i32, %arg2: i32) -> (i32, i32) {
    %c0_i32 = arith.constant 0 : i32
    %c0_i32_0 = arith.constant 0 : i32
    return %c0_i32, %arg1 : i32, i32
  }
  func.func @transform_4(%arg0: i32, %arg1: i32, %arg2: i32) -> (i32, i32) {
    %c0_i32 = arith.constant 0 : i32
    return %arg0, %arg1 : i32, i32
  }
}

module attributes {stable_mosaic.version = 11 : i64} {
  func.func @kernel(%arg0: i32, %arg1: i32, %arg2: i32, %arg3: memref<128x128xbf16, #tpu.memory_space<vmem>>, %arg4: memref<128x256xbf16, #tpu.memory_space<vmem>>, %arg5: memref<1x256xf32, #tpu.memory_space<vmem>>, %arg6: memref<1x256xf32, #tpu.memory_space<vmem>>, %arg7: memref<128x256xbf16, #tpu.memory_space<vmem>>, %arg8: memref<128x256xf32, #tpu.memory_space<vmem>>) attributes {dimension_semantics = [#tpu.dimension_semantics<parallel>, #tpu.dimension_semantics<parallel>, #tpu.dimension_semantics<arbitrary>], iteration_bounds = array<i64: 1, 1, 1>, scalar_prefetch = 0 : i64, scratch_operands = 1 : i64, tpu.core_type = #tpu.core_type<tc>, window_params = [{transform_indices = @transform_0, window_bounds = array<i64: 128, 128>}, {transform_indices = @transform_1, window_bounds = array<i64: 128, 256>}, {transform_indices = @transform_2, window_bounds = array<i64: 1, 256>}, {transform_indices = @transform_3, window_bounds = array<i64: 1, 256>}, {transform_indices = @transform_4, window_bounds = array<i64: 128, 256>}]} {
    %c0_i32 = arith.constant 0 : i32
    %0 = arith.cmpi eq, %arg2, %c0_i32 : i32
    %1 = arith.extui %0 : i1 to i32
    %c0_i32_0 = arith.constant 0 : i32
    %2 = arith.cmpi ne, %1, %c0_i32_0 : i32
    scf.if %2 {
      %cst_10 = arith.constant 0.000000e+00 : f32
      %12 = vector.broadcast %cst_10 : f32 to vector<128x256xf32>
      %c0_11 = arith.constant 0 : index
      %c0_12 = arith.constant 0 : index
      %13 = vector.load %arg8[%c0_11, %c0_12] : memref<128x256xf32, #tpu.memory_space<vmem>>, vector<128x256xf32>
      tpu.vector_store %arg8[%c0_11, %c0_12], %12 {strides = array<i32>} : memref<128x256xf32, #tpu.memory_space<vmem>>, vector<128x256xf32>,
    } else {
    }
    %c0 = arith.constant 0 : index
    %c0_1 = arith.constant 0 : index
    %3 = vector.load %arg8[%c0, %c0_1] : memref<128x256xf32, #tpu.memory_space<vmem>>, vector<128x256xf32>
    %c0_2 = arith.constant 0 : index
    %c0_3 = arith.constant 0 : index
    %4 = vector.load %arg3[%c0_2, %c0_3] : memref<128x128xbf16, #tpu.memory_space<vmem>>, vector<128x128xbf16>
    %c0_4 = arith.constant 0 : index
    %c0_5 = arith.constant 0 : index
    %5 = vector.load %arg4[%c0_4, %c0_5] : memref<128x256xbf16, #tpu.memory_space<vmem>>, vector<128x256xbf16>
    %cst = arith.constant dense<0.000000e+00> : vector<128x256xf32>
    %6 = tpu.matmul %4, %5, %cst {dimension_numbers = #tpu.dot_dimension_numbers<[1], [0], [0], [1], [0, 0, 1, 1], [], []>} : vector<128x128xbf16>, vector<128x256xbf16>, vector<128x256xf32> -> vector<128x256xf32>
    %7 = arith.addf %3, %6 : vector<128x256xf32>
    %c0_6 = arith.constant 0 : index
    %c0_7 = arith.constant 0 : index
    %8 = vector.load %arg8[%c0_6, %c0_7] : memref<128x256xf32, #tpu.memory_space<vmem>>, vector<128x256xf32>
    tpu.vector_store %arg8[%c0_6, %c0_7], %7 {strides = array<i32>} : memref<128x256xf32, #tpu.memory_space<vmem>>, vector<128x256xf32>,
    %c0_i32_8 = arith.constant 0 : i32
    %9 = arith.cmpi eq, %arg2, %c0_i32_8 : i32
    %10 = arith.extui %9 : i1 to i32
    %c0_i32_9 = arith.constant 0 : i32
    %11 = arith.cmpi ne, %10, %c0_i32_9 : i32
    scf.if %11 {
      %c0_10 = arith.constant 0 : index
      %c0_11 = arith.constant 0 : index
      %12 = vector.load %arg8[%c0_10, %c0_11] : memref<128x256xf32, #tpu.memory_space<vmem>>, vector<128x256xf32>
      %c0_12 = arith.constant 0 : index
      %c0_13 = arith.constant 0 : index
      %13 = vector.load %arg5[%c0_12, %c0_13] : memref<1x256xf32, #tpu.memory_space<vmem>>, vector<1x256xf32>
      %14 = vector.broadcast %13 : vector<1x256xf32> to vector<128x256xf32>
      %15 = arith.mulf %12, %14 : vector<128x256xf32>
      %c0_14 = arith.constant 0 : index
      %c0_15 = arith.constant 0 : index
      %16 = vector.load %arg6[%c0_14, %c0_15] : memref<1x256xf32, #tpu.memory_space<vmem>>, vector<1x256xf32>
      %17 = vector.broadcast %16 : vector<1x256xf32> to vector<128x256xf32>
      %18 = arith.addf %15, %17 : vector<128x256xf32>
      %19 = arith.truncf %18 : vector<128x256xf32> to vector<128x256xbf16>
      %c0_16 = arith.constant 0 : index
      %c0_17 = arith.constant 0 : index
      %20 = vector.load %arg7[%c0_16, %c0_17] : memref<128x256xbf16, #tpu.memory_space<vmem>>, vector<128x256xbf16>
      tpu.vector_store %arg7[%c0_16, %c0_17], %19 {strides = array<i32>} : memref<128x256xbf16, #tpu.memory_space<vmem>>, vector<128x256xbf16>,
    } else {
    }
    return
  }
  func.func @transform_0(%arg0: i32, %arg1: i32, %arg2: i32) -> (i32, i32) {
    %c0_i32 = arith.constant 0 : i32
    return %arg0, %arg2 : i32, i32
  }
  func.func @transform_1(%arg0: i32, %arg1: i32, %arg2: i32) -> (i32, i32) {
    %c0_i32 = arith.constant 0 : i32
    return %arg2, %arg1 : i32, i32
  }
  func.func @transform_2(%arg0: i32, %arg1: i32, %arg2: i32) -> (i32, i32) {
    %c0_i32 = arith.constant 0 : i32
    %c0_i32_0 = arith.constant 0 : i32
    return %c0_i32, %arg1 : i32, i32
  }
  func.func @transform_3(%arg0: i32, %arg1: i32, %arg2: i32) -> (i32, i32) {
    %c0_i32 = arith.constant 0 : i32
    %c0_i32_0 = arith.constant 0 : i32
    return %c0_i32, %arg1 : i32, i32
  }
  func.func @transform_4(%arg0: i32, %arg1: i32, %arg2: i32) -> (i32, i32) {
    %c0_i32 = arith.constant 0 : i32
    return %arg0, %arg1 : i32, i32
  }
}

module attributes {stable_mosaic.version = 11 : i64} {
  func.func @kernel(%arg0: i32, %arg1: i32, %arg2: i32, %arg3: memref<128x256xbf16, #tpu.memory_space<vmem>>, %arg4: memref<256x128xbf16, #tpu.memory_space<vmem>>, %arg5: memref<1x128xf32, #tpu.memory_space<vmem>>, %arg6: memref<1x128xf32, #tpu.memory_space<vmem>>, %arg7: memref<128x128xbf16, #tpu.memory_space<vmem>>, %arg8: memref<128x128xf32, #tpu.memory_space<vmem>>) attributes {dimension_semantics = [#tpu.dimension_semantics<parallel>, #tpu.dimension_semantics<parallel>, #tpu.dimension_semantics<arbitrary>], iteration_bounds = array<i64: 1, 1, 9>, scalar_prefetch = 0 : i64, scratch_operands = 1 : i64, tpu.core_type = #tpu.core_type<tc>, window_params = [{transform_indices = @transform_0, window_bounds = array<i64: 128, 256>}, {transform_indices = @transform_1, window_bounds = array<i64: 256, 128>}, {transform_indices = @transform_2, window_bounds = array<i64: 1, 128>}, {transform_indices = @transform_3, window_bounds = array<i64: 1, 128>}, {transform_indices = @transform_4, window_bounds = array<i64: 128, 128>}]} {
    %c0_i32 = arith.constant 0 : i32
    %0 = arith.cmpi eq, %arg2, %c0_i32 : i32
    %1 = arith.extui %0 : i1 to i32
    %c0_i32_0 = arith.constant 0 : i32
    %2 = arith.cmpi ne, %1, %c0_i32_0 : i32
    scf.if %2 {
      %cst_9 = arith.constant 0.000000e+00 : f32
      %12 = vector.broadcast %cst_9 : f32 to vector<128x128xf32>
      %c0_10 = arith.constant 0 : index
      %c0_11 = arith.constant 0 : index
      %13 = vector.load %arg8[%c0_10, %c0_11] : memref<128x128xf32, #tpu.memory_space<vmem>>, vector<128x128xf32>
      tpu.vector_store %arg8[%c0_10, %c0_11], %12 {strides = array<i32>} : memref<128x128xf32, #tpu.memory_space<vmem>>, vector<128x128xf32>,
    } else {
    }
    %c0 = arith.constant 0 : index
    %c0_1 = arith.constant 0 : index
    %3 = vector.load %arg8[%c0, %c0_1] : memref<128x128xf32, #tpu.memory_space<vmem>>, vector<128x128xf32>
    %c0_2 = arith.constant 0 : index
    %c0_3 = arith.constant 0 : index
    %4 = vector.load %arg3[%c0_2, %c0_3] : memref<128x256xbf16, #tpu.memory_space<vmem>>, vector<128x256xbf16>
    %c0_4 = arith.constant 0 : index
    %c0_5 = arith.constant 0 : index
    %5 = vector.load %arg4[%c0_4, %c0_5] : memref<256x128xbf16, #tpu.memory_space<vmem>>, vector<256x128xbf16>
    %cst = arith.constant dense<0.000000e+00> : vector<128x128xf32>
    %6 = tpu.matmul %4, %5, %cst {dimension_numbers = #tpu.dot_dimension_numbers<[1], [0], [0], [1], [0, 0, 1, 1], [], []>} : vector<128x256xbf16>, vector<256x128xbf16>, vector<128x128xf32> -> vector<128x128xf32>
    %7 = arith.addf %3, %6 : vector<128x128xf32>
    %c0_6 = arith.constant 0 : index
    %c0_7 = arith.constant 0 : index
    %8 = vector.load %arg8[%c0_6, %c0_7] : memref<128x128xf32, #tpu.memory_space<vmem>>, vector<128x128xf32>
    tpu.vector_store %arg8[%c0_6, %c0_7], %7 {strides = array<i32>} : memref<128x128xf32, #tpu.memory_space<vmem>>, vector<128x128xf32>,
    %c8_i32 = arith.constant 8 : i32
    %9 = arith.cmpi eq, %arg2, %c8_i32 : i32
    %10 = arith.extui %9 : i1 to i32
    %c0_i32_8 = arith.constant 0 : i32
    %11 = arith.cmpi ne, %10, %c0_i32_8 : i32
    scf.if %11 {
      %c0_9 = arith.constant 0 : index
      %c0_10 = arith.constant 0 : index
      %12 = vector.load %arg8[%c0_9, %c0_10] : memref<128x128xf32, #tpu.memory_space<vmem>>, vector<128x128xf32>
      %c0_11 = arith.constant 0 : index
      %c0_12 = arith.constant 0 : index
      %13 = vector.load %arg5[%c0_11, %c0_12] : memref<1x128xf32, #tpu.memory_space<vmem>>, vector<1x128xf32>
      %14 = vector.broadcast %13 : vector<1x128xf32> to vector<128x128xf32>
      %15 = arith.mulf %12, %14 : vector<128x128xf32>
      %c0_13 = arith.constant 0 : index
      %c0_14 = arith.constant 0 : index
      %16 = vector.load %arg6[%c0_13, %c0_14] : memref<1x128xf32, #tpu.memory_space<vmem>>, vector<1x128xf32>
      %17 = vector.broadcast %16 : vector<1x128xf32> to vector<128x128xf32>
      %18 = arith.addf %15, %17 : vector<128x128xf32>
      %cst_15 = arith.constant 0.000000e+00 : f32
      %19 = vector.broadcast %cst_15 : f32 to vector<128x128xf32>
      %20 = arith.maximumf %18, %19 : vector<128x128xf32>
      %21 = arith.truncf %20 : vector<128x128xf32> to vector<128x128xbf16>
      %c0_16 = arith.constant 0 : index
      %c0_17 = arith.constant 0 : index
      %22 = vector.load %arg7[%c0_16, %c0_17] : memref<128x128xbf16, #tpu.memory_space<vmem>>, vector<128x128xbf16>
      tpu.vector_store %arg7[%c0_16, %c0_17], %21 {strides = array<i32>} : memref<128x128xbf16, #tpu.memory_space<vmem>>, vector<128x128xbf16>,
    } else {
    }
    return
  }
  func.func @transform_0(%arg0: i32, %arg1: i32, %arg2: i32) -> (i32, i32) {
    %c0_i32 = arith.constant 0 : i32
    return %arg0, %arg2 : i32, i32
  }
  func.func @transform_1(%arg0: i32, %arg1: i32, %arg2: i32) -> (i32, i32) {
    %c0_i32 = arith.constant 0 : i32
    return %arg2, %arg1 : i32, i32
  }
  func.func @transform_2(%arg0: i32, %arg1: i32, %arg2: i32) -> (i32, i32) {
    %c0_i32 = arith.constant 0 : i32
    %c0_i32_0 = arith.constant 0 : i32
    return %c0_i32, %arg1 : i32, i32
  }
  func.func @transform_3(%arg0: i32, %arg1: i32, %arg2: i32) -> (i32, i32) {
    %c0_i32 = arith.constant 0 : i32
    %c0_i32_0 = arith.constant 0 : i32
    return %c0_i32, %arg1 : i32, i32
  }
  func.func @transform_4(%arg0: i32, %arg1: i32, %arg2: i32) -> (i32, i32) {
    %c0_i32 = arith.constant 0 : i32
    return %arg0, %arg1 : i32, i32
  }
}

module attributes {stable_mosaic.version = 11 : i64} {
  func.func @kernel(%arg0: i32, %arg1: i32, %arg2: i32, %arg3: memref<128x128xbf16, #tpu.memory_space<vmem>>, %arg4: memref<128x128xbf16, #tpu.memory_space<vmem>>, %arg5: memref<1x128xf32, #tpu.memory_space<vmem>>, %arg6: memref<1x128xf32, #tpu.memory_space<vmem>>, %arg7: memref<128x128xbf16, #tpu.memory_space<vmem>>, %arg8: memref<128x128xbf16, #tpu.memory_space<vmem>>, %arg9: memref<128x128xf32, #tpu.memory_space<vmem>>) attributes {dimension_semantics = [#tpu.dimension_semantics<parallel>, #tpu.dimension_semantics<parallel>, #tpu.dimension_semantics<arbitrary>], iteration_bounds = array<i64: 1, 1, 9>, scalar_prefetch = 0 : i64, scratch_operands = 1 : i64, tpu.core_type = #tpu.core_type<tc>, window_params = [{transform_indices = @transform_0, window_bounds = array<i64: 128, 128>}, {transform_indices = @transform_1, window_bounds = array<i64: 128, 128>}, {transform_indices = @transform_2, window_bounds = array<i64: 1, 128>}, {transform_indices = @transform_3, window_bounds = array<i64: 1, 128>}, {transform_indices = @transform_4, window_bounds = array<i64: 128, 128>}, {transform_indices = @transform_5, window_bounds = array<i64: 128, 128>}]} {
    %c0_i32 = arith.constant 0 : i32
    %0 = arith.cmpi eq, %arg2, %c0_i32 : i32
    %1 = arith.extui %0 : i1 to i32
    %c0_i32_0 = arith.constant 0 : i32
    %2 = arith.cmpi ne, %1, %c0_i32_0 : i32
    scf.if %2 {
      %cst_9 = arith.constant 0.000000e+00 : f32
      %12 = vector.broadcast %cst_9 : f32 to vector<128x128xf32>
      %c0_10 = arith.constant 0 : index
      %c0_11 = arith.constant 0 : index
      %13 = vector.load %arg9[%c0_10, %c0_11] : memref<128x128xf32, #tpu.memory_space<vmem>>, vector<128x128xf32>
      tpu.vector_store %arg9[%c0_10, %c0_11], %12 {strides = array<i32>} : memref<128x128xf32, #tpu.memory_space<vmem>>, vector<128x128xf32>,
    } else {
    }
    %c0 = arith.constant 0 : index
    %c0_1 = arith.constant 0 : index
    %3 = vector.load %arg9[%c0, %c0_1] : memref<128x128xf32, #tpu.memory_space<vmem>>, vector<128x128xf32>
    %c0_2 = arith.constant 0 : index
    %c0_3 = arith.constant 0 : index
    %4 = vector.load %arg3[%c0_2, %c0_3] : memref<128x128xbf16, #tpu.memory_space<vmem>>, vector<128x128xbf16>
    %c0_4 = arith.constant 0 : index
    %c0_5 = arith.constant 0 : index
    %5 = vector.load %arg4[%c0_4, %c0_5] : memref<128x128xbf16, #tpu.memory_space<vmem>>, vector<128x128xbf16>
    %cst = arith.constant dense<0.000000e+00> : vector<128x128xf32>
    %6 = tpu.matmul %4, %5, %cst {dimension_numbers = #tpu.dot_dimension_numbers<[1], [0], [0], [1], [0, 0, 1, 1], [], []>} : vector<128x128xbf16>, vector<128x128xbf16>, vector<128x128xf32> -> vector<128x128xf32>
    %7 = arith.addf %3, %6 : vector<128x128xf32>
    %c0_6 = arith.constant 0 : index
    %c0_7 = arith.constant 0 : index
    %8 = vector.load %arg9[%c0_6, %c0_7] : memref<128x128xf32, #tpu.memory_space<vmem>>, vector<128x128xf32>
    tpu.vector_store %arg9[%c0_6, %c0_7], %7 {strides = array<i32>} : memref<128x128xf32, #tpu.memory_space<vmem>>, vector<128x128xf32>,
    %c8_i32 = arith.constant 8 : i32
    %9 = arith.cmpi eq, %arg2, %c8_i32 : i32
    %10 = arith.extui %9 : i1 to i32
    %c0_i32_8 = arith.constant 0 : i32
    %11 = arith.cmpi ne, %10, %c0_i32_8 : i32
    scf.if %11 {
      %c0_9 = arith.constant 0 : index
      %c0_10 = arith.constant 0 : index
      %12 = vector.load %arg9[%c0_9, %c0_10] : memref<128x128xf32, #tpu.memory_space<vmem>>, vector<128x128xf32>
      %c0_11 = arith.constant 0 : index
      %c0_12 = arith.constant 0 : index
      %13 = vector.load %arg5[%c0_11, %c0_12] : memref<1x128xf32, #tpu.memory_space<vmem>>, vector<1x128xf32>
      %14 = vector.broadcast %13 : vector<1x128xf32> to vector<128x128xf32>
      %15 = arith.mulf %12, %14 : vector<128x128xf32>
      %c0_13 = arith.constant 0 : index
      %c0_14 = arith.constant 0 : index
      %16 = vector.load %arg6[%c0_13, %c0_14] : memref<1x128xf32, #tpu.memory_space<vmem>>, vector<1x128xf32>
      %17 = vector.broadcast %16 : vector<1x128xf32> to vector<128x128xf32>
      %18 = arith.addf %15, %17 : vector<128x128xf32>
      %c0_15 = arith.constant 0 : index
      %c0_16 = arith.constant 0 : index
      %19 = vector.load %arg7[%c0_15, %c0_16] : memref<128x128xbf16, #tpu.memory_space<vmem>>, vector<128x128xbf16>
      %20 = arith.extf %19 : vector<128x128xbf16> to vector<128x128xf32>
      %21 = arith.addf %18, %20 : vector<128x128xf32>
      %cst_17 = arith.constant 0.000000e+00 : f32
      %22 = vector.broadcast %cst_17 : f32 to vector<128x128xf32>
      %23 = arith.maximumf %21, %22 : vector<128x128xf32>
      %24 = arith.truncf %23 : vector<128x128xf32> to vector<128x128xbf16>
      %c0_18 = arith.constant 0 : index
      %c0_19 = arith.constant 0 : index
      %25 = vector.load %arg8[%c0_18, %c0_19] : memref<128x128xbf16, #tpu.memory_space<vmem>>, vector<128x128xbf16>
      tpu.vector_store %arg8[%c0_18, %c0_19], %24 {strides = array<i32>} : memref<128x128xbf16, #tpu.memory_space<vmem>>, vector<128x128xbf16>,
    } else {
    }
    return
  }
  func.func @transform_0(%arg0: i32, %arg1: i32, %arg2: i32) -> (i32, i32) {
    %c0_i32 = arith.constant 0 : i32
    return %arg0, %arg2 : i32, i32
  }
  func.func @transform_1(%arg0: i32, %arg1: i32, %arg2: i32) -> (i32, i32) {
    %c0_i32 = arith.constant 0 : i32
    return %arg2, %arg1 : i32, i32
  }
  func.func @transform_2(%arg0: i32, %arg1: i32, %arg2: i32) -> (i32, i32) {
    %c0_i32 = arith.constant 0 : i32
    %c0_i32_0 = arith.constant 0 : i32
    return %c0_i32, %arg1 : i32, i32
  }
  func.func @transform_3(%arg0: i32, %arg1: i32, %arg2: i32) -> (i32, i32) {
    %c0_i32 = arith.constant 0 : i32
    %c0_i32_0 = arith.constant 0 : i32
    return %c0_i32, %arg1 : i32, i32
  }
  func.func @transform_4(%arg0: i32, %arg1: i32, %arg2: i32) -> (i32, i32) {
    %c0_i32 = arith.constant 0 : i32
    return %arg0, %arg1 : i32, i32
  }
  func.func @transform_5(%arg0: i32, %arg1: i32, %arg2: i32) -> (i32, i32) {
    %c0_i32 = arith.constant 0 : i32
    return %arg0, %arg1 : i32, i32
  }
}

module attributes {stable_mosaic.version = 11 : i64} {
  func.func @kernel(%arg0: i32, %arg1: i32, %arg2: i32, %arg3: memref<32x128xbf16, #tpu.memory_space<vmem>>, %arg4: memref<128x128xbf16, #tpu.memory_space<vmem>>, %arg5: memref<1x128xf32, #tpu.memory_space<vmem>>, %arg6: memref<1x128xf32, #tpu.memory_space<vmem>>, %arg7: memref<32x128xbf16, #tpu.memory_space<vmem>>, %arg8: memref<32x128xf32, #tpu.memory_space<vmem>>) attributes {dimension_semantics = [#tpu.dimension_semantics<parallel>, #tpu.dimension_semantics<parallel>, #tpu.dimension_semantics<arbitrary>], iteration_bounds = array<i64: 1, 1, 9>, scalar_prefetch = 0 : i64, scratch_operands = 1 : i64, tpu.core_type = #tpu.core_type<tc>, window_params = [{transform_indices = @transform_0, window_bounds = array<i64: 32, 128>}, {transform_indices = @transform_1, window_bounds = array<i64: 128, 128>}, {transform_indices = @transform_2, window_bounds = array<i64: 1, 128>}, {transform_indices = @transform_3, window_bounds = array<i64: 1, 128>}, {transform_indices = @transform_4, window_bounds = array<i64: 32, 128>}]} {
    %c0_i32 = arith.constant 0 : i32
    %0 = arith.cmpi eq, %arg2, %c0_i32 : i32
    %1 = arith.extui %0 : i1 to i32
    %c0_i32_0 = arith.constant 0 : i32
    %2 = arith.cmpi ne, %1, %c0_i32_0 : i32
    scf.if %2 {
      %cst_9 = arith.constant 0.000000e+00 : f32
      %12 = vector.broadcast %cst_9 : f32 to vector<32x128xf32>
      %c0_10 = arith.constant 0 : index
      %c0_11 = arith.constant 0 : index
      %13 = vector.load %arg8[%c0_10, %c0_11] : memref<32x128xf32, #tpu.memory_space<vmem>>, vector<32x128xf32>
      tpu.vector_store %arg8[%c0_10, %c0_11], %12 {strides = array<i32>} : memref<32x128xf32, #tpu.memory_space<vmem>>, vector<32x128xf32>,
    } else {
    }
    %c0 = arith.constant 0 : index
    %c0_1 = arith.constant 0 : index
    %3 = vector.load %arg8[%c0, %c0_1] : memref<32x128xf32, #tpu.memory_space<vmem>>, vector<32x128xf32>
    %c0_2 = arith.constant 0 : index
    %c0_3 = arith.constant 0 : index
    %4 = vector.load %arg3[%c0_2, %c0_3] : memref<32x128xbf16, #tpu.memory_space<vmem>>, vector<32x128xbf16>
    %c0_4 = arith.constant 0 : index
    %c0_5 = arith.constant 0 : index
    %5 = vector.load %arg4[%c0_4, %c0_5] : memref<128x128xbf16, #tpu.memory_space<vmem>>, vector<128x128xbf16>
    %cst = arith.constant dense<0.000000e+00> : vector<32x128xf32>
    %6 = tpu.matmul %4, %5, %cst {dimension_numbers = #tpu.dot_dimension_numbers<[1], [0], [0], [1], [0, 0, 1, 1], [], []>} : vector<32x128xbf16>, vector<128x128xbf16>, vector<32x128xf32> -> vector<32x128xf32>
    %7 = arith.addf %3, %6 : vector<32x128xf32>
    %c0_6 = arith.constant 0 : index
    %c0_7 = arith.constant 0 : index
    %8 = vector.load %arg8[%c0_6, %c0_7] : memref<32x128xf32, #tpu.memory_space<vmem>>, vector<32x128xf32>
    tpu.vector_store %arg8[%c0_6, %c0_7], %7 {strides = array<i32>} : memref<32x128xf32, #tpu.memory_space<vmem>>, vector<32x128xf32>,
    %c8_i32 = arith.constant 8 : i32
    %9 = arith.cmpi eq, %arg2, %c8_i32 : i32
    %10 = arith.extui %9 : i1 to i32
    %c0_i32_8 = arith.constant 0 : i32
    %11 = arith.cmpi ne, %10, %c0_i32_8 : i32
    scf.if %11 {
      %c0_9 = arith.constant 0 : index
      %c0_10 = arith.constant 0 : index
      %12 = vector.load %arg8[%c0_9, %c0_10] : memref<32x128xf32, #tpu.memory_space<vmem>>, vector<32x128xf32>
      %c0_11 = arith.constant 0 : index
      %c0_12 = arith.constant 0 : index
      %13 = vector.load %arg5[%c0_11, %c0_12] : memref<1x128xf32, #tpu.memory_space<vmem>>, vector<1x128xf32>
      %14 = vector.broadcast %13 : vector<1x128xf32> to vector<32x128xf32>
      %15 = arith.mulf %12, %14 : vector<32x128xf32>
      %c0_13 = arith.constant 0 : index
      %c0_14 = arith.constant 0 : index
      %16 = vector.load %arg6[%c0_13, %c0_14] : memref<1x128xf32, #tpu.memory_space<vmem>>, vector<1x128xf32>
      %17 = vector.broadcast %16 : vector<1x128xf32> to vector<32x128xf32>
      %18 = arith.addf %15, %17 : vector<32x128xf32>
      %19 = arith.truncf %18 : vector<32x128xf32> to vector<32x128xbf16>
      %c0_15 = arith.constant 0 : index
      %c0_16 = arith.constant 0 : index
      %20 = vector.load %arg7[%c0_15, %c0_16] : memref<32x128xbf16, #tpu.memory_space<vmem>>, vector<32x128xbf16>
      tpu.vector_store %arg7[%c0_15, %c0_16], %19 {strides = array<i32>} : memref<32x128xbf16, #tpu.memory_space<vmem>>, vector<32x128xbf16>,
    } else {
    }
    return
  }
  func.func @transform_0(%arg0: i32, %arg1: i32, %arg2: i32) -> (i32, i32) {
    %c0_i32 = arith.constant 0 : i32
    return %arg0, %arg2 : i32, i32
  }
  func.func @transform_1(%arg0: i32, %arg1: i32, %arg2: i32) -> (i32, i32) {
    %c0_i32 = arith.constant 0 : i32
    return %arg2, %arg1 : i32, i32
  }
  func.func @transform_2(%arg0: i32, %arg1: i32, %arg2: i32) -> (i32, i32) {
    %c0_i32 = arith.constant 0 : i32
    %c0_i32_0 = arith.constant 0 : i32
    return %c0_i32, %arg1 : i32, i32
  }
  func.func @transform_3(%arg0: i32, %arg1: i32, %arg2: i32) -> (i32, i32) {
    %c0_i32 = arith.constant 0 : i32
    %c0_i32_0 = arith.constant 0 : i32
    return %c0_i32, %arg1 : i32, i32
  }
  func.func @transform_4(%arg0: i32, %arg1: i32, %arg2: i32) -> (i32, i32) {
    %c0_i32 = arith.constant 0 : i32
    return %arg0, %arg1 : i32, i32
  }
}

module attributes {stable_mosaic.version = 11 : i64} {
  func.func @kernel(%arg0: i32, %arg1: i32, %arg2: i32, %arg3: memref<32x256xbf16, #tpu.memory_space<vmem>>, %arg4: memref<256x128xbf16, #tpu.memory_space<vmem>>, %arg5: memref<1x128xf32, #tpu.memory_space<vmem>>, %arg6: memref<1x128xf32, #tpu.memory_space<vmem>>, %arg7: memref<32x128xbf16, #tpu.memory_space<vmem>>, %arg8: memref<32x128xf32, #tpu.memory_space<vmem>>) attributes {dimension_semantics = [#tpu.dimension_semantics<parallel>, #tpu.dimension_semantics<parallel>, #tpu.dimension_semantics<arbitrary>], iteration_bounds = array<i64: 1, 1, 9>, scalar_prefetch = 0 : i64, scratch_operands = 1 : i64, tpu.core_type = #tpu.core_type<tc>, window_params = [{transform_indices = @transform_0, window_bounds = array<i64: 32, 256>}, {transform_indices = @transform_1, window_bounds = array<i64: 256, 128>}, {transform_indices = @transform_2, window_bounds = array<i64: 1, 128>}, {transform_indices = @transform_3, window_bounds = array<i64: 1, 128>}, {transform_indices = @transform_4, window_bounds = array<i64: 32, 128>}]} {
    %c0_i32 = arith.constant 0 : i32
    %0 = arith.cmpi eq, %arg2, %c0_i32 : i32
    %1 = arith.extui %0 : i1 to i32
    %c0_i32_0 = arith.constant 0 : i32
    %2 = arith.cmpi ne, %1, %c0_i32_0 : i32
    scf.if %2 {
      %cst_9 = arith.constant 0.000000e+00 : f32
      %12 = vector.broadcast %cst_9 : f32 to vector<32x128xf32>
      %c0_10 = arith.constant 0 : index
      %c0_11 = arith.constant 0 : index
      %13 = vector.load %arg8[%c0_10, %c0_11] : memref<32x128xf32, #tpu.memory_space<vmem>>, vector<32x128xf32>
      tpu.vector_store %arg8[%c0_10, %c0_11], %12 {strides = array<i32>} : memref<32x128xf32, #tpu.memory_space<vmem>>, vector<32x128xf32>,
    } else {
    }
    %c0 = arith.constant 0 : index
    %c0_1 = arith.constant 0 : index
    %3 = vector.load %arg8[%c0, %c0_1] : memref<32x128xf32, #tpu.memory_space<vmem>>, vector<32x128xf32>
    %c0_2 = arith.constant 0 : index
    %c0_3 = arith.constant 0 : index
    %4 = vector.load %arg3[%c0_2, %c0_3] : memref<32x256xbf16, #tpu.memory_space<vmem>>, vector<32x256xbf16>
    %c0_4 = arith.constant 0 : index
    %c0_5 = arith.constant 0 : index
    %5 = vector.load %arg4[%c0_4, %c0_5] : memref<256x128xbf16, #tpu.memory_space<vmem>>, vector<256x128xbf16>
    %cst = arith.constant dense<0.000000e+00> : vector<32x128xf32>
    %6 = tpu.matmul %4, %5, %cst {dimension_numbers = #tpu.dot_dimension_numbers<[1], [0], [0], [1], [0, 0, 1, 1], [], []>} : vector<32x256xbf16>, vector<256x128xbf16>, vector<32x128xf32> -> vector<32x128xf32>
    %7 = arith.addf %3, %6 : vector<32x128xf32>
    %c0_6 = arith.constant 0 : index
    %c0_7 = arith.constant 0 : index
    %8 = vector.load %arg8[%c0_6, %c0_7] : memref<32x128xf32, #tpu.memory_space<vmem>>, vector<32x128xf32>
    tpu.vector_store %arg8[%c0_6, %c0_7], %7 {strides = array<i32>} : memref<32x128xf32, #tpu.memory_space<vmem>>, vector<32x128xf32>,
    %c8_i32 = arith.constant 8 : i32
    %9 = arith.cmpi eq, %arg2, %c8_i32 : i32
    %10 = arith.extui %9 : i1 to i32
    %c0_i32_8 = arith.constant 0 : i32
    %11 = arith.cmpi ne, %10, %c0_i32_8 : i32
    scf.if %11 {
      %c0_9 = arith.constant 0 : index
      %c0_10 = arith.constant 0 : index
      %12 = vector.load %arg8[%c0_9, %c0_10] : memref<32x128xf32, #tpu.memory_space<vmem>>, vector<32x128xf32>
      %c0_11 = arith.constant 0 : index
      %c0_12 = arith.constant 0 : index
      %13 = vector.load %arg5[%c0_11, %c0_12] : memref<1x128xf32, #tpu.memory_space<vmem>>, vector<1x128xf32>
      %14 = vector.broadcast %13 : vector<1x128xf32> to vector<32x128xf32>
      %15 = arith.mulf %12, %14 : vector<32x128xf32>
      %c0_13 = arith.constant 0 : index
      %c0_14 = arith.constant 0 : index
      %16 = vector.load %arg6[%c0_13, %c0_14] : memref<1x128xf32, #tpu.memory_space<vmem>>, vector<1x128xf32>
      %17 = vector.broadcast %16 : vector<1x128xf32> to vector<32x128xf32>
      %18 = arith.addf %15, %17 : vector<32x128xf32>
      %cst_15 = arith.constant 0.000000e+00 : f32
      %19 = vector.broadcast %cst_15 : f32 to vector<32x128xf32>
      %20 = arith.maximumf %18, %19 : vector<32x128xf32>
      %21 = arith.truncf %20 : vector<32x128xf32> to vector<32x128xbf16>
      %c0_16 = arith.constant 0 : index
      %c0_17 = arith.constant 0 : index
      %22 = vector.load %arg7[%c0_16, %c0_17] : memref<32x128xbf16, #tpu.memory_space<vmem>>, vector<32x128xbf16>
      tpu.vector_store %arg7[%c0_16, %c0_17], %21 {strides = array<i32>} : memref<32x128xbf16, #tpu.memory_space<vmem>>, vector<32x128xbf16>,
    } else {
    }
    return
  }
  func.func @transform_0(%arg0: i32, %arg1: i32, %arg2: i32) -> (i32, i32) {
    %c0_i32 = arith.constant 0 : i32
    return %arg0, %arg2 : i32, i32
  }
  func.func @transform_1(%arg0: i32, %arg1: i32, %arg2: i32) -> (i32, i32) {
    %c0_i32 = arith.constant 0 : i32
    return %arg2, %arg1 : i32, i32
  }
  func.func @transform_2(%arg0: i32, %arg1: i32, %arg2: i32) -> (i32, i32) {
    %c0_i32 = arith.constant 0 : i32
    %c0_i32_0 = arith.constant 0 : i32
    return %c0_i32, %arg1 : i32, i32
  }
  func.func @transform_3(%arg0: i32, %arg1: i32, %arg2: i32) -> (i32, i32) {
    %c0_i32 = arith.constant 0 : i32
    %c0_i32_0 = arith.constant 0 : i32
    return %c0_i32, %arg1 : i32, i32
  }
  func.func @transform_4(%arg0: i32, %arg1: i32, %arg2: i32) -> (i32, i32) {
    %c0_i32 = arith.constant 0 : i32
    return %arg0, %arg1 : i32, i32
  }
}

module attributes {stable_mosaic.version = 11 : i64} {
  func.func @kernel(%arg0: i32, %arg1: i32, %arg2: i32, %arg3: memref<32x128xbf16, #tpu.memory_space<vmem>>, %arg4: memref<128x128xbf16, #tpu.memory_space<vmem>>, %arg5: memref<1x128xf32, #tpu.memory_space<vmem>>, %arg6: memref<1x128xf32, #tpu.memory_space<vmem>>, %arg7: memref<32x128xbf16, #tpu.memory_space<vmem>>, %arg8: memref<32x128xf32, #tpu.memory_space<vmem>>) attributes {dimension_semantics = [#tpu.dimension_semantics<parallel>, #tpu.dimension_semantics<parallel>, #tpu.dimension_semantics<arbitrary>], iteration_bounds = array<i64: 1, 1, 9>, scalar_prefetch = 0 : i64, scratch_operands = 1 : i64, tpu.core_type = #tpu.core_type<tc>, window_params = [{transform_indices = @transform_0, window_bounds = array<i64: 32, 128>}, {transform_indices = @transform_1, window_bounds = array<i64: 128, 128>}, {transform_indices = @transform_2, window_bounds = array<i64: 1, 128>}, {transform_indices = @transform_3, window_bounds = array<i64: 1, 128>}, {transform_indices = @transform_4, window_bounds = array<i64: 32, 128>}]} {
    %c0_i32 = arith.constant 0 : i32
    %0 = arith.cmpi eq, %arg2, %c0_i32 : i32
    %1 = arith.extui %0 : i1 to i32
    %c0_i32_0 = arith.constant 0 : i32
    %2 = arith.cmpi ne, %1, %c0_i32_0 : i32
    scf.if %2 {
      %cst_9 = arith.constant 0.000000e+00 : f32
      %12 = vector.broadcast %cst_9 : f32 to vector<32x128xf32>
      %c0_10 = arith.constant 0 : index
      %c0_11 = arith.constant 0 : index
      %13 = vector.load %arg8[%c0_10, %c0_11] : memref<32x128xf32, #tpu.memory_space<vmem>>, vector<32x128xf32>
      tpu.vector_store %arg8[%c0_10, %c0_11], %12 {strides = array<i32>} : memref<32x128xf32, #tpu.memory_space<vmem>>, vector<32x128xf32>,
    } else {
    }
    %c0 = arith.constant 0 : index
    %c0_1 = arith.constant 0 : index
    %3 = vector.load %arg8[%c0, %c0_1] : memref<32x128xf32, #tpu.memory_space<vmem>>, vector<32x128xf32>
    %c0_2 = arith.constant 0 : index
    %c0_3 = arith.constant 0 : index
    %4 = vector.load %arg3[%c0_2, %c0_3] : memref<32x128xbf16, #tpu.memory_space<vmem>>, vector<32x128xbf16>
    %c0_4 = arith.constant 0 : index
    %c0_5 = arith.constant 0 : index
    %5 = vector.load %arg4[%c0_4, %c0_5] : memref<128x128xbf16, #tpu.memory_space<vmem>>, vector<128x128xbf16>
    %cst = arith.constant dense<0.000000e+00> : vector<32x128xf32>
    %6 = tpu.matmul %4, %5, %cst {dimension_numbers = #tpu.dot_dimension_numbers<[1], [0], [0], [1], [0, 0, 1, 1], [], []>} : vector<32x128xbf16>, vector<128x128xbf16>, vector<32x128xf32> -> vector<32x128xf32>
    %7 = arith.addf %3, %6 : vector<32x128xf32>
    %c0_6 = arith.constant 0 : index
    %c0_7 = arith.constant 0 : index
    %8 = vector.load %arg8[%c0_6, %c0_7] : memref<32x128xf32, #tpu.memory_space<vmem>>, vector<32x128xf32>
    tpu.vector_store %arg8[%c0_6, %c0_7], %7 {strides = array<i32>} : memref<32x128xf32, #tpu.memory_space<vmem>>, vector<32x128xf32>,
    %c8_i32 = arith.constant 8 : i32
    %9 = arith.cmpi eq, %arg2, %c8_i32 : i32
    %10 = arith.extui %9 : i1 to i32
    %c0_i32_8 = arith.constant 0 : i32
    %11 = arith.cmpi ne, %10, %c0_i32_8 : i32
    scf.if %11 {
      %c0_9 = arith.constant 0 : index
      %c0_10 = arith.constant 0 : index
      %12 = vector.load %arg8[%c0_9, %c0_10] : memref<32x128xf32, #tpu.memory_space<vmem>>, vector<32x128xf32>
      %c0_11 = arith.constant 0 : index
      %c0_12 = arith.constant 0 : index
      %13 = vector.load %arg5[%c0_11, %c0_12] : memref<1x128xf32, #tpu.memory_space<vmem>>, vector<1x128xf32>
      %14 = vector.broadcast %13 : vector<1x128xf32> to vector<32x128xf32>
      %15 = arith.mulf %12, %14 : vector<32x128xf32>
      %c0_13 = arith.constant 0 : index
      %c0_14 = arith.constant 0 : index
      %16 = vector.load %arg6[%c0_13, %c0_14] : memref<1x128xf32, #tpu.memory_space<vmem>>, vector<1x128xf32>
      %17 = vector.broadcast %16 : vector<1x128xf32> to vector<32x128xf32>
      %18 = arith.addf %15, %17 : vector<32x128xf32>
      %cst_15 = arith.constant 0.000000e+00 : f32
      %19 = vector.broadcast %cst_15 : f32 to vector<32x128xf32>
      %20 = arith.maximumf %18, %19 : vector<32x128xf32>
      %21 = arith.truncf %20 : vector<32x128xf32> to vector<32x128xbf16>
      %c0_16 = arith.constant 0 : index
      %c0_17 = arith.constant 0 : index
      %22 = vector.load %arg7[%c0_16, %c0_17] : memref<32x128xbf16, #tpu.memory_space<vmem>>, vector<32x128xbf16>
      tpu.vector_store %arg7[%c0_16, %c0_17], %21 {strides = array<i32>} : memref<32x128xbf16, #tpu.memory_space<vmem>>, vector<32x128xbf16>,
    } else {
    }
    return
  }
  func.func @transform_0(%arg0: i32, %arg1: i32, %arg2: i32) -> (i32, i32) {
    %c0_i32 = arith.constant 0 : i32
    return %arg0, %arg2 : i32, i32
  }
  func.func @transform_1(%arg0: i32, %arg1: i32, %arg2: i32) -> (i32, i32) {
    %c0_i32 = arith.constant 0 : i32
    return %arg2, %arg1 : i32, i32
  }
  func.func @transform_2(%arg0: i32, %arg1: i32, %arg2: i32) -> (i32, i32) {
    %c0_i32 = arith.constant 0 : i32
    %c0_i32_0 = arith.constant 0 : i32
    return %c0_i32, %arg1 : i32, i32
  }
  func.func @transform_3(%arg0: i32, %arg1: i32, %arg2: i32) -> (i32, i32) {
    %c0_i32 = arith.constant 0 : i32
    %c0_i32_0 = arith.constant 0 : i32
    return %c0_i32, %arg1 : i32, i32
  }
  func.func @transform_4(%arg0: i32, %arg1: i32, %arg2: i32) -> (i32, i32) {
    %c0_i32 = arith.constant 0 : i32
    return %arg0, %arg1 : i32, i32
  }
}

module attributes {stable_mosaic.version = 11 : i64} {
  func.func @kernel(%arg0: i32, %arg1: i32, %arg2: i32, %arg3: memref<32x128xbf16, #tpu.memory_space<vmem>>, %arg4: memref<128x128xbf16, #tpu.memory_space<vmem>>, %arg5: memref<1x128xf32, #tpu.memory_space<vmem>>, %arg6: memref<1x128xf32, #tpu.memory_space<vmem>>, %arg7: memref<32x128xbf16, #tpu.memory_space<vmem>>, %arg8: memref<32x128xbf16, #tpu.memory_space<vmem>>, %arg9: memref<32x128xf32, #tpu.memory_space<vmem>>) attributes {dimension_semantics = [#tpu.dimension_semantics<parallel>, #tpu.dimension_semantics<parallel>, #tpu.dimension_semantics<arbitrary>], iteration_bounds = array<i64: 1, 1, 9>, scalar_prefetch = 0 : i64, scratch_operands = 1 : i64, tpu.core_type = #tpu.core_type<tc>, window_params = [{transform_indices = @transform_0, window_bounds = array<i64: 32, 128>}, {transform_indices = @transform_1, window_bounds = array<i64: 128, 128>}, {transform_indices = @transform_2, window_bounds = array<i64: 1, 128>}, {transform_indices = @transform_3, window_bounds = array<i64: 1, 128>}, {transform_indices = @transform_4, window_bounds = array<i64: 32, 128>}, {transform_indices = @transform_5, window_bounds = array<i64: 32, 128>}]} {
    %c0_i32 = arith.constant 0 : i32
    %0 = arith.cmpi eq, %arg2, %c0_i32 : i32
    %1 = arith.extui %0 : i1 to i32
    %c0_i32_0 = arith.constant 0 : i32
    %2 = arith.cmpi ne, %1, %c0_i32_0 : i32
    scf.if %2 {
      %cst_9 = arith.constant 0.000000e+00 : f32
      %12 = vector.broadcast %cst_9 : f32 to vector<32x128xf32>
      %c0_10 = arith.constant 0 : index
      %c0_11 = arith.constant 0 : index
      %13 = vector.load %arg9[%c0_10, %c0_11] : memref<32x128xf32, #tpu.memory_space<vmem>>, vector<32x128xf32>
      tpu.vector_store %arg9[%c0_10, %c0_11], %12 {strides = array<i32>} : memref<32x128xf32, #tpu.memory_space<vmem>>, vector<32x128xf32>,
    } else {
    }
    %c0 = arith.constant 0 : index
    %c0_1 = arith.constant 0 : index
    %3 = vector.load %arg9[%c0, %c0_1] : memref<32x128xf32, #tpu.memory_space<vmem>>, vector<32x128xf32>
    %c0_2 = arith.constant 0 : index
    %c0_3 = arith.constant 0 : index
    %4 = vector.load %arg3[%c0_2, %c0_3] : memref<32x128xbf16, #tpu.memory_space<vmem>>, vector<32x128xbf16>
    %c0_4 = arith.constant 0 : index
    %c0_5 = arith.constant 0 : index
    %5 = vector.load %arg4[%c0_4, %c0_5] : memref<128x128xbf16, #tpu.memory_space<vmem>>, vector<128x128xbf16>
    %cst = arith.constant dense<0.000000e+00> : vector<32x128xf32>
    %6 = tpu.matmul %4, %5, %cst {dimension_numbers = #tpu.dot_dimension_numbers<[1], [0], [0], [1], [0, 0, 1, 1], [], []>} : vector<32x128xbf16>, vector<128x128xbf16>, vector<32x128xf32> -> vector<32x128xf32>
    %7 = arith.addf %3, %6 : vector<32x128xf32>
    %c0_6 = arith.constant 0 : index
    %c0_7 = arith.constant 0 : index
    %8 = vector.load %arg9[%c0_6, %c0_7] : memref<32x128xf32, #tpu.memory_space<vmem>>, vector<32x128xf32>
    tpu.vector_store %arg9[%c0_6, %c0_7], %7 {strides = array<i32>} : memref<32x128xf32, #tpu.memory_space<vmem>>, vector<32x128xf32>,
    %c8_i32 = arith.constant 8 : i32
    %9 = arith.cmpi eq, %arg2, %c8_i32 : i32
    %10 = arith.extui %9 : i1 to i32
    %c0_i32_8 = arith.constant 0 : i32
    %11 = arith.cmpi ne, %10, %c0_i32_8 : i32
    scf.if %11 {
      %c0_9 = arith.constant 0 : index
      %c0_10 = arith.constant 0 : index
      %12 = vector.load %arg9[%c0_9, %c0_10] : memref<32x128xf32, #tpu.memory_space<vmem>>, vector<32x128xf32>
      %c0_11 = arith.constant 0 : index
      %c0_12 = arith.constant 0 : index
      %13 = vector.load %arg5[%c0_11, %c0_12] : memref<1x128xf32, #tpu.memory_space<vmem>>, vector<1x128xf32>
      %14 = vector.broadcast %13 : vector<1x128xf32> to vector<32x128xf32>
      %15 = arith.mulf %12, %14 : vector<32x128xf32>
      %c0_13 = arith.constant 0 : index
      %c0_14 = arith.constant 0 : index
      %16 = vector.load %arg6[%c0_13, %c0_14] : memref<1x128xf32, #tpu.memory_space<vmem>>, vector<1x128xf32>
      %17 = vector.broadcast %16 : vector<1x128xf32> to vector<32x128xf32>
      %18 = arith.addf %15, %17 : vector<32x128xf32>
      %c0_15 = arith.constant 0 : index
      %c0_16 = arith.constant 0 : index
      %19 = vector.load %arg7[%c0_15, %c0_16] : memref<32x128xbf16, #tpu.memory_space<vmem>>, vector<32x128xbf16>
      %20 = arith.extf %19 : vector<32x128xbf16> to vector<32x128xf32>
      %21 = arith.addf %18, %20 : vector<32x128xf32>
      %cst_17 = arith.constant 0.000000e+00 : f32
      %22 = vector.broadcast %cst_17 : f32 to vector<32x128xf32>
      %23 = arith.maximumf %21, %22 : vector<32x128xf32>
      %24 = arith.truncf %23 : vector<32x128xf32> to vector<32x128xbf16>
      %c0_18 = arith.constant 0 : index
      %c0_19 = arith.constant 0 : index
      %25 = vector.load %arg8[%c0_18, %c0_19] : memref<32x128xbf16, #tpu.memory_space<vmem>>, vector<32x128xbf16>
      tpu.vector_store %arg8[%c0_18, %c0_19], %24 {strides = array<i32>} : memref<32x128xbf16, #tpu.memory_space<vmem>>, vector<32x128xbf16>,
    } else {
    }
    return
  }
  func.func @transform_0(%arg0: i32, %arg1: i32, %arg2: i32) -> (i32, i32) {
    %c0_i32 = arith.constant 0 : i32
    return %arg0, %arg2 : i32, i32
  }
  func.func @transform_1(%arg0: i32, %arg1: i32, %arg2: i32) -> (i32, i32) {
    %c0_i32 = arith.constant 0 : i32
    return %arg2, %arg1 : i32, i32
  }
  func.func @transform_2(%arg0: i32, %arg1: i32, %arg2: i32) -> (i32, i32) {
    %c0_i32 = arith.constant 0 : i32
    %c0_i32_0 = arith.constant 0 : i32
    return %c0_i32, %arg1 : i32, i32
  }
  func.func @transform_3(%arg0: i32, %arg1: i32, %arg2: i32) -> (i32, i32) {
    %c0_i32 = arith.constant 0 : i32
    %c0_i32_0 = arith.constant 0 : i32
    return %c0_i32, %arg1 : i32, i32
  }
  func.func @transform_4(%arg0: i32, %arg1: i32, %arg2: i32) -> (i32, i32) {
    %c0_i32 = arith.constant 0 : i32
    return %arg0, %arg1 : i32, i32
  }
  func.func @transform_5(%arg0: i32, %arg1: i32, %arg2: i32) -> (i32, i32) {
    %c0_i32 = arith.constant 0 : i32
    return %arg0, %arg1 : i32, i32
  }
}

module attributes {stable_mosaic.version = 11 : i64} {
  func.func @kernel(%arg0: i32, %arg1: memref<32x128xbf16, #tpu.memory_space<vmem>>, %arg2: memref<32x128xbf16, #tpu.memory_space<vmem>>, %arg3: memref<32x128xbf16, #tpu.memory_space<vmem>>) attributes {dimension_semantics = [#tpu.dimension_semantics<parallel>], iteration_bounds = array<i64: 1>, scalar_prefetch = 0 : i64, scratch_operands = 0 : i64, tpu.core_type = #tpu.core_type<tc>, window_params = [{transform_indices = @transform_0, window_bounds = array<i64: 32, 128>}, {transform_indices = @transform_1, window_bounds = array<i64: 32, 128>}, {transform_indices = @transform_2, window_bounds = array<i64: 32, 128>}]} {
    %c0 = arith.constant 0 : index
    %c0_0 = arith.constant 0 : index
    %0 = vector.load %arg1[%c0, %c0_0] : memref<32x128xbf16, #tpu.memory_space<vmem>>, vector<32x128xbf16>
    %1 = arith.extf %0 : vector<32x128xbf16> to vector<32x128xf32>
    %c0_1 = arith.constant 0 : index
    %c0_2 = arith.constant 0 : index
    %2 = vector.load %arg2[%c0_1, %c0_2] : memref<32x128xbf16, #tpu.memory_space<vmem>>, vector<32x128xbf16>
    %3 = arith.extf %2 : vector<32x128xbf16> to vector<32x128xf32>
    %4 = arith.addf %1, %3 : vector<32x128xf32>
    %cst = arith.constant 0.000000e+00 : f32
    %5 = vector.broadcast %cst : f32 to vector<32x128xf32>
    %6 = arith.maximumf %4, %5 : vector<32x128xf32>
    %7 = arith.truncf %6 : vector<32x128xf32> to vector<32x128xbf16>
    %c0_3 = arith.constant 0 : index
    %c0_4 = arith.constant 0 : index
    %8 = vector.load %arg3[%c0_3, %c0_4] : memref<32x128xbf16, #tpu.memory_space<vmem>>, vector<32x128xbf16>
    tpu.vector_store %arg3[%c0_3, %c0_4], %7 {strides = array<i32>} : memref<32x128xbf16, #tpu.memory_space<vmem>>, vector<32x128xbf16>,
    return
  }
  func.func @transform_0(%arg0: i32) -> (i32, i32) {
    %c0_i32 = arith.constant 0 : i32
    %c0_i32_0 = arith.constant 0 : i32
    return %arg0, %c0_i32 : i32, i32
  }
  func.func @transform_1(%arg0: i32) -> (i32, i32) {
    %c0_i32 = arith.constant 0 : i32
    %c0_i32_0 = arith.constant 0 : i32
    return %arg0, %c0_i32 : i32, i32
  }
  func.func @transform_2(%arg0: i32) -> (i32, i32) {
    %c0_i32 = arith.constant 0 : i32
    %c0_i32_0 = arith.constant 0 : i32
    return %arg0, %c0_i32 : i32, i32
  }
}

module attributes {stable_mosaic.version = 11 : i64} {
  func.func @kernel(%arg0: i32, %arg1: i32, %arg2: i32, %arg3: memref<8x128xbf16, #tpu.memory_space<vmem>>, %arg4: memref<128x128xbf16, #tpu.memory_space<vmem>>, %arg5: memref<1x128xf32, #tpu.memory_space<vmem>>, %arg6: memref<1x128xf32, #tpu.memory_space<vmem>>, %arg7: memref<8x128xbf16, #tpu.memory_space<vmem>>, %arg8: memref<8x128xf32, #tpu.memory_space<vmem>>) attributes {dimension_semantics = [#tpu.dimension_semantics<parallel>, #tpu.dimension_semantics<parallel>, #tpu.dimension_semantics<arbitrary>], iteration_bounds = array<i64: 1, 1, 9>, scalar_prefetch = 0 : i64, scratch_operands = 1 : i64, tpu.core_type = #tpu.core_type<tc>, window_params = [{transform_indices = @transform_0, window_bounds = array<i64: 8, 128>}, {transform_indices = @transform_1, window_bounds = array<i64: 128, 128>}, {transform_indices = @transform_2, window_bounds = array<i64: 1, 128>}, {transform_indices = @transform_3, window_bounds = array<i64: 1, 128>}, {transform_indices = @transform_4, window_bounds = array<i64: 8, 128>}]} {
    %c0_i32 = arith.constant 0 : i32
    %0 = arith.cmpi eq, %arg2, %c0_i32 : i32
    %1 = arith.extui %0 : i1 to i32
    %c0_i32_0 = arith.constant 0 : i32
    %2 = arith.cmpi ne, %1, %c0_i32_0 : i32
    scf.if %2 {
      %cst_9 = arith.constant 0.000000e+00 : f32
      %12 = vector.broadcast %cst_9 : f32 to vector<8x128xf32>
      %c0_10 = arith.constant 0 : index
      %c0_11 = arith.constant 0 : index
      %13 = vector.load %arg8[%c0_10, %c0_11] : memref<8x128xf32, #tpu.memory_space<vmem>>, vector<8x128xf32>
      tpu.vector_store %arg8[%c0_10, %c0_11], %12 {strides = array<i32>} : memref<8x128xf32, #tpu.memory_space<vmem>>, vector<8x128xf32>,
    } else {
    }
    %c0 = arith.constant 0 : index
    %c0_1 = arith.constant 0 : index
    %3 = vector.load %arg8[%c0, %c0_1] : memref<8x128xf32, #tpu.memory_space<vmem>>, vector<8x128xf32>
    %c0_2 = arith.constant 0 : index
    %c0_3 = arith.constant 0 : index
    %4 = vector.load %arg3[%c0_2, %c0_3] : memref<8x128xbf16, #tpu.memory_space<vmem>>, vector<8x128xbf16>
    %c0_4 = arith.constant 0 : index
    %c0_5 = arith.constant 0 : index
    %5 = vector.load %arg4[%c0_4, %c0_5] : memref<128x128xbf16, #tpu.memory_space<vmem>>, vector<128x128xbf16>
    %cst = arith.constant dense<0.000000e+00> : vector<8x128xf32>
    %6 = tpu.matmul %4, %5, %cst {dimension_numbers = #tpu.dot_dimension_numbers<[1], [0], [0], [1], [0, 0, 1, 1], [], []>} : vector<8x128xbf16>, vector<128x128xbf16>, vector<8x128xf32> -> vector<8x128xf32>
    %7 = arith.addf %3, %6 : vector<8x128xf32>
    %c0_6 = arith.constant 0 : index
    %c0_7 = arith.constant 0 : index
    %8 = vector.load %arg8[%c0_6, %c0_7] : memref<8x128xf32, #tpu.memory_space<vmem>>, vector<8x128xf32>
    tpu.vector_store %arg8[%c0_6, %c0_7], %7 {strides = array<i32>} : memref<8x128xf32, #tpu.memory_space<vmem>>, vector<8x128xf32>,
    %c8_i32 = arith.constant 8 : i32
    %9 = arith.cmpi eq, %arg2, %c8_i32 : i32
    %10 = arith.extui %9 : i1 to i32
    %c0_i32_8 = arith.constant 0 : i32
    %11 = arith.cmpi ne, %10, %c0_i32_8 : i32
    scf.if %11 {
      %c0_9 = arith.constant 0 : index
      %c0_10 = arith.constant 0 : index
      %12 = vector.load %arg8[%c0_9, %c0_10] : memref<8x128xf32, #tpu.memory_space<vmem>>, vector<8x128xf32>
      %c0_11 = arith.constant 0 : index
      %c0_12 = arith.constant 0 : index
      %13 = vector.load %arg5[%c0_11, %c0_12] : memref<1x128xf32, #tpu.memory_space<vmem>>, vector<1x128xf32>
      %14 = vector.broadcast %13 : vector<1x128xf32> to vector<8x128xf32>
      %15 = arith.mulf %12, %14 : vector<8x128xf32>
      %c0_13 = arith.constant 0 : index
      %c0_14 = arith.constant 0 : index
      %16 = vector.load %arg6[%c0_13, %c0_14] : memref<1x128xf32, #tpu.memory_space<vmem>>, vector<1x128xf32>
      %17 = vector.broadcast %16 : vector<1x128xf32> to vector<8x128xf32>
      %18 = arith.addf %15, %17 : vector<8x128xf32>
      %19 = arith.truncf %18 : vector<8x128xf32> to vector<8x128xbf16>
      %c0_15 = arith.constant 0 : index
      %c0_16 = arith.constant 0 : index
      %20 = vector.load %arg7[%c0_15, %c0_16] : memref<8x128xbf16, #tpu.memory_space<vmem>>, vector<8x128xbf16>
      tpu.vector_store %arg7[%c0_15, %c0_16], %19 {strides = array<i32>} : memref<8x128xbf16, #tpu.memory_space<vmem>>, vector<8x128xbf16>,
    } else {
    }
    return
  }
  func.func @transform_0(%arg0: i32, %arg1: i32, %arg2: i32) -> (i32, i32) {
    %c0_i32 = arith.constant 0 : i32
    return %arg0, %arg2 : i32, i32
  }
  func.func @transform_1(%arg0: i32, %arg1: i32, %arg2: i32) -> (i32, i32) {
    %c0_i32 = arith.constant 0 : i32
    return %arg2, %arg1 : i32, i32
  }
  func.func @transform_2(%arg0: i32, %arg1: i32, %arg2: i32) -> (i32, i32) {
    %c0_i32 = arith.constant 0 : i32
    %c0_i32_0 = arith.constant 0 : i32
    return %c0_i32, %arg1 : i32, i32
  }
  func.func @transform_3(%arg0: i32, %arg1: i32, %arg2: i32) -> (i32, i32) {
    %c0_i32 = arith.constant 0 : i32
    %c0_i32_0 = arith.constant 0 : i32
    return %c0_i32, %arg1 : i32, i32
  }
  func.func @transform_4(%arg0: i32, %arg1: i32, %arg2: i32) -> (i32, i32) {
    %c0_i32 = arith.constant 0 : i32
    return %arg0, %arg1 : i32, i32
  }
}

module attributes {stable_mosaic.version = 11 : i64} {
  func.func @kernel(%arg0: i32, %arg1: i32, %arg2: i32, %arg3: memref<32x128xbf16, #tpu.memory_space<vmem>>, %arg4: memref<128x128xbf16, #tpu.memory_space<vmem>>, %arg5: memref<1x128xf32, #tpu.memory_space<vmem>>, %arg6: memref<1x128xf32, #tpu.memory_space<vmem>>, %arg7: memref<32x128xbf16, #tpu.memory_space<vmem>>, %arg8: memref<32x128xf32, #tpu.memory_space<vmem>>) attributes {dimension_semantics = [#tpu.dimension_semantics<parallel>, #tpu.dimension_semantics<parallel>, #tpu.dimension_semantics<arbitrary>], iteration_bounds = array<i64: 1, 1, 1>, scalar_prefetch = 0 : i64, scratch_operands = 1 : i64, tpu.core_type = #tpu.core_type<tc>, window_params = [{transform_indices = @transform_0, window_bounds = array<i64: 32, 128>}, {transform_indices = @transform_1, window_bounds = array<i64: 128, 128>}, {transform_indices = @transform_2, window_bounds = array<i64: 1, 128>}, {transform_indices = @transform_3, window_bounds = array<i64: 1, 128>}, {transform_indices = @transform_4, window_bounds = array<i64: 32, 128>}]} {
    %c0_i32 = arith.constant 0 : i32
    %0 = arith.cmpi eq, %arg2, %c0_i32 : i32
    %1 = arith.extui %0 : i1 to i32
    %c0_i32_0 = arith.constant 0 : i32
    %2 = arith.cmpi ne, %1, %c0_i32_0 : i32
    scf.if %2 {
      %cst_10 = arith.constant 0.000000e+00 : f32
      %12 = vector.broadcast %cst_10 : f32 to vector<32x128xf32>
      %c0_11 = arith.constant 0 : index
      %c0_12 = arith.constant 0 : index
      %13 = vector.load %arg8[%c0_11, %c0_12] : memref<32x128xf32, #tpu.memory_space<vmem>>, vector<32x128xf32>
      tpu.vector_store %arg8[%c0_11, %c0_12], %12 {strides = array<i32>} : memref<32x128xf32, #tpu.memory_space<vmem>>, vector<32x128xf32>,
    } else {
    }
    %c0 = arith.constant 0 : index
    %c0_1 = arith.constant 0 : index
    %3 = vector.load %arg8[%c0, %c0_1] : memref<32x128xf32, #tpu.memory_space<vmem>>, vector<32x128xf32>
    %c0_2 = arith.constant 0 : index
    %c0_3 = arith.constant 0 : index
    %4 = vector.load %arg3[%c0_2, %c0_3] : memref<32x128xbf16, #tpu.memory_space<vmem>>, vector<32x128xbf16>
    %c0_4 = arith.constant 0 : index
    %c0_5 = arith.constant 0 : index
    %5 = vector.load %arg4[%c0_4, %c0_5] : memref<128x128xbf16, #tpu.memory_space<vmem>>, vector<128x128xbf16>
    %cst = arith.constant dense<0.000000e+00> : vector<32x128xf32>
    %6 = tpu.matmul %4, %5, %cst {dimension_numbers = #tpu.dot_dimension_numbers<[1], [0], [0], [1], [0, 0, 1, 1], [], []>} : vector<32x128xbf16>, vector<128x128xbf16>, vector<32x128xf32> -> vector<32x128xf32>
    %7 = arith.addf %3, %6 : vector<32x128xf32>
    %c0_6 = arith.constant 0 : index
    %c0_7 = arith.constant 0 : index
    %8 = vector.load %arg8[%c0_6, %c0_7] : memref<32x128xf32, #tpu.memory_space<vmem>>, vector<32x128xf32>
    tpu.vector_store %arg8[%c0_6, %c0_7], %7 {strides = array<i32>} : memref<32x128xf32, #tpu.memory_space<vmem>>, vector<32x128xf32>,
    %c0_i32_8 = arith.constant 0 : i32
    %9 = arith.cmpi eq, %arg2, %c0_i32_8 : i32
    %10 = arith.extui %9 : i1 to i32
    %c0_i32_9 = arith.constant 0 : i32
    %11 = arith.cmpi ne, %10, %c0_i32_9 : i32
    scf.if %11 {
      %c0_10 = arith.constant 0 : index
      %c0_11 = arith.constant 0 : index
      %12 = vector.load %arg8[%c0_10, %c0_11] : memref<32x128xf32, #tpu.memory_space<vmem>>, vector<32x128xf32>
      %c0_12 = arith.constant 0 : index
      %c0_13 = arith.constant 0 : index
      %13 = vector.load %arg5[%c0_12, %c0_13] : memref<1x128xf32, #tpu.memory_space<vmem>>, vector<1x128xf32>
      %14 = vector.broadcast %13 : vector<1x128xf32> to vector<32x128xf32>
      %15 = arith.mulf %12, %14 : vector<32x128xf32>
      %c0_14 = arith.constant 0 : index
      %c0_15 = arith.constant 0 : index
      %16 = vector.load %arg6[%c0_14, %c0_15] : memref<1x128xf32, #tpu.memory_space<vmem>>, vector<1x128xf32>
      %17 = vector.broadcast %16 : vector<1x128xf32> to vector<32x128xf32>
      %18 = arith.addf %15, %17 : vector<32x128xf32>
      %19 = arith.truncf %18 : vector<32x128xf32> to vector<32x128xbf16>
      %c0_16 = arith.constant 0 : index
      %c0_17 = arith.constant 0 : index
      %20 = vector.load %arg7[%c0_16, %c0_17] : memref<32x128xbf16, #tpu.memory_space<vmem>>, vector<32x128xbf16>
      tpu.vector_store %arg7[%c0_16, %c0_17], %19 {strides = array<i32>} : memref<32x128xbf16, #tpu.memory_space<vmem>>, vector<32x128xbf16>,
    } else {
    }
    return
  }
  func.func @transform_0(%arg0: i32, %arg1: i32, %arg2: i32) -> (i32, i32) {
    %c0_i32 = arith.constant 0 : i32
    return %arg0, %arg2 : i32, i32
  }
  func.func @transform_1(%arg0: i32, %arg1: i32, %arg2: i32) -> (i32, i32) {
    %c0_i32 = arith.constant 0 : i32
    return %arg2, %arg1 : i32, i32
  }
  func.func @transform_2(%arg0: i32, %arg1: i32, %arg2: i32) -> (i32, i32) {
    %c0_i32 = arith.constant 0 : i32
    %c0_i32_0 = arith.constant 0 : i32
    return %c0_i32, %arg1 : i32, i32
  }
  func.func @transform_3(%arg0: i32, %arg1: i32, %arg2: i32) -> (i32, i32) {
    %c0_i32 = arith.constant 0 : i32
    %c0_i32_0 = arith.constant 0 : i32
    return %c0_i32, %arg1 : i32, i32
  }
  func.func @transform_4(%arg0: i32, %arg1: i32, %arg2: i32) -> (i32, i32) {
    %c0_i32 = arith.constant 0 : i32
    return %arg0, %arg1 : i32, i32
  }
}

module attributes {stable_mosaic.version = 11 : i64} {
  func.func @kernel(%arg0: i32, %arg1: memref<128x128xbf16, #tpu.memory_space<vmem>>, %arg2: memref<128x128xbf16, #tpu.memory_space<vmem>>, %arg3: memref<128x128xbf16, #tpu.memory_space<vmem>>) attributes {dimension_semantics = [#tpu.dimension_semantics<parallel>], iteration_bounds = array<i64: 1>, scalar_prefetch = 0 : i64, scratch_operands = 0 : i64, tpu.core_type = #tpu.core_type<tc>, window_params = [{transform_indices = @transform_0, window_bounds = array<i64: 128, 128>}, {transform_indices = @transform_1, window_bounds = array<i64: 128, 128>}, {transform_indices = @transform_2, window_bounds = array<i64: 128, 128>}]} {
    %c0 = arith.constant 0 : index
    %c0_0 = arith.constant 0 : index
    %0 = vector.load %arg1[%c0, %c0_0] : memref<128x128xbf16, #tpu.memory_space<vmem>>, vector<128x128xbf16>
    %1 = arith.extf %0 : vector<128x128xbf16> to vector<128x128xf32>
    %c0_1 = arith.constant 0 : index
    %c0_2 = arith.constant 0 : index
    %2 = vector.load %arg2[%c0_1, %c0_2] : memref<128x128xbf16, #tpu.memory_space<vmem>>, vector<128x128xbf16>
    %3 = arith.extf %2 : vector<128x128xbf16> to vector<128x128xf32>
    %4 = arith.addf %1, %3 : vector<128x128xf32>
    %cst = arith.constant 0.000000e+00 : f32
    %5 = vector.broadcast %cst : f32 to vector<128x128xf32>
    %6 = arith.maximumf %4, %5 : vector<128x128xf32>
    %7 = arith.truncf %6 : vector<128x128xf32> to vector<128x128xbf16>
    %c0_3 = arith.constant 0 : index
    %c0_4 = arith.constant 0 : index
    %8 = vector.load %arg3[%c0_3, %c0_4] : memref<128x128xbf16, #tpu.memory_space<vmem>>, vector<128x128xbf16>
    tpu.vector_store %arg3[%c0_3, %c0_4], %7 {strides = array<i32>} : memref<128x128xbf16, #tpu.memory_space<vmem>>, vector<128x128xbf16>,
    return
  }
  func.func @transform_0(%arg0: i32) -> (i32, i32) {
    %c0_i32 = arith.constant 0 : i32
    %c0_i32_0 = arith.constant 0 : i32
    return %arg0, %c0_i32 : i32, i32
  }
  func.func @transform_1(%arg0: i32) -> (i32, i32) {
    %c0_i32 = arith.constant 0 : i32
    %c0_i32_0 = arith.constant 0 : i32
    return %arg0, %c0_i32 : i32, i32
  }
  func.func @transform_2(%arg0: i32) -> (i32, i32) {
    %c0_i32 = arith.constant 0 : i32
    %c0_i32_0 = arith.constant 0 : i32
    return %arg0, %c0_i32 : i32, i32
  }
}

module attributes {stable_mosaic.version = 11 : i64} {
  func.func @kernel(%arg0: i32, %arg1: i32, %arg2: i32, %arg3: memref<8x128xbf16, #tpu.memory_space<vmem>>, %arg4: memref<128x128xbf16, #tpu.memory_space<vmem>>, %arg5: memref<1x128xf32, #tpu.memory_space<vmem>>, %arg6: memref<1x128xf32, #tpu.memory_space<vmem>>, %arg7: memref<8x128xbf16, #tpu.memory_space<vmem>>, %arg8: memref<8x128xf32, #tpu.memory_space<vmem>>) attributes {dimension_semantics = [#tpu.dimension_semantics<parallel>, #tpu.dimension_semantics<parallel>, #tpu.dimension_semantics<arbitrary>], iteration_bounds = array<i64: 1, 1, 9>, scalar_prefetch = 0 : i64, scratch_operands = 1 : i64, tpu.core_type = #tpu.core_type<tc>, window_params = [{transform_indices = @transform_0, window_bounds = array<i64: 8, 128>}, {transform_indices = @transform_1, window_bounds = array<i64: 128, 128>}, {transform_indices = @transform_2, window_bounds = array<i64: 1, 128>}, {transform_indices = @transform_3, window_bounds = array<i64: 1, 128>}, {transform_indices = @transform_4, window_bounds = array<i64: 8, 128>}]} {
    %c0_i32 = arith.constant 0 : i32
    %0 = arith.cmpi eq, %arg2, %c0_i32 : i32
    %1 = arith.extui %0 : i1 to i32
    %c0_i32_0 = arith.constant 0 : i32
    %2 = arith.cmpi ne, %1, %c0_i32_0 : i32
    scf.if %2 {
      %cst_9 = arith.constant 0.000000e+00 : f32
      %12 = vector.broadcast %cst_9 : f32 to vector<8x128xf32>
      %c0_10 = arith.constant 0 : index
      %c0_11 = arith.constant 0 : index
      %13 = vector.load %arg8[%c0_10, %c0_11] : memref<8x128xf32, #tpu.memory_space<vmem>>, vector<8x128xf32>
      tpu.vector_store %arg8[%c0_10, %c0_11], %12 {strides = array<i32>} : memref<8x128xf32, #tpu.memory_space<vmem>>, vector<8x128xf32>,
    } else {
    }
    %c0 = arith.constant 0 : index
    %c0_1 = arith.constant 0 : index
    %3 = vector.load %arg8[%c0, %c0_1] : memref<8x128xf32, #tpu.memory_space<vmem>>, vector<8x128xf32>
    %c0_2 = arith.constant 0 : index
    %c0_3 = arith.constant 0 : index
    %4 = vector.load %arg3[%c0_2, %c0_3] : memref<8x128xbf16, #tpu.memory_space<vmem>>, vector<8x128xbf16>
    %c0_4 = arith.constant 0 : index
    %c0_5 = arith.constant 0 : index
    %5 = vector.load %arg4[%c0_4, %c0_5] : memref<128x128xbf16, #tpu.memory_space<vmem>>, vector<128x128xbf16>
    %cst = arith.constant dense<0.000000e+00> : vector<8x128xf32>
    %6 = tpu.matmul %4, %5, %cst {dimension_numbers = #tpu.dot_dimension_numbers<[1], [0], [0], [1], [0, 0, 1, 1], [], []>} : vector<8x128xbf16>, vector<128x128xbf16>, vector<8x128xf32> -> vector<8x128xf32>
    %7 = arith.addf %3, %6 : vector<8x128xf32>
    %c0_6 = arith.constant 0 : index
    %c0_7 = arith.constant 0 : index
    %8 = vector.load %arg8[%c0_6, %c0_7] : memref<8x128xf32, #tpu.memory_space<vmem>>, vector<8x128xf32>
    tpu.vector_store %arg8[%c0_6, %c0_7], %7 {strides = array<i32>} : memref<8x128xf32, #tpu.memory_space<vmem>>, vector<8x128xf32>,
    %c8_i32 = arith.constant 8 : i32
    %9 = arith.cmpi eq, %arg2, %c8_i32 : i32
    %10 = arith.extui %9 : i1 to i32
    %c0_i32_8 = arith.constant 0 : i32
    %11 = arith.cmpi ne, %10, %c0_i32_8 : i32
    scf.if %11 {
      %c0_9 = arith.constant 0 : index
      %c0_10 = arith.constant 0 : index
      %12 = vector.load %arg8[%c0_9, %c0_10] : memref<8x128xf32, #tpu.memory_space<vmem>>, vector<8x128xf32>
      %c0_11 = arith.constant 0 : index
      %c0_12 = arith.constant 0 : index
      %13 = vector.load %arg5[%c0_11, %c0_12] : memref<1x128xf32, #tpu.memory_space<vmem>>, vector<1x128xf32>
      %14 = vector.broadcast %13 : vector<1x128xf32> to vector<8x128xf32>
      %15 = arith.mulf %12, %14 : vector<8x128xf32>
      %c0_13 = arith.constant 0 : index
      %c0_14 = arith.constant 0 : index
      %16 = vector.load %arg6[%c0_13, %c0_14] : memref<1x128xf32, #tpu.memory_space<vmem>>, vector<1x128xf32>
      %17 = vector.broadcast %16 : vector<1x128xf32> to vector<8x128xf32>
      %18 = arith.addf %15, %17 : vector<8x128xf32>
      %cst_15 = arith.constant 0.000000e+00 : f32
      %19 = vector.broadcast %cst_15 : f32 to vector<8x128xf32>
      %20 = arith.maximumf %18, %19 : vector<8x128xf32>
      %21 = arith.truncf %20 : vector<8x128xf32> to vector<8x128xbf16>
      %c0_16 = arith.constant 0 : index
      %c0_17 = arith.constant 0 : index
      %22 = vector.load %arg7[%c0_16, %c0_17] : memref<8x128xbf16, #tpu.memory_space<vmem>>, vector<8x128xbf16>
      tpu.vector_store %arg7[%c0_16, %c0_17], %21 {strides = array<i32>} : memref<8x128xbf16, #tpu.memory_space<vmem>>, vector<8x128xbf16>,
    } else {
    }
    return
  }
  func.func @transform_0(%arg0: i32, %arg1: i32, %arg2: i32) -> (i32, i32) {
    %c0_i32 = arith.constant 0 : i32
    return %arg0, %arg2 : i32, i32
  }
  func.func @transform_1(%arg0: i32, %arg1: i32, %arg2: i32) -> (i32, i32) {
    %c0_i32 = arith.constant 0 : i32
    return %arg2, %arg1 : i32, i32
  }
  func.func @transform_2(%arg0: i32, %arg1: i32, %arg2: i32) -> (i32, i32) {
    %c0_i32 = arith.constant 0 : i32
    %c0_i32_0 = arith.constant 0 : i32
    return %c0_i32, %arg1 : i32, i32
  }
  func.func @transform_3(%arg0: i32, %arg1: i32, %arg2: i32) -> (i32, i32) {
    %c0_i32 = arith.constant 0 : i32
    %c0_i32_0 = arith.constant 0 : i32
    return %c0_i32, %arg1 : i32, i32
  }
  func.func @transform_4(%arg0: i32, %arg1: i32, %arg2: i32) -> (i32, i32) {
    %c0_i32 = arith.constant 0 : i32
    return %arg0, %arg1 : i32, i32
  }
}

module attributes {stable_mosaic.version = 11 : i64} {
  func.func @kernel(%arg0: i32, %arg1: i32, %arg2: i32, %arg3: memref<8x128xbf16, #tpu.memory_space<vmem>>, %arg4: memref<128x128xbf16, #tpu.memory_space<vmem>>, %arg5: memref<1x128xf32, #tpu.memory_space<vmem>>, %arg6: memref<1x128xf32, #tpu.memory_space<vmem>>, %arg7: memref<8x128xbf16, #tpu.memory_space<vmem>>, %arg8: memref<8x128xbf16, #tpu.memory_space<vmem>>, %arg9: memref<8x128xf32, #tpu.memory_space<vmem>>) attributes {dimension_semantics = [#tpu.dimension_semantics<parallel>, #tpu.dimension_semantics<parallel>, #tpu.dimension_semantics<arbitrary>], iteration_bounds = array<i64: 1, 1, 9>, scalar_prefetch = 0 : i64, scratch_operands = 1 : i64, tpu.core_type = #tpu.core_type<tc>, window_params = [{transform_indices = @transform_0, window_bounds = array<i64: 8, 128>}, {transform_indices = @transform_1, window_bounds = array<i64: 128, 128>}, {transform_indices = @transform_2, window_bounds = array<i64: 1, 128>}, {transform_indices = @transform_3, window_bounds = array<i64: 1, 128>}, {transform_indices = @transform_4, window_bounds = array<i64: 8, 128>}, {transform_indices = @transform_5, window_bounds = array<i64: 8, 128>}]} {
    %c0_i32 = arith.constant 0 : i32
    %0 = arith.cmpi eq, %arg2, %c0_i32 : i32
    %1 = arith.extui %0 : i1 to i32
    %c0_i32_0 = arith.constant 0 : i32
    %2 = arith.cmpi ne, %1, %c0_i32_0 : i32
    scf.if %2 {
      %cst_9 = arith.constant 0.000000e+00 : f32
      %12 = vector.broadcast %cst_9 : f32 to vector<8x128xf32>
      %c0_10 = arith.constant 0 : index
      %c0_11 = arith.constant 0 : index
      %13 = vector.load %arg9[%c0_10, %c0_11] : memref<8x128xf32, #tpu.memory_space<vmem>>, vector<8x128xf32>
      tpu.vector_store %arg9[%c0_10, %c0_11], %12 {strides = array<i32>} : memref<8x128xf32, #tpu.memory_space<vmem>>, vector<8x128xf32>,
    } else {
    }
    %c0 = arith.constant 0 : index
    %c0_1 = arith.constant 0 : index
    %3 = vector.load %arg9[%c0, %c0_1] : memref<8x128xf32, #tpu.memory_space<vmem>>, vector<8x128xf32>
    %c0_2 = arith.constant 0 : index
    %c0_3 = arith.constant 0 : index
    %4 = vector.load %arg3[%c0_2, %c0_3] : memref<8x128xbf16, #tpu.memory_space<vmem>>, vector<8x128xbf16>
    %c0_4 = arith.constant 0 : index
    %c0_5 = arith.constant 0 : index
    %5 = vector.load %arg4[%c0_4, %c0_5] : memref<128x128xbf16, #tpu.memory_space<vmem>>, vector<128x128xbf16>
    %cst = arith.constant dense<0.000000e+00> : vector<8x128xf32>
    %6 = tpu.matmul %4, %5, %cst {dimension_numbers = #tpu.dot_dimension_numbers<[1], [0], [0], [1], [0, 0, 1, 1], [], []>} : vector<8x128xbf16>, vector<128x128xbf16>, vector<8x128xf32> -> vector<8x128xf32>
    %7 = arith.addf %3, %6 : vector<8x128xf32>
    %c0_6 = arith.constant 0 : index
    %c0_7 = arith.constant 0 : index
    %8 = vector.load %arg9[%c0_6, %c0_7] : memref<8x128xf32, #tpu.memory_space<vmem>>, vector<8x128xf32>
    tpu.vector_store %arg9[%c0_6, %c0_7], %7 {strides = array<i32>} : memref<8x128xf32, #tpu.memory_space<vmem>>, vector<8x128xf32>,
    %c8_i32 = arith.constant 8 : i32
    %9 = arith.cmpi eq, %arg2, %c8_i32 : i32
    %10 = arith.extui %9 : i1 to i32
    %c0_i32_8 = arith.constant 0 : i32
    %11 = arith.cmpi ne, %10, %c0_i32_8 : i32
    scf.if %11 {
      %c0_9 = arith.constant 0 : index
      %c0_10 = arith.constant 0 : index
      %12 = vector.load %arg9[%c0_9, %c0_10] : memref<8x128xf32, #tpu.memory_space<vmem>>, vector<8x128xf32>
      %c0_11 = arith.constant 0 : index
      %c0_12 = arith.constant 0 : index
      %13 = vector.load %arg5[%c0_11, %c0_12] : memref<1x128xf32, #tpu.memory_space<vmem>>, vector<1x128xf32>
      %14 = vector.broadcast %13 : vector<1x128xf32> to vector<8x128xf32>
      %15 = arith.mulf %12, %14 : vector<8x128xf32>
      %c0_13 = arith.constant 0 : index
      %c0_14 = arith.constant 0 : index
      %16 = vector.load %arg6[%c0_13, %c0_14] : memref<1x128xf32, #tpu.memory_space<vmem>>, vector<1x128xf32>
      %17 = vector.broadcast %16 : vector<1x128xf32> to vector<8x128xf32>
      %18 = arith.addf %15, %17 : vector<8x128xf32>
      %c0_15 = arith.constant 0 : index
      %c0_16 = arith.constant 0 : index
      %19 = vector.load %arg7[%c0_15, %c0_16] : memref<8x128xbf16, #tpu.memory_space<vmem>>, vector<8x128xbf16>
      %20 = arith.extf %19 : vector<8x128xbf16> to vector<8x128xf32>
      %21 = arith.addf %18, %20 : vector<8x128xf32>
      %cst_17 = arith.constant 0.000000e+00 : f32
      %22 = vector.broadcast %cst_17 : f32 to vector<8x128xf32>
      %23 = arith.maximumf %21, %22 : vector<8x128xf32>
      %24 = arith.truncf %23 : vector<8x128xf32> to vector<8x128xbf16>
      %c0_18 = arith.constant 0 : index
      %c0_19 = arith.constant 0 : index
      %25 = vector.load %arg8[%c0_18, %c0_19] : memref<8x128xbf16, #tpu.memory_space<vmem>>, vector<8x128xbf16>
      tpu.vector_store %arg8[%c0_18, %c0_19], %24 {strides = array<i32>} : memref<8x128xbf16, #tpu.memory_space<vmem>>, vector<8x128xbf16>,
    } else {
    }
    return
  }
  func.func @transform_0(%arg0: i32, %arg1: i32, %arg2: i32) -> (i32, i32) {
    %c0_i32 = arith.constant 0 : i32
    return %arg0, %arg2 : i32, i32
  }
  func.func @transform_1(%arg0: i32, %arg1: i32, %arg2: i32) -> (i32, i32) {
    %c0_i32 = arith.constant 0 : i32
    return %arg2, %arg1 : i32, i32
  }
  func.func @transform_2(%arg0: i32, %arg1: i32, %arg2: i32) -> (i32, i32) {
    %c0_i32 = arith.constant 0 : i32
    %c0_i32_0 = arith.constant 0 : i32
    return %c0_i32, %arg1 : i32, i32
  }
  func.func @transform_3(%arg0: i32, %arg1: i32, %arg2: i32) -> (i32, i32) {
    %c0_i32 = arith.constant 0 : i32
    %c0_i32_0 = arith.constant 0 : i32
    return %c0_i32, %arg1 : i32, i32
  }
  func.func @transform_4(%arg0: i32, %arg1: i32, %arg2: i32) -> (i32, i32) {
    %c0_i32 = arith.constant 0 : i32
    return %arg0, %arg1 : i32, i32
  }
  func.func @transform_5(%arg0: i32, %arg1: i32, %arg2: i32) -> (i32, i32) {
    %c0_i32 = arith.constant 0 : i32
    return %arg0, %arg1 : i32, i32
  }
}

module attributes {stable_mosaic.version = 11 : i64} {
  func.func @kernel(%arg0: i32, %arg1: memref<8x128xbf16, #tpu.memory_space<vmem>>, %arg2: memref<8x128xbf16, #tpu.memory_space<vmem>>, %arg3: memref<8x128xbf16, #tpu.memory_space<vmem>>, %arg4: memref<8x128xbf16, #tpu.memory_space<vmem>>) attributes {dimension_semantics = [#tpu.dimension_semantics<parallel>], iteration_bounds = array<i64: 1>, scalar_prefetch = 0 : i64, scratch_operands = 0 : i64, tpu.core_type = #tpu.core_type<tc>, window_params = [{transform_indices = @transform_0, window_bounds = array<i64: 8, 128>}, {transform_indices = @transform_1, window_bounds = array<i64: 8, 128>}, {transform_indices = @transform_2, window_bounds = array<i64: 8, 128>}, {transform_indices = @transform_3, window_bounds = array<i64: 8, 128>}]} {
    %c0 = arith.constant 0 : index
    %c0_0 = arith.constant 0 : index
    %0 = vector.load %arg1[%c0, %c0_0] : memref<8x128xbf16, #tpu.memory_space<vmem>>, vector<8x128xbf16>
    %1 = arith.extf %0 : vector<8x128xbf16> to vector<8x128xf32>
    %c0_1 = arith.constant 0 : index
    %c0_2 = arith.constant 0 : index
    %2 = vector.load %arg2[%c0_1, %c0_2] : memref<8x128xbf16, #tpu.memory_space<vmem>>, vector<8x128xbf16>
    %3 = arith.extf %2 : vector<8x128xbf16> to vector<8x128xf32>
    %4 = arith.addf %1, %3 : vector<8x128xf32>
    %c0_3 = arith.constant 0 : index
    %c0_4 = arith.constant 0 : index
    %5 = vector.load %arg3[%c0_3, %c0_4] : memref<8x128xbf16, #tpu.memory_space<vmem>>, vector<8x128xbf16>
    %6 = arith.extf %5 : vector<8x128xbf16> to vector<8x128xf32>
    %7 = arith.addf %4, %6 : vector<8x128xf32>
    %cst = arith.constant 0.000000e+00 : f32
    %8 = vector.broadcast %cst : f32 to vector<8x128xf32>
    %9 = arith.maximumf %7, %8 : vector<8x128xf32>
    %10 = arith.truncf %9 : vector<8x128xf32> to vector<8x128xbf16>
    %c0_5 = arith.constant 0 : index
    %c0_6 = arith.constant 0 : index
    %11 = vector.load %arg4[%c0_5, %c0_6] : memref<8x128xbf16, #tpu.memory_space<vmem>>, vector<8x128xbf16>
    tpu.vector_store %arg4[%c0_5, %c0_6], %10 {strides = array<i32>} : memref<8x128xbf16, #tpu.memory_space<vmem>>, vector<8x128xbf16>,
    return
  }
  func.func @transform_0(%arg0: i32) -> (i32, i32) {
    %c0_i32 = arith.constant 0 : i32
    %c0_i32_0 = arith.constant 0 : i32
    return %arg0, %c0_i32 : i32, i32
  }
  func.func @transform_1(%arg0: i32) -> (i32, i32) {
    %c0_i32 = arith.constant 0 : i32
    %c0_i32_0 = arith.constant 0 : i32
    return %arg0, %c0_i32 : i32, i32
  }
  func.func @transform_2(%arg0: i32) -> (i32, i32) {
    %c0_i32 = arith.constant 0 : i32
    %c0_i32_0 = arith.constant 0 : i32
    return %arg0, %c0_i32 : i32, i32
  }
  func.func @transform_3(%arg0: i32) -> (i32, i32) {
    %c0_i32 = arith.constant 0 : i32
    %c0_i32_0 = arith.constant 0 : i32
    return %arg0, %c0_i32 : i32, i32
  }
}

module attributes {stable_mosaic.version = 11 : i64} {
  func.func @kernel(%arg0: i32, %arg1: i32, %arg2: i32, %arg3: memref<8x128xbf16, #tpu.memory_space<vmem>>, %arg4: memref<128x128xbf16, #tpu.memory_space<vmem>>, %arg5: memref<1x128xf32, #tpu.memory_space<vmem>>, %arg6: memref<1x128xf32, #tpu.memory_space<vmem>>, %arg7: memref<8x128xbf16, #tpu.memory_space<vmem>>, %arg8: memref<8x128xf32, #tpu.memory_space<vmem>>) attributes {dimension_semantics = [#tpu.dimension_semantics<parallel>, #tpu.dimension_semantics<parallel>, #tpu.dimension_semantics<arbitrary>], iteration_bounds = array<i64: 1, 1, 1>, scalar_prefetch = 0 : i64, scratch_operands = 1 : i64, tpu.core_type = #tpu.core_type<tc>, window_params = [{transform_indices = @transform_0, window_bounds = array<i64: 8, 128>}, {transform_indices = @transform_1, window_bounds = array<i64: 128, 128>}, {transform_indices = @transform_2, window_bounds = array<i64: 1, 128>}, {transform_indices = @transform_3, window_bounds = array<i64: 1, 128>}, {transform_indices = @transform_4, window_bounds = array<i64: 8, 128>}]} {
    %c0_i32 = arith.constant 0 : i32
    %0 = arith.cmpi eq, %arg2, %c0_i32 : i32
    %1 = arith.extui %0 : i1 to i32
    %c0_i32_0 = arith.constant 0 : i32
    %2 = arith.cmpi ne, %1, %c0_i32_0 : i32
    scf.if %2 {
      %cst_10 = arith.constant 0.000000e+00 : f32
      %12 = vector.broadcast %cst_10 : f32 to vector<8x128xf32>
      %c0_11 = arith.constant 0 : index
      %c0_12 = arith.constant 0 : index
      %13 = vector.load %arg8[%c0_11, %c0_12] : memref<8x128xf32, #tpu.memory_space<vmem>>, vector<8x128xf32>
      tpu.vector_store %arg8[%c0_11, %c0_12], %12 {strides = array<i32>} : memref<8x128xf32, #tpu.memory_space<vmem>>, vector<8x128xf32>,
    } else {
    }
    %c0 = arith.constant 0 : index
    %c0_1 = arith.constant 0 : index
    %3 = vector.load %arg8[%c0, %c0_1] : memref<8x128xf32, #tpu.memory_space<vmem>>, vector<8x128xf32>
    %c0_2 = arith.constant 0 : index
    %c0_3 = arith.constant 0 : index
    %4 = vector.load %arg3[%c0_2, %c0_3] : memref<8x128xbf16, #tpu.memory_space<vmem>>, vector<8x128xbf16>
    %c0_4 = arith.constant 0 : index
    %c0_5 = arith.constant 0 : index
    %5 = vector.load %arg4[%c0_4, %c0_5] : memref<128x128xbf16, #tpu.memory_space<vmem>>, vector<128x128xbf16>
    %cst = arith.constant dense<0.000000e+00> : vector<8x128xf32>
    %6 = tpu.matmul %4, %5, %cst {dimension_numbers = #tpu.dot_dimension_numbers<[1], [0], [0], [1], [0, 0, 1, 1], [], []>} : vector<8x128xbf16>, vector<128x128xbf16>, vector<8x128xf32> -> vector<8x128xf32>
    %7 = arith.addf %3, %6 : vector<8x128xf32>
    %c0_6 = arith.constant 0 : index
    %c0_7 = arith.constant 0 : index
    %8 = vector.load %arg8[%c0_6, %c0_7] : memref<8x128xf32, #tpu.memory_space<vmem>>, vector<8x128xf32>
    tpu.vector_store %arg8[%c0_6, %c0_7], %7 {strides = array<i32>} : memref<8x128xf32, #tpu.memory_space<vmem>>, vector<8x128xf32>,
    %c0_i32_8 = arith.constant 0 : i32
    %9 = arith.cmpi eq, %arg2, %c0_i32_8 : i32
    %10 = arith.extui %9 : i1 to i32
    %c0_i32_9 = arith.constant 0 : i32
    %11 = arith.cmpi ne, %10, %c0_i32_9 : i32
    scf.if %11 {
      %c0_10 = arith.constant 0 : index
      %c0_11 = arith.constant 0 : index
      %12 = vector.load %arg8[%c0_10, %c0_11] : memref<8x128xf32, #tpu.memory_space<vmem>>, vector<8x128xf32>
      %c0_12 = arith.constant 0 : index
      %c0_13 = arith.constant 0 : index
      %13 = vector.load %arg5[%c0_12, %c0_13] : memref<1x128xf32, #tpu.memory_space<vmem>>, vector<1x128xf32>
      %14 = vector.broadcast %13 : vector<1x128xf32> to vector<8x128xf32>
      %15 = arith.mulf %12, %14 : vector<8x128xf32>
      %c0_14 = arith.constant 0 : index
      %c0_15 = arith.constant 0 : index
      %16 = vector.load %arg6[%c0_14, %c0_15] : memref<1x128xf32, #tpu.memory_space<vmem>>, vector<1x128xf32>
      %17 = vector.broadcast %16 : vector<1x128xf32> to vector<8x128xf32>
      %18 = arith.addf %15, %17 : vector<8x128xf32>
      %19 = arith.truncf %18 : vector<8x128xf32> to vector<8x128xbf16>
      %c0_16 = arith.constant 0 : index
      %c0_17 = arith.constant 0 : index
      %20 = vector.load %arg7[%c0_16, %c0_17] : memref<8x128xbf16, #tpu.memory_space<vmem>>, vector<8x128xbf16>
      tpu.vector_store %arg7[%c0_16, %c0_17], %19 {strides = array<i32>} : memref<8x128xbf16, #tpu.memory_space<vmem>>, vector<8x128xbf16>,
    } else {
    }
    return
  }
  func.func @transform_0(%arg0: i32, %arg1: i32, %arg2: i32) -> (i32, i32) {
    %c0_i32 = arith.constant 0 : i32
    return %arg0, %arg2 : i32, i32
  }
  func.func @transform_1(%arg0: i32, %arg1: i32, %arg2: i32) -> (i32, i32) {
    %c0_i32 = arith.constant 0 : i32
    return %arg2, %arg1 : i32, i32
  }
  func.func @transform_2(%arg0: i32, %arg1: i32, %arg2: i32) -> (i32, i32) {
    %c0_i32 = arith.constant 0 : i32
    %c0_i32_0 = arith.constant 0 : i32
    return %c0_i32, %arg1 : i32, i32
  }
  func.func @transform_3(%arg0: i32, %arg1: i32, %arg2: i32) -> (i32, i32) {
    %c0_i32 = arith.constant 0 : i32
    %c0_i32_0 = arith.constant 0 : i32
    return %c0_i32, %arg1 : i32, i32
  }
  func.func @transform_4(%arg0: i32, %arg1: i32, %arg2: i32) -> (i32, i32) {
    %c0_i32 = arith.constant 0 : i32
    return %arg0, %arg1 : i32, i32
  }
}

module attributes {stable_mosaic.version = 11 : i64} {
  func.func @kernel(%arg0: i32, %arg1: memref<32x128xbf16, #tpu.memory_space<vmem>>, %arg2: memref<32x128xbf16, #tpu.memory_space<vmem>>, %arg3: memref<32x128xbf16, #tpu.memory_space<vmem>>, %arg4: memref<32x128xbf16, #tpu.memory_space<vmem>>) attributes {dimension_semantics = [#tpu.dimension_semantics<parallel>], iteration_bounds = array<i64: 1>, scalar_prefetch = 0 : i64, scratch_operands = 0 : i64, tpu.core_type = #tpu.core_type<tc>, window_params = [{transform_indices = @transform_0, window_bounds = array<i64: 32, 128>}, {transform_indices = @transform_1, window_bounds = array<i64: 32, 128>}, {transform_indices = @transform_2, window_bounds = array<i64: 32, 128>}, {transform_indices = @transform_3, window_bounds = array<i64: 32, 128>}]} {
    %c0 = arith.constant 0 : index
    %c0_0 = arith.constant 0 : index
    %0 = vector.load %arg1[%c0, %c0_0] : memref<32x128xbf16, #tpu.memory_space<vmem>>, vector<32x128xbf16>
    %1 = arith.extf %0 : vector<32x128xbf16> to vector<32x128xf32>
    %c0_1 = arith.constant 0 : index
    %c0_2 = arith.constant 0 : index
    %2 = vector.load %arg2[%c0_1, %c0_2] : memref<32x128xbf16, #tpu.memory_space<vmem>>, vector<32x128xbf16>
    %3 = arith.extf %2 : vector<32x128xbf16> to vector<32x128xf32>
    %4 = arith.addf %1, %3 : vector<32x128xf32>
    %c0_3 = arith.constant 0 : index
    %c0_4 = arith.constant 0 : index
    %5 = vector.load %arg3[%c0_3, %c0_4] : memref<32x128xbf16, #tpu.memory_space<vmem>>, vector<32x128xbf16>
    %6 = arith.extf %5 : vector<32x128xbf16> to vector<32x128xf32>
    %7 = arith.addf %4, %6 : vector<32x128xf32>
    %cst = arith.constant 0.000000e+00 : f32
    %8 = vector.broadcast %cst : f32 to vector<32x128xf32>
    %9 = arith.maximumf %7, %8 : vector<32x128xf32>
    %10 = arith.truncf %9 : vector<32x128xf32> to vector<32x128xbf16>
    %c0_5 = arith.constant 0 : index
    %c0_6 = arith.constant 0 : index
    %11 = vector.load %arg4[%c0_5, %c0_6] : memref<32x128xbf16, #tpu.memory_space<vmem>>, vector<32x128xbf16>
    tpu.vector_store %arg4[%c0_5, %c0_6], %10 {strides = array<i32>} : memref<32x128xbf16, #tpu.memory_space<vmem>>, vector<32x128xbf16>,
    return
  }
  func.func @transform_0(%arg0: i32) -> (i32, i32) {
    %c0_i32 = arith.constant 0 : i32
    %c0_i32_0 = arith.constant 0 : i32
    return %arg0, %c0_i32 : i32, i32
  }
  func.func @transform_1(%arg0: i32) -> (i32, i32) {
    %c0_i32 = arith.constant 0 : i32
    %c0_i32_0 = arith.constant 0 : i32
    return %arg0, %c0_i32 : i32, i32
  }
  func.func @transform_2(%arg0: i32) -> (i32, i32) {
    %c0_i32 = arith.constant 0 : i32
    %c0_i32_0 = arith.constant 0 : i32
    return %arg0, %c0_i32 : i32, i32
  }
  func.func @transform_3(%arg0: i32) -> (i32, i32) {
    %c0_i32 = arith.constant 0 : i32
    %c0_i32_0 = arith.constant 0 : i32
    return %arg0, %c0_i32 : i32, i32
  }
}

module attributes {stable_mosaic.version = 11 : i64} {
  func.func @kernel(%arg0: i32, %arg1: memref<128x128xbf16, #tpu.memory_space<vmem>>, %arg2: memref<128x128xbf16, #tpu.memory_space<vmem>>, %arg3: memref<128x128xbf16, #tpu.memory_space<vmem>>, %arg4: memref<128x128xbf16, #tpu.memory_space<vmem>>) attributes {dimension_semantics = [#tpu.dimension_semantics<parallel>], iteration_bounds = array<i64: 1>, scalar_prefetch = 0 : i64, scratch_operands = 0 : i64, tpu.core_type = #tpu.core_type<tc>, window_params = [{transform_indices = @transform_0, window_bounds = array<i64: 128, 128>}, {transform_indices = @transform_1, window_bounds = array<i64: 128, 128>}, {transform_indices = @transform_2, window_bounds = array<i64: 128, 128>}, {transform_indices = @transform_3, window_bounds = array<i64: 128, 128>}]} {
    %c0 = arith.constant 0 : index
    %c0_0 = arith.constant 0 : index
    %0 = vector.load %arg1[%c0, %c0_0] : memref<128x128xbf16, #tpu.memory_space<vmem>>, vector<128x128xbf16>
    %1 = arith.extf %0 : vector<128x128xbf16> to vector<128x128xf32>
    %c0_1 = arith.constant 0 : index
    %c0_2 = arith.constant 0 : index
    %2 = vector.load %arg2[%c0_1, %c0_2] : memref<128x128xbf16, #tpu.memory_space<vmem>>, vector<128x128xbf16>
    %3 = arith.extf %2 : vector<128x128xbf16> to vector<128x128xf32>
    %4 = arith.addf %1, %3 : vector<128x128xf32>
    %c0_3 = arith.constant 0 : index
    %c0_4 = arith.constant 0 : index
    %5 = vector.load %arg3[%c0_3, %c0_4] : memref<128x128xbf16, #tpu.memory_space<vmem>>, vector<128x128xbf16>
    %6 = arith.extf %5 : vector<128x128xbf16> to vector<128x128xf32>
    %7 = arith.addf %4, %6 : vector<128x128xf32>
    %cst = arith.constant 0.000000e+00 : f32
    %8 = vector.broadcast %cst : f32 to vector<128x128xf32>
    %9 = arith.maximumf %7, %8 : vector<128x128xf32>
    %10 = arith.truncf %9 : vector<128x128xf32> to vector<128x128xbf16>
    %c0_5 = arith.constant 0 : index
    %c0_6 = arith.constant 0 : index
    %11 = vector.load %arg4[%c0_5, %c0_6] : memref<128x128xbf16, #tpu.memory_space<vmem>>, vector<128x128xbf16>
    tpu.vector_store %arg4[%c0_5, %c0_6], %10 {strides = array<i32>} : memref<128x128xbf16, #tpu.memory_space<vmem>>, vector<128x128xbf16>,
    return
  }
  func.func @transform_0(%arg0: i32) -> (i32, i32) {
    %c0_i32 = arith.constant 0 : i32
    %c0_i32_0 = arith.constant 0 : i32
    return %arg0, %c0_i32 : i32, i32
  }
  func.func @transform_1(%arg0: i32) -> (i32, i32) {
    %c0_i32 = arith.constant 0 : i32
    %c0_i32_0 = arith.constant 0 : i32
    return %arg0, %c0_i32 : i32, i32
  }
  func.func @transform_2(%arg0: i32) -> (i32, i32) {
    %c0_i32 = arith.constant 0 : i32
    %c0_i32_0 = arith.constant 0 : i32
    return %arg0, %c0_i32 : i32, i32
  }
  func.func @transform_3(%arg0: i32) -> (i32, i32) {
    %c0_i32 = arith.constant 0 : i32
    %c0_i32_0 = arith.constant 0 : i32
    return %arg0, %c0_i32 : i32, i32
  }
}

module attributes {stable_mosaic.version = 11 : i64} {
  func.func @kernel(%arg0: i32, %arg1: memref<128x128xbf16, #tpu.memory_space<vmem>>, %arg2: memref<128x128xbf16, #tpu.memory_space<vmem>>, %arg3: memref<128x128xbf16, #tpu.memory_space<vmem>>, %arg4: memref<128x128xbf16, #tpu.memory_space<vmem>>, %arg5: memref<128x128xbf16, #tpu.memory_space<vmem>>) attributes {dimension_semantics = [#tpu.dimension_semantics<parallel>], iteration_bounds = array<i64: 1>, scalar_prefetch = 0 : i64, scratch_operands = 0 : i64, tpu.core_type = #tpu.core_type<tc>, window_params = [{transform_indices = @transform_0, window_bounds = array<i64: 128, 128>}, {transform_indices = @transform_1, window_bounds = array<i64: 128, 128>}, {transform_indices = @transform_2, window_bounds = array<i64: 128, 128>}, {transform_indices = @transform_3, window_bounds = array<i64: 128, 128>}, {transform_indices = @transform_4, window_bounds = array<i64: 128, 128>}]} {
    %c0 = arith.constant 0 : index
    %c0_0 = arith.constant 0 : index
    %0 = vector.load %arg1[%c0, %c0_0] : memref<128x128xbf16, #tpu.memory_space<vmem>>, vector<128x128xbf16>
    %1 = arith.extf %0 : vector<128x128xbf16> to vector<128x128xf32>
    %c0_1 = arith.constant 0 : index
    %c0_2 = arith.constant 0 : index
    %2 = vector.load %arg2[%c0_1, %c0_2] : memref<128x128xbf16, #tpu.memory_space<vmem>>, vector<128x128xbf16>
    %3 = arith.extf %2 : vector<128x128xbf16> to vector<128x128xf32>
    %4 = arith.addf %1, %3 : vector<128x128xf32>
    %c0_3 = arith.constant 0 : index
    %c0_4 = arith.constant 0 : index
    %5 = vector.load %arg3[%c0_3, %c0_4] : memref<128x128xbf16, #tpu.memory_space<vmem>>, vector<128x128xbf16>
    %6 = arith.extf %5 : vector<128x128xbf16> to vector<128x128xf32>
    %7 = arith.addf %4, %6 : vector<128x128xf32>
    %c0_5 = arith.constant 0 : index
    %c0_6 = arith.constant 0 : index
    %8 = vector.load %arg4[%c0_5, %c0_6] : memref<128x128xbf16, #tpu.memory_space<vmem>>, vector<128x128xbf16>
    %9 = arith.extf %8 : vector<128x128xbf16> to vector<128x128xf32>
    %10 = arith.addf %7, %9 : vector<128x128xf32>
    %cst = arith.constant 0.000000e+00 : f32
    %11 = vector.broadcast %cst : f32 to vector<128x128xf32>
    %12 = arith.maximumf %10, %11 : vector<128x128xf32>
    %13 = arith.truncf %12 : vector<128x128xf32> to vector<128x128xbf16>
    %c0_7 = arith.constant 0 : index
    %c0_8 = arith.constant 0 : index
    %14 = vector.load %arg5[%c0_7, %c0_8] : memref<128x128xbf16, #tpu.memory_space<vmem>>, vector<128x128xbf16>
    tpu.vector_store %arg5[%c0_7, %c0_8], %13 {strides = array<i32>} : memref<128x128xbf16, #tpu.memory_space<vmem>>, vector<128x128xbf16>,
    return
  }
  func.func @transform_0(%arg0: i32) -> (i32, i32) {
    %c0_i32 = arith.constant 0 : i32
    %c0_i32_0 = arith.constant 0 : i32
    return %arg0, %c0_i32 : i32, i32
  }
  func.func @transform_1(%arg0: i32) -> (i32, i32) {
    %c0_i32 = arith.constant 0 : i32
    %c0_i32_0 = arith.constant 0 : i32
    return %arg0, %c0_i32 : i32, i32
  }
  func.func @transform_2(%arg0: i32) -> (i32, i32) {
    %c0_i32 = arith.constant 0 : i32
    %c0_i32_0 = arith.constant 0 : i32
    return %arg0, %c0_i32 : i32, i32
  }
  func.func @transform_3(%arg0: i32) -> (i32, i32) {
    %c0_i32 = arith.constant 0 : i32
    %c0_i32_0 = arith.constant 0 : i32
    return %arg0, %c0_i32 : i32, i32
  }
  func.func @transform_4(%arg0: i32) -> (i32, i32) {
    %c0_i32 = arith.constant 0 : i32
    %c0_i32_0 = arith.constant 0 : i32
    return %arg0, %c0_i32 : i32, i32
  }
}

module attributes {stable_mosaic.version = 11 : i64} {
  func.func @kernel(%arg0: i32, %arg1: i32, %arg2: i32, %arg3: memref<128x128xbf16, #tpu.memory_space<vmem>>, %arg4: memref<128x128xbf16, #tpu.memory_space<vmem>>, %arg5: memref<1x128xf32, #tpu.memory_space<vmem>>, %arg6: memref<1x128xf32, #tpu.memory_space<vmem>>, %arg7: memref<128x128xf32, #tpu.memory_space<vmem>>, %arg8: memref<128x128xf32, #tpu.memory_space<vmem>>) attributes {dimension_semantics = [#tpu.dimension_semantics<parallel>, #tpu.dimension_semantics<parallel>, #tpu.dimension_semantics<arbitrary>], iteration_bounds = array<i64: 1, 1, 1>, scalar_prefetch = 0 : i64, scratch_operands = 1 : i64, tpu.core_type = #tpu.core_type<tc>, window_params = [{transform_indices = @transform_0, window_bounds = array<i64: 128, 128>}, {transform_indices = @transform_1, window_bounds = array<i64: 128, 128>}, {transform_indices = @transform_2, window_bounds = array<i64: 1, 128>}, {transform_indices = @transform_3, window_bounds = array<i64: 1, 128>}, {transform_indices = @transform_4, window_bounds = array<i64: 128, 128>}]} {
    %c0_i32 = arith.constant 0 : i32
    %0 = arith.cmpi eq, %arg2, %c0_i32 : i32
    %1 = arith.extui %0 : i1 to i32
    %c0_i32_0 = arith.constant 0 : i32
    %2 = arith.cmpi ne, %1, %c0_i32_0 : i32
    scf.if %2 {
      %cst_10 = arith.constant 0.000000e+00 : f32
      %12 = vector.broadcast %cst_10 : f32 to vector<128x128xf32>
      %c0_11 = arith.constant 0 : index
      %c0_12 = arith.constant 0 : index
      %13 = vector.load %arg8[%c0_11, %c0_12] : memref<128x128xf32, #tpu.memory_space<vmem>>, vector<128x128xf32>
      tpu.vector_store %arg8[%c0_11, %c0_12], %12 {strides = array<i32>} : memref<128x128xf32, #tpu.memory_space<vmem>>, vector<128x128xf32>,
    } else {
    }
    %c0 = arith.constant 0 : index
    %c0_1 = arith.constant 0 : index
    %3 = vector.load %arg8[%c0, %c0_1] : memref<128x128xf32, #tpu.memory_space<vmem>>, vector<128x128xf32>
    %c0_2 = arith.constant 0 : index
    %c0_3 = arith.constant 0 : index
    %4 = vector.load %arg3[%c0_2, %c0_3] : memref<128x128xbf16, #tpu.memory_space<vmem>>, vector<128x128xbf16>
    %c0_4 = arith.constant 0 : index
    %c0_5 = arith.constant 0 : index
    %5 = vector.load %arg4[%c0_4, %c0_5] : memref<128x128xbf16, #tpu.memory_space<vmem>>, vector<128x128xbf16>
    %cst = arith.constant dense<0.000000e+00> : vector<128x128xf32>
    %6 = tpu.matmul %4, %5, %cst {dimension_numbers = #tpu.dot_dimension_numbers<[1], [0], [0], [1], [0, 0, 1, 1], [], []>} : vector<128x128xbf16>, vector<128x128xbf16>, vector<128x128xf32> -> vector<128x128xf32>
    %7 = arith.addf %3, %6 : vector<128x128xf32>
    %c0_6 = arith.constant 0 : index
    %c0_7 = arith.constant 0 : index
    %8 = vector.load %arg8[%c0_6, %c0_7] : memref<128x128xf32, #tpu.memory_space<vmem>>, vector<128x128xf32>
    tpu.vector_store %arg8[%c0_6, %c0_7], %7 {strides = array<i32>} : memref<128x128xf32, #tpu.memory_space<vmem>>, vector<128x128xf32>,
    %c0_i32_8 = arith.constant 0 : i32
    %9 = arith.cmpi eq, %arg2, %c0_i32_8 : i32
    %10 = arith.extui %9 : i1 to i32
    %c0_i32_9 = arith.constant 0 : i32
    %11 = arith.cmpi ne, %10, %c0_i32_9 : i32
    scf.if %11 {
      %c0_10 = arith.constant 0 : index
      %c0_11 = arith.constant 0 : index
      %12 = vector.load %arg8[%c0_10, %c0_11] : memref<128x128xf32, #tpu.memory_space<vmem>>, vector<128x128xf32>
      %c0_12 = arith.constant 0 : index
      %c0_13 = arith.constant 0 : index
      %13 = vector.load %arg5[%c0_12, %c0_13] : memref<1x128xf32, #tpu.memory_space<vmem>>, vector<1x128xf32>
      %14 = vector.broadcast %13 : vector<1x128xf32> to vector<128x128xf32>
      %15 = arith.mulf %12, %14 : vector<128x128xf32>
      %c0_14 = arith.constant 0 : index
      %c0_15 = arith.constant 0 : index
      %16 = vector.load %arg6[%c0_14, %c0_15] : memref<1x128xf32, #tpu.memory_space<vmem>>, vector<1x128xf32>
      %17 = vector.broadcast %16 : vector<1x128xf32> to vector<128x128xf32>
      %18 = arith.addf %15, %17 : vector<128x128xf32>
      %c0_16 = arith.constant 0 : index
      %c0_17 = arith.constant 0 : index
      %19 = vector.load %arg7[%c0_16, %c0_17] : memref<128x128xf32, #tpu.memory_space<vmem>>, vector<128x128xf32>
      tpu.vector_store %arg7[%c0_16, %c0_17], %18 {strides = array<i32>} : memref<128x128xf32, #tpu.memory_space<vmem>>, vector<128x128xf32>,
    } else {
    }
    return
  }
  func.func @transform_0(%arg0: i32, %arg1: i32, %arg2: i32) -> (i32, i32) {
    %c0_i32 = arith.constant 0 : i32
    return %arg0, %arg2 : i32, i32
  }
  func.func @transform_1(%arg0: i32, %arg1: i32, %arg2: i32) -> (i32, i32) {
    %c0_i32 = arith.constant 0 : i32
    return %arg2, %arg1 : i32, i32
  }
  func.func @transform_2(%arg0: i32, %arg1: i32, %arg2: i32) -> (i32, i32) {
    %c0_i32 = arith.constant 0 : i32
    %c0_i32_0 = arith.constant 0 : i32
    return %c0_i32, %arg1 : i32, i32
  }
  func.func @transform_3(%arg0: i32, %arg1: i32, %arg2: i32) -> (i32, i32) {
    %c0_i32 = arith.constant 0 : i32
    %c0_i32_0 = arith.constant 0 : i32
    return %c0_i32, %arg1 : i32, i32
  }
  func.func @transform_4(%arg0: i32, %arg1: i32, %arg2: i32) -> (i32, i32) {
    %c0_i32 = arith.constant 0 : i32
    return %arg0, %arg1 : i32, i32
  }
}

</mosaic_0001>

<bundles_post_ra>
// kernel: _lambda_.56
= control target key start
LH: loop header
LB: loop body
LE: loop exit
PB: predicated region body
PF: predicated region fallthrough
CT: control target
= control target key end

     0   :  { %s1837_s15 = smov 0   ;;  %s1839_s16 = smov 0   ;;  %s2119_s0 = inlined_call_operand.vmem [shape: bf16[512,1152], index: 0, kind: input, shape index: {}]   ;;  %s2120_s1 = inlined_call_operand.vmem [shape: bf16[1152,128], index: 1, kind: input, shape index: {}]   ;;  %s2121_s2 = inlined_call_operand.vmem [shape: f32[1,128], index: 2, kind: input, shape index: {}]   ;;  %s2122_s3 = inlined_call_operand.vmem [shape: f32[1,128], index: 3, kind: input, shape index: {}]   ;;  %s2123_s4 = inlined_call_operand.vmem [shape: bf16[512,128], index: 4, kind: output, shape index: {}]  }
   0x1   :  { %s1841_s17 = smov 0   ;;  %s1843_s18 = smov 0  }
   0x2   :  { %s1845_s19 = smov 0   ;;  %s1847_s20 = smov 0  }
   0x3   :  { %s1849_s21 = smov 0  }
   0x4 LB: > { %s26_s22 = sadd.s32 1, %s1801_s19  ;;  %s33_s23 = sadd.s32 1, %s1805_s20  ;;  %s1809_s21 = sphi %s1849_s21, %s14_s21   ;;  %s1805_s20 = sphi %s1847_s20, %s2129_s20   ;;  %s1801_s19 = sphi %s1845_s19, %s2128_s19   ;;  %s1797_s18 = sphi %s1843_s18, %s2127_s18   ;;  %s1793_s17 = sphi %s1841_s17, %s2126_s17   ;;  %s1789_s16 = sphi %s1839_s16, %s2125_s16   ;;  %s1785_s15 = sphi %s1837_s15, %s2124_s15  }
   0x5   : > { %p27_p0 = scmp.ge.s32.totalorder %s26_s22, 9  ;;  %p49_p1 = scmp.ne.s32.totalorder %s1789_s16, %s1785_s15 }
   0x6   : > { %p50_p2 = scmp.eq.s32.totalorder %s1809_s21, 0  ;;  %s42_s27 = sadd.s32 1, %s1789_s16 }
   0x7   : > { %s2131_s22 = smov (%p27_p0, %s26_s22), 0  ;;  %s2133_s23 = smov (!%p27_p0, %s33_s23), %s1805_s20 }
   0x8   : > { %p51_p3 = por %p50_p2, %p49_p1  ;;  %p35_p4 = scmp.ge.s32.totalorder %s2133_s23, 2 }
   0x9   : > { %s38_s24 = ssub.s32 %s1801_s19, %s2131_s22  ;;  %p1385_p6 = scmp.ge.s32.totalorder %s1809_s21, 18 }
   0xa   : > { %s2135_s23 = smov (%p35_p4, %s2133_s23), 0 }
   0xb   : > { %s37_s25 = ssub.s32 %s1805_s20, %s2135_s23  ;;  %195 = sbr.rel (%p1385_p6) target bundleno = 44 (0x2c), region = 24 }
   0xc   : > { %s39_s26 = sor.u32 %s38_s24, %s37_s25 }
   0xd   : > { %p40_p5 = scmp.eq.s32.totalorder %s39_s26, 0 }
   0xf   : > { %s1888_s28 = scalar_select %p40_p5, %s1789_s16, %s42_s27  }
  0x10   : > { %198 = sbr.rel (!%p51_p3) target bundleno = 44 (0x2c), region = 28  ;;  %s200_s29 = sand.u32 (%p51_p3), 1, %s1789_s16  }
  0x11   : > { %s1673_s30 = smul.u32 (%p51_p3), 288, %s1805_s20  ;;  %s1386_s5 = sshll.u32 (%p51_p3), %s200_s29, 7 }
  0x12   : > { %s1902_s11 = scalar_lea.vmem (%p51_p3), [#allocation3], %s1386_s5 }
  0x13   : > { %s205_s6 = sadd.s32 (%p51_p3), %s1801_s19, %s1673_s30 }
  0x14   : > { %s1389_s7 = sshll.u32 (%p51_p3), %s205_s6, 2 }
  0x15   : > { %s1897_s10 = scalar_lea.vmem %s2119_s0, %s1389_s7 }
  0x16   : > { %v224_v0 = vld [vmem:[%s1897_s10] sm:$0xf]  ;;  %v226_v1 = vld [vmem:[%s1897_s10 + $0x24] sm:$0xf]  ;;  %v228_v2 = vld [vmem:[%s1897_s10 + $0x48] sm:$0xf] }
  0x17   : > { %225 = vst [vmem:[%s1902_s11] sm:$0xf] %v224_v0  ;;  %227 = vst [vmem:[%s1902_s11 + $0x4] sm:$0xf] %v226_v1  ;;  %v230_v3 = vld [vmem:[%s1897_s10 + $0x6c] sm:$0xf] }
  0x18   : > { %229 = vst [vmem:[%s1902_s11 + $0x8] sm:$0xf] %v228_v2  ;;  %v232_v4 = vld [vmem:[%s1897_s10 + $0x90] sm:$0xf]  ;;  %v234_v5 = vld [vmem:[%s1897_s10 + $0xb4] sm:$0xf] }
  0x19   : > { %231 = vst [vmem:[%s1902_s11 + $0xc] sm:$0xf] %v230_v3  ;;  %233 = vst [vmem:[%s1902_s11 + $0x10] sm:$0xf] %v232_v4  ;;  %v236_v6 = vld [vmem:[%s1897_s10 + $0xd8] sm:$0xf] }
  0x1a   : > { %235 = vst [vmem:[%s1902_s11 + $0x14] sm:$0xf] %v234_v5  ;;  %v238_v7 = vld [vmem:[%s1897_s10 + $0xfc] sm:$0xf]  ;;  %v240_v8 = vld [vmem:[%s1897_s10 + $0x120] sm:$0xf] }
  0x1b   : > { %237 = vst [vmem:[%s1902_s11 + $0x18] sm:$0xf] %v236_v6  ;;  %239 = vst [vmem:[%s1902_s11 + $0x1c] sm:$0xf] %v238_v7  ;;  %v242_v9 = vld [vmem:[%s1897_s10 + $0x144] sm:$0xf] }
  0x1c   : > { %241 = vst [vmem:[%s1902_s11 + $0x20] sm:$0xf] %v240_v8  ;;  %v244_v10 = vld [vmem:[%s1897_s10 + $0x168] sm:$0xf]  ;;  %v246_v11 = vld [vmem:[%s1897_s10 + $0x18c] sm:$0xf] }
  0x1d   : > { %243 = vst [vmem:[%s1902_s11 + $0x24] sm:$0xf] %v242_v9  ;;  %245 = vst [vmem:[%s1902_s11 + $0x28] sm:$0xf] %v244_v10  ;;  %v248_v12 = vld [vmem:[%s1897_s10 + $0x1b0] sm:$0xf] }
  0x1e   : > { %247 = vst [vmem:[%s1902_s11 + $0x2c] sm:$0xf] %v246_v11  ;;  %v250_v13 = vld [vmem:[%s1897_s10 + $0x1d4] sm:$0xf]  ;;  %v252_v14 = vld [vmem:[%s1897_s10 + $0x1f8] sm:$0xf] }
  0x1f   : > { %249 = vst [vmem:[%s1902_s11 + $0x30] sm:$0xf] %v248_v12  ;;  %251 = vst [vmem:[%s1902_s11 + $0x34] sm:$0xf] %v250_v13  ;;  %v254_v15 = vld [vmem:[%s1897_s10 + $0x21c] sm:$0xf] }
  0x20   : > { %253 = vst [vmem:[%s1902_s11 + $0x38] sm:$0xf] %v252_v14  ;;  %v256_v16 = vld [vmem:[%s1897_s10 + $0x240] sm:$0xf]  ;;  %v258_v17 = vld [vmem:[%s1897_s10 + $0x264] sm:$0xf] }
  0x21   : > { %255 = vst [vmem:[%s1902_s11 + $0x3c] sm:$0xf] %v254_v15  ;;  %257 = vst [vmem:[%s1902_s11 + $0x40] sm:$0xf] %v256_v16  ;;  %v260_v18 = vld [vmem:[%s1897_s10 + $0x288] sm:$0xf] }
  0x22   : > { %259 = vst [vmem:[%s1902_s11 + $0x44] sm:$0xf] %v258_v17  ;;  %v262_v19 = vld [vmem:[%s1897_s10 + $0x2ac] sm:$0xf]  ;;  %v264_v20 = vld [vmem:[%s1897_s10 + $0x2d0] sm:$0xf] }
  0x23   : > { %261 = vst [vmem:[%s1902_s11 + $0x48] sm:$0xf] %v260_v18  ;;  %263 = vst [vmem:[%s1902_s11 + $0x4c] sm:$0xf] %v262_v19  ;;  %v266_v21 = vld [vmem:[%s1897_s10 + $0x2f4] sm:$0xf] }
  0x24   : > { %265 = vst [vmem:[%s1902_s11 + $0x50] sm:$0xf] %v264_v20  ;;  %v268_v22 = vld [vmem:[%s1897_s10 + $0x318] sm:$0xf]  ;;  %v270_v23 = vld [vmem:[%s1897_s10 + $0x33c] sm:$0xf] }
  0x25   : > { %267 = vst [vmem:[%s1902_s11 + $0x54] sm:$0xf] %v266_v21  ;;  %269 = vst [vmem:[%s1902_s11 + $0x58] sm:$0xf] %v268_v22  ;;  %v272_v24 = vld [vmem:[%s1897_s10 + $0x360] sm:$0xf] }
  0x26   : > { %271 = vst [vmem:[%s1902_s11 + $0x5c] sm:$0xf] %v270_v23  ;;  %v274_v25 = vld [vmem:[%s1897_s10 + $0x384] sm:$0xf]  ;;  %v276_v26 = vld [vmem:[%s1897_s10 + $0x3a8] sm:$0xf] }
  0x27   : > { %273 = vst [vmem:[%s1902_s11 + $0x60] sm:$0xf] %v272_v24  ;;  %275 = vst [vmem:[%s1902_s11 + $0x64] sm:$0xf] %v274_v25  ;;  %v278_v27 = vld [vmem:[%s1897_s10 + $0x3cc] sm:$0xf] }
  0x28   : > { %277 = vst [vmem:[%s1902_s11 + $0x68] sm:$0xf] %v276_v26  ;;  %v280_v28 = vld [vmem:[%s1897_s10 + $0x3f0] sm:$0xf]  ;;  %v282_v29 = vld [vmem:[%s1897_s10 + $0x414] sm:$0xf] }
  0x29   : > { %279 = vst [vmem:[%s1902_s11 + $0x6c] sm:$0xf] %v278_v27  ;;  %281 = vst [vmem:[%s1902_s11 + $0x70] sm:$0xf] %v280_v28  ;;  %v284_v30 = vld [vmem:[%s1897_s10 + $0x438] sm:$0xf] }
  0x2a   : > { %283 = vst [vmem:[%s1902_s11 + $0x74] sm:$0xf] %v282_v29  ;;  %v286_v31 = vld [vmem:[%s1897_s10 + $0x45c] sm:$0xf]  ;;  %285 = vst [vmem:[%s1902_s11 + $0x78] sm:$0xf] %v284_v30 }
  0x2b   : > { %287 = vst [vmem:[%s1902_s11 + $0x7c] sm:$0xf] %v286_v31 }
  0x2c PF: > { %p1390_p7 = scmp.ge.s32.totalorder %s1809_s21, 1  ;;  %p386_p8 = scmp.lt.s32.totalorder %s1809_s21, 19 }
  0x2e   : > { %p387_p9 = pnand %p1390_p7, %p386_p8 }
  0x2f   : > { %s393_s12 = sand.u32 (!%p387_p9), 1, %s1785_s15   ;;  %s1392_s13 = sshll.u32 (!%p387_p9), %s1793_s17, 4 }
  0x30   : > { %390 = sbr.rel (%p387_p9) target bundleno = 373 (0x175), region = 73  ;;  %s1391_s14 = sshll.u32 (!%p387_p9), %s393_s12, 7 }
  0x31   : > { %p437_p10 = scmp.lt.s32.totalorder (!%p387_p9), %s1392_s13, 143  ;;  %s1394_s24 = sshll.u32 (!%p387_p9), %s1797_s18, 5 }
  0x32   : > { %p452_p11 = scmp.lt.s32.totalorder (!%p387_p9), %s1394_s24, 63  ;;  %s1980_s15 = scalar_lea.vmem (!%p387_p9), [#allocation3], %s1391_s14 }
  0x33   : > { %p1396_p12 = scmp.ne.s32.totalorder (!%p387_p9), %s1793_s17, 0 }
  0x35   : > { %s2137_s13 = smov (!%p437_p10, %s1392_s13), 143  ;;  %s2139_s24 = smov (!%p452_p11, %s1394_s24), 63 }
  0x36   : > { %s1393_s25 = sshll.u32 %s2137_s13, 2  ;;  %s1395_s30 = sshll.u32 %s2139_s24, 2 }
  0x37   : > { %s1973_s29 = scalar_lea.vmem %s2120_s1, %s1393_s25  ;;  %s1978_s7 = scalar_lea.vmem %s2123_s4, %s1395_s30 }
  0x38   : > { %464 = sbr.rel (%p1396_p12) target bundleno = 78 (0x4e), region = 81 }
  0x3d   : > { %v1811_v32 = vmov 0.0  }
  0x3e   : > { %465 = vst [vmem:[#allocation2 + $0xb0] sm:$0xff] %v1811_v32  ;;  %466 = vst [vmem:[#allocation2] sm:$0xff] %v1811_v32 }
  0x3f   : > { %467 = vst [vmem:[#allocation2 + $0xd8] sm:$0xff] %v1811_v32  ;;  %468 = vst [vmem:[#allocation2 + $0x18] sm:$0xff] %v1811_v32 }
  0x40   : > { %469 = vst [vmem:[#allocation2 + $0x50] sm:$0xff] %v1811_v32  ;;  %470 = vst [vmem:[#allocation2 + $0x68] sm:$0xff] %v1811_v32 }
  0x41   : > { %471 = vst [vmem:[#allocation2 + $0x30] sm:$0xff] %v1811_v32  ;;  %472 = vst [vmem:[#allocation2 + $0x48] sm:$0xff] %v1811_v32 }
  0x42   : > { %473 = vst [vmem:[#allocation2 + $0x80] sm:$0xff] %v1811_v32  ;;  %474 = vst [vmem:[#allocation2 + $0x88] sm:$0xff] %v1811_v32 }
  0x43   : > { %475 = vst [vmem:[#allocation2 + $0xe8] sm:$0xff] %v1811_v32  ;;  %476 = vst [vmem:[#allocation2 + $0xb8] sm:$0xff] %v1811_v32 }
  0x44   : > { %477 = vst [vmem:[#allocation2 + $0x60] sm:$0xff] %v1811_v32  ;;  %478 = vst [vmem:[#allocation2 + $0xf0] sm:$0xff] %v1811_v32 }
  0x45   : > { %479 = vst [vmem:[#allocation2 + $0x8] sm:$0xff] %v1811_v32  ;;  %480 = vst [vmem:[#allocation2 + $0x78] sm:$0xff] %v1811_v32 }
  0x46   : > { %481 = vst [vmem:[#allocation2 + $0x38] sm:$0xff] %v1811_v32  ;;  %482 = vst [vmem:[#allocation2 + $0x58] sm:$0xff] %v1811_v32 }
  0x47   : > { %483 = vst [vmem:[#allocation2 + $0x40] sm:$0xff] %v1811_v32  ;;  %484 = vst [vmem:[#allocation2 + $0xc8] sm:$0xff] %v1811_v32 }
  0x48   : > { %485 = vst [vmem:[#allocation2 + $0xe0] sm:$0xff] %v1811_v32  ;;  %486 = vst [vmem:[#allocation2 + $0x90] sm:$0xff] %v1811_v32 }
  0x49   : > { %487 = vst [vmem:[#allocation2 + $0x70] sm:$0xff] %v1811_v32  ;;  %488 = vst [vmem:[#allocation2 + $0xc0] sm:$0xff] %v1811_v32 }
  0x4a   : > { %489 = vst [vmem:[#allocation2 + $0xa8] sm:$0xff] %v1811_v32  ;;  %490 = vst [vmem:[#allocation2 + $0xd0] sm:$0xff] %v1811_v32 }
  0x4b   : > { %491 = vst [vmem:[#allocation2 + $0x10] sm:$0xff] %v1811_v32  ;;  %492 = vst [vmem:[#allocation2 + $0x28] sm:$0xff] %v1811_v32 }
  0x4c   : > { %493 = vst [vmem:[#allocation2 + $0xa0] sm:$0xff] %v1811_v32  ;;  %494 = vst [vmem:[#allocation2 + $0xf8] sm:$0xff] %v1811_v32 }
  0x4d   : > { %495 = vst [vmem:[#allocation2 + $0x20] sm:$0xff] %v1811_v32  ;;  %496 = vst [vmem:[#allocation2 + $0x98] sm:$0xff] %v1811_v32 }
  0x4e PF: > { %v1731_v33 = vld [vmem:[%s1973_s29 + $0x38] sm:$0xff]   ;;  %v1732_v34 = vld [vmem:[%s1973_s29 + $0x30] sm:$0xff]   ;;  %v1733_v35 = vld [vmem:[%s1973_s29 + $0x28] sm:$0xff]   ;;  %p1421_p13 = scmp.ne.s32.totalorder %s1793_s17, 8 }
  0x4f   : > { %1609 = vmatprep.subr.bf16.mxu0 %v1731_v33  ;;  %1657 = vmatprep.subr.bf16.mxu1 %v1731_v33  ;;  %v1734_v36 = vld [vmem:[%s1973_s29 + $0x20] sm:$0xff]   ;;  %v1735_v39 = vld [vmem:[%s1973_s29 + $0x18] sm:$0xff]   ;;  %v1736_v40 = vld [vmem:[%s1973_s29 + $0x10] sm:$0xff]  }
  0x50   : > { %1610 = vmatpush3.bf16.msra.mxu0 %v1731_v33  ;;  %1665 = vmatpush3.bf16.msra.mxu1 %v1731_v33  ;;  %v1739_v37 = vld [vmem:[%s1980_s15] sm:$0xff]   ;;  %v1737_v41 = vld [vmem:[%s1973_s29 + $0x8] sm:$0xff]   ;;  %v1743_v45 = vld [vmem:[%s1980_s15 + $0x10] sm:$0xff]  }
  0x51   : > { %1611 = vmatprep.subr.bf16.mxu0 %v1732_v34  ;;  %1658 = vmatprep.subr.bf16.mxu1 %v1732_v34  ;;  %v1740_v38 = vld [vmem:[%s1980_s15 + $0x40] sm:$0xff]   ;;  %v1741_v43 = vld [vmem:[%s1980_s15 + $0x8] sm:$0xff]   ;;  %v1744_v46 = vld [vmem:[%s1980_s15 + $0x50] sm:$0xff]  }
  0x52   : > { %1625 = vmatprep.mubr.bf16.mxu0 %v1739_v37  ;;  %1641 = vmatprep.mubr.bf16.mxu1 %v1740_v38  ;;  %v1738_v42 = vld [vmem:[%s1973_s29] sm:$0xff]   ;;  %v1742_v44 = vld [vmem:[%s1980_s15 + $0x48] sm:$0xff]   ;;  %v1745_v47 = vld [vmem:[%s1980_s15 + $0x18] sm:$0xff]  }
  0x53   : > { %v1746_v48 = vld [vmem:[%s1980_s15 + $0x58] sm:$0xff]   ;;  %v1747_v49 = vld [vmem:[%s1980_s15 + $0x20] sm:$0xff]   ;;  %v1749_v51 = vld [vmem:[%s1980_s15 + $0x28] sm:$0xff]  }
  0x54   : > { %1612 = vmatpush3.bf16.msra.mxu0 %v1732_v34  ;;  %1666 = vmatpush3.bf16.msra.mxu1 %v1732_v34  ;;  %v1748_v50 = vld [vmem:[%s1980_s15 + $0x60] sm:$0xff]   ;;  %v1750_v52 = vld [vmem:[%s1980_s15 + $0x68] sm:$0xff]   ;;  %v1751_v53 = vld [vmem:[%s1980_s15 + $0x30] sm:$0xff]  }
  0x55   : > { %1613 = vmatprep.subr.bf16.mxu0 %v1733_v35  ;;  %1659 = vmatprep.subr.bf16.mxu1 %v1733_v35  ;;  %v1752_v54 = vld [vmem:[%s1980_s15 + $0x70] sm:$0xff]   ;;  %v1753_v55 = vld [vmem:[%s1980_s15 + $0x38] sm:$0xff]   ;;  %v515_v58 = vld [vmem:[#allocation2 + $0x40] sm:$0xff] }
  0x56   : > { %v1754_v56 = vld [vmem:[%s1980_s15 + $0x78] sm:$0xff]   ;;  %v497_v61 = vld [vmem:[#allocation2 + $0xb0] sm:$0xff]  ;;  %v516_v4 = vld [vmem:[#allocation2 + $0xc8] sm:$0xff] }
  0x57   : > { %v499_v57 = vld [vmem:[#allocation2 + $0xd8] sm:$0xff]  ;;  %v498_v9 = vld [vmem:[#allocation2] sm:$0xff]  ;;  %v503_v15 = vld [vmem:[#allocation2 + $0x30] sm:$0xff] }
  0x58   : > { %1614 = vmatpush3.bf16.msra.mxu0 %v1733_v35  ;;  %1667 = vmatpush3.bf16.msra.mxu1 %v1733_v35  ;;  %v513_v62 = vld [vmem:[#allocation2 + $0x38] sm:$0xff]  ;;  %v519_v16 = vld [vmem:[#allocation2 + $0x70] sm:$0xff]  ;;  %v517_v22 = vld [vmem:[#allocation2 + $0xe0] sm:$0xff] }
  0x59   : > { %1615 = vmatprep.subr.bf16.mxu0 %v1734_v36  ;;  %1660 = vmatprep.subr.bf16.mxu1 %v1734_v36  ;;  %v500_v3 = vld [vmem:[#allocation2 + $0x18] sm:$0xff]  ;;  %v501_v21 = vld [vmem:[#allocation2 + $0x50] sm:$0xff]  ;;  %v504_v27 = vld [vmem:[#allocation2 + $0x48] sm:$0xff] }
  0x5a   : > { %v514_v10 = vld [vmem:[#allocation2 + $0x58] sm:$0xff]  ;;  %v520_v28 = vld [vmem:[#allocation2 + $0xc0] sm:$0xff]  ;;  %v502_v33 = vld [vmem:[#allocation2 + $0x68] sm:$0xff] }
  0x5b   : > { %v518_v34 = vld [vmem:[#allocation2 + $0x90] sm:$0xff] }
  0x5c   : > { %1616 = vmatpush3.bf16.msra.mxu0 %v1734_v36  ;;  %1668 = vmatpush3.bf16.msra.mxu1 %v1734_v36 }
  0x5d   : > { %1617 = vmatprep.subr.bf16.mxu0 %v1735_v39  ;;  %1661 = vmatprep.subr.bf16.mxu1 %v1735_v39 }
  0x60   : > { %1618 = vmatpush3.bf16.msra.mxu0 %v1735_v39  ;;  %1669 = vmatpush3.bf16.msra.mxu1 %v1735_v39  ;;  %v507_v39 = vld [vmem:[#allocation2 + $0xe8] sm:$0xff] }
  0x61   : > { %1619 = vmatprep.subr.bf16.mxu0 %v1736_v40  ;;  %1662 = vmatprep.subr.bf16.mxu1 %v1736_v40 }
  0x64   : > { %1620 = vmatpush3.bf16.msra.mxu0 %v1736_v40  ;;  %1670 = vmatpush3.bf16.msra.mxu1 %v1736_v40  ;;  %v523_v40 = vld [vmem:[#allocation2 + $0x10] sm:$0xff] }
  0x65   : > { %1621 = vmatprep.subr.bf16.mxu0 %v1737_v41  ;;  %1663 = vmatprep.subr.bf16.mxu1 %v1737_v41 }
  0x68   : > { %1622 = vmatpush3.bf16.msra.mxu0 %v1737_v41  ;;  %1671 = vmatpush3.bf16.msra.mxu1 %v1737_v41 }
  0x69   : > { %1623 = vmatprep.subr.bf16.mxu0 %v1738_v42  ;;  %1664 = vmatprep.subr.bf16.mxu1 %v1738_v42 }
  0x6c   : > { %1624 = vmatpush3.bf16.msra.mxu0 %v1738_v42  ;;  %1672 = vmatpush3.bf16.msra.mxu1 %v1738_v42 }
  0x6f   : > { %1626 = vmatmul.mubr.bf16.vlgmr.msra.gmra.mxu0 %v1741_v43  ;;  %1642 = vmatmul.mubr.bf16.vlgmr.msra.gmra.mxu1 %v1742_v44 }
  0x70   : > { %1629 = vmatprep.mubr.bf16.mxu0 %v1743_v45  ;;  %1645 = vmatprep.mubr.bf16.mxu1 %v1744_v46  ;;  %v505_v45 = vld [vmem:[#allocation2 + $0x80] sm:$0xff]  ;;  %v521_v46 = vld [vmem:[#allocation2 + $0xa8] sm:$0xff] }
  0x77   : > { %1630 = vmatmul.mubr.bf16.gmra.mxu0 %v1745_v47  ;;  %1646 = vmatmul.mubr.bf16.gmra.mxu1 %v1746_v48 }
  0x78   : > { %1633 = vmatprep.mubr.bf16.mxu0 %v1747_v49  ;;  %1649 = vmatprep.mubr.bf16.mxu1 %v1748_v50 }
  0x7f   : > { %1634 = vmatmul.mubr.bf16.gmra.mxu0 %v1749_v51  ;;  %1650 = vmatmul.mubr.bf16.gmra.mxu1 %v1750_v52  ;;  %v508_v51 = vld [vmem:[#allocation2 + $0xb8] sm:$0xff]  ;;  %v524_v52 = vld [vmem:[#allocation2 + $0x28] sm:$0xff] }
  0x80   : > { %1637 = vmatprep.mubr.bf16.mxu0 %v1751_v53  ;;  %1653 = vmatprep.mubr.bf16.mxu1 %v1752_v54 }
  0x87   : > { %1638 = vmatmul.mubr.bf16.gmra.mxu0 %v1753_v55  ;;  %1654 = vmatmul.mubr.bf16.gmra.mxu1 %v1754_v56 }
 0x12f   : > { %v1627_v59 = vpop.f32.mrf.mxu0  ;;  %v1643_v60 = vpop.f32.mrf.mxu1 }
 0x130   : > { %v884_v63 = vadd.f32 %v1627_v59, %v499_v57  ;;  %v900_v0 = vadd.f32 %v1643_v60, %v515_v58  ;;  %v506_v57 = vld [vmem:[#allocation2 + $0x88] sm:$0xff]  ;;  %v522_v58 = vld [vmem:[#allocation2 + $0xd0] sm:$0xff] }
 0x131   : > { %v755_v1 = vpop.f32.mrf.mxu0  ;;  %v819_v2 = vpop.f32.mrf.mxu1 }
 0x132   : > { %916 = vst [vmem:[#allocation2 + $0xd8] sm:$0xff] %v884_v63  ;;  %932 = vst [vmem:[#allocation2 + $0x40] sm:$0xff] %v900_v0  ;;  %v882_v5 = vadd.f32 %v755_v1, %v497_v61  ;;  %v898_v6 = vadd.f32 %v819_v2, %v513_v62  ;;  %v511_v63 = vld [vmem:[#allocation2 + $0x8] sm:$0xff]  ;;  %v527_v0 = vld [vmem:[#allocation2 + $0x20] sm:$0xff] }
 0x133   : > { %v1628_v7 = vpop.f32.mrf.mxu0  ;;  %v1644_v8 = vpop.f32.mrf.mxu1 }
 0x134   : > { %914 = vst [vmem:[#allocation2 + $0xb0] sm:$0xff] %v882_v5  ;;  %930 = vst [vmem:[#allocation2 + $0x38] sm:$0xff] %v898_v6  ;;  %v885_v11 = vadd.f32 %v1628_v7, %v500_v3  ;;  %v901_v12 = vadd.f32 %v1644_v8, %v516_v4  ;;  %v509_v5 = vld [vmem:[#allocation2 + $0x60] sm:$0xff] }
 0x135   : > { %v758_v13 = vpop.f32.mrf.mxu0  ;;  %v822_v14 = vpop.f32.mrf.mxu1  ;;  %v525_v6 = vld [vmem:[#allocation2 + $0xa0] sm:$0xff] }
 0x136   : > { %917 = vst [vmem:[#allocation2 + $0x18] sm:$0xff] %v885_v11  ;;  %933 = vst [vmem:[#allocation2 + $0xc8] sm:$0xff] %v901_v12  ;;  %v883_v17 = vadd.f32 %v758_v13, %v498_v9  ;;  %v899_v18 = vadd.f32 %v822_v14, %v514_v10  ;;  %v512_v11 = vld [vmem:[#allocation2 + $0x78] sm:$0xff] }
 0x137   : > { %v1631_v19 = vpop.f32.mrf.mxu0  ;;  %v1647_v20 = vpop.f32.mrf.mxu1  ;;  %v528_v12 = vld [vmem:[#allocation2 + $0x98] sm:$0xff] }
 0x138   : > { %915 = vst [vmem:[#allocation2] sm:$0xff] %v883_v17  ;;  %931 = vst [vmem:[#allocation2 + $0x58] sm:$0xff] %v899_v18  ;;  %v888_v23 = vadd.f32 %v1631_v19, %v503_v15  ;;  %v904_v24 = vadd.f32 %v1647_v20, %v519_v16  ;;  %v510_v17 = vld [vmem:[#allocation2 + $0xf0] sm:$0xff]  ;;  %v526_v18 = vld [vmem:[#allocation2 + $0xf8] sm:$0xff] }
 0x139   : > { %v771_v25 = vpop.f32.mrf.mxu0  ;;  %v835_v26 = vpop.f32.mrf.mxu1 }
 0x13a   : > { %920 = vst [vmem:[#allocation2 + $0x30] sm:$0xff] %v888_v23  ;;  %936 = vst [vmem:[#allocation2 + $0x70] sm:$0xff] %v904_v24  ;;  %v886_v29 = vadd.f32 %v771_v25, %v501_v21  ;;  %v902_v30 = vadd.f32 %v835_v26, %v517_v22 }
 0x13b   : > { %v1632_v31 = vpop.f32.mrf.mxu0  ;;  %v1648_v32 = vpop.f32.mrf.mxu1 }
 0x13c   : > { %918 = vst [vmem:[#allocation2 + $0x50] sm:$0xff] %v886_v29  ;;  %934 = vst [vmem:[#allocation2 + $0xe0] sm:$0xff] %v902_v30  ;;  %v889_v35 = vadd.f32 %v1632_v31, %v504_v27  ;;  %v905_v36 = vadd.f32 %v1648_v32, %v520_v28 }
 0x13d   : > { %v774_v37 = vpop.f32.mrf.mxu0  ;;  %v838_v38 = vpop.f32.mrf.mxu1 }
 0x13e   : > { %921 = vst [vmem:[#allocation2 + $0x48] sm:$0xff] %v889_v35  ;;  %937 = vst [vmem:[#allocation2 + $0xc0] sm:$0xff] %v905_v36  ;;  %v887_v41 = vadd.f32 %v774_v37, %v502_v33  ;;  %v903_v42 = vadd.f32 %v838_v38, %v518_v34 }
 0x13f   : > { %v1635_v43 = vpop.f32.mrf.mxu0  ;;  %v1651_v44 = vpop.f32.mrf.mxu1 }
 0x140   : > { %919 = vst [vmem:[#allocation2 + $0x68] sm:$0xff] %v887_v41  ;;  %935 = vst [vmem:[#allocation2 + $0x90] sm:$0xff] %v903_v42  ;;  %v892_v47 = vadd.f32 %v1635_v43, %v507_v39  ;;  %v908_v48 = vadd.f32 %v1651_v44, %v523_v40 }
 0x141   : > { %v787_v49 = vpop.f32.mrf.mxu0  ;;  %v851_v50 = vpop.f32.mrf.mxu1 }
 0x142   : > { %924 = vst [vmem:[#allocation2 + $0xe8] sm:$0xff] %v892_v47  ;;  %940 = vst [vmem:[#allocation2 + $0x10] sm:$0xff] %v908_v48  ;;  %v890_v53 = vadd.f32 %v787_v49, %v505_v45  ;;  %v906_v54 = vadd.f32 %v851_v50, %v521_v46 }
 0x143   : > { %v1636_v55 = vpop.f32.mrf.mxu0  ;;  %v1652_v56 = vpop.f32.mrf.mxu1 }
 0x144   : > { %922 = vst [vmem:[#allocation2 + $0x80] sm:$0xff] %v890_v53  ;;  %938 = vst [vmem:[#allocation2 + $0xa8] sm:$0xff] %v906_v54  ;;  %v893_v59 = vadd.f32 %v1636_v55, %v508_v51  ;;  %v909_v60 = vadd.f32 %v1652_v56, %v524_v52 }
 0x145   : > { %v790_v61 = vpop.f32.mrf.mxu0  ;;  %v854_v62 = vpop.f32.mrf.mxu1 }
 0x146   : > { %925 = vst [vmem:[#allocation2 + $0xb8] sm:$0xff] %v893_v59  ;;  %941 = vst [vmem:[#allocation2 + $0x28] sm:$0xff] %v909_v60  ;;  %v891_v1 = vadd.f32 %v790_v61, %v506_v57  ;;  %v907_v2 = vadd.f32 %v854_v62, %v522_v58 }
 0x147   : > { %v1639_v3 = vpop.f32.mrf.mxu0  ;;  %v1655_v4 = vpop.f32.mrf.mxu1 }
 0x148   : > { %923 = vst [vmem:[#allocation2 + $0x88] sm:$0xff] %v891_v1  ;;  %939 = vst [vmem:[#allocation2 + $0xd0] sm:$0xff] %v907_v2  ;;  %v896_v7 = vadd.f32 %v1639_v3, %v511_v63  ;;  %v912_v8 = vadd.f32 %v1655_v4, %v527_v0 }
 0x149   : > { %v803_v9 = vpop.f32.mrf.mxu0  ;;  %v867_v10 = vpop.f32.mrf.mxu1 }
 0x14a   : > { %928 = vst [vmem:[#allocation2 + $0x8] sm:$0xff] %v896_v7  ;;  %944 = vst [vmem:[#allocation2 + $0x20] sm:$0xff] %v912_v8  ;;  %v894_v13 = vadd.f32 %v803_v9, %v509_v5  ;;  %v910_v14 = vadd.f32 %v867_v10, %v525_v6 }
 0x14b   : > { %v1640_v15 = vpop.f32.mrf.mxu0  ;;  %v1656_v16 = vpop.f32.mrf.mxu1 }
 0x14c   : > { %926 = vst [vmem:[#allocation2 + $0x60] sm:$0xff] %v894_v13  ;;  %942 = vst [vmem:[#allocation2 + $0xa0] sm:$0xff] %v910_v14  ;;  %v897_v19 = vadd.f32 %v1640_v15, %v512_v11  ;;  %v913_v20 = vadd.f32 %v1656_v16, %v528_v12  ;;  %949 = sbr.rel (%p1421_p13) target bundleno = 373 (0x175), region = 85 }
 0x14d   : > { %v806_v21 = vpop.f32.mrf.mxu0  ;;  %v870_v22 = vpop.f32.mrf.mxu1 }
 0x14e   : > { %929 = vst [vmem:[#allocation2 + $0x78] sm:$0xff] %v897_v19  ;;  %945 = vst [vmem:[#allocation2 + $0x98] sm:$0xff] %v913_v20  ;;  %v895_v23 = vadd.f32 %v806_v21, %v510_v17  ;;  %v911_v24 = vadd.f32 %v870_v22, %v526_v18 }
 0x150   : > { %927 = vst [vmem:[#allocation2 + $0xf0] sm:$0xff] %v895_v23  ;;  %943 = vst [vmem:[#allocation2 + $0xf8] sm:$0xff] %v911_v24 }
 0x151   : > { %v950_v25 = vld [vmem:[#allocation2 + $0xb0] sm:$0xff]  ;;  %v951_v26 = vld [vmem:[#allocation2] sm:$0xff]  ;;  %v952_v31 = vld [vmem:[#allocation2 + $0xd8] sm:$0xff] }
 0x152   : > { %v2011_v27 = vld [vmem:[%s2121_s2] ss:$0 sm:$0xff]  ;;  %v953_v32 = vld [vmem:[#allocation2 + $0x18] sm:$0xff]  ;;  %v954_v35 = vld [vmem:[#allocation2 + $0x50] sm:$0xff] }
 0x153   : > { %v989_v28 = vmul.f32 %v2011_v27, %v950_v25  ;;  %v990_v29 = vmul.f32 %v2011_v27, %v951_v26  ;;  %v2018_v30 = vld [vmem:[%s2122_s3] ss:$0 sm:$0xff]  ;;  %v991_v33 = vmul.f32 %v2011_v27, %v952_v31  ;;  %v992_v34 = vmul.f32 %v2011_v27, %v953_v32  ;;  %v955_v36 = vld [vmem:[#allocation2 + $0x68] sm:$0xff]  ;;  %v956_v37 = vld [vmem:[#allocation2 + $0x30] sm:$0xff] }
 0x154   : > { %v993_v40 = vmul.f32 %v2011_v27, %v954_v35  ;;  %v994_v41 = vmul.f32 %v2011_v27, %v955_v36  ;;  %v957_v42 = vld [vmem:[#allocation2 + $0x48] sm:$0xff]  ;;  %v995_v45 = vmul.f32 %v2011_v27, %v956_v37  ;;  %v958_v47 = vld [vmem:[#allocation2 + $0x80] sm:$0xff]  ;;  %v961_v58 = vld [vmem:[#allocation2 + $0xb8] sm:$0xff] }
 0x155   : > { %v1028_v38 = vadd.f32 %v2018_v30, %v989_v28  ;;  %v1029_v39 = vadd.f32 %v2018_v30, %v990_v29  ;;  %v1030_v43 = vadd.f32 %v2018_v30, %v991_v33  ;;  %v1031_v44 = vadd.f32 %v2018_v30, %v992_v34  ;;  %v959_v52 = vld [vmem:[#allocation2 + $0x88] sm:$0xff]  ;;  %v962_v63 = vld [vmem:[#allocation2 + $0x60] sm:$0xff]  ;;  %v965_v10 = vld [vmem:[#allocation2 + $0x78] sm:$0xff] }
 0x156   : > { %v996_v46 = vmul.f32 %v2011_v27, %v957_v42  ;;  %v1032_v50 = vadd.f32 %v2018_v30, %v993_v40  ;;  %v1033_v51 = vadd.f32 %v2018_v30, %v994_v41  ;;  %v1034_v55 = vadd.f32 %v2018_v30, %v995_v45  ;;  %v960_v57 = vld [vmem:[#allocation2 + $0xe8] sm:$0xff]  ;;  %v966_v15 = vld [vmem:[#allocation2 + $0x38] sm:$0xff]  ;;  %v968_v31 = vld [vmem:[#allocation2 + $0x40] sm:$0xff] }
 0x157   : > { %v1060_v48 = vmax.f32 %v1028_v38, 0.0  ;;  %v1061_v49 = vmax.f32 %v1029_v39, 0.0  ;;  %v1062_v53 = vmax.f32 %v1030_v43, 0.0  ;;  %v1063_v54 = vmax.f32 %v1031_v44, 0.0  ;;  %v963_v0 = vld [vmem:[#allocation2 + $0xf0] sm:$0xff]  ;;  %v964_v5 = vld [vmem:[#allocation2 + $0x8] sm:$0xff] }
 0x158   : > { %v1035_v56 = vadd.f32 %v2018_v30, %v996_v46  ;;  %v1064_v60 = vmax.f32 %v1032_v50, 0.0  ;;  %v1065_v61 = vmax.f32 %v1033_v51, 0.0  ;;  %v997_v62 = vmul.f32 %v2011_v27, %v958_v47  ;;  %v967_v24 = vld [vmem:[#allocation2 + $0x58] sm:$0xff]  ;;  %v969_v32 = vld [vmem:[#allocation2 + $0xc8] sm:$0xff]  ;;  %v970_v37 = vld [vmem:[#allocation2 + $0xe0] sm:$0xff] }
 0x159   : > { %v1493_v59 = vpack.c.bf16 %v1061_v49, %v1060_v48  ;;  %v1498_v1 = vpack.c.bf16 %v1063_v54, %v1062_v53  ;;  %v1066_v2 = vmax.f32 %v1034_v55, 0.0  ;;  %v998_v4 = vmul.f32 %v2011_v27, %v959_v52  ;;  %v971_v38 = vld [vmem:[#allocation2 + $0x90] sm:$0xff]  ;;  %v973_v48 = vld [vmem:[#allocation2 + $0xc0] sm:$0xff]  ;;  %v974_v53 = vld [vmem:[#allocation2 + $0xa8] sm:$0xff] }
 0x15a   : > { %v1067_v3 = vmax.f32 %v1035_v56, 0.0  ;;  %v1503_v6 = vpack.c.bf16 %v1065_v61, %v1064_v60  ;;  %v1036_v7 = vadd.f32 %v2018_v30, %v997_v62  ;;  %v999_v8 = vmul.f32 %v2011_v27, %v960_v57  ;;  %v972_v43 = vld [vmem:[#allocation2 + $0x70] sm:$0xff] }
 0x15b   : > { %1494 = vst [vmem:[%s1978_s7] sm:$0xff] %v1493_v59   ;;  %v1000_v9 = vmul.f32 %v2011_v27, %v961_v58  ;;  %1570 = vst [vmem:[%s1978_s7 + $0x8] sm:$0xff] %v1498_v1   ;;  %v1037_v12 = vadd.f32 %v2018_v30, %v998_v4  ;;  %v1001_v13 = vmul.f32 %v2011_v27, %v962_v63  ;;  %v975_v62 = vld [vmem:[#allocation2 + $0xd0] sm:$0xff]  ;;  %v977_v4 = vld [vmem:[#allocation2 + $0x28] sm:$0xff] }
 0x15c   : > { %v1508_v11 = vpack.c.bf16 %v1067_v3, %v1066_v2  ;;  %v1002_v14 = vmul.f32 %v2011_v27, %v963_v0  ;;  %1571 = vst [vmem:[%s1978_s7 + $0x10] sm:$0xff] %v1503_v6   ;;  %v1068_v16 = vmax.f32 %v1036_v7, 0.0  ;;  %v1038_v17 = vadd.f32 %v2018_v30, %v999_v8  ;;  %v976_v3 = vld [vmem:[#allocation2 + $0x10] sm:$0xff] }
 0x15d   : > { %v1039_v18 = vadd.f32 %v2018_v30, %v1000_v9  ;;  %v1003_v19 = vmul.f32 %v2011_v27, %v964_v5  ;;  %v1069_v20 = vmax.f32 %v1037_v12, 0.0  ;;  %v1040_v21 = vadd.f32 %v2018_v30, %v1001_v13  ;;  %v978_v9 = vld [vmem:[#allocation2 + $0xa0] sm:$0xff] }
 0x15e   : > { %1572 = vst [vmem:[%s1978_s7 + $0x18] sm:$0xff] %v1508_v11   ;;  %v1041_v22 = vadd.f32 %v2018_v30, %v1002_v14  ;;  %v1004_v23 = vmul.f32 %v2011_v27, %v965_v10  ;;  %v1070_v25 = vmax.f32 %v1038_v17, 0.0  ;;  %v1005_v29 = vmul.f32 %v2011_v27, %v966_v15  ;;  %v979_v10 = vld [vmem:[#allocation2 + $0xf8] sm:$0xff]  ;;  %v980_v15 = vld [vmem:[#allocation2 + $0x20] sm:$0xff] }
 0x15f   : > { %v1071_v26 = vmax.f32 %v1039_v18, 0.0  ;;  %v1042_v28 = vadd.f32 %v2018_v30, %v1003_v19  ;;  %v1513_v33 = vpack.c.bf16 %v1069_v20, %v1068_v16  ;;  %v1072_v34 = vmax.f32 %v1040_v21, 0.0  ;;  %v981_v20 = vld [vmem:[#allocation2 + $0x98] sm:$0xff] }
 0x160   : > { %v1073_v35 = vmax.f32 %v1041_v22, 0.0  ;;  %v1043_v36 = vadd.f32 %v2018_v30, %v1004_v23  ;;  %v1006_v41 = vmul.f32 %v2011_v27, %v967_v24  ;;  %v1044_v42 = vadd.f32 %v2018_v30, %v1005_v29 }
 0x161   : > { %v1518_v39 = vpack.c.bf16 %v1071_v26, %v1070_v25  ;;  %v1074_v40 = vmax.f32 %v1042_v28, 0.0  ;;  %1573 = vst [vmem:[%s1978_s7 + $0x20] sm:$0xff] %v1513_v33   ;;  %v1007_v46 = vmul.f32 %v2011_v27, %v968_v31  ;;  %v1008_v47 = vmul.f32 %v2011_v27, %v969_v32 }
 0x162   : > { %v1523_v44 = vpack.c.bf16 %v1073_v35, %v1072_v34  ;;  %v1075_v45 = vmax.f32 %v1043_v36, 0.0  ;;  %v1045_v49 = vadd.f32 %v2018_v30, %v1006_v41  ;;  %v1076_v50 = vmax.f32 %v1044_v42, 0.0 }
 0x163   : > { %1574 = vst [vmem:[%s1978_s7 + $0x28] sm:$0xff] %v1518_v39   ;;  %v1009_v51 = vmul.f32 %v2011_v27, %v970_v37  ;;  %v1010_v52 = vmul.f32 %v2011_v27, %v971_v38  ;;  %v1046_v55 = vadd.f32 %v2018_v30, %v1007_v46  ;;  %v1047_v56 = vadd.f32 %v2018_v30, %v1008_v47 }
 0x164   : > { %1575 = vst [vmem:[%s1978_s7 + $0x30] sm:$0xff] %v1523_v44   ;;  %v1528_v54 = vpack.c.bf16 %v1075_v45, %v1074_v40  ;;  %v1011_v57 = vmul.f32 %v2011_v27, %v972_v43  ;;  %v1077_v58 = vmax.f32 %v1045_v49, 0.0  ;;  %v1012_v61 = vmul.f32 %v2011_v27, %v973_v48 }
 0x165   : > { %v1048_v59 = vadd.f32 %v2018_v30, %v1009_v51  ;;  %v1049_v60 = vadd.f32 %v2018_v30, %v1010_v52  ;;  %v1078_v63 = vmax.f32 %v1046_v55, 0.0  ;;  %v1079_v0 = vmax.f32 %v1047_v56, 0.0 }
 0x166   : > { %1576 = vst [vmem:[%s1978_s7 + $0x38] sm:$0xff] %v1528_v54   ;;  %v1050_v1 = vadd.f32 %v2018_v30, %v1011_v57  ;;  %v1013_v2 = vmul.f32 %v2011_v27, %v974_v53  ;;  %v1533_v5 = vpack.c.bf16 %v1077_v58, %v1076_v50  ;;  %v1051_v8 = vadd.f32 %v2018_v30, %v1012_v61 }
 0x167   : > { %v1080_v6 = vmax.f32 %v1048_v59, 0.0  ;;  %v1081_v7 = vmax.f32 %v1049_v60, 0.0  ;;  %v1538_v11 = vpack.c.bf16 %v1079_v0, %v1078_v63  ;;  %v1014_v13 = vmul.f32 %v2011_v27, %v975_v62 }
 0x168   : > { %v1082_v12 = vmax.f32 %v1050_v1, 0.0  ;;  %v1052_v14 = vadd.f32 %v2018_v30, %v1013_v2  ;;  %1577 = vst [vmem:[%s1978_s7 + $0x40] sm:$0xff] %v1533_v5   ;;  %v1083_v17 = vmax.f32 %v1051_v8, 0.0  ;;  %v1015_v18 = vmul.f32 %v2011_v27, %v976_v3 }
 0x169   : > { %v1543_v16 = vpack.c.bf16 %v1081_v7, %v1080_v6  ;;  %v1016_v19 = vmul.f32 %v2011_v27, %v977_v4  ;;  %1578 = vst [vmem:[%s1978_s7 + $0x48] sm:$0xff] %v1538_v11   ;;  %v1053_v21 = vadd.f32 %v2018_v30, %v1014_v13  ;;  %v1017_v23 = vmul.f32 %v2011_v27, %v978_v9 }
 0x16a   : > { %v1084_v22 = vmax.f32 %v1052_v14, 0.0  ;;  %v1018_v24 = vmul.f32 %v2011_v27, %v979_v10  ;;  %v1548_v25 = vpack.c.bf16 %v1083_v17, %v1082_v12  ;;  %v1054_v26 = vadd.f32 %v2018_v30, %v1015_v18 }
 0x16b   : > { %1579 = vst [vmem:[%s1978_s7 + $0x50] sm:$0xff] %v1543_v16   ;;  %v1055_v28 = vadd.f32 %v2018_v30, %v1016_v19  ;;  %v1019_v29 = vmul.f32 %v2011_v27, %v980_v15  ;;  %v1085_v31 = vmax.f32 %v1053_v21, 0.0  ;;  %v1056_v32 = vadd.f32 %v2018_v30, %v1017_v23 }
 0x16c   : > { %v1057_v33 = vadd.f32 %v2018_v30, %v1018_v24  ;;  %v1020_v34 = vmul.f32 %v2011_v27, %v981_v20  ;;  %1580 = vst [vmem:[%s1978_s7 + $0x58] sm:$0xff] %v1548_v25   ;;  %v1086_v35 = vmax.f32 %v1054_v26, 0.0 }
 0x16d   : > { %v1087_v36 = vmax.f32 %v1055_v28, 0.0  ;;  %v1058_v37 = vadd.f32 %v2018_v30, %v1019_v29  ;;  %v1553_v38 = vpack.c.bf16 %v1085_v31, %v1084_v22  ;;  %v1088_v39 = vmax.f32 %v1056_v32, 0.0 }
 0x16e   : > { %v1089_v40 = vmax.f32 %v1057_v33, 0.0  ;;  %v1059_v41 = vadd.f32 %v2018_v30, %v1020_v34 }
 0x16f   : > { %v1558_v42 = vpack.c.bf16 %v1087_v36, %v1086_v35  ;;  %v1090_v43 = vmax.f32 %v1058_v37, 0.0  ;;  %1581 = vst [vmem:[%s1978_s7 + $0x60] sm:$0xff] %v1553_v38  }
 0x170   : > { %v1563_v44 = vpack.c.bf16 %v1089_v40, %v1088_v39  ;;  %v1091_v45 = vmax.f32 %v1059_v41, 0.0 }
 0x171   : > { %1582 = vst [vmem:[%s1978_s7 + $0x68] sm:$0xff] %v1558_v42  }
 0x172   : > { %1583 = vst [vmem:[%s1978_s7 + $0x70] sm:$0xff] %v1563_v44   ;;  %v1568_v46 = vpack.c.bf16 %v1091_v45, %v1090_v43 }
 0x174   : > { %1584 = vst [vmem:[%s1978_s7 + $0x78] sm:$0xff] %v1568_v46  }
 0x175 PF: > { %s14_s21 = sadd.s32 1, %s1809_s21   ;;  %s2124_s15 = smov %s1789_s16 }
 0x176   : > { %p11_p0 = scmp.ge.s32.totalorder %s14_s21, 20   ;;  %s2125_s16 = smov %s1888_s28 }
 0x177   : > { %s2126_s17 = smov %s1801_s19  ;;  %s2127_s18 = smov %s1805_s20 }
 0x178   : > { %s2128_s19 = smov %s2131_s22  ;;  %s2129_s20 = smov %s2135_s23 }
 0x179   :  { %13 = sbr.rel (!%p11_p0) target bundleno = 4 (0x4), region = 129 }

// kernel: _lambda_.58
= control target key start
LH: loop header
LB: loop body
LE: loop exit
PB: predicated region body
PF: predicated region fallthrough
CT: control target
= control target key end

     0   :  { %s774_s1 = inlined_call_operand.vmem [shape: bf16[128,128], index: 1, kind: input, shape index: {}]   ;;  %s775_s0 = inlined_call_operand.vmem [shape: bf16[128,128], index: 0, kind: input, shape index: {}]   ;;  %s776_s2 = inlined_call_operand.vmem [shape: f32[1,128], index: 2, kind: input, shape index: {}]   ;;  %s777_s3 = inlined_call_operand.vmem [shape: f32[1,128], index: 3, kind: input, shape index: {}]   ;;  %s778_s4 = inlined_call_operand.vmem [shape: bf16[128,128], index: 4, kind: output, shape index: {}]  }
   0x1   :  { %v637_v0 = vld [vmem:[%s774_s1 + $0x38] sm:$0xff]   ;;  %v638_v1 = vld [vmem:[%s774_s1 + $0x30] sm:$0xff]   ;;  %v639_v2 = vld [vmem:[%s774_s1 + $0x28] sm:$0xff]  }
   0x2   :  { %589 = vmatprep.subr.bf16.mxu0 %v637_v0  ;;  %621 = vmatprep.subr.bf16.mxu1 %v637_v0  ;;  %v640_v3 = vld [vmem:[%s774_s1 + $0x20] sm:$0xff]   ;;  %v641_v6 = vld [vmem:[%s774_s1 + $0x18] sm:$0xff]   ;;  %v642_v7 = vld [vmem:[%s774_s1 + $0x10] sm:$0xff]  }
   0x3   :  { %590 = vmatpush3.bf16.msra.mxu0 %v637_v0  ;;  %629 = vmatpush3.bf16.msra.mxu1 %v637_v0  ;;  %v645_v4 = vld [vmem:[%s775_s0] sm:$0xff]   ;;  %v643_v8 = vld [vmem:[%s774_s1 + $0x8] sm:$0xff]   ;;  %v649_v12 = vld [vmem:[%s775_s0 + $0x10] sm:$0xff]  }
   0x4   :  { %591 = vmatprep.subr.bf16.mxu0 %v638_v1  ;;  %622 = vmatprep.subr.bf16.mxu1 %v638_v1  ;;  %v646_v5 = vld [vmem:[%s775_s0 + $0x20] sm:$0xff]   ;;  %v647_v10 = vld [vmem:[%s775_s0 + $0x8] sm:$0xff]   ;;  %v650_v13 = vld [vmem:[%s775_s0 + $0x30] sm:$0xff]  }
   0x5   :  { %605 = vmatprep.mubr.bf16.mxu0 %v645_v4  ;;  %613 = vmatprep.mubr.bf16.mxu1 %v646_v5  ;;  %v644_v9 = vld [vmem:[%s774_s1] sm:$0xff]   ;;  %v648_v11 = vld [vmem:[%s775_s0 + $0x28] sm:$0xff]   ;;  %v651_v14 = vld [vmem:[%s775_s0 + $0x18] sm:$0xff]  }
   0x6   :  { %v652_v15 = vld [vmem:[%s775_s0 + $0x38] sm:$0xff]   ;;  %v729_v16 = vld [vmem:[%s776_s2] ss:$0 sm:$0xff] }
   0x7   :  { %592 = vmatpush3.bf16.msra.mxu0 %v638_v1  ;;  %630 = vmatpush3.bf16.msra.mxu1 %v638_v1  ;;  %v493_v21 = vld [vmem:[%s777_s3] ss:$0 sm:$0xff] }
   0x8   :  { %593 = vmatprep.subr.bf16.mxu0 %v639_v2  ;;  %623 = vmatprep.subr.bf16.mxu1 %v639_v2 }
   0xb   :  { %594 = vmatpush3.bf16.msra.mxu0 %v639_v2  ;;  %631 = vmatpush3.bf16.msra.mxu1 %v639_v2 }
   0xc   :  { %595 = vmatprep.subr.bf16.mxu0 %v640_v3  ;;  %624 = vmatprep.subr.bf16.mxu1 %v640_v3 }
   0xf   :  { %596 = vmatpush3.bf16.msra.mxu0 %v640_v3  ;;  %632 = vmatpush3.bf16.msra.mxu1 %v640_v3 }
  0x10   :  { %597 = vmatprep.subr.bf16.mxu0 %v641_v6  ;;  %625 = vmatprep.subr.bf16.mxu1 %v641_v6 }
  0x13   :  { %598 = vmatpush3.bf16.msra.mxu0 %v641_v6  ;;  %633 = vmatpush3.bf16.msra.mxu1 %v641_v6 }
  0x14   :  { %599 = vmatprep.subr.bf16.mxu0 %v642_v7  ;;  %626 = vmatprep.subr.bf16.mxu1 %v642_v7 }
  0x17   :  { %600 = vmatpush3.bf16.msra.mxu0 %v642_v7  ;;  %634 = vmatpush3.bf16.msra.mxu1 %v642_v7 }
  0x18   :  { %601 = vmatprep.subr.bf16.mxu0 %v643_v8  ;;  %627 = vmatprep.subr.bf16.mxu1 %v643_v8 }
  0x1b   :  { %602 = vmatpush3.bf16.msra.mxu0 %v643_v8  ;;  %635 = vmatpush3.bf16.msra.mxu1 %v643_v8 }
  0x1c   :  { %603 = vmatprep.subr.bf16.mxu0 %v644_v9  ;;  %628 = vmatprep.subr.bf16.mxu1 %v644_v9 }
  0x1f   :  { %604 = vmatpush3.bf16.msra.mxu0 %v644_v9  ;;  %636 = vmatpush3.bf16.msra.mxu1 %v644_v9 }
  0x22   :  { %606 = vmatmul.mubr.bf16.vlgmr.msra.gmra.mxu0 %v647_v10  ;;  %614 = vmatmul.mubr.bf16.vlgmr.msra.gmra.mxu1 %v648_v11 }
  0x23   :  { %609 = vmatprep.mubr.bf16.mxu0 %v649_v12  ;;  %617 = vmatprep.mubr.bf16.mxu1 %v650_v13 }
  0x2a   :  { %610 = vmatmul.mubr.bf16.gmra.mxu0 %v651_v14  ;;  %618 = vmatmul.mubr.bf16.gmra.mxu1 %v652_v15 }
  0xe2   :  { %v607_v17 = vpop.f32.mrf.mxu0  ;;  %v615_v18 = vpop.f32.mrf.mxu1 }
  0xe3   :  { %v339_v19 = vmul.f32 %v607_v17, %v729_v16  ;;  %v347_v20 = vmul.f32 %v615_v18, %v729_v16 }
  0xe4   :  { %v216_v22 = vpop.f32.mrf.mxu0  ;;  %v248_v23 = vpop.f32.mrf.mxu1 }
  0xe5   :  { %v337_v24 = vmul.f32 %v729_v16, %v216_v22  ;;  %v345_v25 = vmul.f32 %v729_v16, %v248_v23  ;;  %v362_v28 = vadd.f32 %v493_v21, %v339_v19  ;;  %v370_v29 = vadd.f32 %v493_v21, %v347_v20 }
  0xe6   :  { %v608_v26 = vpop.f32.mrf.mxu0  ;;  %v616_v27 = vpop.f32.mrf.mxu1 }
  0xe7   :  { %v340_v30 = vmul.f32 %v608_v26, %v729_v16  ;;  %v348_v31 = vmul.f32 %v616_v27, %v729_v16  ;;  %v360_v34 = vadd.f32 %v493_v21, %v337_v24  ;;  %v368_v35 = vadd.f32 %v493_v21, %v345_v25 }
  0xe8   :  { %v219_v32 = vpop.f32.mrf.mxu0  ;;  %v251_v33 = vpop.f32.mrf.mxu1  ;;  %v378_v42 = vmax.f32 %v362_v28, 0.0  ;;  %v386_v43 = vmax.f32 %v370_v29, 0.0 }
  0xe9   :  { %v338_v36 = vmul.f32 %v729_v16, %v219_v32  ;;  %v346_v37 = vmul.f32 %v729_v16, %v251_v33  ;;  %v363_v38 = vadd.f32 %v493_v21, %v340_v30  ;;  %v371_v39 = vadd.f32 %v493_v21, %v348_v31 }
  0xea   :  { %v611_v40 = vpop.f32.mrf.mxu0  ;;  %v619_v41 = vpop.f32.mrf.mxu1  ;;  %v376_v52 = vmax.f32 %v360_v34, 0.0  ;;  %v384_v53 = vmax.f32 %v368_v35, 0.0 }
  0xeb   :  { %v361_v44 = vadd.f32 %v493_v21, %v338_v36  ;;  %v369_v45 = vadd.f32 %v493_v21, %v346_v37  ;;  %v379_v46 = vmax.f32 %v363_v38, 0.0  ;;  %v387_v47 = vmax.f32 %v371_v39, 0.0 }
  0xec   :  { %v343_v48 = vmul.f32 %v611_v40, %v729_v16  ;;  %v351_v49 = vmul.f32 %v619_v41, %v729_v16  ;;  %v232_v50 = vpop.f32.mrf.mxu0  ;;  %v264_v51 = vpop.f32.mrf.mxu1 }
  0xed   :  { %v377_v54 = vmax.f32 %v361_v44, 0.0  ;;  %v385_v55 = vmax.f32 %v369_v45, 0.0  ;;  %v534_v56 = vpack.c.bf16 %v379_v46, %v378_v42  ;;  %v554_v57 = vpack.c.bf16 %v387_v47, %v386_v43 }
  0xee   :  { %v341_v58 = vmul.f32 %v729_v16, %v232_v50  ;;  %v349_v59 = vmul.f32 %v729_v16, %v264_v51  ;;  %v612_v60 = vpop.f32.mrf.mxu0  ;;  %v620_v61 = vpop.f32.mrf.mxu1  ;;  %v366_v0 = vadd.f32 %v493_v21, %v343_v48  ;;  %v374_v1 = vadd.f32 %v493_v21, %v351_v49 }
  0xef   :  { %v529_v62 = vpack.c.bf16 %v377_v54, %v376_v52  ;;  %v549_v63 = vpack.c.bf16 %v385_v55, %v384_v53  ;;  %566 = vst [vmem:[%s778_s4 + $0x8] sm:$0xff] %v534_v56   ;;  %570 = vst [vmem:[%s778_s4 + $0x28] sm:$0xff] %v554_v57   ;;  %v344_v2 = vmul.f32 %v612_v60, %v729_v16 }
  0xf0   :  { %v352_v3 = vmul.f32 %v620_v61, %v729_v16  ;;  %v235_v4 = vpop.f32.mrf.mxu0  ;;  %v267_v5 = vpop.f32.mrf.mxu1  ;;  %v364_v6 = vadd.f32 %v493_v21, %v341_v58  ;;  %v372_v7 = vadd.f32 %v493_v21, %v349_v59  ;;  %v382_v14 = vmax.f32 %v366_v0, 0.0 }
  0xf1   :  { %530 = vst [vmem:[%s778_s4] sm:$0xff] %v529_v62   ;;  %569 = vst [vmem:[%s778_s4 + $0x20] sm:$0xff] %v549_v63   ;;  %v342_v8 = vmul.f32 %v729_v16, %v235_v4  ;;  %v350_v9 = vmul.f32 %v729_v16, %v267_v5  ;;  %v367_v10 = vadd.f32 %v493_v21, %v344_v2  ;;  %v390_v15 = vmax.f32 %v374_v1, 0.0 }
  0xf2   :  { %v375_v11 = vadd.f32 %v493_v21, %v352_v3  ;;  %v380_v19 = vmax.f32 %v364_v6, 0.0  ;;  %v388_v20 = vmax.f32 %v372_v7, 0.0 }
  0xf3   :  { %v365_v12 = vadd.f32 %v493_v21, %v342_v8  ;;  %v373_v13 = vadd.f32 %v493_v21, %v350_v9  ;;  %v383_v17 = vmax.f32 %v367_v10, 0.0 }
  0xf4   :  { %v391_v18 = vmax.f32 %v375_v11, 0.0 }
  0xf5   :  { %v381_v22 = vmax.f32 %v365_v12, 0.0  ;;  %v389_v23 = vmax.f32 %v373_v13, 0.0  ;;  %v544_v24 = vpack.c.bf16 %v383_v17, %v382_v14 }
  0xf6   :  { %v564_v25 = vpack.c.bf16 %v391_v18, %v390_v15 }
  0xf7   :  { %v539_v26 = vpack.c.bf16 %v381_v22, %v380_v19  ;;  %v559_v27 = vpack.c.bf16 %v389_v23, %v388_v20  ;;  %568 = vst [vmem:[%s778_s4 + $0x18] sm:$0xff] %v544_v24  }
  0xf8   :  { %572 = vst [vmem:[%s778_s4 + $0x38] sm:$0xff] %v564_v25  }
  0xf9   :  { %567 = vst [vmem:[%s778_s4 + $0x10] sm:$0xff] %v539_v26   ;;  %571 = vst [vmem:[%s778_s4 + $0x30] sm:$0xff] %v559_v27  }

// kernel: _lambda_.57
= control target key start
LH: loop header
LB: loop body
LE: loop exit
PB: predicated region body
PF: predicated region fallthrough
CT: control target
= control target key end

     0   :  { %s1275_s15 = smov 0   ;;  %s1277_s16 = smov 0   ;;  %s1446_s0 = inlined_call_operand.vmem [shape: bf16[128,1152], index: 0, kind: input, shape index: {}]   ;;  %s1447_s1 = inlined_call_operand.vmem [shape: bf16[1152,128], index: 1, kind: input, shape index: {}]   ;;  %s1448_s2 = inlined_call_operand.vmem [shape: f32[1,128], index: 2, kind: input, shape index: {}]   ;;  %s1449_s3 = inlined_call_operand.vmem [shape: f32[1,128], index: 3, kind: input, shape index: {}]   ;;  %s1450_s4 = inlined_call_operand.vmem [shape: bf16[128,128], index: 4, kind: output, shape index: {}]  }
   0x1   :  { %s1279_s17 = smov 0   ;;  %s1281_s18 = smov 0  }
   0x2   :  { %s1283_s19 = smov 0  }
   0x3 LB: > { %s26_s20 = sadd.s32 1, %s1243_s18  ;;  %p49_p1 = scmp.ne.s32.totalorder %s1235_s16, %s1231_s15  ;;  %s1247_s19 = sphi %s1283_s19, %s14_s19   ;;  %s1243_s18 = sphi %s1281_s18, %s1454_s18   ;;  %s1239_s17 = sphi %s1279_s17, %s1453_s17   ;;  %s1235_s16 = sphi %s1277_s16, %s1452_s16   ;;  %s1231_s15 = sphi %s1275_s15, %s1451_s15  }
   0x4   : > { %p27_p0 = scmp.ge.s32.totalorder %s26_s20, 9  ;;  %p50_p2 = scmp.eq.s32.totalorder %s1247_s19, 0 }
   0x5   : > { %s42_s22 = sadd.s32 1, %s1235_s16  ;;  %p978_p5 = scmp.ge.s32.totalorder %s1247_s19, 9 }
   0x6   : > { %s1456_s20 = smov (%p27_p0, %s26_s20), 0  ;;  %p51_p3 = por %p50_p2, %p49_p1 }
   0x7   : > { %s38_s21 = ssub.s32 %s1243_s18, %s1456_s20  ;;  %195 = sbr.rel (%p978_p5) target bundleno = 26 (0x1a), region = 24 }
   0x8   : > { %p40_p4 = scmp.eq.s32.totalorder %s38_s21, 0 }
   0xa   : > { %s1310_s23 = scalar_select %p40_p4, %s1235_s16, %s42_s22  }
   0xc   : > { %198 = sbr.rel (!%p51_p3) target bundleno = 26 (0x1a), region = 28  ;;  %s200_s24 = sand.u32 (%p51_p3), 1, %s1235_s16  }
   0xd   : > { %s980_s25 = sshll.u32 (%p51_p3), %s1243_s18, 2  ;;  %s979_s26 = sshll.u32 (%p51_p3), %s200_s24, 6 }
   0xe   : > { %s1318_s29 = scalar_lea.vmem (%p51_p3), %s1446_s0, %s980_s25  ;;  %s202_s30 = scalar_lea.vmem (%p51_p3), [#allocation3], %s979_s26 }
   0xf   : > { %v224_v0 = vld [vmem:[%s1318_s29] sm:$0xf] (%p51_p3)  ;;  %v226_v1 = vld [vmem:[%s1318_s29 + $0x24] sm:$0xf] (%p51_p3)  ;;  %v228_v2 = vld [vmem:[%s1318_s29 + $0x48] sm:$0xf] (%p51_p3) }
  0x10   : > { %225 = vst [vmem:[%s202_s30] sm:$0xf] (%p51_p3), %v224_v0  ;;  %227 = vst [vmem:[%s202_s30 + $0x4] sm:$0xf] (%p51_p3), %v226_v1  ;;  %v230_v3 = vld [vmem:[%s1318_s29 + $0x6c] sm:$0xf] (%p51_p3) }
  0x11   : > { %v232_v4 = vld [vmem:[%s1318_s29 + $0x90] sm:$0xf]  ;;  %229 = vst [vmem:[%s202_s30 + $0x8] sm:$0xf] %v228_v2  ;;  %231 = vst [vmem:[%s202_s30 + $0xc] sm:$0xf] %v230_v3 }
  0x12   : > { %233 = vst [vmem:[%s202_s30 + $0x10] sm:$0xf] %v232_v4  ;;  %v234_v5 = vld [vmem:[%s1318_s29 + $0xb4] sm:$0xf]  ;;  %v236_v6 = vld [vmem:[%s1318_s29 + $0xd8] sm:$0xf] }
  0x13   : > { %v238_v7 = vld [vmem:[%s1318_s29 + $0xfc] sm:$0xf]  ;;  %235 = vst [vmem:[%s202_s30 + $0x14] sm:$0xf] %v234_v5  ;;  %237 = vst [vmem:[%s202_s30 + $0x18] sm:$0xf] %v236_v6 }
  0x14   : > { %239 = vst [vmem:[%s202_s30 + $0x1c] sm:$0xf] %v238_v7  ;;  %v240_v8 = vld [vmem:[%s1318_s29 + $0x120] sm:$0xf]  ;;  %v242_v9 = vld [vmem:[%s1318_s29 + $0x144] sm:$0xf] }
  0x15   : > { %v244_v10 = vld [vmem:[%s1318_s29 + $0x168] sm:$0xf]  ;;  %241 = vst [vmem:[%s202_s30 + $0x20] sm:$0xf] %v240_v8  ;;  %243 = vst [vmem:[%s202_s30 + $0x24] sm:$0xf] %v242_v9 }
  0x16   : > { %245 = vst [vmem:[%s202_s30 + $0x28] sm:$0xf] %v244_v10  ;;  %v246_v11 = vld [vmem:[%s1318_s29 + $0x18c] sm:$0xf]  ;;  %v248_v12 = vld [vmem:[%s1318_s29 + $0x1b0] sm:$0xf] }
  0x17   : > { %v250_v13 = vld [vmem:[%s1318_s29 + $0x1d4] sm:$0xf]  ;;  %247 = vst [vmem:[%s202_s30 + $0x2c] sm:$0xf] %v246_v11  ;;  %249 = vst [vmem:[%s202_s30 + $0x30] sm:$0xf] %v248_v12 }
  0x18   : > { %251 = vst [vmem:[%s202_s30 + $0x34] sm:$0xf] %v250_v13  ;;  %v252_v14 = vld [vmem:[%s1318_s29 + $0x1f8] sm:$0xf]  ;;  %v254_v15 = vld [vmem:[%s1318_s29 + $0x21c] sm:$0xf] }
  0x19   : > { %253 = vst [vmem:[%s202_s30 + $0x38] sm:$0xf] %v252_v14  ;;  %255 = vst [vmem:[%s202_s30 + $0x3c] sm:$0xf] %v254_v15 }
  0x1a PF: > { %p981_p6 = scmp.ge.s32.totalorder %s1247_s19, 1  ;;  %p322_p7 = scmp.lt.s32.totalorder %s1247_s19, 10 }
  0x1c   : > { %p323_p8 = pnand %p981_p6, %p322_p7 }
  0x1d   : > { %s329_s5 = sand.u32 (!%p323_p8), 1, %s1231_s15   ;;  %s983_s6 = sshll.u32 (!%p323_p8), %s1239_s17, 4 }
  0x1e   : > { %326 = sbr.rel (%p323_p8) target bundleno = 313 (0x139), region = 73  ;;  %s982_s7 = sshll.u32 (!%p323_p8), %s329_s5, 6 }
  0x1f   : > { %p373_p9 = scmp.lt.s32.totalorder (!%p323_p8), %s983_s6, 143  ;;  %s1345_s12 = scalar_lea.vmem (!%p323_p8), [#allocation3], %s982_s7 }
  0x20   : > { %p985_p10 = scmp.ne.s32.totalorder (!%p323_p8), %s1239_s17, 0 }
  0x23   : > { %s1458_s6 = smov (!%p373_p9, %s983_s6), 143  ;;  %400 = sbr.rel (%p985_p10) target bundleno = 49 (0x31), region = 81 }
  0x24   : > { %s984_s8 = sshll.u32 %s1458_s6, 2 }
  0x25   : > { %s1343_s11 = scalar_lea.vmem %s1447_s1, %s984_s8 }
  0x28   : > { %v1249_v16 = vmov 0.0  }
  0x29   : > { %401 = vst [vmem:[#allocation2 + $0x30] sm:$0xff] %v1249_v16  ;;  %402 = vst [vmem:[#allocation2] sm:$0xff] %v1249_v16 }
  0x2a   : > { %403 = vst [vmem:[#allocation2 + $0x58] sm:$0xff] %v1249_v16  ;;  %404 = vst [vmem:[#allocation2 + $0x18] sm:$0xff] %v1249_v16 }
  0x2b   : > { %405 = vst [vmem:[#allocation2 + $0x50] sm:$0xff] %v1249_v16  ;;  %406 = vst [vmem:[#allocation2 + $0x68] sm:$0xff] %v1249_v16 }
  0x2c   : > { %407 = vst [vmem:[#allocation2 + $0x8] sm:$0xff] %v1249_v16  ;;  %408 = vst [vmem:[#allocation2 + $0x48] sm:$0xff] %v1249_v16 }
  0x2d   : > { %409 = vst [vmem:[#allocation2 + $0x40] sm:$0xff] %v1249_v16  ;;  %410 = vst [vmem:[#allocation2 + $0x20] sm:$0xff] %v1249_v16 }
  0x2e   : > { %411 = vst [vmem:[#allocation2 + $0x10] sm:$0xff] %v1249_v16  ;;  %412 = vst [vmem:[#allocation2 + $0x38] sm:$0xff] %v1249_v16 }
  0x2f   : > { %413 = vst [vmem:[#allocation2 + $0x60] sm:$0xff] %v1249_v16  ;;  %414 = vst [vmem:[#allocation2 + $0x70] sm:$0xff] %v1249_v16 }
  0x30   : > { %415 = vst [vmem:[#allocation2 + $0x78] sm:$0xff] %v1249_v16  ;;  %416 = vst [vmem:[#allocation2 + $0x28] sm:$0xff] %v1249_v16 }
  0x31 PF: > { %v1193_v17 = vld [vmem:[%s1343_s11 + $0x38] sm:$0xff]   ;;  %v1194_v18 = vld [vmem:[%s1343_s11 + $0x30] sm:$0xff]   ;;  %v1195_v19 = vld [vmem:[%s1343_s11 + $0x28] sm:$0xff]   ;;  %p1002_p11 = scmp.ne.s32.totalorder %s1239_s17, 8 }
  0x32   : > { %1104 = vmatprep.subr.bf16.mxu0 %v1193_v17  ;;  %1136 = vmatprep.subr.bf16.mxu1 %v1193_v17  ;;  %v1196_v20 = vld [vmem:[%s1343_s11 + $0x20] sm:$0xff]   ;;  %v1197_v23 = vld [vmem:[%s1343_s11 + $0x18] sm:$0xff]   ;;  %v1198_v24 = vld [vmem:[%s1343_s11 + $0x10] sm:$0xff]  }
  0x33   : > { %1105 = vmatpush3.bf16.msra.mxu0 %v1193_v17  ;;  %1144 = vmatpush3.bf16.msra.mxu1 %v1193_v17  ;;  %v1201_v21 = vld [vmem:[%s1345_s12] sm:$0xff]   ;;  %v1199_v25 = vld [vmem:[%s1343_s11 + $0x8] sm:$0xff]   ;;  %v1205_v29 = vld [vmem:[%s1345_s12 + $0x10] sm:$0xff]  }
  0x34   : > { %1106 = vmatprep.subr.bf16.mxu0 %v1194_v18  ;;  %1137 = vmatprep.subr.bf16.mxu1 %v1194_v18  ;;  %v1202_v22 = vld [vmem:[%s1345_s12 + $0x20] sm:$0xff]   ;;  %v1203_v27 = vld [vmem:[%s1345_s12 + $0x8] sm:$0xff]   ;;  %v1206_v30 = vld [vmem:[%s1345_s12 + $0x30] sm:$0xff]  }
  0x35   : > { %1120 = vmatprep.mubr.bf16.mxu0 %v1201_v21  ;;  %1128 = vmatprep.mubr.bf16.mxu1 %v1202_v22  ;;  %v1200_v26 = vld [vmem:[%s1343_s11] sm:$0xff]   ;;  %v1204_v28 = vld [vmem:[%s1345_s12 + $0x28] sm:$0xff]   ;;  %v1207_v31 = vld [vmem:[%s1345_s12 + $0x18] sm:$0xff]  }
  0x36   : > { %v1208_v32 = vld [vmem:[%s1345_s12 + $0x38] sm:$0xff]   ;;  %v427_v34 = vld [vmem:[#allocation2 + $0x10] sm:$0xff]  ;;  %v425_v38 = vld [vmem:[#allocation2 + $0x40] sm:$0xff] }
  0x37   : > { %1107 = vmatpush3.bf16.msra.mxu0 %v1194_v18  ;;  %1145 = vmatpush3.bf16.msra.mxu1 %v1194_v18  ;;  %v419_v33 = vld [vmem:[#allocation2 + $0x58] sm:$0xff]  ;;  %v417_v37 = vld [vmem:[#allocation2 + $0x30] sm:$0xff]  ;;  %v418_v49 = vld [vmem:[#allocation2] sm:$0xff] }
  0x38   : > { %1108 = vmatprep.subr.bf16.mxu0 %v1195_v19  ;;  %1138 = vmatprep.subr.bf16.mxu1 %v1195_v19  ;;  %v420_v43 = vld [vmem:[#allocation2 + $0x18] sm:$0xff]  ;;  %v426_v50 = vld [vmem:[#allocation2 + $0x20] sm:$0xff]  ;;  %v423_v55 = vld [vmem:[#allocation2 + $0x8] sm:$0xff] }
  0x39   : > { %v428_v44 = vld [vmem:[#allocation2 + $0x38] sm:$0xff]  ;;  %v421_v61 = vld [vmem:[#allocation2 + $0x50] sm:$0xff]  ;;  %v429_v62 = vld [vmem:[#allocation2 + $0x60] sm:$0xff] }
  0x3a   : > { %v431_v56 = vld [vmem:[#allocation2 + $0x78] sm:$0xff]  ;;  %v424_v3 = vld [vmem:[#allocation2 + $0x48] sm:$0xff]  ;;  %v430_v10 = vld [vmem:[#allocation2 + $0x70] sm:$0xff] }
  0x3b   : > { %1109 = vmatpush3.bf16.msra.mxu0 %v1195_v19  ;;  %1146 = vmatpush3.bf16.msra.mxu1 %v1195_v19  ;;  %v432_v4 = vld [vmem:[#allocation2 + $0x28] sm:$0xff] }
  0x3c   : > { %1110 = vmatprep.subr.bf16.mxu0 %v1196_v20  ;;  %1139 = vmatprep.subr.bf16.mxu1 %v1196_v20  ;;  %v422_v9 = vld [vmem:[#allocation2 + $0x68] sm:$0xff] }
  0x3f   : > { %1111 = vmatpush3.bf16.msra.mxu0 %v1196_v20  ;;  %1147 = vmatpush3.bf16.msra.mxu1 %v1196_v20 }
  0x40   : > { %1112 = vmatprep.subr.bf16.mxu0 %v1197_v23  ;;  %1140 = vmatprep.subr.bf16.mxu1 %v1197_v23 }
  0x43   : > { %1113 = vmatpush3.bf16.msra.mxu0 %v1197_v23  ;;  %1148 = vmatpush3.bf16.msra.mxu1 %v1197_v23 }
  0x44   : > { %1114 = vmatprep.subr.bf16.mxu0 %v1198_v24  ;;  %1141 = vmatprep.subr.bf16.mxu1 %v1198_v24 }
  0x47   : > { %1115 = vmatpush3.bf16.msra.mxu0 %v1198_v24  ;;  %1149 = vmatpush3.bf16.msra.mxu1 %v1198_v24 }
  0x48   : > { %1116 = vmatprep.subr.bf16.mxu0 %v1199_v25  ;;  %1142 = vmatprep.subr.bf16.mxu1 %v1199_v25 }
  0x4b   : > { %1117 = vmatpush3.bf16.msra.mxu0 %v1199_v25  ;;  %1150 = vmatpush3.bf16.msra.mxu1 %v1199_v25 }
  0x4c   : > { %1118 = vmatprep.subr.bf16.mxu0 %v1200_v26  ;;  %1143 = vmatprep.subr.bf16.mxu1 %v1200_v26 }
  0x4f   : > { %1119 = vmatpush3.bf16.msra.mxu0 %v1200_v26  ;;  %1151 = vmatpush3.bf16.msra.mxu1 %v1200_v26 }
  0x52   : > { %1121 = vmatmul.mubr.bf16.vlgmr.msra.gmra.mxu0 %v1203_v27  ;;  %1129 = vmatmul.mubr.bf16.vlgmr.msra.gmra.mxu1 %v1204_v28 }
  0x53   : > { %1124 = vmatprep.mubr.bf16.mxu0 %v1205_v29  ;;  %1132 = vmatprep.mubr.bf16.mxu1 %v1206_v30 }
  0x5a   : > { %1125 = vmatmul.mubr.bf16.gmra.mxu0 %v1207_v31  ;;  %1133 = vmatmul.mubr.bf16.gmra.mxu1 %v1208_v32 }
 0x112   : > { %v1122_v35 = vpop.f32.mrf.mxu0  ;;  %v1130_v36 = vpop.f32.mrf.mxu1 }
 0x113   : > { %v660_v39 = vadd.f32 %v1122_v35, %v419_v33  ;;  %v668_v40 = vadd.f32 %v1130_v36, %v427_v34 }
 0x114   : > { %v595_v41 = vpop.f32.mrf.mxu0  ;;  %v627_v42 = vpop.f32.mrf.mxu1 }
 0x115   : > { %676 = vst [vmem:[#allocation2 + $0x58] sm:$0xff] %v660_v39  ;;  %684 = vst [vmem:[#allocation2 + $0x10] sm:$0xff] %v668_v40  ;;  %v658_v45 = vadd.f32 %v595_v41, %v417_v37  ;;  %v666_v46 = vadd.f32 %v627_v42, %v425_v38 }
 0x116   : > { %v1123_v47 = vpop.f32.mrf.mxu0  ;;  %v1131_v48 = vpop.f32.mrf.mxu1 }
 0x117   : > { %674 = vst [vmem:[#allocation2 + $0x30] sm:$0xff] %v658_v45  ;;  %682 = vst [vmem:[#allocation2 + $0x40] sm:$0xff] %v666_v46  ;;  %v661_v51 = vadd.f32 %v1123_v47, %v420_v43  ;;  %v669_v52 = vadd.f32 %v1131_v48, %v428_v44 }
 0x118   : > { %v598_v53 = vpop.f32.mrf.mxu0  ;;  %v630_v54 = vpop.f32.mrf.mxu1 }
 0x119   : > { %677 = vst [vmem:[#allocation2 + $0x18] sm:$0xff] %v661_v51  ;;  %685 = vst [vmem:[#allocation2 + $0x38] sm:$0xff] %v669_v52  ;;  %v659_v57 = vadd.f32 %v598_v53, %v418_v49  ;;  %v667_v58 = vadd.f32 %v630_v54, %v426_v50 }
 0x11a   : > { %v1126_v59 = vpop.f32.mrf.mxu0  ;;  %v1134_v60 = vpop.f32.mrf.mxu1 }
 0x11b   : > { %675 = vst [vmem:[#allocation2] sm:$0xff] %v659_v57  ;;  %683 = vst [vmem:[#allocation2 + $0x20] sm:$0xff] %v667_v58  ;;  %v664_v63 = vadd.f32 %v1126_v59, %v423_v55  ;;  %v672_v0 = vadd.f32 %v1134_v60, %v431_v56 }
 0x11c   : > { %v611_v1 = vpop.f32.mrf.mxu0  ;;  %v643_v2 = vpop.f32.mrf.mxu1 }
 0x11d   : > { %680 = vst [vmem:[#allocation2 + $0x8] sm:$0xff] %v664_v63  ;;  %688 = vst [vmem:[#allocation2 + $0x78] sm:$0xff] %v672_v0  ;;  %v662_v5 = vadd.f32 %v611_v1, %v421_v61  ;;  %v670_v6 = vadd.f32 %v643_v2, %v429_v62 }
 0x11e   : > { %v1127_v7 = vpop.f32.mrf.mxu0  ;;  %v1135_v8 = vpop.f32.mrf.mxu1 }
 0x11f   : > { %678 = vst [vmem:[#allocation2 + $0x50] sm:$0xff] %v662_v5  ;;  %686 = vst [vmem:[#allocation2 + $0x60] sm:$0xff] %v670_v6  ;;  %v665_v11 = vadd.f32 %v1127_v7, %v424_v3  ;;  %v673_v12 = vadd.f32 %v1135_v8, %v432_v4  ;;  %693 = sbr.rel (%p1002_p11) target bundleno = 313 (0x139), region = 85 }
 0x120   : > { %v614_v13 = vpop.f32.mrf.mxu0  ;;  %v646_v14 = vpop.f32.mrf.mxu1 }
 0x121   : > { %681 = vst [vmem:[#allocation2 + $0x48] sm:$0xff] %v665_v11  ;;  %689 = vst [vmem:[#allocation2 + $0x28] sm:$0xff] %v673_v12  ;;  %v663_v15 = vadd.f32 %v614_v13, %v422_v9  ;;  %v671_v16 = vadd.f32 %v646_v14, %v430_v10 }
 0x123   : > { %679 = vst [vmem:[#allocation2 + $0x68] sm:$0xff] %v663_v15  ;;  %687 = vst [vmem:[#allocation2 + $0x70] sm:$0xff] %v671_v16 }
 0x124   : > { %v694_v17 = vld [vmem:[#allocation2 + $0x30] sm:$0xff]  ;;  %v695_v18 = vld [vmem:[#allocation2] sm:$0xff]  ;;  %v696_v23 = vld [vmem:[#allocation2 + $0x58] sm:$0xff] }
 0x125   : > { %v1368_v19 = vld [vmem:[%s1448_s2] ss:$0 sm:$0xff]  ;;  %v697_v24 = vld [vmem:[#allocation2 + $0x18] sm:$0xff]  ;;  %v700_v29 = vld [vmem:[#allocation2 + $0x8] sm:$0xff] }
 0x126   : > { %v717_v20 = vmul.f32 %v1368_v19, %v694_v17  ;;  %v718_v21 = vmul.f32 %v1368_v19, %v695_v18  ;;  %v1375_v22 = vld [vmem:[%s1449_s3] ss:$0 sm:$0xff]  ;;  %v719_v25 = vmul.f32 %v1368_v19, %v696_v23  ;;  %v720_v26 = vmul.f32 %v1368_v19, %v697_v24  ;;  %v698_v27 = vld [vmem:[#allocation2 + $0x50] sm:$0xff]  ;;  %v705_v50 = vld [vmem:[#allocation2 + $0x38] sm:$0xff] }
 0x127   : > { %v721_v32 = vmul.f32 %v1368_v19, %v698_v27  ;;  %v723_v37 = vmul.f32 %v1368_v19, %v700_v29  ;;  %v702_v39 = vld [vmem:[#allocation2 + $0x40] sm:$0xff]  ;;  %v704_v49 = vld [vmem:[#allocation2 + $0x10] sm:$0xff]  ;;  %v708_v61 = vld [vmem:[#allocation2 + $0x78] sm:$0xff]  ;;  %v728_v1 = vmul.f32 %v1368_v19, %v705_v50 }
 0x128   : > { %v740_v30 = vadd.f32 %v1375_v22, %v717_v20  ;;  %v741_v31 = vadd.f32 %v1375_v22, %v718_v21  ;;  %v701_v34 = vld [vmem:[#allocation2 + $0x48] sm:$0xff]  ;;  %v742_v35 = vadd.f32 %v1375_v22, %v719_v25  ;;  %v743_v36 = vadd.f32 %v1375_v22, %v720_v26  ;;  %v703_v44 = vld [vmem:[#allocation2 + $0x20] sm:$0xff] }
 0x129   : > { %v724_v38 = vmul.f32 %v1368_v19, %v701_v34  ;;  %v744_v42 = vadd.f32 %v1375_v22, %v721_v32  ;;  %v746_v47 = vadd.f32 %v1375_v22, %v723_v37  ;;  %v725_v54 = vmul.f32 %v1368_v19, %v702_v39  ;;  %v706_v55 = vld [vmem:[#allocation2 + $0x60] sm:$0xff]  ;;  %v709_v2 = vld [vmem:[#allocation2 + $0x28] sm:$0xff] }
 0x12a   : > { %v699_v28 = vld [vmem:[#allocation2 + $0x68] sm:$0xff]  ;;  %v756_v40 = vmax.f32 %v740_v30, 0.0  ;;  %v757_v41 = vmax.f32 %v741_v31, 0.0  ;;  %v758_v45 = vmax.f32 %v742_v35, 0.0  ;;  %v759_v46 = vmax.f32 %v743_v36, 0.0  ;;  %v707_v56 = vld [vmem:[#allocation2 + $0x70] sm:$0xff] }
 0x12b   : > { %v722_v33 = vmul.f32 %v1368_v19, %v699_v28  ;;  %v747_v48 = vadd.f32 %v1375_v22, %v724_v38  ;;  %v760_v52 = vmax.f32 %v744_v42, 0.0  ;;  %v762_v58 = vmax.f32 %v746_v47, 0.0 }
 0x12c   : > { %v1044_v51 = vpack.c.bf16 %v757_v41, %v756_v40  ;;  %v1049_v57 = vpack.c.bf16 %v759_v46, %v758_v45  ;;  %v726_v60 = vmul.f32 %v1368_v19, %v703_v44  ;;  %v748_v63 = vadd.f32 %v1375_v22, %v725_v54 }
 0x12d   : > { %v745_v43 = vadd.f32 %v1375_v22, %v722_v33  ;;  %v763_v59 = vmax.f32 %v747_v48, 0.0  ;;  %v727_v0 = vmul.f32 %v1368_v19, %v704_v49  ;;  %v729_v5 = vmul.f32 %v1368_v19, %v706_v55 }
 0x12e   : > { %1045 = vst [vmem:[%s1450_s4] sm:$0xff] %v1044_v51   ;;  %1081 = vst [vmem:[%s1450_s4 + $0x8] sm:$0xff] %v1049_v57   ;;  %v749_v4 = vadd.f32 %v1375_v22, %v726_v60  ;;  %v730_v6 = vmul.f32 %v1368_v19, %v707_v56  ;;  %v764_v7 = vmax.f32 %v748_v63, 0.0  ;;  %v751_v9 = vadd.f32 %v1375_v22, %v728_v1 }
 0x12f   : > { %v761_v53 = vmax.f32 %v745_v43, 0.0  ;;  %v1059_v3 = vpack.c.bf16 %v763_v59, %v762_v58  ;;  %v750_v8 = vadd.f32 %v1375_v22, %v727_v0  ;;  %v731_v10 = vmul.f32 %v1368_v19, %v708_v61 }
 0x130   : > { %v765_v11 = vmax.f32 %v749_v4, 0.0  ;;  %v752_v12 = vadd.f32 %v1375_v22, %v729_v5  ;;  %v753_v13 = vadd.f32 %v1375_v22, %v730_v6  ;;  %v732_v14 = vmul.f32 %v1368_v19, %v709_v2 }
 0x131   : > { %v1054_v62 = vpack.c.bf16 %v761_v53, %v760_v52  ;;  %1083 = vst [vmem:[%s1450_s4 + $0x18] sm:$0xff] %v1059_v3   ;;  %v766_v15 = vmax.f32 %v750_v8, 0.0  ;;  %v767_v16 = vmax.f32 %v751_v9, 0.0  ;;  %v754_v17 = vadd.f32 %v1375_v22, %v731_v10 }
 0x132   : > { %v1064_v18 = vpack.c.bf16 %v765_v11, %v764_v7  ;;  %v768_v20 = vmax.f32 %v752_v12, 0.0  ;;  %v769_v21 = vmax.f32 %v753_v13, 0.0  ;;  %v755_v23 = vadd.f32 %v1375_v22, %v732_v14 }
 0x133   : > { %1082 = vst [vmem:[%s1450_s4 + $0x10] sm:$0xff] %v1054_v62   ;;  %v1069_v24 = vpack.c.bf16 %v767_v16, %v766_v15  ;;  %v770_v25 = vmax.f32 %v754_v17, 0.0 }
 0x134   : > { %1084 = vst [vmem:[%s1450_s4 + $0x20] sm:$0xff] %v1064_v18   ;;  %v1074_v26 = vpack.c.bf16 %v769_v21, %v768_v20  ;;  %v771_v27 = vmax.f32 %v755_v23, 0.0 }
 0x135   : > { %1085 = vst [vmem:[%s1450_s4 + $0x28] sm:$0xff] %v1069_v24  }
 0x136   : > { %1086 = vst [vmem:[%s1450_s4 + $0x30] sm:$0xff] %v1074_v26   ;;  %v1079_v19 = vpack.c.bf16 %v771_v27, %v770_v25 }
 0x138   : > { %1087 = vst [vmem:[%s1450_s4 + $0x38] sm:$0xff] %v1079_v19  }
 0x139 PF: > { %s14_s19 = sadd.s32 1, %s1247_s19   ;;  %s1451_s15 = smov %s1235_s16 }
 0x13a   : > { %p11_p12 = scmp.ge.s32.totalorder %s14_s19, 11   ;;  %s1452_s16 = smov %s1310_s23 }
 0x13b   : > { %s1453_s17 = smov %s1243_s18  ;;  %s1454_s18 = smov %s1456_s20 }
 0x13c   :  { %13 = sbr.rel (!%p11_p12) target bundleno = 3 (0x3), region = 129 }

// kernel: _lambda_.62
= control target key start
LH: loop header
LB: loop body
LE: loop exit
PB: predicated region body
PF: predicated region fallthrough
CT: control target
= control target key end

     0   :  { %s992_s1 = inlined_call_operand.vmem [shape: bf16[256,128], index: 1, kind: input, shape index: {}]   ;;  %s993_s0 = inlined_call_operand.vmem [shape: bf16[128,256], index: 0, kind: input, shape index: {}]   ;;  %s994_s2 = inlined_call_operand.vmem [shape: f32[1,128], index: 2, kind: input, shape index: {}]   ;;  %s995_s3 = inlined_call_operand.vmem [shape: f32[1,128], index: 3, kind: input, shape index: {}]   ;;  %s996_s4 = inlined_call_operand.vmem [shape: bf16[128,128], index: 4, kind: output, shape index: {}]  }
   0x1   :  { %v765_v0 = vld [vmem:[%s992_s1 + $0x78] sm:$0xff]   ;;  %v767_v2 = vld [vmem:[%s992_s1 + $0x70] sm:$0xff]   ;;  %v769_v4 = vld [vmem:[%s992_s1 + $0x68] sm:$0xff]  }
   0x2   :  { %v766_v1 = vld [vmem:[%s992_s1 + $0x38] sm:$0xff]   ;;  %685 = vmatprep.subr.bf16.mxu0 %v765_v0  ;;  %749 = vmatprep.subr.bf16.mxu1 %v765_v0  ;;  %v768_v3 = vld [vmem:[%s992_s1 + $0x30] sm:$0xff]   ;;  %v770_v5 = vld [vmem:[%s992_s1 + $0x28] sm:$0xff]  }
   0x3   :  { %686 = vmatpush3.bf16.msra.mxu0 %v766_v1  ;;  %757 = vmatpush3.bf16.msra.mxu1 %v766_v1  ;;  %v771_v6 = vld [vmem:[%s992_s1 + $0x60] sm:$0xff]   ;;  %v773_v8 = vld [vmem:[%s992_s1 + $0x58] sm:$0xff]   ;;  %v775_v10 = vld [vmem:[%s992_s1 + $0x50] sm:$0xff]  }
   0x4   :  { %687 = vmatprep.subr.bf16.mxu0 %v767_v2  ;;  %750 = vmatprep.subr.bf16.mxu1 %v767_v2  ;;  %v772_v7 = vld [vmem:[%s992_s1 + $0x20] sm:$0xff]   ;;  %v774_v9 = vld [vmem:[%s992_s1 + $0x18] sm:$0xff]   ;;  %v776_v13 = vld [vmem:[%s992_s1 + $0x10] sm:$0xff]  }
   0x5   :  { %v783_v11 = vld [vmem:[%s993_s0 + $0x4] ss:$8 sps:$4 sm:$0xff]   ;;  %v781_v18 = vld [vmem:[%s993_s0] ss:$8 sps:$4 sm:$0xff]   ;;  %v787_v20 = vld [vmem:[%s993_s0 + $0x14] ss:$8 sps:$4 sm:$0xff]  }
   0x6   :  { %v786_v12 = vld [vmem:[%s993_s0 + $0x44] ss:$8 sps:$4 sm:$0xff]   ;;  %310 = vmatprep.mubr.bf16.mxu0 %v783_v11  ;;  %v784_v19 = vld [vmem:[%s993_s0 + $0x40] ss:$8 sps:$4 sm:$0xff]   ;;  %v789_v21 = vld [vmem:[%s993_s0 + $0x54] ss:$8 sps:$4 sm:$0xff]  }
   0x7   :  { %688 = vmatpush3.bf16.msra.mxu0 %v768_v3  ;;  %758 = vmatpush3.bf16.msra.mxu1 %v768_v3  ;;  %v777_v14 = vld [vmem:[%s992_s1 + $0x48] sm:$0xff]   ;;  %v779_v16 = vld [vmem:[%s992_s1 + $0x40] sm:$0xff]   ;;  %v791_v22 = vld [vmem:[%s993_s0 + $0x10] ss:$8 sps:$4 sm:$0xff]  }
   0x8   :  { %689 = vmatprep.subr.bf16.mxu0 %v769_v4  ;;  %751 = vmatprep.subr.bf16.mxu1 %v769_v4  ;;  %v778_v15 = vld [vmem:[%s992_s1 + $0x8] sm:$0xff]   ;;  %v780_v17 = vld [vmem:[%s992_s1] sm:$0xff]   ;;  %v792_v23 = vld [vmem:[%s993_s0 + $0x50] ss:$8 sps:$4 sm:$0xff]  }
   0x9   :  { %342 = vmatprep.mubr.bf16.mxu1 %v786_v12  ;;  %v793_v24 = vld [vmem:[%s993_s0 + $0x24] ss:$8 sps:$4 sm:$0xff]   ;;  %v797_v26 = vld [vmem:[%s993_s0 + $0x20] ss:$8 sps:$4 sm:$0xff]   ;;  %v799_v28 = vld [vmem:[%s993_s0 + $0x34] ss:$8 sps:$4 sm:$0xff]  }
   0xa   :  { %v795_v25 = vld [vmem:[%s993_s0 + $0x64] ss:$8 sps:$4 sm:$0xff]   ;;  %v798_v27 = vld [vmem:[%s993_s0 + $0x60] ss:$8 sps:$4 sm:$0xff]   ;;  %v801_v29 = vld [vmem:[%s993_s0 + $0x74] ss:$8 sps:$4 sm:$0xff]  }
   0xb   :  { %690 = vmatpush3.bf16.msra.mxu0 %v770_v5  ;;  %759 = vmatpush3.bf16.msra.mxu1 %v770_v5  ;;  %v803_v30 = vld [vmem:[%s993_s0 + $0x30] ss:$8 sps:$4 sm:$0xff]   ;;  %v929_v35 = vld [vmem:[%s994_s2] ss:$0 sm:$0xff] }
   0xc   :  { %691 = vmatprep.subr.bf16.mxu0 %v771_v6  ;;  %752 = vmatprep.subr.bf16.mxu1 %v771_v6  ;;  %v804_v31 = vld [vmem:[%s993_s0 + $0x70] ss:$8 sps:$4 sm:$0xff]   ;;  %v936_v43 = vld [vmem:[%s995_s3] ss:$0 sm:$0xff] }
   0xf   :  { %692 = vmatpush3.bf16.msra.mxu0 %v772_v7  ;;  %760 = vmatpush3.bf16.msra.mxu1 %v772_v7 }
  0x10   :  { %693 = vmatprep.subr.bf16.mxu0 %v773_v8  ;;  %753 = vmatprep.subr.bf16.mxu1 %v773_v8 }
  0x13   :  { %694 = vmatpush3.bf16.msra.mxu0 %v774_v9  ;;  %761 = vmatpush3.bf16.msra.mxu1 %v774_v9 }
  0x14   :  { %695 = vmatprep.subr.bf16.mxu0 %v775_v10  ;;  %754 = vmatprep.subr.bf16.mxu1 %v775_v10 }
  0x17   :  { %696 = vmatpush3.bf16.msra.mxu0 %v776_v13  ;;  %762 = vmatpush3.bf16.msra.mxu1 %v776_v13 }
  0x18   :  { %697 = vmatprep.subr.bf16.mxu0 %v777_v14  ;;  %755 = vmatprep.subr.bf16.mxu1 %v777_v14 }
  0x1b   :  { %698 = vmatpush3.bf16.msra.mxu0 %v778_v15  ;;  %763 = vmatpush3.bf16.msra.mxu1 %v778_v15 }
  0x1c   :  { %699 = vmatprep.subr.bf16.mxu0 %v779_v16  ;;  %756 = vmatprep.subr.bf16.mxu1 %v779_v16 }
  0x1f   :  { %700 = vmatpush3.bf16.msra.mxu0 %v780_v17  ;;  %764 = vmatpush3.bf16.msra.mxu1 %v780_v17 }
  0x22   :  { %311 = vmatmul.mubr.bf16.vlgmr.msra.gmra.mxu0 %v781_v18  ;;  %343 = vmatmul.mubr.bf16.vlgmr.msra.gmra.mxu1 %v784_v19 }
  0x23   :  { %318 = vmatprep.mubr.bf16.mxu0 %v787_v20  ;;  %350 = vmatprep.mubr.bf16.mxu1 %v789_v21 }
  0x2a   :  { %319 = vmatmul.mubr.bf16.gmra.mxu0 %v791_v22  ;;  %351 = vmatmul.mubr.bf16.gmra.mxu1 %v792_v23 }
  0x2b   :  { %326 = vmatprep.mubr.bf16.mxu0 %v793_v24  ;;  %358 = vmatprep.mubr.bf16.mxu1 %v795_v25 }
  0x32   :  { %327 = vmatmul.mubr.bf16.gmra.mxu0 %v797_v26  ;;  %359 = vmatmul.mubr.bf16.gmra.mxu1 %v798_v27 }
  0x33   :  { %334 = vmatprep.mubr.bf16.mxu0 %v799_v28  ;;  %366 = vmatprep.mubr.bf16.mxu1 %v801_v29 }
  0x3a   :  { %335 = vmatmul.mubr.bf16.gmra.mxu0 %v803_v30  ;;  %367 = vmatmul.mubr.bf16.gmra.mxu1 %v804_v31 }
  0xe2   :  { %v701_v32 = vpop.f32.mrf.mxu0  ;;  %v725_v33 = vpop.f32.mrf.mxu1 }
  0xe4   :  { %v702_v34 = vpop.f32.mrf.mxu0  ;;  %v726_v36 = vpop.f32.mrf.mxu1 }
  0xe5   :  { %v703_v37 = vadd.f32 %v702_v34, %v701_v32  ;;  %v727_v38 = vadd.f32 %v726_v36, %v725_v33 }
  0xe6   :  { %v704_v39 = vpop.f32.mrf.mxu0  ;;  %v728_v40 = vpop.f32.mrf.mxu1 }
  0xe7   :  { %v433_v41 = vmul.f32 %v703_v37, %v929_v35  ;;  %v441_v42 = vmul.f32 %v727_v38, %v929_v35 }
  0xe8   :  { %v705_v44 = vpop.f32.mrf.mxu0  ;;  %v729_v45 = vpop.f32.mrf.mxu1 }
  0xe9   :  { %v706_v46 = vadd.f32 %v705_v44, %v704_v39  ;;  %v730_v47 = vadd.f32 %v729_v45, %v728_v40  ;;  %v456_v50 = vadd.f32 %v936_v43, %v433_v41  ;;  %v464_v51 = vadd.f32 %v936_v43, %v441_v42 }
  0xea   :  { %v707_v48 = vpop.f32.mrf.mxu0  ;;  %v731_v49 = vpop.f32.mrf.mxu1 }
  0xeb   :  { %v434_v52 = vmul.f32 %v706_v46, %v929_v35  ;;  %v442_v53 = vmul.f32 %v730_v47, %v929_v35  ;;  %v472_v62 = vmax.f32 %v456_v50, 0.0  ;;  %v480_v63 = vmax.f32 %v464_v51, 0.0 }
  0xec   :  { %v708_v54 = vpop.f32.mrf.mxu0  ;;  %v732_v55 = vpop.f32.mrf.mxu1 }
  0xed   :  { %v457_v56 = vadd.f32 %v936_v43, %v434_v52  ;;  %v465_v57 = vadd.f32 %v936_v43, %v442_v53  ;;  %v709_v58 = vadd.f32 %v708_v54, %v707_v48  ;;  %v733_v59 = vadd.f32 %v732_v55, %v731_v49 }
  0xee   :  { %v710_v60 = vpop.f32.mrf.mxu0  ;;  %v734_v61 = vpop.f32.mrf.mxu1 }
  0xef   :  { %v473_v0 = vmax.f32 %v457_v56, 0.0  ;;  %v481_v1 = vmax.f32 %v465_v57, 0.0  ;;  %v435_v2 = vmul.f32 %v709_v58, %v929_v35  ;;  %v443_v3 = vmul.f32 %v733_v59, %v929_v35 }
  0xf0   :  { %v711_v4 = vpop.f32.mrf.mxu0  ;;  %v735_v5 = vpop.f32.mrf.mxu1 }
  0xf1   :  { %v641_v6 = vpack.c.bf16 %v473_v0, %v472_v62  ;;  %v661_v7 = vpack.c.bf16 %v481_v1, %v480_v63  ;;  %v712_v8 = vadd.f32 %v711_v4, %v710_v60  ;;  %v736_v9 = vadd.f32 %v735_v5, %v734_v61 }
  0xf2   :  { %v713_v10 = vpop.f32.mrf.mxu0  ;;  %v737_v11 = vpop.f32.mrf.mxu1  ;;  %v458_v12 = vadd.f32 %v936_v43, %v435_v2  ;;  %v466_v13 = vadd.f32 %v936_v43, %v443_v3 }
  0xf3   :  { %642 = vst [vmem:[%s996_s4] sm:$0xff] %v641_v6   ;;  %681 = vst [vmem:[%s996_s4 + $0x20] sm:$0xff] %v661_v7   ;;  %v436_v14 = vmul.f32 %v712_v8, %v929_v35  ;;  %v444_v15 = vmul.f32 %v736_v9, %v929_v35 }
  0xf4   :  { %v714_v16 = vpop.f32.mrf.mxu0  ;;  %v738_v17 = vpop.f32.mrf.mxu1  ;;  %v474_v26 = vmax.f32 %v458_v12, 0.0  ;;  %v482_v27 = vmax.f32 %v466_v13, 0.0 }
  0xf5   :  { %v715_v18 = vadd.f32 %v714_v16, %v713_v10  ;;  %v739_v19 = vadd.f32 %v738_v17, %v737_v11  ;;  %v459_v20 = vadd.f32 %v936_v43, %v436_v14  ;;  %v467_v21 = vadd.f32 %v936_v43, %v444_v15 }
  0xf6   :  { %v716_v22 = vpop.f32.mrf.mxu0  ;;  %v740_v23 = vpop.f32.mrf.mxu1 }
  0xf7   :  { %v437_v24 = vmul.f32 %v715_v18, %v929_v35  ;;  %v445_v25 = vmul.f32 %v739_v19, %v929_v35  ;;  %v475_v28 = vmax.f32 %v459_v20, 0.0  ;;  %v483_v29 = vmax.f32 %v467_v21, 0.0 }
  0xf8   :  { %v717_v30 = vpop.f32.mrf.mxu0  ;;  %v741_v31 = vpop.f32.mrf.mxu1 }
  0xf9   :  { %v718_v32 = vadd.f32 %v717_v30, %v716_v22  ;;  %v742_v33 = vadd.f32 %v741_v31, %v740_v23  ;;  %v646_v34 = vpack.c.bf16 %v475_v28, %v474_v26  ;;  %v666_v36 = vpack.c.bf16 %v483_v29, %v482_v27 }
  0xfa   :  { %v719_v37 = vpop.f32.mrf.mxu0  ;;  %v743_v38 = vpop.f32.mrf.mxu1  ;;  %v460_v39 = vadd.f32 %v936_v43, %v437_v24  ;;  %v468_v40 = vadd.f32 %v936_v43, %v445_v25 }
  0xfb   :  { %v438_v41 = vmul.f32 %v718_v32, %v929_v35  ;;  %v446_v42 = vmul.f32 %v742_v33, %v929_v35  ;;  %678 = vst [vmem:[%s996_s4 + $0x8] sm:$0xff] %v646_v34   ;;  %682 = vst [vmem:[%s996_s4 + $0x28] sm:$0xff] %v666_v36  }
  0xfc   :  { %v720_v44 = vpop.f32.mrf.mxu0  ;;  %v744_v45 = vpop.f32.mrf.mxu1  ;;  %v476_v52 = vmax.f32 %v460_v39, 0.0  ;;  %v484_v53 = vmax.f32 %v468_v40, 0.0 }
  0xfd   :  { %v461_v46 = vadd.f32 %v936_v43, %v438_v41  ;;  %v469_v47 = vadd.f32 %v936_v43, %v446_v42  ;;  %v721_v48 = vadd.f32 %v720_v44, %v719_v37  ;;  %v745_v49 = vadd.f32 %v744_v45, %v743_v38 }
  0xfe   :  { %v722_v50 = vpop.f32.mrf.mxu0  ;;  %v746_v51 = vpop.f32.mrf.mxu1 }
  0xff   :  { %v477_v54 = vmax.f32 %v461_v46, 0.0  ;;  %v485_v55 = vmax.f32 %v469_v47, 0.0  ;;  %v439_v56 = vmul.f32 %v721_v48, %v929_v35  ;;  %v447_v57 = vmul.f32 %v745_v49, %v929_v35 }
 0x100   :  { %v723_v58 = vpop.f32.mrf.mxu0  ;;  %v747_v59 = vpop.f32.mrf.mxu1 }
 0x101   :  { %v651_v60 = vpack.c.bf16 %v477_v54, %v476_v52  ;;  %v671_v61 = vpack.c.bf16 %v485_v55, %v484_v53  ;;  %v724_v62 = vadd.f32 %v723_v58, %v722_v50  ;;  %v748_v63 = vadd.f32 %v747_v59, %v746_v51 }
 0x102   :  { %v462_v0 = vadd.f32 %v936_v43, %v439_v56  ;;  %v470_v1 = vadd.f32 %v936_v43, %v447_v57 }
 0x103   :  { %679 = vst [vmem:[%s996_s4 + $0x10] sm:$0xff] %v651_v60   ;;  %683 = vst [vmem:[%s996_s4 + $0x30] sm:$0xff] %v671_v61   ;;  %v440_v2 = vmul.f32 %v724_v62, %v929_v35  ;;  %v448_v3 = vmul.f32 %v748_v63, %v929_v35 }
 0x104   :  { %v478_v6 = vmax.f32 %v462_v0, 0.0  ;;  %v486_v7 = vmax.f32 %v470_v1, 0.0 }
 0x105   :  { %v463_v4 = vadd.f32 %v936_v43, %v440_v2  ;;  %v471_v5 = vadd.f32 %v936_v43, %v448_v3 }
 0x107   :  { %v479_v8 = vmax.f32 %v463_v4, 0.0  ;;  %v487_v9 = vmax.f32 %v471_v5, 0.0 }
 0x109   :  { %v656_v10 = vpack.c.bf16 %v479_v8, %v478_v6  ;;  %v676_v11 = vpack.c.bf16 %v487_v9, %v486_v7 }
 0x10b   :  { %680 = vst [vmem:[%s996_s4 + $0x18] sm:$0xff] %v656_v10   ;;  %684 = vst [vmem:[%s996_s4 + $0x38] sm:$0xff] %v676_v11  }

// kernel: _lambda_.61
= control target key start
LH: loop header
LB: loop body
LE: loop exit
PB: predicated region body
PF: predicated region fallthrough
CT: control target
= control target key end

     0   :  { %v882_v1 = vmov 0   ;;  %v463_v25 = vlaneseq  ;;  %s1283_s1 = inlined_call_operand.vmem [shape: bf16[128,256], index: 1, kind: input, shape index: {}]   ;;  %s1284_s0 = inlined_call_operand.vmem [shape: bf16[128,128], index: 0, kind: input, shape index: {}]   ;;  %s1285_s2 = inlined_call_operand.vmem [shape: f32[1,256], index: 2, kind: input, shape index: {}]   ;;  %s1286_s3 = inlined_call_operand.vmem [shape: f32[1,256], index: 3, kind: input, shape index: {}]   ;;  %s1287_s4 = inlined_call_operand.vmem [shape: bf16[128,256], index: 4, kind: input, shape index: {}]   ;;  %s1288_s5 = inlined_call_operand.vmem [shape: bf16[128,256], index: 5, kind: output, shape index: {}]  }
   0x1   :  { %v850_v0 = vld [vmem:[%s1283_s1 + $0x74] ss:$8 sps:$4 sm:$0xff]   ;;  %281 = vmatprep.mubr.bf16.mxu0 %v882_v1  ;;  %321 = vmatprep.mubr.bf16.mxu1 %v882_v1  ;;  %v852_v2 = vld [vmem:[%s1283_s1 + $0x70] ss:$8 sps:$4 sm:$0xff]   ;;  %v853_v3 = vld [vmem:[%s1283_s1 + $0x64] ss:$8 sps:$4 sm:$0xff]  }
   0x2   :  { %249 = vmatprep.subr.bf16.mxu0 %v850_v0  ;;  %833 = vmatprep.subr.bf16.mxu1 %v850_v0  ;;  %v855_v4 = vld [vmem:[%s1283_s1 + $0x60] ss:$8 sps:$4 sm:$0xff]   ;;  %v856_v5 = vld [vmem:[%s1283_s1 + $0x54] ss:$8 sps:$4 sm:$0xff]   ;;  %v858_v6 = vld [vmem:[%s1283_s1 + $0x50] ss:$8 sps:$4 sm:$0xff]  }
   0x3   :  { %250 = vmatpush1.bf16.msra.mxu0 %v852_v2  ;;  %841 = vmatpush1.bf16.msra.mxu1 %v852_v2  ;;  %v859_v7 = vld [vmem:[%s1283_s1 + $0x44] ss:$8 sps:$4 sm:$0xff]   ;;  %v861_v8 = vld [vmem:[%s1283_s1 + $0x40] ss:$8 sps:$4 sm:$0xff]   ;;  %v862_v9 = vld [vmem:[%s1283_s1 + $0x34] ss:$8 sps:$4 sm:$0xff]  }
   0x4   :  { %251 = vmatprep.subr.bf16.mxu0 %v853_v3  ;;  %834 = vmatprep.subr.bf16.mxu1 %v853_v3  ;;  %v864_v10 = vld [vmem:[%s1283_s1 + $0x30] ss:$8 sps:$4 sm:$0xff]   ;;  %v865_v11 = vld [vmem:[%s1283_s1 + $0x24] ss:$8 sps:$4 sm:$0xff]   ;;  %v867_v12 = vld [vmem:[%s1283_s1 + $0x20] ss:$8 sps:$4 sm:$0xff]  }
   0x5   :  { %v868_v13 = vld [vmem:[%s1283_s1 + $0x14] ss:$8 sps:$4 sm:$0xff]   ;;  %v870_v14 = vld [vmem:[%s1283_s1 + $0x10] ss:$8 sps:$4 sm:$0xff]   ;;  %v871_v15 = vld [vmem:[%s1283_s1 + $0x4] ss:$8 sps:$4 sm:$0xff]  }
   0x6   :  { %v873_v16 = vld [vmem:[%s1283_s1] ss:$8 sps:$4 sm:$0xff]   ;;  %v878_v21 = vld [vmem:[%s1284_s0 + $0x10] sm:$0xff]   ;;  %v880_v23 = vld [vmem:[%s1284_s0 + $0x18] sm:$0xff]   ;;  %v464_v26 = vshrl.u32 %v463_v25, 7 }
   0x7   :  { %252 = vmatpush1.bf16.msra.mxu0 %v855_v4  ;;  %842 = vmatpush1.bf16.msra.mxu1 %v855_v4  ;;  %v874_v17 = vld [vmem:[%s1284_s0] sm:$0xff]   ;;  %v876_v19 = vld [vmem:[%s1284_s0 + $0x8] sm:$0xff]   ;;  %v879_v22 = vld [vmem:[%s1284_s0 + $0x30] sm:$0xff]  }
   0x8   :  { %253 = vmatprep.subr.bf16.mxu0 %v856_v5  ;;  %835 = vmatprep.subr.bf16.mxu1 %v856_v5  ;;  %v875_v18 = vld [vmem:[%s1284_s0 + $0x20] sm:$0xff]   ;;  %v877_v20 = vld [vmem:[%s1284_s0 + $0x28] sm:$0xff]   ;;  %v881_v24 = vld [vmem:[%s1284_s0 + $0x38] sm:$0xff]   ;;  %v465_v27 = vsub.s32 0, %v464_v26  ;;  %v469_v30 = vsub.s32 1, %v464_v26 }
   0x9   :  { %v461_v28 = vld [vmem:[%s1285_s2] sm:$0x3]  ;;  %v1012_v33 = vld [vmem:[%s1287_s4 + $0x8] sm:$0xff]  ;;  %v1026_v37 = vld [vmem:[%s1287_s4 + $0x10] sm:$0xff] }
   0xa   :  { %v505_v29 = vld [vmem:[%s1286_s3] sm:$0x3]  ;;  %v1017_v34 = vld [vmem:[%s1287_s4 + $0x48] sm:$0xff]  ;;  %v1019_v35 = vrot.slane %v461_v28, %v465_v27  ;;  %v1031_v38 = vld [vmem:[%s1287_s4 + $0x50] sm:$0xff]  ;;  %v1035_v41 = vrot.slane %v461_v28, %v469_v30  ;;  %v567_v47 = vunpack.c.l.bf16 %v1012_v33  ;;  %v568_v51 = vunpack.c.h.bf16 %v1012_v33 }
   0xb   :  { %254 = vmatpush1.bf16.msra.mxu0 %v858_v6  ;;  %843 = vmatpush1.bf16.msra.mxu1 %v858_v6  ;;  %v1002_v31 = vld [vmem:[%s1287_s4] sm:$0xff]  ;;  %v1021_v36 = vrot.slane %v505_v29, %v465_v27  ;;  %v1037_v42 = vrot.slane %v505_v29, %v469_v30  ;;  %v1042_v43 = vld [vmem:[%s1287_s4 + $0x18] sm:$0xff]  ;;  %v583_v48 = vunpack.c.l.bf16 %v1017_v34  ;;  %v584_v52 = vunpack.c.h.bf16 %v1017_v34  ;;  %v1074_v59 = vld [vmem:[%s1287_s4 + $0x28] sm:$0xff] }
   0xc   :  { %255 = vmatprep.subr.bf16.mxu0 %v859_v7  ;;  %836 = vmatprep.subr.bf16.mxu1 %v859_v7  ;;  %v1007_v32 = vld [vmem:[%s1287_s4 + $0x40] sm:$0xff]  ;;  %v565_v39 = vunpack.c.l.bf16 %v1002_v31  ;;  %v1047_v44 = vld [vmem:[%s1287_s4 + $0x58] sm:$0xff]  ;;  %v566_v45 = vunpack.c.h.bf16 %v1002_v31  ;;  %v569_v53 = vunpack.c.l.bf16 %v1026_v37  ;;  %v585_v54 = vunpack.c.l.bf16 %v1031_v38  ;;  %v1079_v60 = vld [vmem:[%s1287_s4 + $0x68] sm:$0xff] }
   0xd   :  { %v581_v40 = vunpack.c.l.bf16 %v1007_v32  ;;  %v582_v46 = vunpack.c.h.bf16 %v1007_v32  ;;  %v1056_v49 = vld [vmem:[%s1287_s4 + $0x20] sm:$0xff]  ;;  %v570_v55 = vunpack.c.h.bf16 %v1026_v37  ;;  %v586_v56 = vunpack.c.h.bf16 %v1031_v38  ;;  %v1092_v7 = vld [vmem:[%s1287_s4 + $0x30] sm:$0xff] }
   0xe   :  { %v1061_v50 = vld [vmem:[%s1287_s4 + $0x60] sm:$0xff]  ;;  %v571_v57 = vunpack.c.l.bf16 %v1042_v43  ;;  %v587_v58 = vunpack.c.l.bf16 %v1047_v44  ;;  %v572_v63 = vunpack.c.h.bf16 %v1042_v43  ;;  %v588_v0 = vunpack.c.h.bf16 %v1047_v44 }
   0xf   :  { %256 = vmatpush1.bf16.msra.mxu0 %v861_v8  ;;  %844 = vmatpush1.bf16.msra.mxu1 %v861_v8  ;;  %v589_v2 = vunpack.c.l.bf16 %v1061_v50  ;;  %v574_v5 = vunpack.c.h.bf16 %v1056_v49  ;;  %v590_v6 = vunpack.c.h.bf16 %v1061_v50  ;;  %v1097_v8 = vld [vmem:[%s1287_s4 + $0x70] sm:$0xff] }
  0x10   :  { %257 = vmatprep.subr.bf16.mxu0 %v862_v9  ;;  %837 = vmatprep.subr.bf16.mxu1 %v862_v9 }
  0x13   :  { %258 = vmatpush1.bf16.msra.mxu0 %v864_v10  ;;  %845 = vmatpush1.bf16.msra.mxu1 %v864_v10 }
  0x14   :  { %259 = vmatprep.subr.bf16.mxu0 %v865_v11  ;;  %838 = vmatprep.subr.bf16.mxu1 %v865_v11  ;;  %v575_v11 = vunpack.c.l.bf16 %v1074_v59 }
  0x17   :  { %260 = vmatpush1.bf16.msra.mxu0 %v867_v12  ;;  %846 = vmatpush1.bf16.msra.mxu1 %v867_v12  ;;  %v591_v12 = vunpack.c.l.bf16 %v1079_v60 }
  0x18   :  { %261 = vmatprep.subr.bf16.mxu0 %v868_v13  ;;  %839 = vmatprep.subr.bf16.mxu1 %v868_v13  ;;  %v576_v13 = vunpack.c.h.bf16 %v1074_v59 }
  0x1b   :  { %262 = vmatpush1.bf16.msra.mxu0 %v870_v14  ;;  %847 = vmatpush1.bf16.msra.mxu1 %v870_v14  ;;  %v592_v14 = vunpack.c.h.bf16 %v1079_v60 }
  0x1c   :  { %263 = vmatprep.subr.bf16.mxu0 %v871_v15  ;;  %840 = vmatprep.subr.bf16.mxu1 %v871_v15 }
  0x1f   :  { %264 = vmatpush1.bf16.msra.mxu0 %v873_v16  ;;  %848 = vmatpush1.bf16.msra.mxu1 %v873_v16 }
  0x22   :  { %282 = vmatmul.mubr.bf16.vlgmr.msra.gmra.mxu0 %v874_v17  ;;  %322 = vmatmul.mubr.bf16.vlgmr.msra.gmra.mxu1 %v875_v18 }
  0x23   :  { %291 = vmatprep.mubr.bf16.mxu0 %v882_v1  ;;  %331 = vmatprep.mubr.bf16.mxu1 %v882_v1 }
  0x2a   :  { %292 = vmatmul.mubr.bf16.gmra.mxu0 %v876_v19  ;;  %332 = vmatmul.mubr.bf16.gmra.mxu1 %v877_v20  ;;  %v1110_v19 = vld [vmem:[%s1287_s4 + $0x38] sm:$0xff] }
  0x2b   :  { %301 = vmatprep.mubr.bf16.mxu0 %v882_v1  ;;  %341 = vmatprep.mubr.bf16.mxu1 %v882_v1  ;;  %v1115_v20 = vld [vmem:[%s1287_s4 + $0x78] sm:$0xff] }
  0x32   :  { %302 = vmatmul.mubr.bf16.gmra.mxu0 %v878_v21  ;;  %342 = vmatmul.mubr.bf16.gmra.mxu1 %v879_v22 }
  0x33   :  { %311 = vmatprep.mubr.bf16.mxu0 %v882_v1  ;;  %351 = vmatprep.mubr.bf16.mxu1 %v882_v1  ;;  %v573_v1 = vunpack.c.l.bf16 %v1056_v49 }
  0x3a   :  { %312 = vmatmul.mubr.bf16.gmra.mxu0 %v880_v23  ;;  %352 = vmatmul.mubr.bf16.gmra.mxu1 %v881_v24  ;;  %v577_v23 = vunpack.c.l.bf16 %v1092_v7  ;;  %v593_v24 = vunpack.c.l.bf16 %v1097_v8 }
  0xe2   :  { %v283_v61 = vpop.f32.mrf.mxu0  ;;  %v323_v62 = vpop.f32.mrf.mxu1 }
  0xe3   :  { %v473_v3 = vmul.f32 %v1019_v35, %v283_v61  ;;  %v489_v4 = vmul.f32 %v1019_v35, %v323_v62 }
  0xe4   :  { %v285_v9 = vpop.f32.mrf.mxu0  ;;  %v325_v10 = vpop.f32.mrf.mxu1 }
  0xe5   :  { %v517_v15 = vadd.f32 %v1021_v36, %v473_v3  ;;  %v533_v16 = vadd.f32 %v1021_v36, %v489_v4  ;;  %v474_v17 = vmul.f32 %v1035_v41, %v285_v9  ;;  %v490_v18 = vmul.f32 %v1035_v41, %v325_v10 }
  0xe6   :  { %v287_v21 = vpop.f32.mrf.mxu0  ;;  %v327_v22 = vpop.f32.mrf.mxu1 }
  0xe7   :  { %v597_v27 = vadd.f32 %v565_v39, %v517_v15  ;;  %v613_v28 = vadd.f32 %v581_v40, %v533_v16  ;;  %v518_v29 = vadd.f32 %v1037_v42, %v474_v17  ;;  %v534_v30 = vadd.f32 %v1037_v42, %v490_v18 }
  0xe8   :  { %v475_v31 = vmul.f32 %v1019_v35, %v287_v21  ;;  %v491_v32 = vmul.f32 %v1019_v35, %v327_v22  ;;  %v289_v61 = vpop.f32.mrf.mxu0  ;;  %v329_v62 = vpop.f32.mrf.mxu1 }
  0xe9   :  { %v629_v9 = vmax.f32 %v597_v27, 0.0  ;;  %v645_v10 = vmax.f32 %v613_v28, 0.0  ;;  %v598_v25 = vadd.f32 %v566_v45, %v518_v29  ;;  %v614_v26 = vadd.f32 %v582_v46, %v534_v30 }
  0xea   :  { %v519_v39 = vadd.f32 %v1021_v36, %v475_v31  ;;  %v535_v40 = vadd.f32 %v1021_v36, %v491_v32  ;;  %v476_v15 = vmul.f32 %v1035_v41, %v289_v61  ;;  %v492_v16 = vmul.f32 %v1035_v41, %v329_v62  ;;  %v293_v17 = vpop.f32.mrf.mxu0  ;;  %v333_v18 = vpop.f32.mrf.mxu1 }
  0xeb   :  { %v630_v21 = vmax.f32 %v598_v25, 0.0  ;;  %v646_v22 = vmax.f32 %v614_v26, 0.0  ;;  %v477_v3 = vmul.f32 %v1019_v35, %v293_v17  ;;  %v493_v4 = vmul.f32 %v1019_v35, %v333_v18 }
  0xec   :  { %v599_v45 = vadd.f32 %v567_v47, %v519_v39  ;;  %v615_v46 = vadd.f32 %v583_v48, %v535_v40  ;;  %v520_v27 = vadd.f32 %v1037_v42, %v476_v15  ;;  %v536_v28 = vadd.f32 %v1037_v42, %v492_v16  ;;  %v295_v29 = vpop.f32.mrf.mxu0  ;;  %v335_v30 = vpop.f32.mrf.mxu1 }
  0xed   :  { %v817_v31 = vpack.c.bf16 %v630_v21, %v629_v9  ;;  %v825_v32 = vpack.c.bf16 %v646_v22, %v645_v10  ;;  %v521_v25 = vadd.f32 %v1021_v36, %v477_v3  ;;  %v537_v26 = vadd.f32 %v1021_v36, %v493_v4 }
  0xee   :  { %v631_v61 = vmax.f32 %v599_v45, 0.0  ;;  %v647_v62 = vmax.f32 %v615_v46, 0.0  ;;  %v600_v47 = vadd.f32 %v568_v51, %v520_v27  ;;  %v616_v48 = vadd.f32 %v584_v52, %v536_v28  ;;  %v297_v39 = vpop.f32.mrf.mxu0  ;;  %v337_v40 = vpop.f32.mrf.mxu1 }
  0xef   :  { %757 = vst [vmem:[%s1288_s5] sm:$0xff] %v817_v31  ;;  %765 = vst [vmem:[%s1288_s5 + $0x40] sm:$0xff] %v825_v32  ;;  %v601_v3 = vadd.f32 %v569_v53, %v521_v25  ;;  %v617_v33 = vadd.f32 %v585_v54, %v537_v26  ;;  %v478_v51 = vmul.f32 %v1035_v41, %v295_v29 }
  0xf0   :  { %v494_v34 = vmul.f32 %v1035_v41, %v335_v30  ;;  %v632_v52 = vmax.f32 %v600_v47, 0.0  ;;  %v648_v4 = vmax.f32 %v616_v48, 0.0  ;;  %v479_v9 = vmul.f32 %v1019_v35, %v297_v39  ;;  %v299_v15 = vpop.f32.mrf.mxu0  ;;  %v339_v16 = vpop.f32.mrf.mxu1 }
  0xf1   :  { %v495_v10 = vmul.f32 %v1019_v35, %v337_v40  ;;  %v633_v17 = vmax.f32 %v601_v3, 0.0  ;;  %v649_v18 = vmax.f32 %v617_v33, 0.0  ;;  %v522_v21 = vadd.f32 %v1037_v42, %v478_v51 }
  0xf2   :  { %v538_v53 = vadd.f32 %v1037_v42, %v494_v34  ;;  %v818_v22 = vpack.c.bf16 %v632_v52, %v631_v61  ;;  %v826_v54 = vpack.c.bf16 %v648_v4, %v647_v62  ;;  %v523_v45 = vadd.f32 %v1021_v36, %v479_v9  ;;  %v303_v27 = vpop.f32.mrf.mxu0  ;;  %v343_v28 = vpop.f32.mrf.mxu1 }
  0xf3   :  { %v539_v46 = vadd.f32 %v1021_v36, %v495_v10  ;;  %v602_v29 = vadd.f32 %v570_v55, %v522_v21  ;;  %v480_v31 = vmul.f32 %v1035_v41, %v299_v15  ;;  %v496_v32 = vmul.f32 %v1035_v41, %v339_v16 }
  0xf4   :  { %v618_v30 = vadd.f32 %v586_v56, %v538_v53  ;;  %758 = vst [vmem:[%s1288_s5 + $0x8] sm:$0xff] %v818_v22  ;;  %766 = vst [vmem:[%s1288_s5 + $0x48] sm:$0xff] %v826_v54  ;;  %v603_v25 = vadd.f32 %v571_v57, %v523_v45  ;;  %v481_v38 = vmul.f32 %v1019_v35, %v303_v27  ;;  %v305_v56 = vpop.f32.mrf.mxu0  ;;  %v345_v26 = vpop.f32.mrf.mxu1 }
  0xf5   :  { %v619_v37 = vadd.f32 %v587_v58, %v539_v46  ;;  %v497_v55 = vmul.f32 %v1019_v35, %v343_v28  ;;  %v634_v61 = vmax.f32 %v602_v29, 0.0  ;;  %v524_v47 = vadd.f32 %v1037_v42, %v480_v31 }
  0xf6   :  { %v650_v62 = vmax.f32 %v618_v30, 0.0  ;;  %v540_v48 = vadd.f32 %v1037_v42, %v496_v32  ;;  %v635_v39 = vmax.f32 %v603_v25, 0.0  ;;  %v525_v3 = vadd.f32 %v1021_v36, %v481_v38  ;;  %v307_v33 = vpop.f32.mrf.mxu0  ;;  %v347_v58 = vpop.f32.mrf.mxu1 }
  0xf7   :  { %v651_v40 = vmax.f32 %v619_v37, 0.0  ;;  %v541_v57 = vadd.f32 %v1021_v36, %v497_v55  ;;  %v819_v51 = vpack.c.bf16 %v634_v61, %v633_v17  ;;  %v604_v52 = vadd.f32 %v572_v63, %v524_v47 }
  0xf8   :  { %v827_v34 = vpack.c.bf16 %v650_v62, %v649_v18  ;;  %v620_v4 = vadd.f32 %v588_v0, %v540_v48  ;;  %v605_v9 = vadd.f32 %v573_v1, %v525_v3  ;;  %v482_v15 = vmul.f32 %v1035_v41, %v305_v56  ;;  %v309_v21 = vpop.f32.mrf.mxu0  ;;  %v349_v53 = vpop.f32.mrf.mxu1 }
  0xf9   :  { %v621_v10 = vadd.f32 %v589_v2, %v541_v57  ;;  %v498_v16 = vmul.f32 %v1035_v41, %v345_v26  ;;  %759 = vst [vmem:[%s1288_s5 + $0x10] sm:$0xff] %v819_v51  ;;  %v636_v43 = vmax.f32 %v604_v52, 0.0  ;;  %v483_v63 = vmul.f32 %v1019_v35, %v307_v33 }
  0xfa   :  { %767 = vst [vmem:[%s1288_s5 + $0x50] sm:$0xff] %v827_v34  ;;  %v652_v44 = vmax.f32 %v620_v4, 0.0  ;;  %v499_v0 = vmul.f32 %v1019_v35, %v347_v58  ;;  %v637_v1 = vmax.f32 %v605_v9, 0.0  ;;  %v526_v17 = vadd.f32 %v1037_v42, %v482_v15  ;;  %v313_v22 = vpop.f32.mrf.mxu0  ;;  %v353_v54 = vpop.f32.mrf.mxu1 }
  0xfb   :  { %v653_v2 = vmax.f32 %v621_v10, 0.0  ;;  %v542_v18 = vadd.f32 %v1037_v42, %v498_v16  ;;  %v820_v45 = vpack.c.bf16 %v636_v43, %v635_v39  ;;  %v527_v27 = vadd.f32 %v1021_v36, %v483_v63 }
  0xfc   :  { %v828_v46 = vpack.c.bf16 %v652_v44, %v651_v40  ;;  %v543_v28 = vadd.f32 %v1021_v36, %v499_v0  ;;  %v606_v29 = vadd.f32 %v574_v5, %v526_v17  ;;  %v484_v31 = vmul.f32 %v1035_v41, %v309_v21  ;;  %v315_v25 = vpop.f32.mrf.mxu0  ;;  %v355_v37 = vpop.f32.mrf.mxu1 }
  0xfd   :  { %v622_v30 = vadd.f32 %v590_v6, %v542_v18  ;;  %v500_v32 = vmul.f32 %v1035_v41, %v349_v53  ;;  %760 = vst [vmem:[%s1288_s5 + $0x18] sm:$0xff] %v820_v45  ;;  %v607_v49 = vadd.f32 %v575_v11, %v527_v27  ;;  %v485_v5 = vmul.f32 %v1019_v35, %v313_v22 }
  0xfe   :  { %768 = vst [vmem:[%s1288_s5 + $0x58] sm:$0xff] %v828_v46  ;;  %v623_v50 = vadd.f32 %v591_v12, %v543_v28  ;;  %v501_v6 = vmul.f32 %v1019_v35, %v353_v54  ;;  %v638_v38 = vmax.f32 %v606_v29, 0.0  ;;  %v528_v56 = vadd.f32 %v1037_v42, %v484_v31  ;;  %v317_v61 = vpop.f32.mrf.mxu0  ;;  %v357_v62 = vpop.f32.mrf.mxu1 }
  0xff   :  { %v654_v55 = vmax.f32 %v622_v30, 0.0  ;;  %v544_v26 = vadd.f32 %v1037_v42, %v500_v32  ;;  %v639_v47 = vmax.f32 %v607_v49, 0.0  ;;  %v529_v39 = vadd.f32 %v1021_v36, %v485_v5 }
 0x100   :  { %v655_v48 = vmax.f32 %v623_v50, 0.0  ;;  %v545_v11 = vadd.f32 %v1021_v36, %v501_v6  ;;  %v821_v40 = vpack.c.bf16 %v638_v38, %v637_v1  ;;  %v608_v3 = vadd.f32 %v576_v13, %v528_v56 }
 0x101   :  { %v829_v12 = vpack.c.bf16 %v654_v55, %v653_v2  ;;  %v624_v57 = vadd.f32 %v592_v14, %v544_v26  ;;  %v609_v33 = vadd.f32 %v577_v23, %v529_v39  ;;  %v486_v51 = vmul.f32 %v1035_v41, %v315_v25  ;;  %v319_v23 = vpop.f32.mrf.mxu0 }
 0x102   :  { %v625_v58 = vadd.f32 %v593_v24, %v545_v11  ;;  %v502_v34 = vmul.f32 %v1035_v41, %v355_v37  ;;  %761 = vst [vmem:[%s1288_s5 + $0x20] sm:$0xff] %v821_v40  ;;  %v640_v59 = vmax.f32 %v608_v3, 0.0  ;;  %v487_v13 = vmul.f32 %v1019_v35, %v317_v61  ;;  %v359_v24 = vpop.f32.mrf.mxu1 }
 0x103   :  { %769 = vst [vmem:[%s1288_s5 + $0x60] sm:$0xff] %v829_v12  ;;  %v656_v60 = vmax.f32 %v624_v57, 0.0  ;;  %v503_v14 = vmul.f32 %v1019_v35, %v357_v62  ;;  %v530_v52 = vadd.f32 %v1037_v42, %v486_v51  ;;  %v580_v9 = vunpack.c.h.bf16 %v1110_v19 }
 0x104   :  { %v546_v4 = vadd.f32 %v1037_v42, %v502_v34  ;;  %v596_v10 = vunpack.c.h.bf16 %v1115_v20  ;;  %v822_v15 = vpack.c.bf16 %v640_v59, %v639_v47  ;;  %v531_v21 = vadd.f32 %v1021_v36, %v487_v13 }
 0x105   :  { %v830_v16 = vpack.c.bf16 %v656_v60, %v655_v48  ;;  %v547_v53 = vadd.f32 %v1021_v36, %v503_v14  ;;  %v1289_v43 = vunpack.c.h.bf16 %v1092_v7  ;;  %v1290_v35 = vunpack.c.h.bf16 %v1097_v8 }
 0x106   :  { %v488_v0 = vmul.f32 %v1035_v41, %v319_v23  ;;  %v504_v1 = vmul.f32 %v1035_v41, %v359_v24  ;;  %762 = vst [vmem:[%s1288_s5 + $0x28] sm:$0xff] %v822_v15  ;;  %v641_v2 = vmax.f32 %v609_v33, 0.0  ;;  %v657_v36 = vmax.f32 %v625_v58, 0.0 }
 0x107   :  { %v610_v44 = vadd.f32 %v1289_v43, %v530_v52  ;;  %v626_v63 = vadd.f32 %v1290_v35, %v546_v4  ;;  %770 = vst [vmem:[%s1288_s5 + $0x68] sm:$0xff] %v830_v16  ;;  %v1291_v7 = vunpack.c.l.bf16 %v1110_v19  ;;  %v1292_v8 = vunpack.c.l.bf16 %v1115_v20 }
 0x108   :  { %v532_v41 = vadd.f32 %v1037_v42, %v488_v0  ;;  %v548_v45 = vadd.f32 %v1037_v42, %v504_v1 }
 0x109   :  { %v611_v17 = vadd.f32 %v1291_v7, %v531_v21  ;;  %v627_v18 = vadd.f32 %v1292_v8, %v547_v53  ;;  %v642_v22 = vmax.f32 %v610_v44, 0.0  ;;  %v658_v54 = vmax.f32 %v626_v63, 0.0 }
 0x10a   :  { %v612_v28 = vadd.f32 %v580_v9, %v532_v41  ;;  %v628_v29 = vadd.f32 %v596_v10, %v548_v45 }
 0x10b   :  { %v823_v46 = vpack.c.bf16 %v642_v22, %v641_v2  ;;  %v831_v27 = vpack.c.bf16 %v658_v54, %v657_v36  ;;  %v643_v19 = vmax.f32 %v611_v17, 0.0  ;;  %v659_v20 = vmax.f32 %v627_v18, 0.0 }
 0x10c   :  { %v644_v30 = vmax.f32 %v612_v28, 0.0  ;;  %v660_v31 = vmax.f32 %v628_v29, 0.0 }
 0x10d   :  { %763 = vst [vmem:[%s1288_s5 + $0x30] sm:$0xff] %v823_v46  ;;  %771 = vst [vmem:[%s1288_s5 + $0x70] sm:$0xff] %v831_v27 }
 0x10e   :  { %v824_v32 = vpack.c.bf16 %v644_v30, %v643_v19  ;;  %v832_v25 = vpack.c.bf16 %v660_v31, %v659_v20 }
 0x110   :  { %764 = vst [vmem:[%s1288_s5 + $0x38] sm:$0xff] %v824_v32  ;;  %772 = vst [vmem:[%s1288_s5 + $0x78] sm:$0xff] %v832_v25 }

// kernel: _lambda_.60
= control target key start
LH: loop header
LB: loop body
LE: loop exit
PB: predicated region body
PF: predicated region fallthrough
CT: control target
= control target key end

     0   :  { %v767_v1 = vmov 0   ;;  %v460_v25 = vlaneseq  ;;  %s999_s1 = inlined_call_operand.vmem [shape: bf16[128,256], index: 1, kind: input, shape index: {}]   ;;  %s1000_s0 = inlined_call_operand.vmem [shape: bf16[128,128], index: 0, kind: input, shape index: {}]   ;;  %s1001_s2 = inlined_call_operand.vmem [shape: f32[1,256], index: 2, kind: input, shape index: {}]   ;;  %s1002_s3 = inlined_call_operand.vmem [shape: f32[1,256], index: 3, kind: input, shape index: {}]   ;;  %s1003_s4 = inlined_call_operand.vmem [shape: bf16[128,256], index: 4, kind: output, shape index: {}]  }
   0x1   :  { %v735_v0 = vld [vmem:[%s999_s1 + $0x74] ss:$8 sps:$4 sm:$0xff]   ;;  %278 = vmatprep.mubr.bf16.mxu0 %v767_v1  ;;  %318 = vmatprep.mubr.bf16.mxu1 %v767_v1  ;;  %v737_v2 = vld [vmem:[%s999_s1 + $0x70] ss:$8 sps:$4 sm:$0xff]   ;;  %v738_v3 = vld [vmem:[%s999_s1 + $0x64] ss:$8 sps:$4 sm:$0xff]  }
   0x2   :  { %246 = vmatprep.subr.bf16.mxu0 %v735_v0  ;;  %718 = vmatprep.subr.bf16.mxu1 %v735_v0  ;;  %v740_v4 = vld [vmem:[%s999_s1 + $0x60] ss:$8 sps:$4 sm:$0xff]   ;;  %v741_v5 = vld [vmem:[%s999_s1 + $0x54] ss:$8 sps:$4 sm:$0xff]   ;;  %v743_v6 = vld [vmem:[%s999_s1 + $0x50] ss:$8 sps:$4 sm:$0xff]  }
   0x3   :  { %247 = vmatpush1.bf16.msra.mxu0 %v737_v2  ;;  %726 = vmatpush1.bf16.msra.mxu1 %v737_v2  ;;  %v744_v7 = vld [vmem:[%s999_s1 + $0x44] ss:$8 sps:$4 sm:$0xff]   ;;  %v746_v8 = vld [vmem:[%s999_s1 + $0x40] ss:$8 sps:$4 sm:$0xff]   ;;  %v747_v9 = vld [vmem:[%s999_s1 + $0x34] ss:$8 sps:$4 sm:$0xff]  }
   0x4   :  { %248 = vmatprep.subr.bf16.mxu0 %v738_v3  ;;  %719 = vmatprep.subr.bf16.mxu1 %v738_v3  ;;  %v749_v10 = vld [vmem:[%s999_s1 + $0x30] ss:$8 sps:$4 sm:$0xff]   ;;  %v750_v11 = vld [vmem:[%s999_s1 + $0x24] ss:$8 sps:$4 sm:$0xff]   ;;  %v752_v12 = vld [vmem:[%s999_s1 + $0x20] ss:$8 sps:$4 sm:$0xff]  }
   0x5   :  { %v753_v13 = vld [vmem:[%s999_s1 + $0x14] ss:$8 sps:$4 sm:$0xff]   ;;  %v755_v14 = vld [vmem:[%s999_s1 + $0x10] ss:$8 sps:$4 sm:$0xff]   ;;  %v756_v15 = vld [vmem:[%s999_s1 + $0x4] ss:$8 sps:$4 sm:$0xff]  }
   0x6   :  { %v758_v16 = vld [vmem:[%s999_s1] ss:$8 sps:$4 sm:$0xff]   ;;  %v763_v21 = vld [vmem:[%s1000_s0 + $0x10] sm:$0xff]   ;;  %v765_v23 = vld [vmem:[%s1000_s0 + $0x18] sm:$0xff]   ;;  %v461_v26 = vshrl.u32 %v460_v25, 7 }
   0x7   :  { %249 = vmatpush1.bf16.msra.mxu0 %v740_v4  ;;  %727 = vmatpush1.bf16.msra.mxu1 %v740_v4  ;;  %v759_v17 = vld [vmem:[%s1000_s0] sm:$0xff]   ;;  %v761_v19 = vld [vmem:[%s1000_s0 + $0x8] sm:$0xff]   ;;  %v764_v22 = vld [vmem:[%s1000_s0 + $0x30] sm:$0xff]  }
   0x8   :  { %250 = vmatprep.subr.bf16.mxu0 %v741_v5  ;;  %720 = vmatprep.subr.bf16.mxu1 %v741_v5  ;;  %v760_v18 = vld [vmem:[%s1000_s0 + $0x20] sm:$0xff]   ;;  %v762_v20 = vld [vmem:[%s1000_s0 + $0x28] sm:$0xff]   ;;  %v766_v24 = vld [vmem:[%s1000_s0 + $0x38] sm:$0xff]   ;;  %v462_v27 = vsub.s32 0, %v461_v26  ;;  %v466_v29 = vsub.s32 1, %v461_v26 }
   0x9   :  { %v458_v28 = vld [vmem:[%s1001_s2] sm:$0x3] }
   0xa   :  { %v876_v30 = vrot.slane %v458_v28, %v462_v27  ;;  %v502_v31 = vld [vmem:[%s1002_s3] sm:$0x3]  ;;  %v881_v32 = vrot.slane %v458_v28, %v466_v29 }
   0xb   :  { %251 = vmatpush1.bf16.msra.mxu0 %v743_v6  ;;  %728 = vmatpush1.bf16.msra.mxu1 %v743_v6  ;;  %v884_v36 = vrot.slane %v502_v31, %v462_v27  ;;  %v887_v38 = vrot.slane %v502_v31, %v466_v29 }
   0xc   :  { %252 = vmatprep.subr.bf16.mxu0 %v744_v7  ;;  %721 = vmatprep.subr.bf16.mxu1 %v744_v7 }
   0xf   :  { %253 = vmatpush1.bf16.msra.mxu0 %v746_v8  ;;  %729 = vmatpush1.bf16.msra.mxu1 %v746_v8 }
  0x10   :  { %254 = vmatprep.subr.bf16.mxu0 %v747_v9  ;;  %722 = vmatprep.subr.bf16.mxu1 %v747_v9 }
  0x13   :  { %255 = vmatpush1.bf16.msra.mxu0 %v749_v10  ;;  %730 = vmatpush1.bf16.msra.mxu1 %v749_v10 }
  0x14   :  { %256 = vmatprep.subr.bf16.mxu0 %v750_v11  ;;  %723 = vmatprep.subr.bf16.mxu1 %v750_v11 }
  0x17   :  { %257 = vmatpush1.bf16.msra.mxu0 %v752_v12  ;;  %731 = vmatpush1.bf16.msra.mxu1 %v752_v12 }
  0x18   :  { %258 = vmatprep.subr.bf16.mxu0 %v753_v13  ;;  %724 = vmatprep.subr.bf16.mxu1 %v753_v13 }
  0x1b   :  { %259 = vmatpush1.bf16.msra.mxu0 %v755_v14  ;;  %732 = vmatpush1.bf16.msra.mxu1 %v755_v14 }
  0x1c   :  { %260 = vmatprep.subr.bf16.mxu0 %v756_v15  ;;  %725 = vmatprep.subr.bf16.mxu1 %v756_v15 }
  0x1f   :  { %261 = vmatpush1.bf16.msra.mxu0 %v758_v16  ;;  %733 = vmatpush1.bf16.msra.mxu1 %v758_v16 }
  0x22   :  { %279 = vmatmul.mubr.bf16.vlgmr.msra.gmra.mxu0 %v759_v17  ;;  %319 = vmatmul.mubr.bf16.vlgmr.msra.gmra.mxu1 %v760_v18 }
  0x23   :  { %288 = vmatprep.mubr.bf16.mxu0 %v767_v1  ;;  %328 = vmatprep.mubr.bf16.mxu1 %v767_v1 }
  0x2a   :  { %289 = vmatmul.mubr.bf16.gmra.mxu0 %v761_v19  ;;  %329 = vmatmul.mubr.bf16.gmra.mxu1 %v762_v20 }
  0x2b   :  { %298 = vmatprep.mubr.bf16.mxu0 %v767_v1  ;;  %338 = vmatprep.mubr.bf16.mxu1 %v767_v1 }
  0x32   :  { %299 = vmatmul.mubr.bf16.gmra.mxu0 %v763_v21  ;;  %339 = vmatmul.mubr.bf16.gmra.mxu1 %v764_v22 }
  0x33   :  { %308 = vmatprep.mubr.bf16.mxu0 %v767_v1  ;;  %348 = vmatprep.mubr.bf16.mxu1 %v767_v1 }
  0x3a   :  { %309 = vmatmul.mubr.bf16.gmra.mxu0 %v765_v23  ;;  %349 = vmatmul.mubr.bf16.gmra.mxu1 %v766_v24 }
  0xe2   :  { %v280_v33 = vpop.f32.mrf.mxu0  ;;  %v320_v34 = vpop.f32.mrf.mxu1 }
  0xe3   :  { %v470_v35 = vmul.f32 %v876_v30, %v280_v33  ;;  %v486_v37 = vmul.f32 %v876_v30, %v320_v34 }
  0xe4   :  { %v282_v39 = vpop.f32.mrf.mxu0  ;;  %v322_v40 = vpop.f32.mrf.mxu1 }
  0xe5   :  { %v471_v41 = vmul.f32 %v881_v32, %v282_v39  ;;  %v487_v42 = vmul.f32 %v881_v32, %v322_v40  ;;  %v514_v45 = vadd.f32 %v884_v36, %v470_v35  ;;  %v530_v46 = vadd.f32 %v884_v36, %v486_v37 }
  0xe6   :  { %v284_v43 = vpop.f32.mrf.mxu0  ;;  %v324_v44 = vpop.f32.mrf.mxu1 }
  0xe7   :  { %v515_v47 = vadd.f32 %v887_v38, %v471_v41  ;;  %v531_v48 = vadd.f32 %v887_v38, %v487_v42  ;;  %v472_v49 = vmul.f32 %v876_v30, %v284_v43  ;;  %v488_v50 = vmul.f32 %v876_v30, %v324_v44 }
  0xe8   :  { %v286_v51 = vpop.f32.mrf.mxu0  ;;  %v326_v52 = vpop.f32.mrf.mxu1 }
  0xe9   :  { %v702_v53 = vpack.c.bf16 %v515_v47, %v514_v45  ;;  %v710_v54 = vpack.c.bf16 %v531_v48, %v530_v46  ;;  %v473_v55 = vmul.f32 %v881_v32, %v286_v51  ;;  %v489_v56 = vmul.f32 %v881_v32, %v326_v52 }
  0xea   :  { %v290_v57 = vpop.f32.mrf.mxu0  ;;  %v330_v58 = vpop.f32.mrf.mxu1  ;;  %v516_v61 = vadd.f32 %v884_v36, %v472_v49  ;;  %v532_v62 = vadd.f32 %v884_v36, %v488_v50 }
  0xeb   :  { %642 = vst [vmem:[%s1003_s4] sm:$0xff] %v702_v53  ;;  %650 = vst [vmem:[%s1003_s4 + $0x40] sm:$0xff] %v710_v54  ;;  %v474_v59 = vmul.f32 %v876_v30, %v290_v57  ;;  %v490_v60 = vmul.f32 %v876_v30, %v330_v58  ;;  %v517_v63 = vadd.f32 %v887_v38, %v473_v55 }
  0xec   :  { %v533_v0 = vadd.f32 %v887_v38, %v489_v56  ;;  %v292_v1 = vpop.f32.mrf.mxu0  ;;  %v332_v2 = vpop.f32.mrf.mxu1 }
  0xed   :  { %v475_v3 = vmul.f32 %v881_v32, %v292_v1  ;;  %v491_v4 = vmul.f32 %v881_v32, %v332_v2  ;;  %v703_v5 = vpack.c.bf16 %v517_v63, %v516_v61  ;;  %v518_v9 = vadd.f32 %v884_v36, %v474_v59 }
  0xee   :  { %v711_v6 = vpack.c.bf16 %v533_v0, %v532_v62  ;;  %v294_v7 = vpop.f32.mrf.mxu0  ;;  %v334_v8 = vpop.f32.mrf.mxu1  ;;  %v534_v10 = vadd.f32 %v884_v36, %v490_v60 }
  0xef   :  { %v519_v11 = vadd.f32 %v887_v38, %v475_v3  ;;  %v535_v12 = vadd.f32 %v887_v38, %v491_v4  ;;  %643 = vst [vmem:[%s1003_s4 + $0x8] sm:$0xff] %v703_v5  ;;  %v476_v13 = vmul.f32 %v876_v30, %v294_v7  ;;  %v492_v14 = vmul.f32 %v876_v30, %v334_v8 }
  0xf0   :  { %651 = vst [vmem:[%s1003_s4 + $0x48] sm:$0xff] %v711_v6  ;;  %v296_v15 = vpop.f32.mrf.mxu0  ;;  %v336_v16 = vpop.f32.mrf.mxu1 }
  0xf1   :  { %v704_v17 = vpack.c.bf16 %v519_v11, %v518_v9  ;;  %v712_v18 = vpack.c.bf16 %v535_v12, %v534_v10  ;;  %v477_v19 = vmul.f32 %v881_v32, %v296_v15  ;;  %v493_v20 = vmul.f32 %v881_v32, %v336_v16 }
  0xf2   :  { %v300_v21 = vpop.f32.mrf.mxu0  ;;  %v340_v22 = vpop.f32.mrf.mxu1  ;;  %v520_v25 = vadd.f32 %v884_v36, %v476_v13  ;;  %v536_v26 = vadd.f32 %v884_v36, %v492_v14 }
  0xf3   :  { %644 = vst [vmem:[%s1003_s4 + $0x10] sm:$0xff] %v704_v17  ;;  %652 = vst [vmem:[%s1003_s4 + $0x50] sm:$0xff] %v712_v18  ;;  %v478_v23 = vmul.f32 %v876_v30, %v300_v21  ;;  %v494_v24 = vmul.f32 %v876_v30, %v340_v22  ;;  %v521_v27 = vadd.f32 %v887_v38, %v477_v19 }
  0xf4   :  { %v537_v28 = vadd.f32 %v887_v38, %v493_v20  ;;  %v302_v29 = vpop.f32.mrf.mxu0  ;;  %v342_v31 = vpop.f32.mrf.mxu1 }
  0xf5   :  { %v479_v33 = vmul.f32 %v881_v32, %v302_v29  ;;  %v495_v34 = vmul.f32 %v881_v32, %v342_v31  ;;  %v705_v35 = vpack.c.bf16 %v521_v27, %v520_v25  ;;  %v522_v41 = vadd.f32 %v884_v36, %v478_v23 }
  0xf6   :  { %v713_v37 = vpack.c.bf16 %v537_v28, %v536_v26  ;;  %v304_v39 = vpop.f32.mrf.mxu0  ;;  %v344_v40 = vpop.f32.mrf.mxu1  ;;  %v538_v42 = vadd.f32 %v884_v36, %v494_v24 }
  0xf7   :  { %v523_v43 = vadd.f32 %v887_v38, %v479_v33  ;;  %v539_v44 = vadd.f32 %v887_v38, %v495_v34  ;;  %645 = vst [vmem:[%s1003_s4 + $0x18] sm:$0xff] %v705_v35  ;;  %v480_v45 = vmul.f32 %v876_v30, %v304_v39  ;;  %v496_v46 = vmul.f32 %v876_v30, %v344_v40 }
  0xf8   :  { %653 = vst [vmem:[%s1003_s4 + $0x58] sm:$0xff] %v713_v37  ;;  %v306_v47 = vpop.f32.mrf.mxu0  ;;  %v346_v48 = vpop.f32.mrf.mxu1 }
  0xf9   :  { %v706_v49 = vpack.c.bf16 %v523_v43, %v522_v41  ;;  %v714_v50 = vpack.c.bf16 %v539_v44, %v538_v42  ;;  %v481_v51 = vmul.f32 %v881_v32, %v306_v47  ;;  %v497_v52 = vmul.f32 %v881_v32, %v346_v48 }
  0xfa   :  { %v310_v53 = vpop.f32.mrf.mxu0  ;;  %v350_v54 = vpop.f32.mrf.mxu1  ;;  %v524_v57 = vadd.f32 %v884_v36, %v480_v45  ;;  %v540_v58 = vadd.f32 %v884_v36, %v496_v46 }
  0xfb   :  { %646 = vst [vmem:[%s1003_s4 + $0x20] sm:$0xff] %v706_v49  ;;  %654 = vst [vmem:[%s1003_s4 + $0x60] sm:$0xff] %v714_v50  ;;  %v482_v55 = vmul.f32 %v876_v30, %v310_v53  ;;  %v498_v56 = vmul.f32 %v876_v30, %v350_v54  ;;  %v525_v59 = vadd.f32 %v887_v38, %v481_v51 }
  0xfc   :  { %v541_v60 = vadd.f32 %v887_v38, %v497_v52  ;;  %v312_v61 = vpop.f32.mrf.mxu0  ;;  %v352_v62 = vpop.f32.mrf.mxu1 }
  0xfd   :  { %v483_v63 = vmul.f32 %v881_v32, %v312_v61  ;;  %v499_v0 = vmul.f32 %v881_v32, %v352_v62  ;;  %v707_v1 = vpack.c.bf16 %v525_v59, %v524_v57  ;;  %v526_v5 = vadd.f32 %v884_v36, %v482_v55 }
  0xfe   :  { %v715_v2 = vpack.c.bf16 %v541_v60, %v540_v58  ;;  %v314_v3 = vpop.f32.mrf.mxu0  ;;  %v354_v4 = vpop.f32.mrf.mxu1  ;;  %v542_v6 = vadd.f32 %v884_v36, %v498_v56 }
  0xff   :  { %v527_v7 = vadd.f32 %v887_v38, %v483_v63  ;;  %v543_v8 = vadd.f32 %v887_v38, %v499_v0  ;;  %647 = vst [vmem:[%s1003_s4 + $0x28] sm:$0xff] %v707_v1  ;;  %v484_v9 = vmul.f32 %v876_v30, %v314_v3  ;;  %v500_v10 = vmul.f32 %v876_v30, %v354_v4 }
 0x100   :  { %655 = vst [vmem:[%s1003_s4 + $0x68] sm:$0xff] %v715_v2  ;;  %v316_v11 = vpop.f32.mrf.mxu0  ;;  %v356_v12 = vpop.f32.mrf.mxu1 }
 0x101   :  { %v708_v13 = vpack.c.bf16 %v527_v7, %v526_v5  ;;  %v716_v14 = vpack.c.bf16 %v543_v8, %v542_v6  ;;  %v485_v15 = vmul.f32 %v881_v32, %v316_v11  ;;  %v501_v16 = vmul.f32 %v881_v32, %v356_v12 }
 0x102   :  { %v528_v17 = vadd.f32 %v884_v36, %v484_v9  ;;  %v544_v30 = vadd.f32 %v884_v36, %v500_v10 }
 0x103   :  { %648 = vst [vmem:[%s1003_s4 + $0x30] sm:$0xff] %v708_v13  ;;  %656 = vst [vmem:[%s1003_s4 + $0x70] sm:$0xff] %v716_v14  ;;  %v529_v18 = vadd.f32 %v887_v38, %v485_v15  ;;  %v545_v19 = vadd.f32 %v887_v38, %v501_v16 }
 0x105   :  { %v709_v20 = vpack.c.bf16 %v529_v18, %v528_v17  ;;  %v717_v21 = vpack.c.bf16 %v545_v19, %v544_v30 }
 0x107   :  { %649 = vst [vmem:[%s1003_s4 + $0x38] sm:$0xff] %v709_v20  ;;  %657 = vst [vmem:[%s1003_s4 + $0x78] sm:$0xff] %v717_v21 }

// kernel: _lambda_.71
= control target key start
LH: loop header
LB: loop body
LE: loop exit
PB: predicated region body
PF: predicated region fallthrough
CT: control target
= control target key end

     0   :  { %s1424_s15 = smov 0   ;;  %s1426_s16 = smov 0   ;;  %s1611_s0 = inlined_call_operand.vmem [shape: bf16[128,2304], index: 0, kind: input, shape index: {}]   ;;  %s1612_s1 = inlined_call_operand.vmem [shape: bf16[2304,128], index: 1, kind: input, shape index: {}]   ;;  %s1613_s2 = inlined_call_operand.vmem [shape: f32[1,128], index: 2, kind: input, shape index: {}]   ;;  %s1614_s3 = inlined_call_operand.vmem [shape: f32[1,128], index: 3, kind: input, shape index: {}]   ;;  %s1615_s4 = inlined_call_operand.vmem [shape: bf16[128,128], index: 4, kind: output, shape index: {}]  }
   0x1   :  { %s1428_s17 = smov 0   ;;  %s1430_s18 = smov 0  }
   0x2   :  { %s1432_s19 = smov 0  }
   0x3 LB: > { %s26_s20 = sadd.s32 1, %s1392_s18  ;;  %p49_p1 = scmp.ne.s32.totalorder %s1384_s16, %s1380_s15  ;;  %s1396_s19 = sphi %s1432_s19, %s14_s19   ;;  %s1392_s18 = sphi %s1430_s18, %s1619_s18   ;;  %s1388_s17 = sphi %s1428_s17, %s1618_s17   ;;  %s1384_s16 = sphi %s1426_s16, %s1617_s16   ;;  %s1380_s15 = sphi %s1424_s15, %s1616_s15  }
   0x4   : > { %p27_p0 = scmp.ge.s32.totalorder %s26_s20, 9  ;;  %p50_p2 = scmp.eq.s32.totalorder %s1396_s19, 0 }
   0x5   : > { %s42_s22 = sadd.s32 1, %s1384_s16  ;;  %p1069_p5 = scmp.ge.s32.totalorder %s1396_s19, 9 }
   0x6   : > { %s1621_s20 = smov (%p27_p0, %s26_s20), 0  ;;  %p51_p3 = por %p50_p2, %p49_p1 }
   0x7   : > { %s38_s21 = ssub.s32 %s1392_s18, %s1621_s20  ;;  %195 = sbr.rel (%p1069_p5) target bundleno = 24 (0x18), region = 24 }
   0x8   : > { %p40_p4 = scmp.eq.s32.totalorder %s38_s21, 0 }
   0xa   : > { %s1459_s23 = scalar_select %p40_p4, %s1384_s16, %s42_s22  }
   0xc   : > { %198 = sbr.rel (!%p51_p3) target bundleno = 24 (0x18), region = 28  ;;  %s200_s24 = sand.u32 (%p51_p3), 1, %s1384_s16  }
   0xd   : > { %s1133_s25 = sshll.u32 (%p51_p3), %s1392_s18, 3  ;;  %s1070_s26 = sshll.u32 (%p51_p3), %s200_s24, 7 }
   0xe   : > { %s1467_s29 = scalar_lea.vmem (%p51_p3), %s1611_s0, %s1133_s25  ;;  %s202_s30 = scalar_lea.vmem (%p51_p3), [#allocation3], %s1070_s26 }
   0xf   : > { %v267_v0 = vld [vmem:[%s1467_s29] sm:$0xff] (%p51_p3)  ;;  %v269_v1 = vld [vmem:[%s1467_s29 + $0x48] sm:$0xff] (%p51_p3)  ;;  %v271_v2 = vld [vmem:[%s1467_s29 + $0x90] sm:$0xff] (%p51_p3) }
  0x10   : > { %268 = vst [vmem:[%s202_s30] sm:$0xff] (%p51_p3), %v267_v0  ;;  %270 = vst [vmem:[%s202_s30 + $0x8] sm:$0xff] (%p51_p3), %v269_v1  ;;  %v273_v3 = vld [vmem:[%s1467_s29 + $0xd8] sm:$0xff] (%p51_p3)  ;;  %v275_v4 = vld [vmem:[%s1467_s29 + $0x120] sm:$0xff] (%p51_p3) }
  0x11   : > { %272 = vst [vmem:[%s202_s30 + $0x10] sm:$0xff] %v271_v2  ;;  %v277_v5 = vld [vmem:[%s1467_s29 + $0x168] sm:$0xff]  ;;  %274 = vst [vmem:[%s202_s30 + $0x18] sm:$0xff] %v273_v3  ;;  %v279_v6 = vld [vmem:[%s1467_s29 + $0x1b0] sm:$0xff] }
  0x12   : > { %276 = vst [vmem:[%s202_s30 + $0x20] sm:$0xff] %v275_v4  ;;  %278 = vst [vmem:[%s202_s30 + $0x28] sm:$0xff] %v277_v5  ;;  %v281_v7 = vld [vmem:[%s1467_s29 + $0x1f8] sm:$0xff]  ;;  %v283_v8 = vld [vmem:[%s1467_s29 + $0x240] sm:$0xff] }
  0x13   : > { %280 = vst [vmem:[%s202_s30 + $0x30] sm:$0xff] %v279_v6  ;;  %282 = vst [vmem:[%s202_s30 + $0x38] sm:$0xff] %v281_v7  ;;  %v285_v9 = vld [vmem:[%s1467_s29 + $0x288] sm:$0xff]  ;;  %v287_v10 = vld [vmem:[%s1467_s29 + $0x2d0] sm:$0xff] }
  0x14   : > { %284 = vst [vmem:[%s202_s30 + $0x40] sm:$0xff] %v283_v8  ;;  %v289_v11 = vld [vmem:[%s1467_s29 + $0x318] sm:$0xff]  ;;  %286 = vst [vmem:[%s202_s30 + $0x48] sm:$0xff] %v285_v9  ;;  %v291_v12 = vld [vmem:[%s1467_s29 + $0x360] sm:$0xff] }
  0x15   : > { %288 = vst [vmem:[%s202_s30 + $0x50] sm:$0xff] %v287_v10  ;;  %290 = vst [vmem:[%s202_s30 + $0x58] sm:$0xff] %v289_v11  ;;  %v293_v13 = vld [vmem:[%s1467_s29 + $0x3a8] sm:$0xff]  ;;  %v295_v14 = vld [vmem:[%s1467_s29 + $0x3f0] sm:$0xff] }
  0x16   : > { %292 = vst [vmem:[%s202_s30 + $0x60] sm:$0xff] %v291_v12  ;;  %294 = vst [vmem:[%s202_s30 + $0x68] sm:$0xff] %v293_v13  ;;  %v297_v15 = vld [vmem:[%s1467_s29 + $0x438] sm:$0xff] }
  0x17   : > { %296 = vst [vmem:[%s202_s30 + $0x70] sm:$0xff] %v295_v14  ;;  %298 = vst [vmem:[%s202_s30 + $0x78] sm:$0xff] %v297_v15 }
  0x18 PF: > { %p1073_p6 = scmp.ge.s32.totalorder %s1396_s19, 1  ;;  %p315_p7 = scmp.lt.s32.totalorder %s1396_s19, 10 }
  0x1a   : > { %p316_p8 = pnand %p1073_p6, %p315_p7 }
  0x1b   : > { %s322_s5 = sand.u32 (!%p316_p8), 1, %s1380_s15   ;;  %s1075_s6 = sshll.u32 (!%p316_p8), %s1388_s17, 5 }
  0x1c   : > { %319 = sbr.rel (%p316_p8) target bundleno = 329 (0x149), region = 70  ;;  %s1074_s7 = sshll.u32 (!%p316_p8), %s322_s5, 7 }
  0x1d   : > { %p367_p9 = scmp.lt.s32.totalorder (!%p316_p8), %s1075_s6, 287  ;;  %s1494_s12 = scalar_lea.vmem (!%p316_p8), [#allocation3], %s1074_s7 }
  0x1e   : > { %p1077_p10 = scmp.ne.s32.totalorder (!%p316_p8), %s1388_s17, 0 }
  0x21   : > { %s1623_s6 = smov (!%p367_p9, %s1075_s6), 287  ;;  %394 = sbr.rel (%p1077_p10) target bundleno = 47 (0x2f), region = 78 }
  0x22   : > { %s1076_s8 = sshll.u32 %s1623_s6, 2 }
  0x23   : > { %s1492_s11 = scalar_lea.vmem %s1612_s1, %s1076_s8 }
  0x26   : > { %v1398_v16 = vmov 0.0  }
  0x27   : > { %395 = vst [vmem:[#allocation2 + $0x30] sm:$0xff] %v1398_v16  ;;  %396 = vst [vmem:[#allocation2] sm:$0xff] %v1398_v16 }
  0x28   : > { %397 = vst [vmem:[#allocation2 + $0x58] sm:$0xff] %v1398_v16  ;;  %398 = vst [vmem:[#allocation2 + $0x18] sm:$0xff] %v1398_v16 }
  0x29   : > { %399 = vst [vmem:[#allocation2 + $0x50] sm:$0xff] %v1398_v16  ;;  %400 = vst [vmem:[#allocation2 + $0x68] sm:$0xff] %v1398_v16 }
  0x2a   : > { %401 = vst [vmem:[#allocation2 + $0x8] sm:$0xff] %v1398_v16  ;;  %402 = vst [vmem:[#allocation2 + $0x48] sm:$0xff] %v1398_v16 }
  0x2b   : > { %403 = vst [vmem:[#allocation2 + $0x40] sm:$0xff] %v1398_v16  ;;  %404 = vst [vmem:[#allocation2 + $0x20] sm:$0xff] %v1398_v16 }
  0x2c   : > { %405 = vst [vmem:[#allocation2 + $0x10] sm:$0xff] %v1398_v16  ;;  %406 = vst [vmem:[#allocation2 + $0x38] sm:$0xff] %v1398_v16 }
  0x2d   : > { %407 = vst [vmem:[#allocation2 + $0x60] sm:$0xff] %v1398_v16  ;;  %408 = vst [vmem:[#allocation2 + $0x70] sm:$0xff] %v1398_v16 }
  0x2e   : > { %409 = vst [vmem:[#allocation2 + $0x78] sm:$0xff] %v1398_v16  ;;  %410 = vst [vmem:[#allocation2 + $0x28] sm:$0xff] %v1398_v16 }
  0x2f PF: > { %v1318_v17 = vld [vmem:[%s1492_s11 + $0x78] sm:$0xff]   ;;  %v1320_v19 = vld [vmem:[%s1492_s11 + $0x70] sm:$0xff]   ;;  %v1322_v21 = vld [vmem:[%s1492_s11 + $0x68] sm:$0xff]   ;;  %p1110_p11 = scmp.ne.s32.totalorder %s1388_s17, 8 }
  0x30   : > { %v1319_v18 = vld [vmem:[%s1492_s11 + $0x38] sm:$0xff]   ;;  %1197 = vmatprep.subr.bf16.mxu0 %v1318_v17  ;;  %1261 = vmatprep.subr.bf16.mxu1 %v1318_v17  ;;  %v1321_v20 = vld [vmem:[%s1492_s11 + $0x30] sm:$0xff]   ;;  %v1323_v22 = vld [vmem:[%s1492_s11 + $0x28] sm:$0xff]  }
  0x31   : > { %1198 = vmatpush3.bf16.msra.mxu0 %v1319_v18  ;;  %1269 = vmatpush3.bf16.msra.mxu1 %v1319_v18  ;;  %v1324_v23 = vld [vmem:[%s1492_s11 + $0x60] sm:$0xff]   ;;  %v1326_v25 = vld [vmem:[%s1492_s11 + $0x58] sm:$0xff]   ;;  %v1328_v27 = vld [vmem:[%s1492_s11 + $0x50] sm:$0xff]  }
  0x32   : > { %1199 = vmatprep.subr.bf16.mxu0 %v1320_v19  ;;  %1262 = vmatprep.subr.bf16.mxu1 %v1320_v19  ;;  %v1325_v24 = vld [vmem:[%s1492_s11 + $0x20] sm:$0xff]   ;;  %v1327_v26 = vld [vmem:[%s1492_s11 + $0x18] sm:$0xff]   ;;  %v1329_v30 = vld [vmem:[%s1492_s11 + $0x10] sm:$0xff]  }
  0x33   : > { %v1336_v28 = vld [vmem:[%s1494_s12 + $0x4] ss:$8 sps:$4 sm:$0xff]   ;;  %v1334_v35 = vld [vmem:[%s1494_s12] ss:$8 sps:$4 sm:$0xff]   ;;  %v1340_v37 = vld [vmem:[%s1494_s12 + $0x14] ss:$8 sps:$4 sm:$0xff]  }
  0x34   : > { %v1339_v29 = vld [vmem:[%s1494_s12 + $0x44] ss:$8 sps:$4 sm:$0xff]   ;;  %683 = vmatprep.mubr.bf16.mxu0 %v1336_v28  ;;  %v1337_v36 = vld [vmem:[%s1494_s12 + $0x40] ss:$8 sps:$4 sm:$0xff]   ;;  %v1342_v38 = vld [vmem:[%s1494_s12 + $0x54] ss:$8 sps:$4 sm:$0xff]  }
  0x35   : > { %1200 = vmatpush3.bf16.msra.mxu0 %v1321_v20  ;;  %1270 = vmatpush3.bf16.msra.mxu1 %v1321_v20  ;;  %v1330_v31 = vld [vmem:[%s1492_s11 + $0x48] sm:$0xff]   ;;  %v1332_v33 = vld [vmem:[%s1492_s11 + $0x40] sm:$0xff]   ;;  %v1344_v39 = vld [vmem:[%s1494_s12 + $0x10] ss:$8 sps:$4 sm:$0xff]  }
  0x36   : > { %1201 = vmatprep.subr.bf16.mxu0 %v1322_v21  ;;  %1263 = vmatprep.subr.bf16.mxu1 %v1322_v21  ;;  %v1331_v32 = vld [vmem:[%s1492_s11 + $0x8] sm:$0xff]   ;;  %v1333_v34 = vld [vmem:[%s1492_s11] sm:$0xff]   ;;  %v1345_v40 = vld [vmem:[%s1494_s12 + $0x50] ss:$8 sps:$4 sm:$0xff]  }
  0x37   : > { %715 = vmatprep.mubr.bf16.mxu1 %v1339_v29  ;;  %v1346_v41 = vld [vmem:[%s1494_s12 + $0x24] ss:$8 sps:$4 sm:$0xff]   ;;  %v1350_v43 = vld [vmem:[%s1494_s12 + $0x20] ss:$8 sps:$4 sm:$0xff]   ;;  %v1352_v45 = vld [vmem:[%s1494_s12 + $0x34] ss:$8 sps:$4 sm:$0xff]  }
  0x38   : > { %v1348_v42 = vld [vmem:[%s1494_s12 + $0x64] ss:$8 sps:$4 sm:$0xff]   ;;  %v1351_v44 = vld [vmem:[%s1494_s12 + $0x60] ss:$8 sps:$4 sm:$0xff]   ;;  %v1354_v46 = vld [vmem:[%s1494_s12 + $0x74] ss:$8 sps:$4 sm:$0xff]  }
  0x39   : > { %1202 = vmatpush3.bf16.msra.mxu0 %v1323_v22  ;;  %1271 = vmatpush3.bf16.msra.mxu1 %v1323_v22  ;;  %v1356_v47 = vld [vmem:[%s1494_s12 + $0x30] ss:$8 sps:$4 sm:$0xff]   ;;  %v419_v53 = vld [vmem:[#allocation2 + $0x40] sm:$0xff] }
  0x3a   : > { %1203 = vmatprep.subr.bf16.mxu0 %v1324_v23  ;;  %1264 = vmatprep.subr.bf16.mxu1 %v1324_v23  ;;  %v1357_v48 = vld [vmem:[%s1494_s12 + $0x70] ss:$8 sps:$4 sm:$0xff]   ;;  %v412_v61 = vld [vmem:[#allocation2] sm:$0xff] }
  0x3b   : > { %v411_v51 = vld [vmem:[#allocation2 + $0x30] sm:$0xff]  ;;  %v420_v63 = vld [vmem:[#allocation2 + $0x20] sm:$0xff]  ;;  %v413_v7 = vld [vmem:[#allocation2 + $0x58] sm:$0xff] }
  0x3c   : > { %v421_v9 = vld [vmem:[#allocation2 + $0x10] sm:$0xff]  ;;  %v414_v17 = vld [vmem:[#allocation2 + $0x18] sm:$0xff]  ;;  %v423_v29 = vld [vmem:[#allocation2 + $0x60] sm:$0xff] }
  0x3d   : > { %1204 = vmatpush3.bf16.msra.mxu0 %v1325_v24  ;;  %1272 = vmatpush3.bf16.msra.mxu1 %v1325_v24  ;;  %v422_v19 = vld [vmem:[#allocation2 + $0x38] sm:$0xff] }
  0x3e   : > { %1205 = vmatprep.subr.bf16.mxu0 %v1326_v25  ;;  %1265 = vmatprep.subr.bf16.mxu1 %v1326_v25 }
  0x41   : > { %1206 = vmatpush3.bf16.msra.mxu0 %v1327_v26  ;;  %1273 = vmatpush3.bf16.msra.mxu1 %v1327_v26 }
  0x42   : > { %1207 = vmatprep.subr.bf16.mxu0 %v1328_v27  ;;  %1266 = vmatprep.subr.bf16.mxu1 %v1328_v27  ;;  %v415_v27 = vld [vmem:[#allocation2 + $0x50] sm:$0xff] }
  0x45   : > { %1208 = vmatpush3.bf16.msra.mxu0 %v1329_v30  ;;  %1274 = vmatpush3.bf16.msra.mxu1 %v1329_v30 }
  0x46   : > { %1209 = vmatprep.subr.bf16.mxu0 %v1330_v31  ;;  %1267 = vmatprep.subr.bf16.mxu1 %v1330_v31 }
  0x49   : > { %1210 = vmatpush3.bf16.msra.mxu0 %v1331_v32  ;;  %1275 = vmatpush3.bf16.msra.mxu1 %v1331_v32 }
  0x4a   : > { %1211 = vmatprep.subr.bf16.mxu0 %v1332_v33  ;;  %1268 = vmatprep.subr.bf16.mxu1 %v1332_v33 }
  0x4d   : > { %1212 = vmatpush3.bf16.msra.mxu0 %v1333_v34  ;;  %1276 = vmatpush3.bf16.msra.mxu1 %v1333_v34 }
  0x50   : > { %684 = vmatmul.mubr.bf16.vlgmr.msra.gmra.mxu0 %v1334_v35  ;;  %716 = vmatmul.mubr.bf16.vlgmr.msra.gmra.mxu1 %v1337_v36 }
  0x51   : > { %691 = vmatprep.mubr.bf16.mxu0 %v1340_v37  ;;  %723 = vmatprep.mubr.bf16.mxu1 %v1342_v38  ;;  %v416_v37 = vld [vmem:[#allocation2 + $0x68] sm:$0xff] }
  0x58   : > { %692 = vmatmul.mubr.bf16.gmra.mxu0 %v1344_v39  ;;  %724 = vmatmul.mubr.bf16.gmra.mxu1 %v1345_v40  ;;  %v424_v39 = vld [vmem:[#allocation2 + $0x70] sm:$0xff] }
  0x59   : > { %699 = vmatprep.mubr.bf16.mxu0 %v1346_v41  ;;  %731 = vmatprep.mubr.bf16.mxu1 %v1348_v42 }
  0x60   : > { %700 = vmatmul.mubr.bf16.gmra.mxu0 %v1350_v43  ;;  %732 = vmatmul.mubr.bf16.gmra.mxu1 %v1351_v44 }
  0x61   : > { %707 = vmatprep.mubr.bf16.mxu0 %v1352_v45  ;;  %739 = vmatprep.mubr.bf16.mxu1 %v1354_v46 }
  0x68   : > { %708 = vmatmul.mubr.bf16.gmra.mxu0 %v1356_v47  ;;  %740 = vmatmul.mubr.bf16.gmra.mxu1 %v1357_v48  ;;  %v417_v47 = vld [vmem:[#allocation2 + $0x8] sm:$0xff] }
 0x110   : > { %v1213_v49 = vpop.f32.mrf.mxu0  ;;  %v1237_v50 = vpop.f32.mrf.mxu1 }
 0x112   : > { %v1214_v52 = vpop.f32.mrf.mxu0  ;;  %v1238_v54 = vpop.f32.mrf.mxu1 }
 0x113   : > { %v1215_v55 = vadd.f32 %v1214_v52, %v1213_v49  ;;  %v1239_v56 = vadd.f32 %v1238_v54, %v1237_v50  ;;  %v425_v49 = vld [vmem:[#allocation2 + $0x78] sm:$0xff] }
 0x114   : > { %v1216_v57 = vpop.f32.mrf.mxu0  ;;  %v1240_v58 = vpop.f32.mrf.mxu1 }
 0x115   : > { %v748_v59 = vadd.f32 %v1215_v55, %v411_v51  ;;  %v756_v60 = vadd.f32 %v1239_v56, %v419_v53 }
 0x116   : > { %v1217_v62 = vpop.f32.mrf.mxu0  ;;  %v1241_v0 = vpop.f32.mrf.mxu1 }
 0x117   : > { %764 = vst [vmem:[#allocation2 + $0x30] sm:$0xff] %v748_v59  ;;  %772 = vst [vmem:[#allocation2 + $0x40] sm:$0xff] %v756_v60  ;;  %v1218_v1 = vadd.f32 %v1217_v62, %v1216_v57  ;;  %v1242_v2 = vadd.f32 %v1241_v0, %v1240_v58  ;;  %v418_v57 = vld [vmem:[#allocation2 + $0x48] sm:$0xff] }
 0x118   : > { %v1219_v3 = vpop.f32.mrf.mxu0  ;;  %v1243_v4 = vpop.f32.mrf.mxu1  ;;  %v426_v59 = vld [vmem:[#allocation2 + $0x28] sm:$0xff] }
 0x119   : > { %v749_v5 = vadd.f32 %v1218_v1, %v412_v61  ;;  %v757_v6 = vadd.f32 %v1242_v2, %v420_v63 }
 0x11a   : > { %v1220_v8 = vpop.f32.mrf.mxu0  ;;  %v1244_v10 = vpop.f32.mrf.mxu1 }
 0x11b   : > { %765 = vst [vmem:[#allocation2] sm:$0xff] %v749_v5  ;;  %773 = vst [vmem:[#allocation2 + $0x20] sm:$0xff] %v757_v6  ;;  %v1221_v11 = vadd.f32 %v1220_v8, %v1219_v3  ;;  %v1245_v12 = vadd.f32 %v1244_v10, %v1243_v4 }
 0x11c   : > { %v1222_v13 = vpop.f32.mrf.mxu0  ;;  %v1246_v14 = vpop.f32.mrf.mxu1 }
 0x11d   : > { %v750_v15 = vadd.f32 %v1221_v11, %v413_v7  ;;  %v758_v16 = vadd.f32 %v1245_v12, %v421_v9 }
 0x11e   : > { %v1223_v18 = vpop.f32.mrf.mxu0  ;;  %v1247_v20 = vpop.f32.mrf.mxu1 }
 0x11f   : > { %766 = vst [vmem:[#allocation2 + $0x58] sm:$0xff] %v750_v15  ;;  %774 = vst [vmem:[#allocation2 + $0x10] sm:$0xff] %v758_v16  ;;  %v1224_v21 = vadd.f32 %v1223_v18, %v1222_v13  ;;  %v1248_v22 = vadd.f32 %v1247_v20, %v1246_v14 }
 0x120   : > { %v1225_v23 = vpop.f32.mrf.mxu0  ;;  %v1249_v24 = vpop.f32.mrf.mxu1 }
 0x121   : > { %v751_v25 = vadd.f32 %v1224_v21, %v414_v17  ;;  %v759_v26 = vadd.f32 %v1248_v22, %v422_v19 }
 0x122   : > { %v1226_v28 = vpop.f32.mrf.mxu0  ;;  %v1250_v30 = vpop.f32.mrf.mxu1 }
 0x123   : > { %767 = vst [vmem:[#allocation2 + $0x18] sm:$0xff] %v751_v25  ;;  %775 = vst [vmem:[#allocation2 + $0x38] sm:$0xff] %v759_v26  ;;  %v1227_v31 = vadd.f32 %v1226_v28, %v1225_v23  ;;  %v1251_v32 = vadd.f32 %v1250_v30, %v1249_v24 }
 0x124   : > { %v1228_v33 = vpop.f32.mrf.mxu0  ;;  %v1252_v34 = vpop.f32.mrf.mxu1 }
 0x125   : > { %v752_v35 = vadd.f32 %v1227_v31, %v415_v27  ;;  %v760_v36 = vadd.f32 %v1251_v32, %v423_v29 }
 0x126   : > { %v1229_v38 = vpop.f32.mrf.mxu0  ;;  %v1253_v40 = vpop.f32.mrf.mxu1 }
 0x127   : > { %768 = vst [vmem:[#allocation2 + $0x50] sm:$0xff] %v752_v35  ;;  %776 = vst [vmem:[#allocation2 + $0x60] sm:$0xff] %v760_v36  ;;  %v1230_v41 = vadd.f32 %v1229_v38, %v1228_v33  ;;  %v1254_v42 = vadd.f32 %v1253_v40, %v1252_v34 }
 0x128   : > { %v1231_v43 = vpop.f32.mrf.mxu0  ;;  %v1255_v44 = vpop.f32.mrf.mxu1 }
 0x129   : > { %v753_v45 = vadd.f32 %v1230_v41, %v416_v37  ;;  %v761_v46 = vadd.f32 %v1254_v42, %v424_v39 }
 0x12a   : > { %v1232_v48 = vpop.f32.mrf.mxu0  ;;  %v1256_v50 = vpop.f32.mrf.mxu1 }
 0x12b   : > { %769 = vst [vmem:[#allocation2 + $0x68] sm:$0xff] %v753_v45  ;;  %777 = vst [vmem:[#allocation2 + $0x70] sm:$0xff] %v761_v46  ;;  %v1233_v51 = vadd.f32 %v1232_v48, %v1231_v43  ;;  %v1257_v52 = vadd.f32 %v1256_v50, %v1255_v44 }
 0x12c   : > { %v1234_v53 = vpop.f32.mrf.mxu0  ;;  %v1258_v54 = vpop.f32.mrf.mxu1 }
 0x12d   : > { %v754_v55 = vadd.f32 %v1233_v51, %v417_v47  ;;  %v762_v56 = vadd.f32 %v1257_v52, %v425_v49 }
 0x12e   : > { %v1235_v58 = vpop.f32.mrf.mxu0  ;;  %v1259_v60 = vpop.f32.mrf.mxu1 }
 0x12f   : > { %770 = vst [vmem:[#allocation2 + $0x8] sm:$0xff] %v754_v55  ;;  %778 = vst [vmem:[#allocation2 + $0x78] sm:$0xff] %v762_v56  ;;  %v1236_v61 = vadd.f32 %v1235_v58, %v1234_v53  ;;  %v1260_v62 = vadd.f32 %v1259_v60, %v1258_v54  ;;  %783 = sbr.rel (%p1110_p11) target bundleno = 329 (0x149), region = 82 }
 0x131   : > { %v755_v63 = vadd.f32 %v1236_v61, %v418_v57  ;;  %v763_v0 = vadd.f32 %v1260_v62, %v426_v59 }
 0x133   : > { %771 = vst [vmem:[#allocation2 + $0x48] sm:$0xff] %v755_v63  ;;  %779 = vst [vmem:[#allocation2 + $0x28] sm:$0xff] %v763_v0 }
 0x134   : > { %v784_v1 = vld [vmem:[#allocation2 + $0x30] sm:$0xff]  ;;  %v785_v2 = vld [vmem:[#allocation2] sm:$0xff]  ;;  %v786_v7 = vld [vmem:[#allocation2 + $0x58] sm:$0xff] }
 0x135   : > { %v1533_v3 = vld [vmem:[%s1613_s2] ss:$0 sm:$0xff]  ;;  %v787_v8 = vld [vmem:[#allocation2 + $0x18] sm:$0xff]  ;;  %v788_v11 = vld [vmem:[#allocation2 + $0x50] sm:$0xff] }
 0x136   : > { %v807_v4 = vmul.f32 %v1533_v3, %v784_v1  ;;  %v808_v5 = vmul.f32 %v1533_v3, %v785_v2  ;;  %v1540_v6 = vld [vmem:[%s1614_s3] ss:$0 sm:$0xff]  ;;  %v809_v9 = vmul.f32 %v1533_v3, %v786_v7  ;;  %v810_v10 = vmul.f32 %v1533_v3, %v787_v8  ;;  %v789_v12 = vld [vmem:[#allocation2 + $0x68] sm:$0xff]  ;;  %v794_v33 = vld [vmem:[#allocation2 + $0x10] sm:$0xff] }
 0x137   : > { %v790_v13 = vld [vmem:[#allocation2 + $0x8] sm:$0xff]  ;;  %v811_v16 = vmul.f32 %v1533_v3, %v788_v11  ;;  %v812_v17 = vmul.f32 %v1533_v3, %v789_v12  ;;  %v792_v23 = vld [vmem:[#allocation2 + $0x40] sm:$0xff]  ;;  %v795_v34 = vld [vmem:[#allocation2 + $0x38] sm:$0xff]  ;;  %v817_v48 = vmul.f32 %v1533_v3, %v794_v33 }
 0x138   : > { %v830_v14 = vadd.f32 %v1540_v6, %v807_v4  ;;  %v831_v15 = vadd.f32 %v1540_v6, %v808_v5  ;;  %v832_v19 = vadd.f32 %v1540_v6, %v809_v9  ;;  %v833_v20 = vadd.f32 %v1540_v6, %v810_v10  ;;  %v793_v28 = vld [vmem:[#allocation2 + $0x20] sm:$0xff]  ;;  %v797_v40 = vld [vmem:[#allocation2 + $0x70] sm:$0xff]  ;;  %v798_v45 = vld [vmem:[#allocation2 + $0x78] sm:$0xff] }
 0x139   : > { %v813_v21 = vmul.f32 %v1533_v3, %v790_v13  ;;  %v834_v26 = vadd.f32 %v1540_v6, %v811_v16  ;;  %v835_v27 = vadd.f32 %v1540_v6, %v812_v17  ;;  %v815_v38 = vmul.f32 %v1533_v3, %v792_v23  ;;  %v796_v39 = vld [vmem:[#allocation2 + $0x60] sm:$0xff] }
 0x13a   : > { %v791_v18 = vld [vmem:[#allocation2 + $0x48] sm:$0xff]  ;;  %v846_v24 = vmax.f32 %v830_v14, 0.0  ;;  %v847_v25 = vmax.f32 %v831_v15, 0.0  ;;  %v848_v29 = vmax.f32 %v832_v19, 0.0  ;;  %v849_v30 = vmax.f32 %v833_v20, 0.0 }
 0x13b   : > { %v814_v22 = vmul.f32 %v1533_v3, %v791_v18  ;;  %v836_v31 = vadd.f32 %v1540_v6, %v813_v21  ;;  %v850_v36 = vmax.f32 %v834_v26, 0.0  ;;  %v851_v37 = vmax.f32 %v835_v27, 0.0  ;;  %v799_v50 = vld [vmem:[#allocation2 + $0x28] sm:$0xff] }
 0x13c   : > { %v1153_v35 = vpack.c.bf16 %v847_v25, %v846_v24  ;;  %v1158_v41 = vpack.c.bf16 %v849_v30, %v848_v29  ;;  %v816_v44 = vmul.f32 %v1533_v3, %v793_v28  ;;  %v838_v47 = vadd.f32 %v1540_v6, %v815_v38 }
 0x13d   : > { %v837_v32 = vadd.f32 %v1540_v6, %v814_v22  ;;  %v852_v42 = vmax.f32 %v836_v31, 0.0  ;;  %v1163_v46 = vpack.c.bf16 %v851_v37, %v850_v36  ;;  %v818_v49 = vmul.f32 %v1533_v3, %v795_v34 }
 0x13e   : > { %1154 = vst [vmem:[%s1615_s4] sm:$0xff] %v1153_v35   ;;  %1190 = vst [vmem:[%s1615_s4 + $0x8] sm:$0xff] %v1158_v41   ;;  %v839_v52 = vadd.f32 %v1540_v6, %v816_v44  ;;  %v819_v53 = vmul.f32 %v1533_v3, %v796_v39  ;;  %v820_v54 = vmul.f32 %v1533_v3, %v797_v40  ;;  %v854_v55 = vmax.f32 %v838_v47, 0.0 }
 0x13f   : > { %v853_v43 = vmax.f32 %v837_v32, 0.0  ;;  %1191 = vst [vmem:[%s1615_s4 + $0x10] sm:$0xff] %v1163_v46   ;;  %v840_v56 = vadd.f32 %v1540_v6, %v817_v48  ;;  %v841_v57 = vadd.f32 %v1540_v6, %v818_v49  ;;  %v821_v58 = vmul.f32 %v1533_v3, %v798_v45 }
 0x140   : > { %v855_v59 = vmax.f32 %v839_v52, 0.0  ;;  %v842_v60 = vadd.f32 %v1540_v6, %v819_v53  ;;  %v843_v61 = vadd.f32 %v1540_v6, %v820_v54  ;;  %v822_v62 = vmul.f32 %v1533_v3, %v799_v50 }
 0x141   : > { %v1168_v51 = vpack.c.bf16 %v853_v43, %v852_v42  ;;  %v856_v63 = vmax.f32 %v840_v56, 0.0  ;;  %v857_v0 = vmax.f32 %v841_v57, 0.0  ;;  %v844_v1 = vadd.f32 %v1540_v6, %v821_v58 }
 0x142   : > { %v1173_v2 = vpack.c.bf16 %v855_v59, %v854_v55  ;;  %v858_v4 = vmax.f32 %v842_v60, 0.0  ;;  %v859_v5 = vmax.f32 %v843_v61, 0.0  ;;  %v845_v7 = vadd.f32 %v1540_v6, %v822_v62 }
 0x143   : > { %1192 = vst [vmem:[%s1615_s4 + $0x18] sm:$0xff] %v1168_v51   ;;  %v1178_v8 = vpack.c.bf16 %v857_v0, %v856_v63  ;;  %v860_v9 = vmax.f32 %v844_v1, 0.0 }
 0x144   : > { %1193 = vst [vmem:[%s1615_s4 + $0x20] sm:$0xff] %v1173_v2   ;;  %v1183_v10 = vpack.c.bf16 %v859_v5, %v858_v4  ;;  %v861_v11 = vmax.f32 %v845_v7, 0.0 }
 0x145   : > { %1194 = vst [vmem:[%s1615_s4 + $0x28] sm:$0xff] %v1178_v8  }
 0x146   : > { %1195 = vst [vmem:[%s1615_s4 + $0x30] sm:$0xff] %v1183_v10   ;;  %v1188_v3 = vpack.c.bf16 %v861_v11, %v860_v9 }
 0x148   : > { %1196 = vst [vmem:[%s1615_s4 + $0x38] sm:$0xff] %v1188_v3  }
 0x149 PF: > { %s14_s19 = sadd.s32 1, %s1396_s19   ;;  %s1616_s15 = smov %s1384_s16 }
 0x14a   : > { %p11_p12 = scmp.ge.s32.totalorder %s14_s19, 11   ;;  %s1617_s16 = smov %s1459_s23 }
 0x14b   : > { %s1618_s17 = smov %s1392_s18  ;;  %s1619_s18 = smov %s1621_s20 }
 0x14c   :  { %13 = sbr.rel (!%p11_p12) target bundleno = 3 (0x3), region = 126 }

// kernel: _lambda_.74
= control target key start
LH: loop header
LB: loop body
LE: loop exit
PB: predicated region body
PF: predicated region fallthrough
CT: control target
= control target key end

     0   :  { %s1446_s18 = smov 0   ;;  %s1448_s19 = smov 0   ;;  %s1641_s0 = inlined_call_operand.vmem [shape: bf16[128,1152], index: 0, kind: input, shape index: {}]   ;;  %s1642_s1 = inlined_call_operand.vmem [shape: bf16[1152,128], index: 1, kind: input, shape index: {}]   ;;  %s1643_s2 = inlined_call_operand.vmem [shape: f32[1,128], index: 2, kind: input, shape index: {}]   ;;  %s1644_s3 = inlined_call_operand.vmem [shape: f32[1,128], index: 3, kind: input, shape index: {}]   ;;  %s1645_s4 = inlined_call_operand.vmem [shape: bf16[128,128], index: 4, kind: input, shape index: {}]   ;;  %s1646_s5 = inlined_call_operand.vmem [shape: bf16[128,128], index: 5, kind: output, shape index: {}]  }
   0x1   :  { %s1450_s20 = smov 0   ;;  %s1452_s21 = smov 0  }
   0x2   :  { %s1454_s22 = smov 0  }
   0x3 LB: > { %s27_s23 = sadd.s32 1, %s1409_s21  ;;  %p50_p1 = scmp.ne.s32.totalorder %s1401_s19, %s1397_s18  ;;  %s1413_s22 = sphi %s1454_s22, %s15_s22   ;;  %s1409_s21 = sphi %s1452_s21, %s1650_s21   ;;  %s1405_s20 = sphi %s1450_s20, %s1649_s20   ;;  %s1401_s19 = sphi %s1448_s19, %s1648_s19   ;;  %s1397_s18 = sphi %s1446_s18, %s1647_s18  }
   0x4   : > { %p28_p0 = scmp.ge.s32.totalorder %s27_s23, 9  ;;  %p51_p2 = scmp.eq.s32.totalorder %s1413_s22, 0 }
   0x5   : > { %s43_s25 = sadd.s32 1, %s1401_s19  ;;  %p1105_p5 = scmp.ge.s32.totalorder %s1413_s22, 9 }
   0x6   : > { %s1652_s23 = smov (%p28_p0, %s27_s23), 0  ;;  %p52_p3 = por %p51_p2, %p50_p1 }
   0x7   : > { %s39_s24 = ssub.s32 %s1409_s21, %s1652_s23  ;;  %236 = sbr.rel (%p1105_p5) target bundleno = 26 (0x1a), region = 28 }
   0x8   : > { %p41_p4 = scmp.eq.s32.totalorder %s39_s24, 0 }
   0xa   : > { %s1481_s26 = scalar_select %p41_p4, %s1401_s19, %s43_s25  }
   0xc   : > { %239 = sbr.rel (!%p52_p3) target bundleno = 26 (0x1a), region = 32  ;;  %s241_s27 = sand.u32 (%p52_p3), 1, %s1401_s19  }
   0xd   : > { %s1107_s28 = sshll.u32 (%p52_p3), %s1409_s21, 2  ;;  %s1106_s29 = sshll.u32 (%p52_p3), %s241_s27, 6 }
   0xe   : > { %s1489_s7 = scalar_lea.vmem (%p52_p3), %s1641_s0, %s1107_s28  ;;  %s243_s8 = scalar_lea.vmem (%p52_p3), [#allocation3], %s1106_s29 }
   0xf   : > { %v265_v0 = vld [vmem:[%s1489_s7] sm:$0xf] (%p52_p3)  ;;  %v267_v1 = vld [vmem:[%s1489_s7 + $0x24] sm:$0xf] (%p52_p3)  ;;  %v269_v2 = vld [vmem:[%s1489_s7 + $0x48] sm:$0xf] (%p52_p3) }
  0x10   : > { %266 = vst [vmem:[%s243_s8] sm:$0xf] (%p52_p3), %v265_v0  ;;  %268 = vst [vmem:[%s243_s8 + $0x4] sm:$0xf] (%p52_p3), %v267_v1  ;;  %v271_v3 = vld [vmem:[%s1489_s7 + $0x6c] sm:$0xf] (%p52_p3) }
  0x11   : > { %v273_v4 = vld [vmem:[%s1489_s7 + $0x90] sm:$0xf]  ;;  %270 = vst [vmem:[%s243_s8 + $0x8] sm:$0xf] %v269_v2  ;;  %272 = vst [vmem:[%s243_s8 + $0xc] sm:$0xf] %v271_v3 }
  0x12   : > { %274 = vst [vmem:[%s243_s8 + $0x10] sm:$0xf] %v273_v4  ;;  %v275_v5 = vld [vmem:[%s1489_s7 + $0xb4] sm:$0xf]  ;;  %v277_v6 = vld [vmem:[%s1489_s7 + $0xd8] sm:$0xf] }
  0x13   : > { %v279_v7 = vld [vmem:[%s1489_s7 + $0xfc] sm:$0xf]  ;;  %276 = vst [vmem:[%s243_s8 + $0x14] sm:$0xf] %v275_v5  ;;  %278 = vst [vmem:[%s243_s8 + $0x18] sm:$0xf] %v277_v6 }
  0x14   : > { %280 = vst [vmem:[%s243_s8 + $0x1c] sm:$0xf] %v279_v7  ;;  %v281_v8 = vld [vmem:[%s1489_s7 + $0x120] sm:$0xf]  ;;  %v283_v9 = vld [vmem:[%s1489_s7 + $0x144] sm:$0xf] }
  0x15   : > { %v285_v10 = vld [vmem:[%s1489_s7 + $0x168] sm:$0xf]  ;;  %282 = vst [vmem:[%s243_s8 + $0x20] sm:$0xf] %v281_v8  ;;  %284 = vst [vmem:[%s243_s8 + $0x24] sm:$0xf] %v283_v9 }
  0x16   : > { %286 = vst [vmem:[%s243_s8 + $0x28] sm:$0xf] %v285_v10  ;;  %v287_v11 = vld [vmem:[%s1489_s7 + $0x18c] sm:$0xf]  ;;  %v289_v12 = vld [vmem:[%s1489_s7 + $0x1b0] sm:$0xf] }
  0x17   : > { %v291_v13 = vld [vmem:[%s1489_s7 + $0x1d4] sm:$0xf]  ;;  %288 = vst [vmem:[%s243_s8 + $0x2c] sm:$0xf] %v287_v11  ;;  %290 = vst [vmem:[%s243_s8 + $0x30] sm:$0xf] %v289_v12 }
  0x18   : > { %292 = vst [vmem:[%s243_s8 + $0x34] sm:$0xf] %v291_v13  ;;  %v293_v14 = vld [vmem:[%s1489_s7 + $0x1f8] sm:$0xf]  ;;  %v295_v15 = vld [vmem:[%s1489_s7 + $0x21c] sm:$0xf] }
  0x19   : > { %294 = vst [vmem:[%s243_s8 + $0x38] sm:$0xf] %v293_v14  ;;  %296 = vst [vmem:[%s243_s8 + $0x3c] sm:$0xf] %v295_v15 }
  0x1a PF: > { %p1108_p6 = scmp.ge.s32.totalorder %s1413_s22, 1  ;;  %p363_p7 = scmp.lt.s32.totalorder %s1413_s22, 10 }
  0x1c   : > { %p364_p8 = pnand %p1108_p6, %p363_p7 }
  0x1d   : > { %s370_s9 = sand.u32 (!%p364_p8), 1, %s1397_s18   ;;  %s1110_s10 = sshll.u32 (!%p364_p8), %s1405_s20, 4 }
  0x1e   : > { %367 = sbr.rel (%p364_p8) target bundleno = 322 (0x142), region = 77  ;;  %s1109_s11 = sshll.u32 (!%p364_p8), %s370_s9, 6 }
  0x1f   : > { %p424_p9 = scmp.lt.s32.totalorder (!%p364_p8), %s1110_s10, 143  ;;  %s1516_s16 = scalar_lea.vmem (!%p364_p8), [#allocation3], %s1109_s11 }
  0x20   : > { %p1112_p10 = scmp.ne.s32.totalorder (!%p364_p8), %s1405_s20, 0 }
  0x23   : > { %s1654_s10 = smov (!%p424_p9, %s1110_s10), 143  ;;  %460 = sbr.rel (%p1112_p10) target bundleno = 49 (0x31), region = 85 }
  0x24   : > { %s1111_s12 = sshll.u32 %s1654_s10, 2 }
  0x25   : > { %s1514_s15 = scalar_lea.vmem %s1642_s1, %s1111_s12 }
  0x28   : > { %v1415_v16 = vmov 0.0  }
  0x29   : > { %461 = vst [vmem:[#allocation2 + $0x30] sm:$0xff] %v1415_v16  ;;  %462 = vst [vmem:[#allocation2] sm:$0xff] %v1415_v16 }
  0x2a   : > { %463 = vst [vmem:[#allocation2 + $0x58] sm:$0xff] %v1415_v16  ;;  %464 = vst [vmem:[#allocation2 + $0x18] sm:$0xff] %v1415_v16 }
  0x2b   : > { %465 = vst [vmem:[#allocation2 + $0x50] sm:$0xff] %v1415_v16  ;;  %466 = vst [vmem:[#allocation2 + $0x68] sm:$0xff] %v1415_v16 }
  0x2c   : > { %467 = vst [vmem:[#allocation2 + $0x8] sm:$0xff] %v1415_v16  ;;  %468 = vst [vmem:[#allocation2 + $0x48] sm:$0xff] %v1415_v16 }
  0x2d   : > { %469 = vst [vmem:[#allocation2 + $0x40] sm:$0xff] %v1415_v16  ;;  %470 = vst [vmem:[#allocation2 + $0x20] sm:$0xff] %v1415_v16 }
  0x2e   : > { %471 = vst [vmem:[#allocation2 + $0x10] sm:$0xff] %v1415_v16  ;;  %472 = vst [vmem:[#allocation2 + $0x38] sm:$0xff] %v1415_v16 }
  0x2f   : > { %473 = vst [vmem:[#allocation2 + $0x60] sm:$0xff] %v1415_v16  ;;  %474 = vst [vmem:[#allocation2 + $0x70] sm:$0xff] %v1415_v16 }
  0x30   : > { %475 = vst [vmem:[#allocation2 + $0x78] sm:$0xff] %v1415_v16  ;;  %476 = vst [vmem:[#allocation2 + $0x28] sm:$0xff] %v1415_v16 }
  0x31 PF: > { %v1359_v17 = vld [vmem:[%s1514_s15 + $0x38] sm:$0xff]   ;;  %v1360_v18 = vld [vmem:[%s1514_s15 + $0x30] sm:$0xff]   ;;  %v1361_v19 = vld [vmem:[%s1514_s15 + $0x28] sm:$0xff]   ;;  %p1129_p11 = scmp.ne.s32.totalorder %s1405_s20, 8 }
  0x32   : > { %1270 = vmatprep.subr.bf16.mxu0 %v1359_v17  ;;  %1302 = vmatprep.subr.bf16.mxu1 %v1359_v17  ;;  %v1362_v20 = vld [vmem:[%s1514_s15 + $0x20] sm:$0xff]   ;;  %v1363_v23 = vld [vmem:[%s1514_s15 + $0x18] sm:$0xff]   ;;  %v1364_v24 = vld [vmem:[%s1514_s15 + $0x10] sm:$0xff]  }
  0x33   : > { %1271 = vmatpush3.bf16.msra.mxu0 %v1359_v17  ;;  %1310 = vmatpush3.bf16.msra.mxu1 %v1359_v17  ;;  %v1367_v21 = vld [vmem:[%s1516_s16] sm:$0xff]   ;;  %v1365_v25 = vld [vmem:[%s1514_s15 + $0x8] sm:$0xff]   ;;  %v1371_v29 = vld [vmem:[%s1516_s16 + $0x10] sm:$0xff]  }
  0x34   : > { %1272 = vmatprep.subr.bf16.mxu0 %v1360_v18  ;;  %1303 = vmatprep.subr.bf16.mxu1 %v1360_v18  ;;  %v1368_v22 = vld [vmem:[%s1516_s16 + $0x20] sm:$0xff]   ;;  %v1369_v27 = vld [vmem:[%s1516_s16 + $0x8] sm:$0xff]   ;;  %v1372_v30 = vld [vmem:[%s1516_s16 + $0x30] sm:$0xff]  }
  0x35   : > { %1286 = vmatprep.mubr.bf16.mxu0 %v1367_v21  ;;  %1294 = vmatprep.mubr.bf16.mxu1 %v1368_v22  ;;  %v1366_v26 = vld [vmem:[%s1514_s15] sm:$0xff]   ;;  %v1370_v28 = vld [vmem:[%s1516_s16 + $0x28] sm:$0xff]   ;;  %v1373_v31 = vld [vmem:[%s1516_s16 + $0x18] sm:$0xff]  }
  0x36   : > { %v1374_v32 = vld [vmem:[%s1516_s16 + $0x38] sm:$0xff]   ;;  %v487_v34 = vld [vmem:[#allocation2 + $0x10] sm:$0xff]  ;;  %v485_v38 = vld [vmem:[#allocation2 + $0x40] sm:$0xff] }
  0x37   : > { %1273 = vmatpush3.bf16.msra.mxu0 %v1360_v18  ;;  %1311 = vmatpush3.bf16.msra.mxu1 %v1360_v18  ;;  %v479_v33 = vld [vmem:[#allocation2 + $0x58] sm:$0xff]  ;;  %v477_v37 = vld [vmem:[#allocation2 + $0x30] sm:$0xff]  ;;  %v478_v49 = vld [vmem:[#allocation2] sm:$0xff] }
  0x38   : > { %1274 = vmatprep.subr.bf16.mxu0 %v1361_v19  ;;  %1304 = vmatprep.subr.bf16.mxu1 %v1361_v19  ;;  %v480_v43 = vld [vmem:[#allocation2 + $0x18] sm:$0xff]  ;;  %v486_v50 = vld [vmem:[#allocation2 + $0x20] sm:$0xff]  ;;  %v483_v55 = vld [vmem:[#allocation2 + $0x8] sm:$0xff] }
  0x39   : > { %v488_v44 = vld [vmem:[#allocation2 + $0x38] sm:$0xff]  ;;  %v481_v61 = vld [vmem:[#allocation2 + $0x50] sm:$0xff]  ;;  %v489_v62 = vld [vmem:[#allocation2 + $0x60] sm:$0xff] }
  0x3a   : > { %v491_v56 = vld [vmem:[#allocation2 + $0x78] sm:$0xff]  ;;  %v484_v3 = vld [vmem:[#allocation2 + $0x48] sm:$0xff]  ;;  %v490_v10 = vld [vmem:[#allocation2 + $0x70] sm:$0xff] }
  0x3b   : > { %1275 = vmatpush3.bf16.msra.mxu0 %v1361_v19  ;;  %1312 = vmatpush3.bf16.msra.mxu1 %v1361_v19  ;;  %v492_v4 = vld [vmem:[#allocation2 + $0x28] sm:$0xff] }
  0x3c   : > { %1276 = vmatprep.subr.bf16.mxu0 %v1362_v20  ;;  %1305 = vmatprep.subr.bf16.mxu1 %v1362_v20  ;;  %v482_v9 = vld [vmem:[#allocation2 + $0x68] sm:$0xff] }
  0x3f   : > { %1277 = vmatpush3.bf16.msra.mxu0 %v1362_v20  ;;  %1313 = vmatpush3.bf16.msra.mxu1 %v1362_v20 }
  0x40   : > { %1278 = vmatprep.subr.bf16.mxu0 %v1363_v23  ;;  %1306 = vmatprep.subr.bf16.mxu1 %v1363_v23 }
  0x43   : > { %1279 = vmatpush3.bf16.msra.mxu0 %v1363_v23  ;;  %1314 = vmatpush3.bf16.msra.mxu1 %v1363_v23 }
  0x44   : > { %1280 = vmatprep.subr.bf16.mxu0 %v1364_v24  ;;  %1307 = vmatprep.subr.bf16.mxu1 %v1364_v24 }
  0x47   : > { %1281 = vmatpush3.bf16.msra.mxu0 %v1364_v24  ;;  %1315 = vmatpush3.bf16.msra.mxu1 %v1364_v24 }
  0x48   : > { %1282 = vmatprep.subr.bf16.mxu0 %v1365_v25  ;;  %1308 = vmatprep.subr.bf16.mxu1 %v1365_v25 }
  0x4b   : > { %1283 = vmatpush3.bf16.msra.mxu0 %v1365_v25  ;;  %1316 = vmatpush3.bf16.msra.mxu1 %v1365_v25 }
  0x4c   : > { %1284 = vmatprep.subr.bf16.mxu0 %v1366_v26  ;;  %1309 = vmatprep.subr.bf16.mxu1 %v1366_v26 }
  0x4f   : > { %1285 = vmatpush3.bf16.msra.mxu0 %v1366_v26  ;;  %1317 = vmatpush3.bf16.msra.mxu1 %v1366_v26 }
  0x52   : > { %1287 = vmatmul.mubr.bf16.vlgmr.msra.gmra.mxu0 %v1369_v27  ;;  %1295 = vmatmul.mubr.bf16.vlgmr.msra.gmra.mxu1 %v1370_v28 }
  0x53   : > { %1290 = vmatprep.mubr.bf16.mxu0 %v1371_v29  ;;  %1298 = vmatprep.mubr.bf16.mxu1 %v1372_v30 }
  0x5a   : > { %1291 = vmatmul.mubr.bf16.gmra.mxu0 %v1373_v31  ;;  %1299 = vmatmul.mubr.bf16.gmra.mxu1 %v1374_v32 }
 0x112   : > { %v1288_v35 = vpop.f32.mrf.mxu0  ;;  %v1296_v36 = vpop.f32.mrf.mxu1 }
 0x113   : > { %v720_v39 = vadd.f32 %v1288_v35, %v479_v33  ;;  %v728_v40 = vadd.f32 %v1296_v36, %v487_v34 }
 0x114   : > { %v655_v41 = vpop.f32.mrf.mxu0  ;;  %v687_v42 = vpop.f32.mrf.mxu1 }
 0x115   : > { %736 = vst [vmem:[#allocation2 + $0x58] sm:$0xff] %v720_v39  ;;  %744 = vst [vmem:[#allocation2 + $0x10] sm:$0xff] %v728_v40  ;;  %v718_v45 = vadd.f32 %v655_v41, %v477_v37  ;;  %v726_v46 = vadd.f32 %v687_v42, %v485_v38 }
 0x116   : > { %v1289_v47 = vpop.f32.mrf.mxu0  ;;  %v1297_v48 = vpop.f32.mrf.mxu1 }
 0x117   : > { %734 = vst [vmem:[#allocation2 + $0x30] sm:$0xff] %v718_v45  ;;  %742 = vst [vmem:[#allocation2 + $0x40] sm:$0xff] %v726_v46  ;;  %v721_v51 = vadd.f32 %v1289_v47, %v480_v43  ;;  %v729_v52 = vadd.f32 %v1297_v48, %v488_v44 }
 0x118   : > { %v658_v53 = vpop.f32.mrf.mxu0  ;;  %v690_v54 = vpop.f32.mrf.mxu1 }
 0x119   : > { %737 = vst [vmem:[#allocation2 + $0x18] sm:$0xff] %v721_v51  ;;  %745 = vst [vmem:[#allocation2 + $0x38] sm:$0xff] %v729_v52  ;;  %v719_v57 = vadd.f32 %v658_v53, %v478_v49  ;;  %v727_v58 = vadd.f32 %v690_v54, %v486_v50 }
 0x11a   : > { %v1292_v59 = vpop.f32.mrf.mxu0  ;;  %v1300_v60 = vpop.f32.mrf.mxu1 }
 0x11b   : > { %735 = vst [vmem:[#allocation2] sm:$0xff] %v719_v57  ;;  %743 = vst [vmem:[#allocation2 + $0x20] sm:$0xff] %v727_v58  ;;  %v724_v63 = vadd.f32 %v1292_v59, %v483_v55  ;;  %v732_v0 = vadd.f32 %v1300_v60, %v491_v56 }
 0x11c   : > { %v671_v1 = vpop.f32.mrf.mxu0  ;;  %v703_v2 = vpop.f32.mrf.mxu1 }
 0x11d   : > { %740 = vst [vmem:[#allocation2 + $0x8] sm:$0xff] %v724_v63  ;;  %748 = vst [vmem:[#allocation2 + $0x78] sm:$0xff] %v732_v0  ;;  %v722_v5 = vadd.f32 %v671_v1, %v481_v61  ;;  %v730_v6 = vadd.f32 %v703_v2, %v489_v62 }
 0x11e   : > { %v1293_v7 = vpop.f32.mrf.mxu0  ;;  %v1301_v8 = vpop.f32.mrf.mxu1 }
 0x11f   : > { %738 = vst [vmem:[#allocation2 + $0x50] sm:$0xff] %v722_v5  ;;  %746 = vst [vmem:[#allocation2 + $0x60] sm:$0xff] %v730_v6  ;;  %v725_v11 = vadd.f32 %v1293_v7, %v484_v3  ;;  %v733_v12 = vadd.f32 %v1301_v8, %v492_v4  ;;  %753 = sbr.rel (%p1129_p11) target bundleno = 322 (0x142), region = 89 }
 0x120   : > { %v674_v13 = vpop.f32.mrf.mxu0  ;;  %v706_v14 = vpop.f32.mrf.mxu1 }
 0x121   : > { %741 = vst [vmem:[#allocation2 + $0x48] sm:$0xff] %v725_v11  ;;  %749 = vst [vmem:[#allocation2 + $0x28] sm:$0xff] %v733_v12  ;;  %v723_v15 = vadd.f32 %v674_v13, %v482_v9  ;;  %v731_v16 = vadd.f32 %v706_v14, %v490_v10 }
 0x123   : > { %739 = vst [vmem:[#allocation2 + $0x68] sm:$0xff] %v723_v15  ;;  %747 = vst [vmem:[#allocation2 + $0x70] sm:$0xff] %v731_v16 }
 0x124   : > { %v754_v17 = vld [vmem:[#allocation2 + $0x30] sm:$0xff]  ;;  %v755_v18 = vld [vmem:[#allocation2] sm:$0xff]  ;;  %v756_v24 = vld [vmem:[#allocation2 + $0x58] sm:$0xff] }
 0x125   : > { %v1539_v19 = vld [vmem:[%s1643_s2] ss:$0 sm:$0xff]  ;;  %v757_v27 = vld [vmem:[#allocation2 + $0x18] sm:$0xff]  ;;  %v1240_v29 = vld [vmem:[%s1645_s4 + $0x8] sm:$0xff]  }
 0x126   : > { %v777_v20 = vmul.f32 %v1539_v19, %v754_v17  ;;  %v778_v21 = vmul.f32 %v1539_v19, %v755_v18  ;;  %v1546_v22 = vld [vmem:[%s1644_s3] ss:$0 sm:$0xff]  ;;  %v779_v28 = vmul.f32 %v1539_v19, %v756_v24  ;;  %v758_v30 = vld [vmem:[#allocation2 + $0x50] sm:$0xff]  ;;  %v780_v33 = vmul.f32 %v1539_v19, %v757_v27  ;;  %v760_v41 = vld [vmem:[#allocation2 + $0x8] sm:$0xff] }
 0x127   : > { %v1169_v23 = vld [vmem:[%s1645_s4] sm:$0xff]   ;;  %v1174_v34 = vunpack.c.l.bf16 %v1240_v29  ;;  %v1241_v36 = vld [vmem:[%s1645_s4 + $0x10] sm:$0xff]   ;;  %v1175_v38 = vunpack.c.h.bf16 %v1240_v29  ;;  %v781_v39 = vmul.f32 %v1539_v19, %v758_v30  ;;  %v1242_v51 = vld [vmem:[%s1645_s4 + $0x18] sm:$0xff]   ;;  %v783_v55 = vmul.f32 %v1539_v19, %v760_v41 }
 0x128   : > { %v1170_v25 = vunpack.c.l.bf16 %v1169_v23  ;;  %v1171_v26 = vunpack.c.h.bf16 %v1169_v23  ;;  %v800_v31 = vadd.f32 %v1546_v22, %v777_v20  ;;  %v801_v32 = vadd.f32 %v1546_v22, %v778_v21  ;;  %v761_v46 = vld [vmem:[#allocation2 + $0x48] sm:$0xff]  ;;  %v762_v60 = vld [vmem:[#allocation2 + $0x40] sm:$0xff]  ;;  %v764_v7 = vld [vmem:[#allocation2 + $0x10] sm:$0xff] }
 0x129   : > { %v802_v37 = vadd.f32 %v1546_v22, %v779_v28  ;;  %v803_v44 = vadd.f32 %v1546_v22, %v780_v33  ;;  %v1178_v45 = vunpack.c.l.bf16 %v1241_v36  ;;  %v804_v48 = vadd.f32 %v1546_v22, %v781_v39  ;;  %v763_v61 = vld [vmem:[#allocation2 + $0x20] sm:$0xff]  ;;  %v765_v12 = vld [vmem:[#allocation2 + $0x38] sm:$0xff]  ;;  %v1244_v13 = vld [vmem:[%s1645_s4 + $0x28] sm:$0xff]  }
 0x12a   : > { %v759_v35 = vld [vmem:[#allocation2 + $0x68] sm:$0xff]  ;;  %v848_v42 = vadd.f32 %v1170_v25, %v800_v31  ;;  %v849_v43 = vadd.f32 %v1171_v26, %v801_v32  ;;  %v1179_v50 = vunpack.c.h.bf16 %v1241_v36  ;;  %v784_v59 = vmul.f32 %v1539_v19, %v761_v46  ;;  %v1243_v2 = vld [vmem:[%s1645_s4 + $0x20] sm:$0xff]   ;;  %v767_v25 = vld [vmem:[#allocation2 + $0x70] sm:$0xff] }
 0x12b   : > { %v782_v40 = vmul.f32 %v1539_v19, %v759_v35  ;;  %v850_v47 = vadd.f32 %v1174_v34, %v802_v37  ;;  %v851_v54 = vadd.f32 %v1175_v38, %v803_v44  ;;  %v852_v57 = vadd.f32 %v1178_v45, %v804_v48  ;;  %v766_v18 = vld [vmem:[#allocation2 + $0x60] sm:$0xff]  ;;  %v1245_v26 = vld [vmem:[%s1645_s4 + $0x30] sm:$0xff]   ;;  %v768_v35 = vld [vmem:[#allocation2 + $0x78] sm:$0xff] }
 0x12c   : > { %v864_v52 = vmax.f32 %v848_v42, 0.0  ;;  %v865_v53 = vmax.f32 %v849_v43, 0.0  ;;  %v806_v0 = vadd.f32 %v1546_v22, %v783_v55  ;;  %v1182_v1 = vunpack.c.l.bf16 %v1242_v51  ;;  %v1246_v45 = vld [vmem:[%s1645_s4 + $0x38] sm:$0xff]  }
 0x12d   : > { %v805_v49 = vadd.f32 %v1546_v22, %v782_v40  ;;  %v866_v56 = vmax.f32 %v850_v47, 0.0  ;;  %v867_v63 = vmax.f32 %v851_v54, 0.0  ;;  %v868_v3 = vmax.f32 %v852_v57, 0.0  ;;  %v769_v40 = vld [vmem:[#allocation2 + $0x28] sm:$0xff] }
 0x12e   : > { %v1203_v62 = vpack.c.bf16 %v865_v53, %v864_v52  ;;  %v807_v5 = vadd.f32 %v1546_v22, %v784_v59  ;;  %v1183_v6 = vunpack.c.h.bf16 %v1242_v51  ;;  %v854_v9 = vadd.f32 %v1182_v1, %v806_v0 }
 0x12f   : > { %v853_v58 = vadd.f32 %v1179_v50, %v805_v49  ;;  %v1208_v8 = vpack.c.bf16 %v867_v63, %v866_v56  ;;  %v785_v10 = vmul.f32 %v1539_v19, %v762_v60  ;;  %v786_v11 = vmul.f32 %v1539_v19, %v763_v61 }
 0x130   : > { %1204 = vst [vmem:[%s1646_s5] sm:$0xff] %v1203_v62   ;;  %v855_v15 = vadd.f32 %v1183_v6, %v807_v5  ;;  %v1186_v16 = vunpack.c.l.bf16 %v1243_v2  ;;  %v1187_v17 = vunpack.c.h.bf16 %v1243_v2  ;;  %v870_v20 = vmax.f32 %v854_v9, 0.0 }
 0x131   : > { %v869_v4 = vmax.f32 %v853_v58, 0.0  ;;  %1247 = vst [vmem:[%s1646_s5 + $0x8] sm:$0xff] %v1208_v8   ;;  %v808_v21 = vadd.f32 %v1546_v22, %v785_v10  ;;  %v809_v23 = vadd.f32 %v1546_v22, %v786_v11  ;;  %v787_v24 = vmul.f32 %v1539_v19, %v764_v7 }
 0x132   : > { %v871_v27 = vmax.f32 %v855_v15, 0.0  ;;  %v788_v28 = vmul.f32 %v1539_v19, %v765_v12  ;;  %v1190_v29 = vunpack.c.l.bf16 %v1244_v13  ;;  %v1191_v30 = vunpack.c.h.bf16 %v1244_v13 }
 0x133   : > { %v1213_v14 = vpack.c.bf16 %v869_v4, %v868_v3  ;;  %v856_v31 = vadd.f32 %v1186_v16, %v808_v21  ;;  %v857_v32 = vadd.f32 %v1187_v17, %v809_v23  ;;  %v810_v33 = vadd.f32 %v1546_v22, %v787_v24 }
 0x134   : > { %v789_v34 = vmul.f32 %v1539_v19, %v766_v18  ;;  %v1218_v36 = vpack.c.bf16 %v871_v27, %v870_v20  ;;  %v811_v37 = vadd.f32 %v1546_v22, %v788_v28  ;;  %v790_v38 = vmul.f32 %v1539_v19, %v767_v25 }
 0x135   : > { %1248 = vst [vmem:[%s1646_s5 + $0x10] sm:$0xff] %v1213_v14   ;;  %v1194_v39 = vunpack.c.l.bf16 %v1245_v26  ;;  %v872_v41 = vmax.f32 %v856_v31, 0.0  ;;  %v873_v42 = vmax.f32 %v857_v32, 0.0  ;;  %v858_v43 = vadd.f32 %v1190_v29, %v810_v33 }
 0x136   : > { %v812_v44 = vadd.f32 %v1546_v22, %v789_v34  ;;  %1249 = vst [vmem:[%s1646_s5 + $0x18] sm:$0xff] %v1218_v36   ;;  %v859_v46 = vadd.f32 %v1191_v30, %v811_v37  ;;  %v813_v47 = vadd.f32 %v1546_v22, %v790_v38  ;;  %v1195_v48 = vunpack.c.h.bf16 %v1245_v26 }
 0x137   : > { %v791_v49 = vmul.f32 %v1539_v19, %v768_v35  ;;  %v1223_v50 = vpack.c.bf16 %v873_v42, %v872_v41  ;;  %v874_v51 = vmax.f32 %v858_v43, 0.0  ;;  %v792_v53 = vmul.f32 %v1539_v19, %v769_v40 }
 0x138   : > { %v860_v52 = vadd.f32 %v1194_v39, %v812_v44  ;;  %v875_v54 = vmax.f32 %v859_v46, 0.0  ;;  %v861_v55 = vadd.f32 %v1195_v48, %v813_v47  ;;  %v1198_v57 = vunpack.c.l.bf16 %v1246_v45 }
 0x139   : > { %v814_v56 = vadd.f32 %v1546_v22, %v791_v49  ;;  %1250 = vst [vmem:[%s1646_s5 + $0x20] sm:$0xff] %v1223_v50   ;;  %v815_v59 = vadd.f32 %v1546_v22, %v792_v53  ;;  %v1199_v60 = vunpack.c.h.bf16 %v1246_v45 }
 0x13a   : > { %v876_v58 = vmax.f32 %v860_v52, 0.0  ;;  %v1228_v61 = vpack.c.bf16 %v875_v54, %v874_v51  ;;  %v877_v62 = vmax.f32 %v861_v55, 0.0 }
 0x13b   : > { %v862_v63 = vadd.f32 %v1198_v57, %v814_v56  ;;  %v863_v0 = vadd.f32 %v1199_v60, %v815_v59 }
 0x13c   : > { %1251 = vst [vmem:[%s1646_s5 + $0x28] sm:$0xff] %v1228_v61   ;;  %v1233_v19 = vpack.c.bf16 %v877_v62, %v876_v58 }
 0x13d   : > { %v878_v1 = vmax.f32 %v862_v63, 0.0  ;;  %v879_v2 = vmax.f32 %v863_v0, 0.0 }
 0x13e   : > { %1252 = vst [vmem:[%s1646_s5 + $0x30] sm:$0xff] %v1233_v19  }
 0x13f   : > { %v1238_v3 = vpack.c.bf16 %v879_v2, %v878_v1 }
 0x141   : > { %1253 = vst [vmem:[%s1646_s5 + $0x38] sm:$0xff] %v1238_v3  }
 0x142 PF: > { %s15_s22 = sadd.s32 1, %s1413_s22   ;;  %s1647_s18 = smov %s1401_s19 }
 0x143   : > { %p12_p12 = scmp.ge.s32.totalorder %s15_s22, 11   ;;  %s1648_s19 = smov %s1481_s26 }
 0x144   : > { %s1649_s20 = smov %s1409_s21  ;;  %s1650_s21 = smov %s1652_s23 }
 0x145   :  { %14 = sbr.rel (!%p12_p12) target bundleno = 3 (0x3), region = 136 }

// kernel: _lambda_.79
= control target key start
LH: loop header
LB: loop body
LE: loop exit
PB: predicated region body
PF: predicated region fallthrough
CT: control target
= control target key end

     0   :  { %s865_s15 = smov 0   ;;  %s867_s16 = smov 0   ;;  %s961_s0 = inlined_call_operand.vmem [shape: bf16[32,1152], index: 0, kind: input, shape index: {}]   ;;  %s962_s1 = inlined_call_operand.vmem [shape: bf16[1152,128], index: 1, kind: input, shape index: {}]   ;;  %s963_s2 = inlined_call_operand.vmem [shape: f32[1,128], index: 2, kind: input, shape index: {}]   ;;  %s964_s3 = inlined_call_operand.vmem [shape: f32[1,128], index: 3, kind: input, shape index: {}]   ;;  %s965_s4 = inlined_call_operand.vmem [shape: bf16[32,128], index: 4, kind: output, shape index: {}]  }
   0x1   :  { %s869_s17 = smov 0   ;;  %s871_s18 = smov 0  }
   0x2   :  { %s873_s19 = smov 0  }
   0x3 LB: > { %s26_s20 = sadd.s32 1, %s833_s18  ;;  %p49_p1 = scmp.ne.s32.totalorder %s825_s16, %s821_s15  ;;  %s837_s19 = sphi %s873_s19, %s14_s19   ;;  %s833_s18 = sphi %s871_s18, %s969_s18   ;;  %s829_s17 = sphi %s869_s17, %s968_s17   ;;  %s825_s16 = sphi %s867_s16, %s967_s16   ;;  %s821_s15 = sphi %s865_s15, %s966_s15  }
   0x4   : > { %p27_p0 = scmp.ge.s32.totalorder %s26_s20, 9  ;;  %p50_p2 = scmp.eq.s32.totalorder %s837_s19, 0 }
   0x5   : > { %s42_s22 = sadd.s32 1, %s825_s16  ;;  %p674_p5 = scmp.ge.s32.totalorder %s837_s19, 9 }
   0x6   : > { %s971_s20 = smov (%p27_p0, %s26_s20), 0  ;;  %p51_p3 = por %p50_p2, %p49_p1 }
   0x7   : > { %s38_s21 = ssub.s32 %s833_s18, %s971_s20  ;;  %195 = sbr.rel (%p674_p5) target bundleno = 18 (0x12), region = 24 }
   0x8   : > { %p40_p4 = scmp.eq.s32.totalorder %s38_s21, 0 }
   0xa   : > { %s900_s23 = scalar_select %p40_p4, %s825_s16, %s42_s22  }
   0xc   : > { %198 = sbr.rel (!%p51_p3) target bundleno = 18 (0x12), region = 28  ;;  %s200_s24 = sand.u32 (%p51_p3), 1, %s825_s16  }
   0xd   : > { %s676_s25 = sshll.u32 (%p51_p3), %s833_s18, 2  ;;  %s675_s26 = sshll.u32 (%p51_p3), %s200_s24, 4 }
   0xe   : > { %s207_s29 = scalar_lea.vmem (%p51_p3), %s961_s0, %s676_s25  ;;  %s202_s30 = scalar_lea.vmem (%p51_p3), [#allocation3], %s675_s26 }
   0xf   : > { %v224_v0 = vld [vmem:[%s207_s29] sm:$0xf] (%p51_p3)  ;;  %v226_v1 = vld [vmem:[%s207_s29 + $0x24] sm:$0xf] (%p51_p3)  ;;  %v228_v2 = vld [vmem:[%s207_s29 + $0x48] sm:$0xf] (%p51_p3) }
  0x10   : > { %225 = vst [vmem:[%s202_s30] sm:$0xf] (%p51_p3), %v224_v0  ;;  %227 = vst [vmem:[%s202_s30 + $0x4] sm:$0xf] (%p51_p3), %v226_v1  ;;  %v230_v3 = vld [vmem:[%s207_s29 + $0x6c] sm:$0xf] (%p51_p3) }
  0x11   : > { %229 = vst [vmem:[%s202_s30 + $0x8] sm:$0xf] %v228_v2  ;;  %231 = vst [vmem:[%s202_s30 + $0xc] sm:$0xf] %v230_v3 }
  0x12 PF: > { %p677_p6 = scmp.ge.s32.totalorder %s837_s19, 1  ;;  %p274_p7 = scmp.lt.s32.totalorder %s837_s19, 10 }
  0x14   : > { %p275_p8 = pnand %p677_p6, %p274_p7 }
  0x15   : > { %s281_s5 = sand.u32 (!%p275_p8), 1, %s821_s15   ;;  %s679_s6 = sshll.u32 (!%p275_p8), %s829_s17, 4 }
  0x16   : > { %278 = sbr.rel (%p275_p8) target bundleno = 284 (0x11c), region = 73  ;;  %s912_s7 = sshll.u32 (!%p275_p8), %s281_s5, 4 }
  0x17   : > { %p325_p9 = scmp.lt.s32.totalorder (!%p275_p8), %s679_s6, 143  ;;  %s283_s12 = scalar_lea.vmem (!%p275_p8), [#allocation3], %s912_s7 }
  0x18   : > { %p681_p10 = scmp.ne.s32.totalorder (!%p275_p8), %s829_s17, 0 }
  0x1b   : > { %s973_s6 = smov (!%p325_p9, %s679_s6), 143  ;;  %352 = sbr.rel (%p681_p10) target bundleno = 35 (0x23), region = 81 }
  0x1c   : > { %s680_s8 = sshll.u32 %s973_s6, 2 }
  0x1d   : > { %s917_s11 = scalar_lea.vmem %s962_s1, %s680_s8 }
  0x20   : > { %v839_v4 = vmov 0.0  }
  0x21   : > { %353 = vst [vmem:[#allocation2 + $0x10] sm:$0xff] %v839_v4  ;;  %354 = vst [vmem:[#allocation2] sm:$0xff] %v839_v4 }
  0x22   : > { %355 = vst [vmem:[#allocation2 + $0x18] sm:$0xff] %v839_v4  ;;  %356 = vst [vmem:[#allocation2 + $0x8] sm:$0xff] %v839_v4 }
  0x23 PF: > { %v789_v5 = vld [vmem:[%s917_s11 + $0x38] sm:$0xff]   ;;  %v790_v6 = vld [vmem:[%s917_s11 + $0x30] sm:$0xff]   ;;  %v791_v7 = vld [vmem:[%s917_s11 + $0x28] sm:$0xff]   ;;  %p692_p11 = scmp.ne.s32.totalorder %s829_s17, 8 }
  0x24   : > { %728 = vmatprep.subr.bf16.mxu0 %v789_v5  ;;  %v792_v8 = vld [vmem:[%s917_s11 + $0x20] sm:$0xff]   ;;  %v793_v10 = vld [vmem:[%s917_s11 + $0x18] sm:$0xff]   ;;  %v794_v11 = vld [vmem:[%s917_s11 + $0x10] sm:$0xff]  }
  0x25   : > { %729 = vmatpush3.bf16.msra.mxu0 %v789_v5  ;;  %v797_v9 = vld [vmem:[%s283_s12] sm:$0xff]   ;;  %v795_v12 = vld [vmem:[%s917_s11 + $0x8] sm:$0xff]  }
  0x26   : > { %730 = vmatprep.subr.bf16.mxu0 %v790_v6  ;;  %744 = vmatprep.mubr.bf16.mxu0 %v797_v9  ;;  %v796_v13 = vld [vmem:[%s917_s11] sm:$0xff]   ;;  %v798_v14 = vld [vmem:[%s283_s12 + $0x8] sm:$0xff]  }
  0x28   : > { %v357_v17 = vld [vmem:[#allocation2 + $0x10] sm:$0xff]  ;;  %v358_v23 = vld [vmem:[#allocation2] sm:$0xff] }
  0x29   : > { %731 = vmatpush3.bf16.msra.mxu0 %v790_v6  ;;  %v359_v15 = vld [vmem:[#allocation2 + $0x18] sm:$0xff]  ;;  %v360_v20 = vld [vmem:[#allocation2 + $0x8] sm:$0xff] }
  0x2a   : > { %732 = vmatprep.subr.bf16.mxu0 %v791_v7 }
  0x2d   : > { %733 = vmatpush3.bf16.msra.mxu0 %v791_v7 }
  0x2e   : > { %734 = vmatprep.subr.bf16.mxu0 %v792_v8 }
  0x31   : > { %735 = vmatpush3.bf16.msra.mxu0 %v792_v8 }
  0x32   : > { %736 = vmatprep.subr.bf16.mxu0 %v793_v10 }
  0x35   : > { %737 = vmatpush3.bf16.msra.mxu0 %v793_v10 }
  0x36   : > { %738 = vmatprep.subr.bf16.mxu0 %v794_v11 }
  0x39   : > { %739 = vmatpush3.bf16.msra.mxu0 %v794_v11 }
  0x3a   : > { %740 = vmatprep.subr.bf16.mxu0 %v795_v12 }
  0x3d   : > { %741 = vmatpush3.bf16.msra.mxu0 %v795_v12 }
  0x3e   : > { %742 = vmatprep.subr.bf16.mxu0 %v796_v13 }
  0x41   : > { %743 = vmatpush3.bf16.msra.mxu0 %v796_v13 }
  0x44   : > { %745 = vmatmul.mubr.bf16.vlgmr.msra.gmra.mxu0 %v798_v14 }
 0x104   : > { %v746_v16 = vpop.f32.mrf.mxu0 }
 0x105   : > { %v492_v18 = vadd.f32 %v746_v16, %v359_v15 }
 0x106   : > { %v475_v19 = vpop.f32.mrf.mxu0 }
 0x107   : > { %496 = vst [vmem:[#allocation2 + $0x18] sm:$0xff] %v492_v18  ;;  %v490_v21 = vadd.f32 %v475_v19, %v357_v17 }
 0x108   : > { %v747_v22 = vpop.f32.mrf.mxu0 }
 0x109   : > { %494 = vst [vmem:[#allocation2 + $0x10] sm:$0xff] %v490_v21  ;;  %v493_v24 = vadd.f32 %v747_v22, %v360_v20  ;;  %501 = sbr.rel (%p692_p11) target bundleno = 284 (0x11c), region = 85 }
 0x10a   : > { %v478_v25 = vpop.f32.mrf.mxu0 }
 0x10b   : > { %497 = vst [vmem:[#allocation2 + $0x8] sm:$0xff] %v493_v24  ;;  %v491_v26 = vadd.f32 %v478_v25, %v358_v23 }
 0x10d   : > { %495 = vst [vmem:[#allocation2] sm:$0xff] %v491_v26 }
 0x10e   : > { %v693_v29 = vld [vmem:[%s963_s2] ss:$0 sm:$0xff]  ;;  %v504_v33 = vld [vmem:[#allocation2 + $0x18] sm:$0xff] }
 0x10f   : > { %v694_v32 = vld [vmem:[%s964_s3] ss:$0 sm:$0xff]  ;;  %v515_v35 = vmul.f32 %v693_v29, %v504_v33 }
 0x110   : > { %v502_v27 = vld [vmem:[#allocation2 + $0x10] sm:$0xff] }
 0x111   : > { %v513_v30 = vmul.f32 %v693_v29, %v502_v27  ;;  %v526_v39 = vadd.f32 %v694_v32, %v515_v35 }
 0x112   : > { %v505_v34 = vld [vmem:[#allocation2 + $0x8] sm:$0xff] }
 0x113   : > { %v516_v36 = vmul.f32 %v693_v29, %v505_v34  ;;  %v524_v37 = vadd.f32 %v694_v32, %v513_v30 }
 0x114   : > { %v503_v28 = vld [vmem:[#allocation2] sm:$0xff] }
 0x115   : > { %v514_v31 = vmul.f32 %v693_v29, %v503_v28  ;;  %v527_v40 = vadd.f32 %v694_v32, %v516_v36 }
 0x117   : > { %v525_v38 = vadd.f32 %v694_v32, %v514_v31  ;;  %v715_v42 = vpack.c.bf16 %v527_v40, %v526_v39 }
 0x119   : > { %v710_v41 = vpack.c.bf16 %v525_v38, %v524_v37  ;;  %717 = vst [vmem:[%s965_s4 + $0x8] sm:$0xff] %v715_v42  }
 0x11b   : > { %711 = vst [vmem:[%s965_s4] sm:$0xff] %v710_v41  }
 0x11c PF: > { %s14_s19 = sadd.s32 1, %s837_s19   ;;  %s966_s15 = smov %s825_s16 }
 0x11d   : > { %p11_p12 = scmp.ge.s32.totalorder %s14_s19, 11   ;;  %s967_s16 = smov %s900_s23 }
 0x11e   : > { %s968_s17 = smov %s833_s18  ;;  %s969_s18 = smov %s971_s20 }
 0x11f   :  { %13 = sbr.rel (!%p11_p12) target bundleno = 3 (0x3), region = 129 }

// kernel: _lambda_.72
= control target key start
LH: loop header
LB: loop body
LE: loop exit
PB: predicated region body
PF: predicated region fallthrough
CT: control target
= control target key end

     0   :  { %s974_s15 = smov 0   ;;  %s976_s16 = smov 0   ;;  %s1077_s0 = inlined_call_operand.vmem [shape: bf16[32,2304], index: 0, kind: input, shape index: {}]   ;;  %s1078_s1 = inlined_call_operand.vmem [shape: bf16[2304,128], index: 1, kind: input, shape index: {}]   ;;  %s1079_s2 = inlined_call_operand.vmem [shape: f32[1,128], index: 2, kind: input, shape index: {}]   ;;  %s1080_s3 = inlined_call_operand.vmem [shape: f32[1,128], index: 3, kind: input, shape index: {}]   ;;  %s1081_s4 = inlined_call_operand.vmem [shape: bf16[32,128], index: 4, kind: output, shape index: {}]  }
   0x1   :  { %s978_s17 = smov 0   ;;  %s980_s18 = smov 0  }
   0x2   :  { %s982_s19 = smov 0  }
   0x3 LB: > { %s26_s20 = sadd.s32 1, %s942_s18  ;;  %p49_p1 = scmp.ne.s32.totalorder %s934_s16, %s930_s15  ;;  %s946_s19 = sphi %s982_s19, %s14_s19   ;;  %s942_s18 = sphi %s980_s18, %s1085_s18   ;;  %s938_s17 = sphi %s978_s17, %s1084_s17   ;;  %s934_s16 = sphi %s976_s16, %s1083_s16   ;;  %s930_s15 = sphi %s974_s15, %s1082_s15  }
   0x4   : > { %p27_p0 = scmp.ge.s32.totalorder %s26_s20, 9  ;;  %p50_p2 = scmp.eq.s32.totalorder %s946_s19, 0 }
   0x5   : > { %s42_s22 = sadd.s32 1, %s934_s16  ;;  %p745_p5 = scmp.ge.s32.totalorder %s946_s19, 9 }
   0x6   : > { %s1087_s20 = smov (%p27_p0, %s26_s20), 0  ;;  %p51_p3 = por %p50_p2, %p49_p1 }
   0x7   : > { %s38_s21 = ssub.s32 %s942_s18, %s1087_s20  ;;  %195 = sbr.rel (%p745_p5) target bundleno = 18 (0x12), region = 24 }
   0x8   : > { %p40_p4 = scmp.eq.s32.totalorder %s38_s21, 0 }
   0xa   : > { %s1009_s23 = scalar_select %p40_p4, %s934_s16, %s42_s22  }
   0xc   : > { %198 = sbr.rel (!%p51_p3) target bundleno = 18 (0x12), region = 28  ;;  %s200_s24 = sand.u32 (%p51_p3), 1, %s934_s16  }
   0xd   : > { %s785_s25 = sshll.u32 (%p51_p3), %s942_s18, 3  ;;  %s746_s26 = sshll.u32 (%p51_p3), %s200_s24, 5 }
   0xe   : > { %s208_s29 = scalar_lea.vmem (%p51_p3), %s1077_s0, %s785_s25  ;;  %s202_s30 = scalar_lea.vmem (%p51_p3), [#allocation3], %s746_s26 }
   0xf   : > { %v243_v0 = vld [vmem:[%s208_s29] sm:$0xff] (%p51_p3)  ;;  %v245_v1 = vld [vmem:[%s208_s29 + $0x48] sm:$0xff] (%p51_p3)  ;;  %v247_v2 = vld [vmem:[%s208_s29 + $0x90] sm:$0xff] (%p51_p3) }
  0x10   : > { %244 = vst [vmem:[%s202_s30] sm:$0xff] (%p51_p3), %v243_v0  ;;  %246 = vst [vmem:[%s202_s30 + $0x8] sm:$0xff] (%p51_p3), %v245_v1  ;;  %v249_v3 = vld [vmem:[%s208_s29 + $0xd8] sm:$0xff] (%p51_p3) }
  0x11   : > { %248 = vst [vmem:[%s202_s30 + $0x10] sm:$0xff] %v247_v2  ;;  %250 = vst [vmem:[%s202_s30 + $0x18] sm:$0xff] %v249_v3 }
  0x12 PF: > { %p749_p6 = scmp.ge.s32.totalorder %s946_s19, 1  ;;  %p267_p7 = scmp.lt.s32.totalorder %s946_s19, 10 }
  0x14   : > { %p268_p8 = pnand %p749_p6, %p267_p7 }
  0x15   : > { %s274_s5 = sand.u32 (!%p268_p8), 1, %s930_s15   ;;  %s751_s6 = sshll.u32 (!%p268_p8), %s938_s17, 5 }
  0x16   : > { %271 = sbr.rel (%p268_p8) target bundleno = 288 (0x120), region = 70  ;;  %s750_s7 = sshll.u32 (!%p268_p8), %s274_s5, 5 }
  0x17   : > { %p319_p9 = scmp.lt.s32.totalorder (!%p268_p8), %s751_s6, 287  ;;  %s1026_s12 = scalar_lea.vmem (!%p268_p8), [#allocation3], %s750_s7 }
  0x18   : > { %p753_p10 = scmp.ne.s32.totalorder (!%p268_p8), %s938_s17, 0 }
  0x1b   : > { %s1089_s6 = smov (!%p319_p9, %s751_s6), 287  ;;  %346 = sbr.rel (%p753_p10) target bundleno = 35 (0x23), region = 78 }
  0x1c   : > { %s752_s8 = sshll.u32 %s1089_s6, 2 }
  0x1d   : > { %s1024_s11 = scalar_lea.vmem %s1078_s1, %s752_s8 }
  0x20   : > { %v948_v4 = vmov 0.0  }
  0x21   : > { %347 = vst [vmem:[#allocation2 + $0x10] sm:$0xff] %v948_v4  ;;  %348 = vst [vmem:[#allocation2] sm:$0xff] %v948_v4 }
  0x22   : > { %349 = vst [vmem:[#allocation2 + $0x18] sm:$0xff] %v948_v4  ;;  %350 = vst [vmem:[#allocation2 + $0x8] sm:$0xff] %v948_v4 }
  0x23 PF: > { %v886_v5 = vld [vmem:[%s1024_s11 + $0x78] sm:$0xff]   ;;  %v888_v7 = vld [vmem:[%s1024_s11 + $0x70] sm:$0xff]   ;;  %v890_v9 = vld [vmem:[%s1024_s11 + $0x68] sm:$0xff]   ;;  %p774_p11 = scmp.ne.s32.totalorder %s938_s17, 8 }
  0x24   : > { %v887_v6 = vld [vmem:[%s1024_s11 + $0x38] sm:$0xff]   ;;  %801 = vmatprep.subr.bf16.mxu0 %v886_v5  ;;  %829 = vmatprep.subr.bf16.mxu1 %v886_v5  ;;  %v889_v8 = vld [vmem:[%s1024_s11 + $0x30] sm:$0xff]   ;;  %v891_v10 = vld [vmem:[%s1024_s11 + $0x28] sm:$0xff]  }
  0x25   : > { %802 = vmatpush3.bf16.msra.mxu0 %v887_v6  ;;  %837 = vmatpush3.bf16.msra.mxu1 %v887_v6  ;;  %v892_v11 = vld [vmem:[%s1024_s11 + $0x60] sm:$0xff]   ;;  %v894_v13 = vld [vmem:[%s1024_s11 + $0x58] sm:$0xff]   ;;  %v896_v15 = vld [vmem:[%s1024_s11 + $0x50] sm:$0xff]  }
  0x26   : > { %803 = vmatprep.subr.bf16.mxu0 %v888_v7  ;;  %830 = vmatprep.subr.bf16.mxu1 %v888_v7  ;;  %v893_v12 = vld [vmem:[%s1024_s11 + $0x20] sm:$0xff]   ;;  %v895_v14 = vld [vmem:[%s1024_s11 + $0x18] sm:$0xff]   ;;  %v897_v18 = vld [vmem:[%s1024_s11 + $0x10] sm:$0xff]  }
  0x27   : > { %v904_v16 = vld [vmem:[%s1026_s12 + $0x4] ss:$8 sps:$4 sm:$0xff]   ;;  %v907_v17 = vld [vmem:[%s1026_s12 + $0x14] ss:$8 sps:$4 sm:$0xff]   ;;  %v902_v23 = vld [vmem:[%s1026_s12] ss:$8 sps:$4 sm:$0xff]  }
  0x28   : > { %v898_v19 = vld [vmem:[%s1024_s11 + $0x48] sm:$0xff]   ;;  %539 = vmatprep.mubr.bf16.mxu0 %v904_v16  ;;  %547 = vmatprep.mubr.bf16.mxu1 %v907_v17  ;;  %v900_v21 = vld [vmem:[%s1024_s11 + $0x40] sm:$0xff]   ;;  %v905_v24 = vld [vmem:[%s1026_s12 + $0x10] ss:$8 sps:$4 sm:$0xff]  }
  0x29   : > { %804 = vmatpush3.bf16.msra.mxu0 %v889_v8  ;;  %838 = vmatpush3.bf16.msra.mxu1 %v889_v8  ;;  %v899_v20 = vld [vmem:[%s1024_s11 + $0x8] sm:$0xff]   ;;  %v901_v22 = vld [vmem:[%s1024_s11] sm:$0xff]   ;;  %v351_v27 = vld [vmem:[#allocation2 + $0x10] sm:$0xff] }
  0x2a   : > { %805 = vmatprep.subr.bf16.mxu0 %v890_v9  ;;  %831 = vmatprep.subr.bf16.mxu1 %v890_v9  ;;  %v353_v29 = vld [vmem:[#allocation2 + $0x18] sm:$0xff]  ;;  %v352_v37 = vld [vmem:[#allocation2] sm:$0xff]  ;;  %v354_v39 = vld [vmem:[#allocation2 + $0x8] sm:$0xff] }
  0x2d   : > { %806 = vmatpush3.bf16.msra.mxu0 %v891_v10  ;;  %839 = vmatpush3.bf16.msra.mxu1 %v891_v10 }
  0x2e   : > { %807 = vmatprep.subr.bf16.mxu0 %v892_v11  ;;  %832 = vmatprep.subr.bf16.mxu1 %v892_v11 }
  0x31   : > { %808 = vmatpush3.bf16.msra.mxu0 %v893_v12  ;;  %840 = vmatpush3.bf16.msra.mxu1 %v893_v12 }
  0x32   : > { %809 = vmatprep.subr.bf16.mxu0 %v894_v13  ;;  %833 = vmatprep.subr.bf16.mxu1 %v894_v13 }
  0x35   : > { %810 = vmatpush3.bf16.msra.mxu0 %v895_v14  ;;  %841 = vmatpush3.bf16.msra.mxu1 %v895_v14 }
  0x36   : > { %811 = vmatprep.subr.bf16.mxu0 %v896_v15  ;;  %834 = vmatprep.subr.bf16.mxu1 %v896_v15 }
  0x39   : > { %812 = vmatpush3.bf16.msra.mxu0 %v897_v18  ;;  %842 = vmatpush3.bf16.msra.mxu1 %v897_v18 }
  0x3a   : > { %813 = vmatprep.subr.bf16.mxu0 %v898_v19  ;;  %835 = vmatprep.subr.bf16.mxu1 %v898_v19 }
  0x3d   : > { %814 = vmatpush3.bf16.msra.mxu0 %v899_v20  ;;  %843 = vmatpush3.bf16.msra.mxu1 %v899_v20 }
  0x3e   : > { %815 = vmatprep.subr.bf16.mxu0 %v900_v21  ;;  %836 = vmatprep.subr.bf16.mxu1 %v900_v21 }
  0x41   : > { %816 = vmatpush3.bf16.msra.mxu0 %v901_v22  ;;  %844 = vmatpush3.bf16.msra.mxu1 %v901_v22 }
  0x44   : > { %540 = vmatmul.mubr.bf16.vlgmr.msra.gmra.mxu0 %v902_v23  ;;  %548 = vmatmul.mubr.bf16.vlgmr.msra.gmra.mxu1 %v905_v24 }
 0x104   : > { %v817_v25 = vpop.f32.mrf.mxu0  ;;  %v823_v26 = vpop.f32.mrf.mxu1 }
 0x106   : > { %v818_v28 = vpop.f32.mrf.mxu0  ;;  %v824_v30 = vpop.f32.mrf.mxu1 }
 0x107   : > { %v819_v31 = vadd.f32 %v818_v28, %v817_v25  ;;  %v825_v32 = vadd.f32 %v824_v30, %v823_v26 }
 0x108   : > { %v820_v33 = vpop.f32.mrf.mxu0  ;;  %v826_v34 = vpop.f32.mrf.mxu1 }
 0x109   : > { %v556_v35 = vadd.f32 %v819_v31, %v351_v27  ;;  %v558_v36 = vadd.f32 %v825_v32, %v353_v29 }
 0x10a   : > { %v821_v38 = vpop.f32.mrf.mxu0  ;;  %v827_v40 = vpop.f32.mrf.mxu1 }
 0x10b   : > { %560 = vst [vmem:[#allocation2 + $0x10] sm:$0xff] %v556_v35  ;;  %562 = vst [vmem:[#allocation2 + $0x18] sm:$0xff] %v558_v36  ;;  %v822_v41 = vadd.f32 %v821_v38, %v820_v33  ;;  %v828_v42 = vadd.f32 %v827_v40, %v826_v34  ;;  %567 = sbr.rel (%p774_p11) target bundleno = 288 (0x120), region = 82 }
 0x10d   : > { %v557_v43 = vadd.f32 %v822_v41, %v352_v37  ;;  %v559_v44 = vadd.f32 %v828_v42, %v354_v39 }
 0x10f   : > { %561 = vst [vmem:[#allocation2] sm:$0xff] %v557_v43  ;;  %563 = vst [vmem:[#allocation2 + $0x8] sm:$0xff] %v559_v44 }
 0x110   : > { %v775_v47 = vld [vmem:[%s1079_s2] ss:$0 sm:$0xff] }
 0x111   : > { %v776_v50 = vld [vmem:[%s1080_s3] ss:$0 sm:$0xff] }
 0x112   : > { %v568_v45 = vld [vmem:[#allocation2 + $0x10] sm:$0xff]  ;;  %v570_v51 = vld [vmem:[#allocation2 + $0x18] sm:$0xff] }
 0x113   : > { %v579_v48 = vmul.f32 %v775_v47, %v568_v45  ;;  %v581_v53 = vmul.f32 %v775_v47, %v570_v51 }
 0x115   : > { %v590_v55 = vadd.f32 %v776_v50, %v579_v48  ;;  %v592_v57 = vadd.f32 %v776_v50, %v581_v53 }
 0x116   : > { %v569_v46 = vld [vmem:[#allocation2] sm:$0xff]  ;;  %v571_v52 = vld [vmem:[#allocation2 + $0x8] sm:$0xff] }
 0x117   : > { %v580_v49 = vmul.f32 %v775_v47, %v569_v46  ;;  %v582_v54 = vmul.f32 %v775_v47, %v571_v52  ;;  %v594_v59 = vmax.f32 %v590_v55, 0.0  ;;  %v596_v61 = vmax.f32 %v592_v57, 0.0 }
 0x119   : > { %v591_v56 = vadd.f32 %v776_v50, %v580_v49  ;;  %v593_v58 = vadd.f32 %v776_v50, %v582_v54 }
 0x11b   : > { %v595_v60 = vmax.f32 %v591_v56, 0.0  ;;  %v597_v62 = vmax.f32 %v593_v58, 0.0 }
 0x11d   : > { %v793_v63 = vpack.c.bf16 %v595_v60, %v594_v59  ;;  %v798_v0 = vpack.c.bf16 %v597_v62, %v596_v61 }
 0x11f   : > { %794 = vst [vmem:[%s1081_s4] sm:$0xff] %v793_v63   ;;  %800 = vst [vmem:[%s1081_s4 + $0x8] sm:$0xff] %v798_v0  }
 0x120 PF: > { %s14_s19 = sadd.s32 1, %s946_s19   ;;  %s1082_s15 = smov %s934_s16 }
 0x121   : > { %p11_p12 = scmp.ge.s32.totalorder %s14_s19, 11   ;;  %s1083_s16 = smov %s1009_s23 }
 0x122   : > { %s1084_s17 = smov %s942_s18  ;;  %s1085_s18 = smov %s1087_s20 }
 0x123   :  { %13 = sbr.rel (!%p11_p12) target bundleno = 3 (0x3), region = 126 }

// kernel: _lambda_.75
= control target key start
LH: loop header
LB: loop body
LE: loop exit
PB: predicated region body
PF: predicated region fallthrough
CT: control target
= control target key end

     0   :  { %s869_s15 = smov 0   ;;  %s871_s16 = smov 0   ;;  %s965_s0 = inlined_call_operand.vmem [shape: bf16[32,1152], index: 0, kind: input, shape index: {}]   ;;  %s966_s1 = inlined_call_operand.vmem [shape: bf16[1152,128], index: 1, kind: input, shape index: {}]   ;;  %s967_s2 = inlined_call_operand.vmem [shape: f32[1,128], index: 2, kind: input, shape index: {}]   ;;  %s968_s3 = inlined_call_operand.vmem [shape: f32[1,128], index: 3, kind: input, shape index: {}]   ;;  %s969_s4 = inlined_call_operand.vmem [shape: bf16[32,128], index: 4, kind: output, shape index: {}]  }
   0x1   :  { %s873_s17 = smov 0   ;;  %s875_s18 = smov 0  }
   0x2   :  { %s877_s19 = smov 0  }
   0x3 LB: > { %s26_s20 = sadd.s32 1, %s837_s18  ;;  %p49_p1 = scmp.ne.s32.totalorder %s829_s16, %s825_s15  ;;  %s841_s19 = sphi %s877_s19, %s14_s19   ;;  %s837_s18 = sphi %s875_s18, %s973_s18   ;;  %s833_s17 = sphi %s873_s17, %s972_s17   ;;  %s829_s16 = sphi %s871_s16, %s971_s16   ;;  %s825_s15 = sphi %s869_s15, %s970_s15  }
   0x4   : > { %p27_p0 = scmp.ge.s32.totalorder %s26_s20, 9  ;;  %p50_p2 = scmp.eq.s32.totalorder %s841_s19, 0 }
   0x5   : > { %s42_s22 = sadd.s32 1, %s829_s16  ;;  %p678_p5 = scmp.ge.s32.totalorder %s841_s19, 9 }
   0x6   : > { %s975_s20 = smov (%p27_p0, %s26_s20), 0  ;;  %p51_p3 = por %p50_p2, %p49_p1 }
   0x7   : > { %s38_s21 = ssub.s32 %s837_s18, %s975_s20  ;;  %195 = sbr.rel (%p678_p5) target bundleno = 18 (0x12), region = 24 }
   0x8   : > { %p40_p4 = scmp.eq.s32.totalorder %s38_s21, 0 }
   0xa   : > { %s904_s23 = scalar_select %p40_p4, %s829_s16, %s42_s22  }
   0xc   : > { %198 = sbr.rel (!%p51_p3) target bundleno = 18 (0x12), region = 28  ;;  %s200_s24 = sand.u32 (%p51_p3), 1, %s829_s16  }
   0xd   : > { %s680_s25 = sshll.u32 (%p51_p3), %s837_s18, 2  ;;  %s679_s26 = sshll.u32 (%p51_p3), %s200_s24, 4 }
   0xe   : > { %s207_s29 = scalar_lea.vmem (%p51_p3), %s965_s0, %s680_s25  ;;  %s202_s30 = scalar_lea.vmem (%p51_p3), [#allocation3], %s679_s26 }
   0xf   : > { %v224_v0 = vld [vmem:[%s207_s29] sm:$0xf] (%p51_p3)  ;;  %v226_v1 = vld [vmem:[%s207_s29 + $0x24] sm:$0xf] (%p51_p3)  ;;  %v228_v2 = vld [vmem:[%s207_s29 + $0x48] sm:$0xf] (%p51_p3) }
  0x10   : > { %225 = vst [vmem:[%s202_s30] sm:$0xf] (%p51_p3), %v224_v0  ;;  %227 = vst [vmem:[%s202_s30 + $0x4] sm:$0xf] (%p51_p3), %v226_v1  ;;  %v230_v3 = vld [vmem:[%s207_s29 + $0x6c] sm:$0xf] (%p51_p3) }
  0x11   : > { %229 = vst [vmem:[%s202_s30 + $0x8] sm:$0xf] %v228_v2  ;;  %231 = vst [vmem:[%s202_s30 + $0xc] sm:$0xf] %v230_v3 }
  0x12 PF: > { %p681_p6 = scmp.ge.s32.totalorder %s841_s19, 1  ;;  %p274_p7 = scmp.lt.s32.totalorder %s841_s19, 10 }
  0x14   : > { %p275_p8 = pnand %p681_p6, %p274_p7 }
  0x15   : > { %s281_s5 = sand.u32 (!%p275_p8), 1, %s825_s15   ;;  %s683_s6 = sshll.u32 (!%p275_p8), %s833_s17, 4 }
  0x16   : > { %278 = sbr.rel (%p275_p8) target bundleno = 286 (0x11e), region = 73  ;;  %s916_s7 = sshll.u32 (!%p275_p8), %s281_s5, 4 }
  0x17   : > { %p325_p9 = scmp.lt.s32.totalorder (!%p275_p8), %s683_s6, 143  ;;  %s283_s12 = scalar_lea.vmem (!%p275_p8), [#allocation3], %s916_s7 }
  0x18   : > { %p685_p10 = scmp.ne.s32.totalorder (!%p275_p8), %s833_s17, 0 }
  0x1b   : > { %s977_s6 = smov (!%p325_p9, %s683_s6), 143  ;;  %352 = sbr.rel (%p685_p10) target bundleno = 35 (0x23), region = 81 }
  0x1c   : > { %s684_s8 = sshll.u32 %s977_s6, 2 }
  0x1d   : > { %s921_s11 = scalar_lea.vmem %s966_s1, %s684_s8 }
  0x20   : > { %v843_v4 = vmov 0.0  }
  0x21   : > { %353 = vst [vmem:[#allocation2 + $0x10] sm:$0xff] %v843_v4  ;;  %354 = vst [vmem:[#allocation2] sm:$0xff] %v843_v4 }
  0x22   : > { %355 = vst [vmem:[#allocation2 + $0x18] sm:$0xff] %v843_v4  ;;  %356 = vst [vmem:[#allocation2 + $0x8] sm:$0xff] %v843_v4 }
  0x23 PF: > { %v793_v5 = vld [vmem:[%s921_s11 + $0x38] sm:$0xff]   ;;  %v794_v6 = vld [vmem:[%s921_s11 + $0x30] sm:$0xff]   ;;  %v795_v7 = vld [vmem:[%s921_s11 + $0x28] sm:$0xff]   ;;  %p696_p11 = scmp.ne.s32.totalorder %s833_s17, 8 }
  0x24   : > { %732 = vmatprep.subr.bf16.mxu0 %v793_v5  ;;  %v796_v8 = vld [vmem:[%s921_s11 + $0x20] sm:$0xff]   ;;  %v797_v10 = vld [vmem:[%s921_s11 + $0x18] sm:$0xff]   ;;  %v798_v11 = vld [vmem:[%s921_s11 + $0x10] sm:$0xff]  }
  0x25   : > { %733 = vmatpush3.bf16.msra.mxu0 %v793_v5  ;;  %v801_v9 = vld [vmem:[%s283_s12] sm:$0xff]   ;;  %v799_v12 = vld [vmem:[%s921_s11 + $0x8] sm:$0xff]  }
  0x26   : > { %734 = vmatprep.subr.bf16.mxu0 %v794_v6  ;;  %748 = vmatprep.mubr.bf16.mxu0 %v801_v9  ;;  %v800_v13 = vld [vmem:[%s921_s11] sm:$0xff]   ;;  %v802_v14 = vld [vmem:[%s283_s12 + $0x8] sm:$0xff]  }
  0x28   : > { %v357_v17 = vld [vmem:[#allocation2 + $0x10] sm:$0xff]  ;;  %v358_v23 = vld [vmem:[#allocation2] sm:$0xff] }
  0x29   : > { %735 = vmatpush3.bf16.msra.mxu0 %v794_v6  ;;  %v359_v15 = vld [vmem:[#allocation2 + $0x18] sm:$0xff]  ;;  %v360_v20 = vld [vmem:[#allocation2 + $0x8] sm:$0xff] }
  0x2a   : > { %736 = vmatprep.subr.bf16.mxu0 %v795_v7 }
  0x2d   : > { %737 = vmatpush3.bf16.msra.mxu0 %v795_v7 }
  0x2e   : > { %738 = vmatprep.subr.bf16.mxu0 %v796_v8 }
  0x31   : > { %739 = vmatpush3.bf16.msra.mxu0 %v796_v8 }
  0x32   : > { %740 = vmatprep.subr.bf16.mxu0 %v797_v10 }
  0x35   : > { %741 = vmatpush3.bf16.msra.mxu0 %v797_v10 }
  0x36   : > { %742 = vmatprep.subr.bf16.mxu0 %v798_v11 }
  0x39   : > { %743 = vmatpush3.bf16.msra.mxu0 %v798_v11 }
  0x3a   : > { %744 = vmatprep.subr.bf16.mxu0 %v799_v12 }
  0x3d   : > { %745 = vmatpush3.bf16.msra.mxu0 %v799_v12 }
  0x3e   : > { %746 = vmatprep.subr.bf16.mxu0 %v800_v13 }
  0x41   : > { %747 = vmatpush3.bf16.msra.mxu0 %v800_v13 }
  0x44   : > { %749 = vmatmul.mubr.bf16.vlgmr.msra.gmra.mxu0 %v802_v14 }
 0x104   : > { %v750_v16 = vpop.f32.mrf.mxu0 }
 0x105   : > { %v492_v18 = vadd.f32 %v750_v16, %v359_v15 }
 0x106   : > { %v475_v19 = vpop.f32.mrf.mxu0 }
 0x107   : > { %496 = vst [vmem:[#allocation2 + $0x18] sm:$0xff] %v492_v18  ;;  %v490_v21 = vadd.f32 %v475_v19, %v357_v17 }
 0x108   : > { %v751_v22 = vpop.f32.mrf.mxu0 }
 0x109   : > { %494 = vst [vmem:[#allocation2 + $0x10] sm:$0xff] %v490_v21  ;;  %v493_v24 = vadd.f32 %v751_v22, %v360_v20  ;;  %501 = sbr.rel (%p696_p11) target bundleno = 286 (0x11e), region = 85 }
 0x10a   : > { %v478_v25 = vpop.f32.mrf.mxu0 }
 0x10b   : > { %497 = vst [vmem:[#allocation2 + $0x8] sm:$0xff] %v493_v24  ;;  %v491_v26 = vadd.f32 %v478_v25, %v358_v23 }
 0x10d   : > { %495 = vst [vmem:[#allocation2] sm:$0xff] %v491_v26 }
 0x10e   : > { %v697_v29 = vld [vmem:[%s967_s2] ss:$0 sm:$0xff]  ;;  %v504_v33 = vld [vmem:[#allocation2 + $0x18] sm:$0xff] }
 0x10f   : > { %v698_v32 = vld [vmem:[%s968_s3] ss:$0 sm:$0xff]  ;;  %v515_v35 = vmul.f32 %v697_v29, %v504_v33 }
 0x110   : > { %v502_v27 = vld [vmem:[#allocation2 + $0x10] sm:$0xff] }
 0x111   : > { %v513_v30 = vmul.f32 %v697_v29, %v502_v27  ;;  %v526_v39 = vadd.f32 %v698_v32, %v515_v35 }
 0x112   : > { %v505_v34 = vld [vmem:[#allocation2 + $0x8] sm:$0xff] }
 0x113   : > { %v516_v36 = vmul.f32 %v697_v29, %v505_v34  ;;  %v524_v37 = vadd.f32 %v698_v32, %v513_v30  ;;  %v530_v43 = vmax.f32 %v526_v39, 0.0 }
 0x114   : > { %v503_v28 = vld [vmem:[#allocation2] sm:$0xff] }
 0x115   : > { %v514_v31 = vmul.f32 %v697_v29, %v503_v28  ;;  %v527_v40 = vadd.f32 %v698_v32, %v516_v36  ;;  %v528_v41 = vmax.f32 %v524_v37, 0.0 }
 0x117   : > { %v525_v38 = vadd.f32 %v698_v32, %v514_v31  ;;  %v531_v44 = vmax.f32 %v527_v40, 0.0 }
 0x119   : > { %v529_v42 = vmax.f32 %v525_v38, 0.0  ;;  %v719_v46 = vpack.c.bf16 %v531_v44, %v530_v43 }
 0x11b   : > { %v714_v45 = vpack.c.bf16 %v529_v42, %v528_v41  ;;  %721 = vst [vmem:[%s969_s4 + $0x8] sm:$0xff] %v719_v46  }
 0x11d   : > { %715 = vst [vmem:[%s969_s4] sm:$0xff] %v714_v45  }
 0x11e PF: > { %s14_s19 = sadd.s32 1, %s841_s19   ;;  %s970_s15 = smov %s829_s16 }
 0x11f   : > { %p11_p12 = scmp.ge.s32.totalorder %s14_s19, 11   ;;  %s971_s16 = smov %s904_s23 }
 0x120   : > { %s972_s17 = smov %s837_s18  ;;  %s973_s18 = smov %s975_s20 }
 0x121   :  { %13 = sbr.rel (!%p11_p12) target bundleno = 3 (0x3), region = 129 }

// kernel: _lambda_.80
= control target key start
LH: loop header
LB: loop body
LE: loop exit
PB: predicated region body
PF: predicated region fallthrough
CT: control target
= control target key end

     0   :  { %s129_s0 = inlined_call_operand.vmem [shape: bf16[32,128], index: 0, kind: input, shape index: {}]   ;;  %s130_s1 = inlined_call_operand.vmem [shape: bf16[32,128], index: 1, kind: input, shape index: {}]   ;;  %s131_s2 = inlined_call_operand.vmem [shape: bf16[32,128], index: 2, kind: output, shape index: {}]  }
   0x1   :  { %v68_v0 = vld [vmem:[%s129_s0] sm:$0xff]   ;;  %v93_v2 = vld [vmem:[%s129_s0 + $0x8] sm:$0xff]  }
   0x2   :  { %v76_v1 = vld [vmem:[%s130_s1] sm:$0xff]   ;;  %v69_v3 = vunpack.c.l.bf16 %v68_v0  ;;  %v70_v4 = vunpack.c.h.bf16 %v68_v0  ;;  %v94_v7 = vld [vmem:[%s130_s1 + $0x8] sm:$0xff]   ;;  %v73_v8 = vunpack.c.l.bf16 %v93_v2  ;;  %v74_v9 = vunpack.c.h.bf16 %v93_v2 }
   0x3   :  { %v77_v5 = vunpack.c.l.bf16 %v76_v1  ;;  %v78_v6 = vunpack.c.h.bf16 %v76_v1  ;;  %v81_v10 = vunpack.c.l.bf16 %v94_v7  ;;  %v82_v11 = vunpack.c.h.bf16 %v94_v7 }
   0x5   :  { %v27_v12 = vadd.f32 %v77_v5, %v69_v3  ;;  %v28_v13 = vadd.f32 %v78_v6, %v70_v4  ;;  %v29_v14 = vadd.f32 %v81_v10, %v73_v8  ;;  %v30_v15 = vadd.f32 %v82_v11, %v74_v9 }
   0x7   :  { %v31_v16 = vmax.f32 %v27_v12, 0.0  ;;  %v32_v17 = vmax.f32 %v28_v13, 0.0  ;;  %v33_v18 = vmax.f32 %v29_v14, 0.0  ;;  %v34_v19 = vmax.f32 %v30_v15, 0.0 }
   0x9   :  { %v86_v20 = vpack.c.bf16 %v32_v17, %v31_v16  ;;  %v91_v21 = vpack.c.bf16 %v34_v19, %v33_v18 }
   0xb   :  { %87 = vst [vmem:[%s131_s2] sm:$0xff] %v86_v20   ;;  %95 = vst [vmem:[%s131_s2 + $0x8] sm:$0xff] %v91_v21  }

// kernel: _lambda_.76
= control target key start
LH: loop header
LB: loop body
LE: loop exit
PB: predicated region body
PF: predicated region fallthrough
CT: control target
= control target key end

     0   :  { %s974_s18 = smov 0   ;;  %s976_s19 = smov 0   ;;  %s1076_s0 = inlined_call_operand.vmem [shape: bf16[32,1152], index: 0, kind: input, shape index: {}]   ;;  %s1077_s1 = inlined_call_operand.vmem [shape: bf16[1152,128], index: 1, kind: input, shape index: {}]   ;;  %s1078_s2 = inlined_call_operand.vmem [shape: f32[1,128], index: 2, kind: input, shape index: {}]   ;;  %s1079_s3 = inlined_call_operand.vmem [shape: f32[1,128], index: 3, kind: input, shape index: {}]   ;;  %s1080_s4 = inlined_call_operand.vmem [shape: bf16[32,128], index: 4, kind: input, shape index: {}]   ;;  %s1081_s5 = inlined_call_operand.vmem [shape: bf16[32,128], index: 5, kind: output, shape index: {}]  }
   0x1   :  { %s978_s20 = smov 0   ;;  %s980_s21 = smov 0  }
   0x2   :  { %s982_s22 = smov 0  }
   0x3 LB: > { %s27_s23 = sadd.s32 1, %s937_s21  ;;  %p50_p1 = scmp.ne.s32.totalorder %s929_s19, %s925_s18  ;;  %s941_s22 = sphi %s982_s22, %s15_s22   ;;  %s937_s21 = sphi %s980_s21, %s1085_s21   ;;  %s933_s20 = sphi %s978_s20, %s1084_s20   ;;  %s929_s19 = sphi %s976_s19, %s1083_s19   ;;  %s925_s18 = sphi %s974_s18, %s1082_s18  }
   0x4   : > { %p28_p0 = scmp.ge.s32.totalorder %s27_s23, 9  ;;  %p51_p2 = scmp.eq.s32.totalorder %s941_s22, 0 }
   0x5   : > { %s43_s25 = sadd.s32 1, %s929_s19  ;;  %p769_p5 = scmp.ge.s32.totalorder %s941_s22, 9 }
   0x6   : > { %s1087_s23 = smov (%p28_p0, %s27_s23), 0  ;;  %p52_p3 = por %p51_p2, %p50_p1 }
   0x7   : > { %s39_s24 = ssub.s32 %s937_s21, %s1087_s23  ;;  %236 = sbr.rel (%p769_p5) target bundleno = 18 (0x12), region = 28 }
   0x8   : > { %p41_p4 = scmp.eq.s32.totalorder %s39_s24, 0 }
   0xa   : > { %s1009_s26 = scalar_select %p41_p4, %s929_s19, %s43_s25  }
   0xc   : > { %239 = sbr.rel (!%p52_p3) target bundleno = 18 (0x12), region = 32  ;;  %s241_s27 = sand.u32 (%p52_p3), 1, %s929_s19  }
   0xd   : > { %s771_s28 = sshll.u32 (%p52_p3), %s937_s21, 2  ;;  %s770_s29 = sshll.u32 (%p52_p3), %s241_s27, 4 }
   0xe   : > { %s248_s7 = scalar_lea.vmem (%p52_p3), %s1076_s0, %s771_s28  ;;  %s243_s8 = scalar_lea.vmem (%p52_p3), [#allocation3], %s770_s29 }
   0xf   : > { %v265_v0 = vld [vmem:[%s248_s7] sm:$0xf] (%p52_p3)  ;;  %v267_v1 = vld [vmem:[%s248_s7 + $0x24] sm:$0xf] (%p52_p3)  ;;  %v269_v2 = vld [vmem:[%s248_s7 + $0x48] sm:$0xf] (%p52_p3) }
  0x10   : > { %266 = vst [vmem:[%s243_s8] sm:$0xf] (%p52_p3), %v265_v0  ;;  %268 = vst [vmem:[%s243_s8 + $0x4] sm:$0xf] (%p52_p3), %v267_v1  ;;  %v271_v3 = vld [vmem:[%s248_s7 + $0x6c] sm:$0xf] (%p52_p3) }
  0x11   : > { %270 = vst [vmem:[%s243_s8 + $0x8] sm:$0xf] %v269_v2  ;;  %272 = vst [vmem:[%s243_s8 + $0xc] sm:$0xf] %v271_v3 }
  0x12 PF: > { %p772_p6 = scmp.ge.s32.totalorder %s941_s22, 1  ;;  %p315_p7 = scmp.lt.s32.totalorder %s941_s22, 10 }
  0x14   : > { %p316_p8 = pnand %p772_p6, %p315_p7 }
  0x15   : > { %s322_s9 = sand.u32 (!%p316_p8), 1, %s925_s18   ;;  %s774_s10 = sshll.u32 (!%p316_p8), %s933_s20, 4 }
  0x16   : > { %319 = sbr.rel (%p316_p8) target bundleno = 288 (0x120), region = 77  ;;  %s1021_s11 = sshll.u32 (!%p316_p8), %s322_s9, 4 }
  0x17   : > { %p376_p9 = scmp.lt.s32.totalorder (!%p316_p8), %s774_s10, 143  ;;  %s324_s16 = scalar_lea.vmem (!%p316_p8), [#allocation3], %s1021_s11 }
  0x18   : > { %p776_p10 = scmp.ne.s32.totalorder (!%p316_p8), %s933_s20, 0 }
  0x1b   : > { %s1089_s10 = smov (!%p376_p9, %s774_s10), 143  ;;  %412 = sbr.rel (%p776_p10) target bundleno = 35 (0x23), region = 85 }
  0x1c   : > { %s775_s12 = sshll.u32 %s1089_s10, 2 }
  0x1d   : > { %s1026_s15 = scalar_lea.vmem %s1077_s1, %s775_s12 }
  0x20   : > { %v943_v4 = vmov 0.0  }
  0x21   : > { %413 = vst [vmem:[#allocation2 + $0x10] sm:$0xff] %v943_v4  ;;  %414 = vst [vmem:[#allocation2] sm:$0xff] %v943_v4 }
  0x22   : > { %415 = vst [vmem:[#allocation2 + $0x18] sm:$0xff] %v943_v4  ;;  %416 = vst [vmem:[#allocation2 + $0x8] sm:$0xff] %v943_v4 }
  0x23 PF: > { %v893_v5 = vld [vmem:[%s1026_s15 + $0x38] sm:$0xff]   ;;  %v894_v6 = vld [vmem:[%s1026_s15 + $0x30] sm:$0xff]   ;;  %v895_v7 = vld [vmem:[%s1026_s15 + $0x28] sm:$0xff]   ;;  %p787_p11 = scmp.ne.s32.totalorder %s933_s20, 8 }
  0x24   : > { %832 = vmatprep.subr.bf16.mxu0 %v893_v5  ;;  %v896_v8 = vld [vmem:[%s1026_s15 + $0x20] sm:$0xff]   ;;  %v897_v10 = vld [vmem:[%s1026_s15 + $0x18] sm:$0xff]   ;;  %v898_v11 = vld [vmem:[%s1026_s15 + $0x10] sm:$0xff]  }
  0x25   : > { %833 = vmatpush3.bf16.msra.mxu0 %v893_v5  ;;  %v901_v9 = vld [vmem:[%s324_s16] sm:$0xff]   ;;  %v899_v12 = vld [vmem:[%s1026_s15 + $0x8] sm:$0xff]  }
  0x26   : > { %834 = vmatprep.subr.bf16.mxu0 %v894_v6  ;;  %848 = vmatprep.mubr.bf16.mxu0 %v901_v9  ;;  %v900_v13 = vld [vmem:[%s1026_s15] sm:$0xff]   ;;  %v902_v14 = vld [vmem:[%s324_s16 + $0x8] sm:$0xff]  }
  0x28   : > { %v417_v17 = vld [vmem:[#allocation2 + $0x10] sm:$0xff]  ;;  %v418_v23 = vld [vmem:[#allocation2] sm:$0xff] }
  0x29   : > { %835 = vmatpush3.bf16.msra.mxu0 %v894_v6  ;;  %v419_v15 = vld [vmem:[#allocation2 + $0x18] sm:$0xff]  ;;  %v420_v20 = vld [vmem:[#allocation2 + $0x8] sm:$0xff] }
  0x2a   : > { %836 = vmatprep.subr.bf16.mxu0 %v895_v7 }
  0x2d   : > { %837 = vmatpush3.bf16.msra.mxu0 %v895_v7 }
  0x2e   : > { %838 = vmatprep.subr.bf16.mxu0 %v896_v8 }
  0x31   : > { %839 = vmatpush3.bf16.msra.mxu0 %v896_v8 }
  0x32   : > { %840 = vmatprep.subr.bf16.mxu0 %v897_v10 }
  0x35   : > { %841 = vmatpush3.bf16.msra.mxu0 %v897_v10 }
  0x36   : > { %842 = vmatprep.subr.bf16.mxu0 %v898_v11 }
  0x39   : > { %843 = vmatpush3.bf16.msra.mxu0 %v898_v11 }
  0x3a   : > { %844 = vmatprep.subr.bf16.mxu0 %v899_v12 }
  0x3d   : > { %845 = vmatpush3.bf16.msra.mxu0 %v899_v12 }
  0x3e   : > { %846 = vmatprep.subr.bf16.mxu0 %v900_v13 }
  0x41   : > { %847 = vmatpush3.bf16.msra.mxu0 %v900_v13 }
  0x44   : > { %849 = vmatmul.mubr.bf16.vlgmr.msra.gmra.mxu0 %v902_v14 }
 0x104   : > { %v850_v16 = vpop.f32.mrf.mxu0 }
 0x105   : > { %v552_v18 = vadd.f32 %v850_v16, %v419_v15 }
 0x106   : > { %v535_v19 = vpop.f32.mrf.mxu0 }
 0x107   : > { %556 = vst [vmem:[#allocation2 + $0x18] sm:$0xff] %v552_v18  ;;  %v550_v21 = vadd.f32 %v535_v19, %v417_v17 }
 0x108   : > { %v851_v22 = vpop.f32.mrf.mxu0 }
 0x109   : > { %554 = vst [vmem:[#allocation2 + $0x10] sm:$0xff] %v550_v21  ;;  %v553_v24 = vadd.f32 %v851_v22, %v420_v20  ;;  %561 = sbr.rel (%p787_p11) target bundleno = 288 (0x120), region = 89 }
 0x10a   : > { %v538_v25 = vpop.f32.mrf.mxu0 }
 0x10b   : > { %557 = vst [vmem:[#allocation2 + $0x8] sm:$0xff] %v553_v24  ;;  %v551_v26 = vadd.f32 %v538_v25, %v418_v23 }
 0x10d   : > { %555 = vst [vmem:[#allocation2] sm:$0xff] %v551_v26 }
 0x10e   : > { %v788_v29 = vld [vmem:[%s1078_s2] ss:$0 sm:$0xff]  ;;  %v564_v34 = vld [vmem:[#allocation2 + $0x18] sm:$0xff]  ;;  %v820_v39 = vld [vmem:[%s1080_s4 + $0x8] sm:$0xff]  }
 0x10f   : > { %v789_v32 = vld [vmem:[%s1079_s3] ss:$0 sm:$0xff]  ;;  %v575_v38 = vmul.f32 %v788_v29, %v564_v34  ;;  %v808_v43 = vunpack.c.l.bf16 %v820_v39  ;;  %v809_v45 = vunpack.c.h.bf16 %v820_v39 }
 0x110   : > { %v562_v27 = vld [vmem:[#allocation2 + $0x10] sm:$0xff]  ;;  %v803_v33 = vld [vmem:[%s1080_s4] sm:$0xff]  }
 0x111   : > { %v573_v30 = vmul.f32 %v788_v29, %v562_v27  ;;  %v804_v35 = vunpack.c.l.bf16 %v803_v33  ;;  %v805_v36 = vunpack.c.h.bf16 %v803_v33  ;;  %v586_v44 = vadd.f32 %v789_v32, %v575_v38 }
 0x112   : > { %v565_v37 = vld [vmem:[#allocation2 + $0x8] sm:$0xff] }
 0x113   : > { %v584_v40 = vadd.f32 %v789_v32, %v573_v30  ;;  %v576_v42 = vmul.f32 %v788_v29, %v565_v37  ;;  %v598_v49 = vadd.f32 %v808_v43, %v586_v44 }
 0x114   : > { %v563_v28 = vld [vmem:[#allocation2] sm:$0xff] }
 0x115   : > { %v574_v31 = vmul.f32 %v788_v29, %v563_v28  ;;  %v596_v46 = vadd.f32 %v804_v35, %v584_v40  ;;  %v587_v48 = vadd.f32 %v789_v32, %v576_v42  ;;  %v602_v53 = vmax.f32 %v598_v49, 0.0 }
 0x117   : > { %v585_v41 = vadd.f32 %v789_v32, %v574_v31  ;;  %v600_v50 = vmax.f32 %v596_v46, 0.0  ;;  %v599_v52 = vadd.f32 %v809_v45, %v587_v48 }
 0x119   : > { %v597_v47 = vadd.f32 %v805_v36, %v585_v41  ;;  %v603_v55 = vmax.f32 %v599_v52, 0.0 }
 0x11b   : > { %v601_v51 = vmax.f32 %v597_v47, 0.0  ;;  %v818_v56 = vpack.c.bf16 %v603_v55, %v602_v53 }
 0x11d   : > { %v813_v54 = vpack.c.bf16 %v601_v51, %v600_v50  ;;  %821 = vst [vmem:[%s1081_s5 + $0x8] sm:$0xff] %v818_v56  }
 0x11f   : > { %814 = vst [vmem:[%s1081_s5] sm:$0xff] %v813_v54  }
 0x120 PF: > { %s15_s22 = sadd.s32 1, %s941_s22   ;;  %s1082_s18 = smov %s929_s19 }
 0x121   : > { %p12_p12 = scmp.ge.s32.totalorder %s15_s22, 11   ;;  %s1083_s19 = smov %s1009_s26 }
 0x122   : > { %s1084_s20 = smov %s937_s21  ;;  %s1085_s21 = smov %s1087_s23 }
 0x123   :  { %14 = sbr.rel (!%p12_p12) target bundleno = 3 (0x3), region = 136 }

// kernel: _lambda_.96
= control target key start
LH: loop header
LB: loop body
LE: loop exit
PB: predicated region body
PF: predicated region fallthrough
CT: control target
= control target key end

     0   :  { %s689_s15 = smov 0   ;;  %s691_s16 = smov 0   ;;  %s741_s0 = inlined_call_operand.vmem [shape: bf16[8,1152], index: 0, kind: input, shape index: {}]   ;;  %s742_s1 = inlined_call_operand.vmem [shape: bf16[1152,128], index: 1, kind: input, shape index: {}]   ;;  %s743_s2 = inlined_call_operand.vmem [shape: f32[1,128], index: 2, kind: input, shape index: {}]   ;;  %s744_s3 = inlined_call_operand.vmem [shape: f32[1,128], index: 3, kind: input, shape index: {}]   ;;  %s745_s4 = inlined_call_operand.vmem [shape: bf16[8,128], index: 4, kind: output, shape index: {}]  }
   0x1   :  { %s693_s17 = smov 0  }
   0x2 LB: > { %s26_s18 = sadd.s32 1, %s655_s16  ;;  %p554_p0 = scmp.ge.s32.totalorder %s659_s17, 1  ;;  %s659_s17 = sphi %s693_s17, %s14_s17   ;;  %s655_s16 = sphi %s691_s16, %s747_s16   ;;  %s651_s15 = sphi %s689_s15, %s746_s15  }
   0x3   : > { %p27_p1 = scmp.ge.s32.totalorder %s26_s18, 9  ;;  %p220_p2 = scmp.lt.s32.totalorder %s659_s17, 10 }
   0x5   : > { %s749_s18 = smov (%p27_p1, %s26_s18), 0  ;;  %p221_p3 = pnand %p554_p0, %p220_p2 }
   0x6   : > { %p267_p4 = scmp.lt.s32.totalorder (!%p221_p3), %s651_s15, 8  ;;  %s556_s19 = sshll.u32 (!%p221_p3), %s651_s15, 4 }
   0x7   : > { %224 = sbr.rel (%p221_p3) target bundleno = 263 (0x107), region = 36  ;;  %p274_p5 = scmp.lt.s32.totalorder (!%p221_p3), %s556_s19, 143 }
   0x8   : > { %p558_p6 = scmp.ne.s32.totalorder (!%p221_p3), %s651_s15, 0 }
   0xc   : > { %s268_s20 = scalar_select %p267_p4, %s651_s15, 8 }
   0xd   : > { %s751_s19 = smov (!%p274_p5, %s556_s19), 143  ;;  %299 = sbr.rel (%p558_p6) target bundleno = 20 (0x14), region = 40 }
   0xe   : > { %s555_s21 = sshll.u32 %s268_s20, 2  ;;  %s557_s25 = sshll.u32 %s751_s19, 2 }
   0xf   : > { %s715_s24 = scalar_lea.vmem %s741_s0, %s555_s21  ;;  %s280_s28 = scalar_lea.vmem %s742_s1, %s557_s25 }
  0x12   : > { %v661_v0 = vmov 0.0  }
  0x13   : > { %300 = vst [vmem:[#allocation2] sm:$0xff] %v661_v0 }
  0x14 PF: > { %v629_v1 = vld [vmem:[%s280_s28 + $0x38] sm:$0xff]   ;;  %v662_v2 = vmov 0.0   ;;  %v630_v3 = vld [vmem:[%s280_s28 + $0x30] sm:$0xff]   ;;  %vm663_vm0 = vmmov 0   ;;  %v631_v4 = vld [vmem:[%s280_s28 + $0x28] sm:$0xff]   ;;  %p567_p7 = scmp.ne.s32.totalorder %s651_s15, 8 }
  0x15   : > { %582 = vmatprep.subr.bf16.mxu0 %v662_v2  ;;  %598 = vmatprep.mubr.msk.bf16.mxu0 %vm663_vm0, %v662_v2  ;;  %v632_v5 = vld [vmem:[%s280_s28 + $0x20] sm:$0xff]   ;;  %v633_v6 = vld [vmem:[%s280_s28 + $0x18] sm:$0xff]   ;;  %v634_v7 = vld [vmem:[%s280_s28 + $0x10] sm:$0xff]  }
  0x16   : > { %583 = vmatpush3.bf16.msra.mxu0 %v629_v1  ;;  %v635_v8 = vld [vmem:[%s280_s28 + $0x8] sm:$0xff]   ;;  %v636_v9 = vld [vmem:[%s280_s28] sm:$0xff]  }
  0x17   : > { %584 = vmatprep.subr.bf16.mxu0 %v662_v2  ;;  %v302_v10 = vld [vmem:[%s715_s24] sm:$0xf] }
  0x1a   : > { %585 = vmatpush3.bf16.msra.mxu0 %v630_v3  ;;  %v301_v11 = vld [vmem:[#allocation2] sm:$0xff] }
  0x1b   : > { %586 = vmatprep.subr.bf16.mxu0 %v662_v2 }
  0x1e   : > { %587 = vmatpush3.bf16.msra.mxu0 %v631_v4 }
  0x1f   : > { %588 = vmatprep.subr.bf16.mxu0 %v662_v2 }
  0x22   : > { %589 = vmatpush3.bf16.msra.mxu0 %v632_v5 }
  0x23   : > { %590 = vmatprep.subr.bf16.mxu0 %v662_v2 }
  0x26   : > { %591 = vmatpush3.bf16.msra.mxu0 %v633_v6 }
  0x27   : > { %592 = vmatprep.subr.bf16.mxu0 %v662_v2 }
  0x2a   : > { %593 = vmatpush3.bf16.msra.mxu0 %v634_v7 }
  0x2b   : > { %594 = vmatprep.subr.bf16.mxu0 %v662_v2 }
  0x2e   : > { %595 = vmatpush3.bf16.msra.mxu0 %v635_v8 }
  0x2f   : > { %596 = vmatprep.subr.bf16.mxu0 %v662_v2 }
  0x32   : > { %597 = vmatpush3.bf16.msra.mxu0 %v636_v9 }
  0x35   : > { %599 = vmatmul.mubr.bf16.vlgmr.msra.gmra.mxu0 %v302_v10 }
  0xf5   : > { %v401_v12 = vpop.f32.mrf.mxu0 }
  0xf6   : > { %v407_v13 = vadd.f32 %v401_v12, %v301_v11 }
  0xf7   : > { %v600_v14 = vpop.f32.mrf.mxu0  ;;  %412 = sbr.rel (%p567_p7) target bundleno = 263 (0x107), region = 44 }
  0xf8   : > { %408 = vst [vmem:[#allocation2] sm:$0xff] %v407_v13 }
  0xf9   : > { %v404_v15 = vpop.f32.mrf.mxu0 }
  0xfb   : > { %v601_v16 = vpop.f32.mrf.mxu0 }
  0xfc   : > { %v568_v18 = vld [vmem:[%s743_s2] ss:$0 sm:$0xff] }
  0xfd   : > { %v569_v19 = vld [vmem:[%s744_s3] ss:$0 sm:$0xff] }
  0xff   : > { %v413_v17 = vld [vmem:[#allocation2] sm:$0xff] }
 0x100   : > { %v421_v20 = vmul.f32 %v568_v18, %v413_v17 }
 0x102   : > { %v429_v21 = vadd.f32 %v569_v19, %v421_v20 }
 0x104   : > { %v430_v22 = vpack.c.bf16 %v429_v21, %v429_v21 }
 0x106   : > { %431 = vst [vmem:[%s745_s4] sm:$0xf] %v430_v22 }
 0x107 PF: > { %s14_s17 = sadd.s32 1, %s659_s17   ;;  %s746_s15 = smov %s655_s16 }
 0x108   : > { %p11_p8 = scmp.ge.s32.totalorder %s14_s17, 11   ;;  %s747_s16 = smov %s749_s18 }
 0x10a   :  { %13 = sbr.rel (!%p11_p8) target bundleno = 2 (0x2), region = 83 }

// kernel: _lambda_.77
= control target key start
LH: loop header
LB: loop body
LE: loop exit
PB: predicated region body
PF: predicated region fallthrough
CT: control target
= control target key end

     0   :  { %s358_s1 = inlined_call_operand.vmem [shape: bf16[128,128], index: 1, kind: input, shape index: {}]   ;;  %s359_s0 = inlined_call_operand.vmem [shape: bf16[32,128], index: 0, kind: input, shape index: {}]   ;;  %s360_s2 = inlined_call_operand.vmem [shape: f32[1,128], index: 2, kind: input, shape index: {}]   ;;  %s361_s3 = inlined_call_operand.vmem [shape: f32[1,128], index: 3, kind: input, shape index: {}]   ;;  %s362_s4 = inlined_call_operand.vmem [shape: bf16[32,128], index: 4, kind: output, shape index: {}]  }
   0x1   :  { %v281_v0 = vld [vmem:[%s358_s1 + $0x38] sm:$0xff]   ;;  %v282_v1 = vld [vmem:[%s358_s1 + $0x30] sm:$0xff]   ;;  %v283_v2 = vld [vmem:[%s358_s1 + $0x28] sm:$0xff]  }
   0x2   :  { %261 = vmatprep.subr.bf16.mxu0 %v281_v0  ;;  %v284_v3 = vld [vmem:[%s358_s1 + $0x20] sm:$0xff]   ;;  %v285_v5 = vld [vmem:[%s358_s1 + $0x18] sm:$0xff]   ;;  %v286_v6 = vld [vmem:[%s358_s1 + $0x10] sm:$0xff]  }
   0x3   :  { %262 = vmatpush3.bf16.msra.mxu0 %v281_v0  ;;  %v289_v4 = vld [vmem:[%s359_s0] sm:$0xff]   ;;  %v287_v7 = vld [vmem:[%s358_s1 + $0x8] sm:$0xff]  }
   0x4   :  { %263 = vmatprep.subr.bf16.mxu0 %v282_v1  ;;  %277 = vmatprep.mubr.bf16.mxu0 %v289_v4  ;;  %v288_v8 = vld [vmem:[%s358_s1] sm:$0xff]   ;;  %v290_v9 = vld [vmem:[%s359_s0 + $0x8] sm:$0xff]  }
   0x5   :  { %v230_v11 = vld [vmem:[%s360_s2] ss:$0 sm:$0xff] }
   0x6   :  { %v231_v14 = vld [vmem:[%s361_s3] ss:$0 sm:$0xff] }
   0x7   :  { %264 = vmatpush3.bf16.msra.mxu0 %v282_v1 }
   0x8   :  { %265 = vmatprep.subr.bf16.mxu0 %v283_v2 }
   0xb   :  { %266 = vmatpush3.bf16.msra.mxu0 %v283_v2 }
   0xc   :  { %267 = vmatprep.subr.bf16.mxu0 %v284_v3 }
   0xf   :  { %268 = vmatpush3.bf16.msra.mxu0 %v284_v3 }
  0x10   :  { %269 = vmatprep.subr.bf16.mxu0 %v285_v5 }
  0x13   :  { %270 = vmatpush3.bf16.msra.mxu0 %v285_v5 }
  0x14   :  { %271 = vmatprep.subr.bf16.mxu0 %v286_v6 }
  0x17   :  { %272 = vmatpush3.bf16.msra.mxu0 %v286_v6 }
  0x18   :  { %273 = vmatprep.subr.bf16.mxu0 %v287_v7 }
  0x1b   :  { %274 = vmatpush3.bf16.msra.mxu0 %v287_v7 }
  0x1c   :  { %275 = vmatprep.subr.bf16.mxu0 %v288_v8 }
  0x1f   :  { %276 = vmatpush3.bf16.msra.mxu0 %v288_v8 }
  0x22   :  { %278 = vmatmul.mubr.bf16.vlgmr.msra.gmra.mxu0 %v290_v9 }
  0xe2   :  { %v279_v10 = vpop.f32.mrf.mxu0 }
  0xe3   :  { %v183_v13 = vmul.f32 %v279_v10, %v230_v11 }
  0xe4   :  { %v144_v12 = vpop.f32.mrf.mxu0 }
  0xe5   :  { %v181_v16 = vmul.f32 %v230_v11, %v144_v12  ;;  %v194_v19 = vadd.f32 %v231_v14, %v183_v13 }
  0xe6   :  { %v280_v15 = vpop.f32.mrf.mxu0 }
  0xe7   :  { %v184_v17 = vmul.f32 %v280_v15, %v230_v11  ;;  %v192_v22 = vadd.f32 %v231_v14, %v181_v16 }
  0xe8   :  { %v147_v18 = vpop.f32.mrf.mxu0 }
  0xe9   :  { %v195_v20 = vadd.f32 %v231_v14, %v184_v17  ;;  %v182_v21 = vmul.f32 %v230_v11, %v147_v18 }
  0xeb   :  { %v248_v23 = vpack.c.bf16 %v195_v20, %v194_v19  ;;  %v193_v24 = vadd.f32 %v231_v14, %v182_v21 }
  0xed   :  { %250 = vst [vmem:[%s362_s4 + $0x8] sm:$0xff] %v248_v23   ;;  %v243_v25 = vpack.c.bf16 %v193_v24, %v192_v22 }
  0xef   :  { %244 = vst [vmem:[%s362_s4] sm:$0xff] %v243_v25  }

// kernel: _lambda_.78
= control target key start
LH: loop header
LB: loop body
LE: loop exit
PB: predicated region body
PF: predicated region fallthrough
CT: control target
= control target key end

     0   :  { %s435_s0 = inlined_call_operand.vmem [shape: bf16[128,128], index: 0, kind: input, shape index: {}]   ;;  %s436_s1 = inlined_call_operand.vmem [shape: bf16[128,128], index: 1, kind: input, shape index: {}]   ;;  %s437_s2 = inlined_call_operand.vmem [shape: bf16[128,128], index: 2, kind: output, shape index: {}]  }
   0x1   :  { %v224_v0 = vld [vmem:[%s435_s0] sm:$0xff]   ;;  %v327_v2 = vld [vmem:[%s435_s0 + $0x8] sm:$0xff]   ;;  %v328_v8 = vld [vmem:[%s435_s0 + $0x10] sm:$0xff]  }
   0x2   :  { %v256_v1 = vld [vmem:[%s436_s1] sm:$0xff]   ;;  %v225_v3 = vunpack.c.l.bf16 %v224_v0  ;;  %v226_v4 = vunpack.c.h.bf16 %v224_v0  ;;  %v334_v7 = vld [vmem:[%s436_s1 + $0x8] sm:$0xff]   ;;  %v335_v9 = vld [vmem:[%s436_s1 + $0x10] sm:$0xff]   ;;  %v229_v10 = vunpack.c.l.bf16 %v327_v2  ;;  %v230_v11 = vunpack.c.h.bf16 %v327_v2 }
   0x3   :  { %v257_v5 = vunpack.c.l.bf16 %v256_v1  ;;  %v258_v6 = vunpack.c.h.bf16 %v256_v1  ;;  %v261_v12 = vunpack.c.l.bf16 %v334_v7  ;;  %v262_v13 = vunpack.c.h.bf16 %v334_v7  ;;  %v329_v14 = vld [vmem:[%s435_s0 + $0x18] sm:$0xff]   ;;  %v330_v24 = vld [vmem:[%s435_s0 + $0x20] sm:$0xff]   ;;  %v331_v38 = vld [vmem:[%s435_s0 + $0x28] sm:$0xff]  }
   0x4   :  { %v233_v17 = vunpack.c.l.bf16 %v328_v8  ;;  %v234_v18 = vunpack.c.h.bf16 %v328_v8  ;;  %v265_v21 = vunpack.c.l.bf16 %v335_v9  ;;  %v266_v22 = vunpack.c.h.bf16 %v335_v9  ;;  %v336_v23 = vld [vmem:[%s436_s1 + $0x18] sm:$0xff]   ;;  %v337_v33 = vld [vmem:[%s436_s1 + $0x20] sm:$0xff]   ;;  %v338_v39 = vld [vmem:[%s436_s1 + $0x28] sm:$0xff]  }
   0x5   :  { %v75_v15 = vadd.f32 %v257_v5, %v225_v3  ;;  %v76_v16 = vadd.f32 %v258_v6, %v226_v4  ;;  %v77_v19 = vadd.f32 %v261_v12, %v229_v10  ;;  %v78_v20 = vadd.f32 %v262_v13, %v230_v11  ;;  %v332_v48 = vld [vmem:[%s435_s0 + $0x30] sm:$0xff]   ;;  %v333_v58 = vld [vmem:[%s435_s0 + $0x38] sm:$0xff]  }
   0x6   :  { %v237_v27 = vunpack.c.l.bf16 %v329_v14  ;;  %v238_v28 = vunpack.c.h.bf16 %v329_v14  ;;  %v79_v31 = vadd.f32 %v265_v21, %v233_v17  ;;  %v80_v32 = vadd.f32 %v266_v22, %v234_v18  ;;  %v339_v53 = vld [vmem:[%s436_s1 + $0x30] sm:$0xff]   ;;  %v340_v63 = vld [vmem:[%s436_s1 + $0x38] sm:$0xff]  }
   0x7   :  { %v91_v25 = vmax.f32 %v75_v15, 0.0  ;;  %v92_v26 = vmax.f32 %v76_v16, 0.0  ;;  %v93_v29 = vmax.f32 %v77_v19, 0.0  ;;  %v94_v30 = vmax.f32 %v78_v20, 0.0 }
   0x8   :  { %v269_v35 = vunpack.c.l.bf16 %v336_v23  ;;  %v270_v36 = vunpack.c.h.bf16 %v336_v23  ;;  %v241_v37 = vunpack.c.l.bf16 %v330_v24  ;;  %v95_v41 = vmax.f32 %v79_v31, 0.0 }
   0x9   :  { %v290_v34 = vpack.c.bf16 %v92_v26, %v91_v25  ;;  %v295_v40 = vpack.c.bf16 %v94_v30, %v93_v29  ;;  %v96_v42 = vmax.f32 %v80_v32, 0.0  ;;  %v242_v43 = vunpack.c.h.bf16 %v330_v24 }
   0xa   :  { %v81_v44 = vadd.f32 %v269_v35, %v237_v27  ;;  %v82_v45 = vadd.f32 %v270_v36, %v238_v28  ;;  %v273_v46 = vunpack.c.l.bf16 %v337_v33  ;;  %v274_v47 = vunpack.c.h.bf16 %v337_v33 }
   0xb   :  { %291 = vst [vmem:[%s437_s2] sm:$0xff] %v290_v34   ;;  %341 = vst [vmem:[%s437_s2 + $0x8] sm:$0xff] %v295_v40   ;;  %v300_v49 = vpack.c.bf16 %v96_v42, %v95_v41  ;;  %v245_v50 = vunpack.c.l.bf16 %v331_v38  ;;  %v246_v51 = vunpack.c.h.bf16 %v331_v38  ;;  %v277_v52 = vunpack.c.l.bf16 %v338_v39 }
   0xc   :  { %v97_v54 = vmax.f32 %v81_v44, 0.0  ;;  %v98_v55 = vmax.f32 %v82_v45, 0.0  ;;  %v83_v56 = vadd.f32 %v273_v46, %v241_v37  ;;  %v84_v57 = vadd.f32 %v274_v47, %v242_v43 }
   0xd   :  { %342 = vst [vmem:[%s437_s2 + $0x10] sm:$0xff] %v300_v49   ;;  %v278_v59 = vunpack.c.h.bf16 %v338_v39  ;;  %v85_v60 = vadd.f32 %v277_v52, %v245_v50  ;;  %v249_v61 = vunpack.c.l.bf16 %v332_v48  ;;  %v250_v62 = vunpack.c.h.bf16 %v332_v48 }
   0xe   :  { %v305_v0 = vpack.c.bf16 %v98_v55, %v97_v54  ;;  %v99_v1 = vmax.f32 %v83_v56, 0.0  ;;  %v100_v2 = vmax.f32 %v84_v57, 0.0  ;;  %v281_v3 = vunpack.c.l.bf16 %v339_v53 }
   0xf   :  { %v86_v4 = vadd.f32 %v278_v59, %v246_v51  ;;  %v101_v5 = vmax.f32 %v85_v60, 0.0  ;;  %v282_v6 = vunpack.c.h.bf16 %v339_v53  ;;  %v253_v7 = vunpack.c.l.bf16 %v333_v58 }
  0x10   :  { %343 = vst [vmem:[%s437_s2 + $0x18] sm:$0xff] %v305_v0   ;;  %v310_v8 = vpack.c.bf16 %v100_v2, %v99_v1  ;;  %v87_v9 = vadd.f32 %v281_v3, %v249_v61  ;;  %v254_v10 = vunpack.c.h.bf16 %v333_v58  ;;  %v285_v11 = vunpack.c.l.bf16 %v340_v63 }
  0x11   :  { %v102_v12 = vmax.f32 %v86_v4, 0.0  ;;  %v88_v13 = vadd.f32 %v282_v6, %v250_v62  ;;  %v286_v14 = vunpack.c.h.bf16 %v340_v63 }
  0x12   :  { %344 = vst [vmem:[%s437_s2 + $0x20] sm:$0xff] %v310_v8   ;;  %v103_v15 = vmax.f32 %v87_v9, 0.0  ;;  %v89_v16 = vadd.f32 %v285_v11, %v253_v7 }
  0x13   :  { %v315_v17 = vpack.c.bf16 %v102_v12, %v101_v5  ;;  %v104_v18 = vmax.f32 %v88_v13, 0.0  ;;  %v90_v19 = vadd.f32 %v286_v14, %v254_v10 }
  0x14   :  { %v105_v20 = vmax.f32 %v89_v16, 0.0 }
  0x15   :  { %345 = vst [vmem:[%s437_s2 + $0x28] sm:$0xff] %v315_v17   ;;  %v320_v21 = vpack.c.bf16 %v104_v18, %v103_v15  ;;  %v106_v22 = vmax.f32 %v90_v19, 0.0 }
  0x17   :  { %346 = vst [vmem:[%s437_s2 + $0x30] sm:$0xff] %v320_v21   ;;  %v325_v23 = vpack.c.bf16 %v106_v22, %v105_v20 }
  0x19   :  { %347 = vst [vmem:[%s437_s2 + $0x38] sm:$0xff] %v325_v23  }

// kernel: _lambda_.81
= control target key start
LH: loop header
LB: loop body
LE: loop exit
PB: predicated region body
PF: predicated region fallthrough
CT: control target
= control target key end

     0   :  { %s690_s15 = smov 0   ;;  %s692_s16 = smov 0   ;;  %s742_s0 = inlined_call_operand.vmem [shape: bf16[8,1152], index: 0, kind: input, shape index: {}]   ;;  %s743_s1 = inlined_call_operand.vmem [shape: bf16[1152,128], index: 1, kind: input, shape index: {}]   ;;  %s744_s2 = inlined_call_operand.vmem [shape: f32[1,128], index: 2, kind: input, shape index: {}]   ;;  %s745_s3 = inlined_call_operand.vmem [shape: f32[1,128], index: 3, kind: input, shape index: {}]   ;;  %s746_s4 = inlined_call_operand.vmem [shape: bf16[8,128], index: 4, kind: output, shape index: {}]  }
   0x1   :  { %s694_s17 = smov 0  }
   0x2 LB: > { %s26_s18 = sadd.s32 1, %s656_s16  ;;  %p555_p0 = scmp.ge.s32.totalorder %s660_s17, 1  ;;  %s660_s17 = sphi %s694_s17, %s14_s17   ;;  %s656_s16 = sphi %s692_s16, %s748_s16   ;;  %s652_s15 = sphi %s690_s15, %s747_s15  }
   0x3   : > { %p27_p1 = scmp.ge.s32.totalorder %s26_s18, 9  ;;  %p220_p2 = scmp.lt.s32.totalorder %s660_s17, 10 }
   0x5   : > { %s750_s18 = smov (%p27_p1, %s26_s18), 0  ;;  %p221_p3 = pnand %p555_p0, %p220_p2 }
   0x6   : > { %p267_p4 = scmp.lt.s32.totalorder (!%p221_p3), %s652_s15, 8  ;;  %s557_s19 = sshll.u32 (!%p221_p3), %s652_s15, 4 }
   0x7   : > { %224 = sbr.rel (%p221_p3) target bundleno = 265 (0x109), region = 36  ;;  %p274_p5 = scmp.lt.s32.totalorder (!%p221_p3), %s557_s19, 143 }
   0x8   : > { %p559_p6 = scmp.ne.s32.totalorder (!%p221_p3), %s652_s15, 0 }
   0xc   : > { %s268_s20 = scalar_select %p267_p4, %s652_s15, 8 }
   0xd   : > { %s752_s19 = smov (!%p274_p5, %s557_s19), 143  ;;  %299 = sbr.rel (%p559_p6) target bundleno = 20 (0x14), region = 40 }
   0xe   : > { %s556_s21 = sshll.u32 %s268_s20, 2  ;;  %s558_s25 = sshll.u32 %s752_s19, 2 }
   0xf   : > { %s716_s24 = scalar_lea.vmem %s742_s0, %s556_s21  ;;  %s280_s28 = scalar_lea.vmem %s743_s1, %s558_s25 }
  0x12   : > { %v662_v0 = vmov 0.0  }
  0x13   : > { %300 = vst [vmem:[#allocation2] sm:$0xff] %v662_v0 }
  0x14 PF: > { %v630_v1 = vld [vmem:[%s280_s28 + $0x38] sm:$0xff]   ;;  %v663_v2 = vmov 0.0   ;;  %v631_v3 = vld [vmem:[%s280_s28 + $0x30] sm:$0xff]   ;;  %vm664_vm0 = vmmov 0   ;;  %v632_v4 = vld [vmem:[%s280_s28 + $0x28] sm:$0xff]   ;;  %p568_p7 = scmp.ne.s32.totalorder %s652_s15, 8 }
  0x15   : > { %583 = vmatprep.subr.bf16.mxu0 %v663_v2  ;;  %599 = vmatprep.mubr.msk.bf16.mxu0 %vm664_vm0, %v663_v2  ;;  %v633_v5 = vld [vmem:[%s280_s28 + $0x20] sm:$0xff]   ;;  %v634_v6 = vld [vmem:[%s280_s28 + $0x18] sm:$0xff]   ;;  %v635_v7 = vld [vmem:[%s280_s28 + $0x10] sm:$0xff]  }
  0x16   : > { %584 = vmatpush3.bf16.msra.mxu0 %v630_v1  ;;  %v636_v8 = vld [vmem:[%s280_s28 + $0x8] sm:$0xff]   ;;  %v637_v9 = vld [vmem:[%s280_s28] sm:$0xff]  }
  0x17   : > { %585 = vmatprep.subr.bf16.mxu0 %v663_v2  ;;  %v302_v10 = vld [vmem:[%s716_s24] sm:$0xf] }
  0x1a   : > { %586 = vmatpush3.bf16.msra.mxu0 %v631_v3  ;;  %v301_v11 = vld [vmem:[#allocation2] sm:$0xff] }
  0x1b   : > { %587 = vmatprep.subr.bf16.mxu0 %v663_v2 }
  0x1e   : > { %588 = vmatpush3.bf16.msra.mxu0 %v632_v4 }
  0x1f   : > { %589 = vmatprep.subr.bf16.mxu0 %v663_v2 }
  0x22   : > { %590 = vmatpush3.bf16.msra.mxu0 %v633_v5 }
  0x23   : > { %591 = vmatprep.subr.bf16.mxu0 %v663_v2 }
  0x26   : > { %592 = vmatpush3.bf16.msra.mxu0 %v634_v6 }
  0x27   : > { %593 = vmatprep.subr.bf16.mxu0 %v663_v2 }
  0x2a   : > { %594 = vmatpush3.bf16.msra.mxu0 %v635_v7 }
  0x2b   : > { %595 = vmatprep.subr.bf16.mxu0 %v663_v2 }
  0x2e   : > { %596 = vmatpush3.bf16.msra.mxu0 %v636_v8 }
  0x2f   : > { %597 = vmatprep.subr.bf16.mxu0 %v663_v2 }
  0x32   : > { %598 = vmatpush3.bf16.msra.mxu0 %v637_v9 }
  0x35   : > { %600 = vmatmul.mubr.bf16.vlgmr.msra.gmra.mxu0 %v302_v10 }
  0xf5   : > { %v401_v12 = vpop.f32.mrf.mxu0 }
  0xf6   : > { %v407_v13 = vadd.f32 %v401_v12, %v301_v11 }
  0xf7   : > { %v601_v14 = vpop.f32.mrf.mxu0  ;;  %412 = sbr.rel (%p568_p7) target bundleno = 265 (0x109), region = 44 }
  0xf8   : > { %408 = vst [vmem:[#allocation2] sm:$0xff] %v407_v13 }
  0xf9   : > { %v404_v15 = vpop.f32.mrf.mxu0 }
  0xfb   : > { %v602_v16 = vpop.f32.mrf.mxu0 }
  0xfc   : > { %v569_v18 = vld [vmem:[%s744_s2] ss:$0 sm:$0xff] }
  0xfd   : > { %v570_v19 = vld [vmem:[%s745_s3] ss:$0 sm:$0xff] }
  0xff   : > { %v413_v17 = vld [vmem:[#allocation2] sm:$0xff] }
 0x100   : > { %v421_v20 = vmul.f32 %v569_v18, %v413_v17 }
 0x102   : > { %v429_v21 = vadd.f32 %v570_v19, %v421_v20 }
 0x104   : > { %v430_v22 = vmax.f32 %v429_v21, 0.0 }
 0x106   : > { %v431_v23 = vpack.c.bf16 %v430_v22, %v430_v22 }
 0x108   : > { %432 = vst [vmem:[%s746_s4] sm:$0xf] %v431_v23 }
 0x109 PF: > { %s14_s17 = sadd.s32 1, %s660_s17   ;;  %s747_s15 = smov %s656_s16 }
 0x10a   : > { %p11_p8 = scmp.ge.s32.totalorder %s14_s17, 11   ;;  %s748_s16 = smov %s750_s18 }
 0x10c   :  { %13 = sbr.rel (!%p11_p8) target bundleno = 2 (0x2), region = 83 }

// kernel: _lambda_.97
= control target key start
LH: loop header
LB: loop body
LE: loop exit
PB: predicated region body
PF: predicated region fallthrough
CT: control target
= control target key end

     0   :  { %s61_s0 = inlined_call_operand.vmem [shape: bf16[8,128], index: 0, kind: input, shape index: {}]   ;;  %s62_s1 = inlined_call_operand.vmem [shape: bf16[8,128], index: 1, kind: input, shape index: {}]   ;;  %s63_s2 = inlined_call_operand.vmem [shape: bf16[8,128], index: 2, kind: input, shape index: {}]   ;;  %s64_s3 = inlined_call_operand.vmem [shape: bf16[8,128], index: 3, kind: output, shape index: {}]  }
   0x1   :  { %v14_v0 = vld [vmem:[%s61_s0] sm:$0xf] }
   0x2   :  { %v16_v1 = vld [vmem:[%s62_s1] sm:$0xf]  ;;  %v15_v3 = vunpack.c.l.bf16 %v14_v0 }
   0x3   :  { %v19_v2 = vld [vmem:[%s63_s2] sm:$0xf]  ;;  %v17_v4 = vunpack.c.l.bf16 %v16_v1 }
   0x4   :  { %v20_v5 = vunpack.c.l.bf16 %v19_v2 }
   0x5   :  { %v18_v6 = vadd.f32 %v17_v4, %v15_v3 }
   0x7   :  { %v21_v7 = vadd.f32 %v20_v5, %v18_v6 }
   0x9   :  { %v22_v8 = vmax.f32 %v21_v7, 0.0 }
   0xb   :  { %v23_v9 = vpack.c.bf16 %v22_v8, %v22_v8 }
   0xd   :  { %24 = vst [vmem:[%s64_s3] sm:$0xf] %v23_v9 }

// kernel: _lambda_.87
= control target key start
LH: loop header
LB: loop body
LE: loop exit
PB: predicated region body
PF: predicated region fallthrough
CT: control target
= control target key end

     0   :  { %s772_s18 = smov 0   ;;  %s774_s19 = smov 0   ;;  %s827_s0 = inlined_call_operand.vmem [shape: bf16[8,1152], index: 0, kind: input, shape index: {}]   ;;  %s828_s1 = inlined_call_operand.vmem [shape: bf16[1152,128], index: 1, kind: input, shape index: {}]   ;;  %s829_s2 = inlined_call_operand.vmem [shape: f32[1,128], index: 2, kind: input, shape index: {}]   ;;  %s830_s3 = inlined_call_operand.vmem [shape: f32[1,128], index: 3, kind: input, shape index: {}]   ;;  %s831_s4 = inlined_call_operand.vmem [shape: bf16[8,128], index: 4, kind: input, shape index: {}]   ;;  %s832_s5 = inlined_call_operand.vmem [shape: bf16[8,128], index: 5, kind: output, shape index: {}]  }
   0x1   :  { %s776_s20 = smov 0  }
   0x2 LB: > { %s27_s21 = sadd.s32 1, %s733_s19  ;;  %p632_p0 = scmp.ge.s32.totalorder %s737_s20, 1  ;;  %s737_s20 = sphi %s776_s20, %s15_s20   ;;  %s733_s19 = sphi %s774_s19, %s834_s19   ;;  %s729_s18 = sphi %s772_s18, %s833_s18  }
   0x3   : > { %p28_p1 = scmp.ge.s32.totalorder %s27_s21, 9  ;;  %p259_p2 = scmp.lt.s32.totalorder %s737_s20, 10 }
   0x5   : > { %s836_s21 = smov (%p28_p1, %s27_s21), 0  ;;  %p260_p3 = pnand %p632_p0, %p259_p2 }
   0x6   : > { %p315_p4 = scmp.lt.s32.totalorder (!%p260_p3), %s729_s18, 8  ;;  %s634_s22 = sshll.u32 (!%p260_p3), %s729_s18, 4 }
   0x7   : > { %263 = sbr.rel (%p260_p3) target bundleno = 267 (0x10b), region = 40  ;;  %p322_p5 = scmp.lt.s32.totalorder (!%p260_p3), %s634_s22, 143 }
   0x8   : > { %p636_p6 = scmp.ne.s32.totalorder (!%p260_p3), %s729_s18, 0 }
   0xc   : > { %s316_s23 = scalar_select %p315_p4, %s729_s18, 8 }
   0xd   : > { %s838_s22 = smov (!%p322_p5, %s634_s22), 143  ;;  %354 = sbr.rel (%p636_p6) target bundleno = 20 (0x14), region = 44 }
   0xe   : > { %s633_s24 = sshll.u32 %s316_s23, 2  ;;  %s635_s28 = sshll.u32 %s838_s22, 2 }
   0xf   : > { %s798_s27 = scalar_lea.vmem %s827_s0, %s633_s24  ;;  %s328_s6 = scalar_lea.vmem %s828_s1, %s635_s28 }
  0x12   : > { %v739_v0 = vmov 0.0  }
  0x13   : > { %355 = vst [vmem:[#allocation2] sm:$0xff] %v739_v0 }
  0x14 PF: > { %v707_v1 = vld [vmem:[%s328_s6 + $0x38] sm:$0xff]   ;;  %v740_v2 = vmov 0.0   ;;  %v708_v3 = vld [vmem:[%s328_s6 + $0x30] sm:$0xff]   ;;  %vm741_vm0 = vmmov 0   ;;  %v709_v4 = vld [vmem:[%s328_s6 + $0x28] sm:$0xff]   ;;  %p645_p7 = scmp.ne.s32.totalorder %s729_s18, 8 }
  0x15   : > { %660 = vmatprep.subr.bf16.mxu0 %v740_v2  ;;  %676 = vmatprep.mubr.msk.bf16.mxu0 %vm741_vm0, %v740_v2  ;;  %v710_v5 = vld [vmem:[%s328_s6 + $0x20] sm:$0xff]   ;;  %v711_v6 = vld [vmem:[%s328_s6 + $0x18] sm:$0xff]   ;;  %v712_v7 = vld [vmem:[%s328_s6 + $0x10] sm:$0xff]  }
  0x16   : > { %661 = vmatpush3.bf16.msra.mxu0 %v707_v1  ;;  %v713_v8 = vld [vmem:[%s328_s6 + $0x8] sm:$0xff]   ;;  %v714_v9 = vld [vmem:[%s328_s6] sm:$0xff]  }
  0x17   : > { %662 = vmatprep.subr.bf16.mxu0 %v740_v2  ;;  %v357_v10 = vld [vmem:[%s798_s27] sm:$0xf] }
  0x1a   : > { %663 = vmatpush3.bf16.msra.mxu0 %v708_v3  ;;  %v356_v11 = vld [vmem:[#allocation2] sm:$0xff] }
  0x1b   : > { %664 = vmatprep.subr.bf16.mxu0 %v740_v2 }
  0x1e   : > { %665 = vmatpush3.bf16.msra.mxu0 %v709_v4 }
  0x1f   : > { %666 = vmatprep.subr.bf16.mxu0 %v740_v2 }
  0x22   : > { %667 = vmatpush3.bf16.msra.mxu0 %v710_v5 }
  0x23   : > { %668 = vmatprep.subr.bf16.mxu0 %v740_v2 }
  0x26   : > { %669 = vmatpush3.bf16.msra.mxu0 %v711_v6 }
  0x27   : > { %670 = vmatprep.subr.bf16.mxu0 %v740_v2 }
  0x2a   : > { %671 = vmatpush3.bf16.msra.mxu0 %v712_v7 }
  0x2b   : > { %672 = vmatprep.subr.bf16.mxu0 %v740_v2 }
  0x2e   : > { %673 = vmatpush3.bf16.msra.mxu0 %v713_v8 }
  0x2f   : > { %674 = vmatprep.subr.bf16.mxu0 %v740_v2 }
  0x32   : > { %675 = vmatpush3.bf16.msra.mxu0 %v714_v9 }
  0x35   : > { %677 = vmatmul.mubr.bf16.vlgmr.msra.gmra.mxu0 %v357_v10 }
  0xf5   : > { %v456_v12 = vpop.f32.mrf.mxu0 }
  0xf6   : > { %v462_v13 = vadd.f32 %v456_v12, %v356_v11 }
  0xf7   : > { %v678_v14 = vpop.f32.mrf.mxu0  ;;  %467 = sbr.rel (%p645_p7) target bundleno = 267 (0x10b), region = 48 }
  0xf8   : > { %463 = vst [vmem:[#allocation2] sm:$0xff] %v462_v13 }
  0xf9   : > { %v459_v15 = vpop.f32.mrf.mxu0 }
  0xfb   : > { %v679_v16 = vpop.f32.mrf.mxu0 }
  0xfc   : > { %v646_v18 = vld [vmem:[%s829_s2] ss:$0 sm:$0xff] }
  0xfd   : > { %v647_v19 = vld [vmem:[%s830_s3] ss:$0 sm:$0xff] }
  0xfe   : > { %v485_v21 = vld [vmem:[%s831_s4] sm:$0xf] }
  0xff   : > { %v468_v17 = vld [vmem:[#allocation2] sm:$0xff]  ;;  %v486_v22 = vunpack.c.l.bf16 %v485_v21 }
 0x100   : > { %v476_v20 = vmul.f32 %v646_v18, %v468_v17 }
 0x102   : > { %v484_v23 = vadd.f32 %v647_v19, %v476_v20 }
 0x104   : > { %v487_v24 = vadd.f32 %v486_v22, %v484_v23 }
 0x106   : > { %v488_v25 = vmax.f32 %v487_v24, 0.0 }
 0x108   : > { %v489_v26 = vpack.c.bf16 %v488_v25, %v488_v25 }
 0x10a   : > { %490 = vst [vmem:[%s832_s5] sm:$0xf] %v489_v26 }
 0x10b PF: > { %s15_s20 = sadd.s32 1, %s737_s20   ;;  %s833_s18 = smov %s733_s19 }
 0x10c   : > { %p12_p8 = scmp.ge.s32.totalorder %s15_s20, 11   ;;  %s834_s19 = smov %s836_s21 }
 0x10e   :  { %14 = sbr.rel (!%p12_p8) target bundleno = 2 (0x2), region = 90 }

// kernel: _lambda_.109
= control target key start
LH: loop header
LB: loop body
LE: loop exit
PB: predicated region body
PF: predicated region fallthrough
CT: control target
= control target key end

     0   :  { %v206_v0 = vmov 0.0   ;;  %vm207_vm0 = vmmov 0   ;;  %s269_s1 = inlined_call_operand.vmem [shape: bf16[128,128], index: 1, kind: input, shape index: {}]   ;;  %s270_s0 = inlined_call_operand.vmem [shape: bf16[8,128], index: 0, kind: input, shape index: {}]   ;;  %s271_s2 = inlined_call_operand.vmem [shape: f32[1,128], index: 2, kind: input, shape index: {}]   ;;  %s272_s3 = inlined_call_operand.vmem [shape: f32[1,128], index: 3, kind: input, shape index: {}]   ;;  %s273_s4 = inlined_call_operand.vmem [shape: bf16[8,128], index: 4, kind: output, shape index: {}]  }
   0x1   :  { %176 = vmatprep.subr.bf16.mxu0 %v206_v0  ;;  %v198_v1 = vld [vmem:[%s269_s1 + $0x38] sm:$0xff]   ;;  %192 = vmatprep.mubr.msk.bf16.mxu0 %vm207_vm0, %v206_v0  ;;  %v199_v2 = vld [vmem:[%s269_s1 + $0x30] sm:$0xff]   ;;  %v200_v3 = vld [vmem:[%s269_s1 + $0x28] sm:$0xff]  }
   0x2   :  { %177 = vmatpush3.bf16.msra.mxu0 %v198_v1  ;;  %v201_v4 = vld [vmem:[%s269_s1 + $0x20] sm:$0xff]   ;;  %v202_v5 = vld [vmem:[%s269_s1 + $0x18] sm:$0xff]   ;;  %v203_v6 = vld [vmem:[%s269_s1 + $0x10] sm:$0xff]  }
   0x3   :  { %178 = vmatprep.subr.bf16.mxu0 %v206_v0  ;;  %v204_v7 = vld [vmem:[%s269_s1 + $0x8] sm:$0xff]   ;;  %v205_v8 = vld [vmem:[%s269_s1] sm:$0xff]  }
   0x4   :  { %v24_v9 = vld [vmem:[%s270_s0] sm:$0xf] }
   0x5   :  { %v165_v10 = vld [vmem:[%s271_s2] ss:$0 sm:$0xff] }
   0x6   :  { %179 = vmatpush3.bf16.msra.mxu0 %v199_v2  ;;  %v166_v12 = vld [vmem:[%s272_s3] ss:$0 sm:$0xff] }
   0x7   :  { %180 = vmatprep.subr.bf16.mxu0 %v206_v0 }
   0xa   :  { %181 = vmatpush3.bf16.msra.mxu0 %v200_v3 }
   0xb   :  { %182 = vmatprep.subr.bf16.mxu0 %v206_v0 }
   0xe   :  { %183 = vmatpush3.bf16.msra.mxu0 %v201_v4 }
   0xf   :  { %184 = vmatprep.subr.bf16.mxu0 %v206_v0 }
  0x12   :  { %185 = vmatpush3.bf16.msra.mxu0 %v202_v5 }
  0x13   :  { %186 = vmatprep.subr.bf16.mxu0 %v206_v0 }
  0x16   :  { %187 = vmatpush3.bf16.msra.mxu0 %v203_v6 }
  0x17   :  { %188 = vmatprep.subr.bf16.mxu0 %v206_v0 }
  0x1a   :  { %189 = vmatpush3.bf16.msra.mxu0 %v204_v7 }
  0x1b   :  { %190 = vmatprep.subr.bf16.mxu0 %v206_v0 }
  0x1e   :  { %191 = vmatpush3.bf16.msra.mxu0 %v205_v8 }
  0x21   :  { %193 = vmatmul.mubr.bf16.vlgmr.msra.gmra.mxu0 %v24_v9 }
  0xe1   :  { %v123_v11 = vpop.f32.mrf.mxu0 }
  0xe2   :  { %v142_v13 = vmul.f32 %v165_v10, %v123_v11 }
  0xe3   :  { %v194_v14 = vpop.f32.mrf.mxu0 }
  0xe4   :  { %v150_v15 = vadd.f32 %v166_v12, %v142_v13 }
  0xe5   :  { %v126_v16 = vpop.f32.mrf.mxu0 }
  0xe6   :  { %v151_v17 = vpack.c.bf16 %v150_v15, %v150_v15 }
  0xe7   :  { %v195_v18 = vpop.f32.mrf.mxu0 }
  0xe8   :  { %152 = vst [vmem:[%s273_s4] sm:$0xf] %v151_v17 }

// kernel: _lambda_.93
= control target key start
LH: loop header
LB: loop body
LE: loop exit
PB: predicated region body
PF: predicated region fallthrough
CT: control target
= control target key end

     0   :  { %s164_s0 = inlined_call_operand.vmem [shape: bf16[32,128], index: 0, kind: input, shape index: {}]   ;;  %s165_s1 = inlined_call_operand.vmem [shape: bf16[32,128], index: 1, kind: input, shape index: {}]   ;;  %s166_s2 = inlined_call_operand.vmem [shape: bf16[32,128], index: 2, kind: input, shape index: {}]   ;;  %s167_s3 = inlined_call_operand.vmem [shape: bf16[32,128], index: 3, kind: output, shape index: {}]  }
   0x1   :  { %v83_v0 = vld [vmem:[%s164_s0] sm:$0xff]   ;;  %v116_v7 = vld [vmem:[%s164_s0 + $0x8] sm:$0xff]  }
   0x2   :  { %v91_v1 = vld [vmem:[%s165_s1] sm:$0xff]   ;;  %v84_v3 = vunpack.c.l.bf16 %v83_v0  ;;  %v85_v4 = vunpack.c.h.bf16 %v83_v0  ;;  %v117_v8 = vld [vmem:[%s165_s1 + $0x8] sm:$0xff]   ;;  %v88_v12 = vunpack.c.l.bf16 %v116_v7  ;;  %v89_v13 = vunpack.c.h.bf16 %v116_v7 }
   0x3   :  { %v99_v2 = vld [vmem:[%s166_s2] sm:$0xff]   ;;  %v92_v5 = vunpack.c.l.bf16 %v91_v1  ;;  %v93_v6 = vunpack.c.h.bf16 %v91_v1  ;;  %v118_v9 = vld [vmem:[%s166_s2 + $0x8] sm:$0xff]   ;;  %v96_v16 = vunpack.c.l.bf16 %v117_v8  ;;  %v97_v17 = vunpack.c.h.bf16 %v117_v8 }
   0x4   :  { %v100_v10 = vunpack.c.l.bf16 %v99_v2  ;;  %v101_v11 = vunpack.c.h.bf16 %v99_v2  ;;  %v104_v18 = vunpack.c.l.bf16 %v118_v9  ;;  %v105_v19 = vunpack.c.h.bf16 %v118_v9 }
   0x5   :  { %v30_v14 = vadd.f32 %v92_v5, %v84_v3  ;;  %v31_v15 = vadd.f32 %v93_v6, %v85_v4  ;;  %v32_v22 = vadd.f32 %v96_v16, %v88_v12  ;;  %v33_v23 = vadd.f32 %v97_v17, %v89_v13 }
   0x7   :  { %v42_v20 = vadd.f32 %v100_v10, %v30_v14  ;;  %v43_v21 = vadd.f32 %v101_v11, %v31_v15  ;;  %v44_v26 = vadd.f32 %v104_v18, %v32_v22  ;;  %v45_v27 = vadd.f32 %v105_v19, %v33_v23 }
   0x9   :  { %v46_v24 = vmax.f32 %v42_v20, 0.0  ;;  %v47_v25 = vmax.f32 %v43_v21, 0.0  ;;  %v48_v29 = vmax.f32 %v44_v26, 0.0  ;;  %v49_v30 = vmax.f32 %v45_v27, 0.0 }
   0xb   :  { %v109_v28 = vpack.c.bf16 %v47_v25, %v46_v24  ;;  %v114_v31 = vpack.c.bf16 %v49_v30, %v48_v29 }
   0xd   :  { %110 = vst [vmem:[%s167_s3] sm:$0xff] %v109_v28   ;;  %119 = vst [vmem:[%s167_s3 + $0x8] sm:$0xff] %v114_v31  }

// kernel: _lambda_.90
= control target key start
LH: loop header
LB: loop body
LE: loop exit
PB: predicated region body
PF: predicated region fallthrough
CT: control target
= control target key end

     0   :  { %s554_s0 = inlined_call_operand.vmem [shape: bf16[128,128], index: 0, kind: input, shape index: {}]   ;;  %s555_s1 = inlined_call_operand.vmem [shape: bf16[128,128], index: 1, kind: input, shape index: {}]   ;;  %s556_s2 = inlined_call_operand.vmem [shape: bf16[128,128], index: 2, kind: input, shape index: {}]   ;;  %s557_s3 = inlined_call_operand.vmem [shape: bf16[128,128], index: 3, kind: output, shape index: {}]  }
   0x1   :  { %v275_v0 = vld [vmem:[%s554_s0] sm:$0xff]   ;;  %v410_v7 = vld [vmem:[%s554_s0 + $0x8] sm:$0xff]   ;;  %v411_v14 = vld [vmem:[%s554_s0 + $0x10] sm:$0xff]  }
   0x2   :  { %v307_v1 = vld [vmem:[%s555_s1] sm:$0xff]   ;;  %v276_v3 = vunpack.c.l.bf16 %v275_v0  ;;  %v277_v4 = vunpack.c.h.bf16 %v275_v0  ;;  %v417_v8 = vld [vmem:[%s555_s1 + $0x8] sm:$0xff]   ;;  %v280_v12 = vunpack.c.l.bf16 %v410_v7  ;;  %v281_v13 = vunpack.c.h.bf16 %v410_v7  ;;  %v418_v19 = vld [vmem:[%s555_s1 + $0x10] sm:$0xff]  }
   0x3   :  { %v339_v2 = vld [vmem:[%s556_s2] sm:$0xff]   ;;  %v308_v5 = vunpack.c.l.bf16 %v307_v1  ;;  %v309_v6 = vunpack.c.h.bf16 %v307_v1  ;;  %v424_v9 = vld [vmem:[%s556_s2 + $0x8] sm:$0xff]   ;;  %v312_v17 = vunpack.c.l.bf16 %v417_v8  ;;  %v313_v18 = vunpack.c.h.bf16 %v417_v8  ;;  %v425_v20 = vld [vmem:[%s556_s2 + $0x10] sm:$0xff]  }
   0x4   :  { %v340_v10 = vunpack.c.l.bf16 %v339_v2  ;;  %v341_v11 = vunpack.c.h.bf16 %v339_v2  ;;  %v344_v21 = vunpack.c.l.bf16 %v424_v9  ;;  %v345_v22 = vunpack.c.h.bf16 %v424_v9  ;;  %v412_v29 = vld [vmem:[%s554_s0 + $0x18] sm:$0xff]   ;;  %v413_v44 = vld [vmem:[%s554_s0 + $0x20] sm:$0xff]   ;;  %v414_v59 = vld [vmem:[%s554_s0 + $0x28] sm:$0xff]  }
   0x5   :  { %v78_v15 = vadd.f32 %v308_v5, %v276_v3  ;;  %v79_v16 = vadd.f32 %v309_v6, %v277_v4  ;;  %v284_v23 = vunpack.c.l.bf16 %v411_v14  ;;  %v285_v24 = vunpack.c.h.bf16 %v411_v14  ;;  %v419_v34 = vld [vmem:[%s555_s1 + $0x18] sm:$0xff]   ;;  %v420_v53 = vld [vmem:[%s555_s1 + $0x20] sm:$0xff]   ;;  %v421_v4 = vld [vmem:[%s555_s1 + $0x28] sm:$0xff]  }
   0x6   :  { %v80_v27 = vadd.f32 %v312_v17, %v280_v12  ;;  %v81_v28 = vadd.f32 %v313_v18, %v281_v13  ;;  %v316_v30 = vunpack.c.l.bf16 %v418_v19  ;;  %v317_v31 = vunpack.c.h.bf16 %v418_v19  ;;  %v426_v39 = vld [vmem:[%s556_s2 + $0x18] sm:$0xff]   ;;  %v427_v54 = vld [vmem:[%s556_s2 + $0x20] sm:$0xff]   ;;  %v428_v5 = vld [vmem:[%s556_s2 + $0x28] sm:$0xff]  }
   0x7   :  { %v126_v25 = vadd.f32 %v340_v10, %v78_v15  ;;  %v127_v26 = vadd.f32 %v341_v11, %v79_v16  ;;  %v348_v32 = vunpack.c.l.bf16 %v425_v20  ;;  %v349_v33 = vunpack.c.h.bf16 %v425_v20  ;;  %v415_v10 = vld [vmem:[%s554_s0 + $0x30] sm:$0xff]  }
   0x8   :  { %v128_v37 = vadd.f32 %v344_v21, %v80_v27  ;;  %v129_v38 = vadd.f32 %v345_v22, %v81_v28  ;;  %v82_v40 = vadd.f32 %v316_v30, %v284_v23  ;;  %v83_v41 = vadd.f32 %v317_v31, %v285_v24  ;;  %v422_v19 = vld [vmem:[%s555_s1 + $0x30] sm:$0xff]  }
   0x9   :  { %v142_v35 = vmax.f32 %v126_v25, 0.0  ;;  %v143_v36 = vmax.f32 %v127_v26, 0.0  ;;  %v288_v42 = vunpack.c.l.bf16 %v412_v29  ;;  %v289_v43 = vunpack.c.h.bf16 %v412_v29  ;;  %v429_v24 = vld [vmem:[%s556_s2 + $0x30] sm:$0xff]   ;;  %v416_v29 = vld [vmem:[%s554_s0 + $0x38] sm:$0xff]  }
   0xa   :  { %v144_v46 = vmax.f32 %v128_v37, 0.0  ;;  %v145_v47 = vmax.f32 %v129_v38, 0.0  ;;  %v320_v48 = vunpack.c.l.bf16 %v419_v34  ;;  %v130_v49 = vadd.f32 %v348_v32, %v82_v40 }
   0xb   :  { %v373_v45 = vpack.c.bf16 %v143_v36, %v142_v35  ;;  %v131_v50 = vadd.f32 %v349_v33, %v83_v41  ;;  %v321_v51 = vunpack.c.h.bf16 %v419_v34  ;;  %v352_v52 = vunpack.c.l.bf16 %v426_v39  ;;  %v423_v34 = vld [vmem:[%s555_s1 + $0x38] sm:$0xff]  }
   0xc   :  { %v378_v55 = vpack.c.bf16 %v145_v47, %v144_v46  ;;  %v84_v56 = vadd.f32 %v320_v48, %v288_v42  ;;  %v353_v57 = vunpack.c.h.bf16 %v426_v39  ;;  %v292_v58 = vunpack.c.l.bf16 %v413_v44  ;;  %v430_v39 = vld [vmem:[%s556_s2 + $0x38] sm:$0xff]  }
   0xd   :  { %374 = vst [vmem:[%s557_s3] sm:$0xff] %v373_v45   ;;  %v146_v60 = vmax.f32 %v130_v49, 0.0  ;;  %v147_v61 = vmax.f32 %v131_v50, 0.0  ;;  %v85_v62 = vadd.f32 %v321_v51, %v289_v43  ;;  %v293_v63 = vunpack.c.h.bf16 %v413_v44 }
   0xe   :  { %431 = vst [vmem:[%s557_s3 + $0x8] sm:$0xff] %v378_v55   ;;  %v132_v0 = vadd.f32 %v352_v52, %v84_v56  ;;  %v324_v1 = vunpack.c.l.bf16 %v420_v53  ;;  %v325_v2 = vunpack.c.h.bf16 %v420_v53  ;;  %v356_v3 = vunpack.c.l.bf16 %v427_v54 }
   0xf   :  { %v383_v6 = vpack.c.bf16 %v147_v61, %v146_v60  ;;  %v133_v7 = vadd.f32 %v353_v57, %v85_v62  ;;  %v357_v8 = vunpack.c.h.bf16 %v427_v54  ;;  %v296_v9 = vunpack.c.l.bf16 %v414_v59 }
  0x10   :  { %v148_v11 = vmax.f32 %v132_v0, 0.0  ;;  %v86_v12 = vadd.f32 %v324_v1, %v292_v58  ;;  %v87_v13 = vadd.f32 %v325_v2, %v293_v63  ;;  %v297_v14 = vunpack.c.h.bf16 %v414_v59 }
  0x11   :  { %432 = vst [vmem:[%s557_s3 + $0x10] sm:$0xff] %v383_v6   ;;  %v149_v15 = vmax.f32 %v133_v7, 0.0  ;;  %v328_v16 = vunpack.c.l.bf16 %v421_v4  ;;  %v329_v17 = vunpack.c.h.bf16 %v421_v4  ;;  %v360_v18 = vunpack.c.l.bf16 %v428_v5 }
  0x12   :  { %v134_v20 = vadd.f32 %v356_v3, %v86_v12  ;;  %v135_v21 = vadd.f32 %v357_v8, %v87_v13  ;;  %v361_v22 = vunpack.c.h.bf16 %v428_v5  ;;  %v300_v23 = vunpack.c.l.bf16 %v415_v10 }
  0x13   :  { %v388_v25 = vpack.c.bf16 %v149_v15, %v148_v11  ;;  %v88_v26 = vadd.f32 %v328_v16, %v296_v9  ;;  %v89_v27 = vadd.f32 %v329_v17, %v297_v14  ;;  %v301_v28 = vunpack.c.h.bf16 %v415_v10 }
  0x14   :  { %v150_v30 = vmax.f32 %v134_v20, 0.0  ;;  %v151_v31 = vmax.f32 %v135_v21, 0.0  ;;  %v332_v32 = vunpack.c.l.bf16 %v422_v19  ;;  %v333_v33 = vunpack.c.h.bf16 %v422_v19 }
  0x15   :  { %433 = vst [vmem:[%s557_s3 + $0x18] sm:$0xff] %v388_v25   ;;  %v136_v35 = vadd.f32 %v360_v18, %v88_v26  ;;  %v137_v36 = vadd.f32 %v361_v22, %v89_v27  ;;  %v364_v37 = vunpack.c.l.bf16 %v429_v24  ;;  %v365_v38 = vunpack.c.h.bf16 %v429_v24 }
  0x16   :  { %v393_v40 = vpack.c.bf16 %v151_v31, %v150_v30  ;;  %v90_v41 = vadd.f32 %v332_v32, %v300_v23  ;;  %v91_v42 = vadd.f32 %v333_v33, %v301_v28  ;;  %v304_v43 = vunpack.c.l.bf16 %v416_v29 }
  0x17   :  { %v152_v44 = vmax.f32 %v136_v35, 0.0  ;;  %v153_v45 = vmax.f32 %v137_v36, 0.0  ;;  %v305_v46 = vunpack.c.h.bf16 %v416_v29  ;;  %v336_v47 = vunpack.c.l.bf16 %v423_v34 }
  0x18   :  { %434 = vst [vmem:[%s557_s3 + $0x20] sm:$0xff] %v393_v40   ;;  %v138_v48 = vadd.f32 %v364_v37, %v90_v41  ;;  %v139_v49 = vadd.f32 %v365_v38, %v91_v42  ;;  %v337_v50 = vunpack.c.h.bf16 %v423_v34  ;;  %v368_v51 = vunpack.c.l.bf16 %v430_v39 }
  0x19   :  { %v398_v52 = vpack.c.bf16 %v153_v45, %v152_v44  ;;  %v92_v53 = vadd.f32 %v336_v47, %v304_v43  ;;  %v369_v54 = vunpack.c.h.bf16 %v430_v39 }
  0x1a   :  { %v154_v55 = vmax.f32 %v138_v48, 0.0  ;;  %v155_v56 = vmax.f32 %v139_v49, 0.0  ;;  %v93_v57 = vadd.f32 %v337_v50, %v305_v46 }
  0x1b   :  { %435 = vst [vmem:[%s557_s3 + $0x28] sm:$0xff] %v398_v52   ;;  %v140_v58 = vadd.f32 %v368_v51, %v92_v53 }
  0x1c   :  { %v403_v59 = vpack.c.bf16 %v155_v56, %v154_v55  ;;  %v141_v60 = vadd.f32 %v369_v54, %v93_v57 }
  0x1d   :  { %v156_v61 = vmax.f32 %v140_v58, 0.0 }
  0x1e   :  { %436 = vst [vmem:[%s557_s3 + $0x30] sm:$0xff] %v403_v59   ;;  %v157_v62 = vmax.f32 %v141_v60, 0.0 }
  0x20   :  { %v408_v63 = vpack.c.bf16 %v157_v62, %v156_v61 }
  0x22   :  { %437 = vst [vmem:[%s557_s3 + $0x38] sm:$0xff] %v408_v63  }

// kernel: _lambda_.110
= control target key start
LH: loop header
LB: loop body
LE: loop exit
PB: predicated region body
PF: predicated region fallthrough
CT: control target
= control target key end

     0   :  { %s673_s0 = inlined_call_operand.vmem [shape: bf16[128,128], index: 0, kind: input, shape index: {}]   ;;  %s674_s1 = inlined_call_operand.vmem [shape: bf16[128,128], index: 1, kind: input, shape index: {}]   ;;  %s675_s2 = inlined_call_operand.vmem [shape: bf16[128,128], index: 2, kind: input, shape index: {}]   ;;  %s676_s3 = inlined_call_operand.vmem [shape: bf16[128,128], index: 3, kind: input, shape index: {}]   ;;  %s677_s4 = inlined_call_operand.vmem [shape: bf16[128,128], index: 4, kind: output, shape index: {}]  }
   0x1   :  { %v326_v0 = vld [vmem:[%s673_s0] sm:$0xff]   ;;  %v493_v8 = vld [vmem:[%s673_s0 + $0x8] sm:$0xff]   ;;  %v494_v20 = vld [vmem:[%s673_s0 + $0x10] sm:$0xff]  }
   0x2   :  { %v358_v1 = vld [vmem:[%s674_s1] sm:$0xff]   ;;  %v327_v3 = vunpack.c.l.bf16 %v326_v0  ;;  %v328_v4 = vunpack.c.h.bf16 %v326_v0  ;;  %v500_v9 = vld [vmem:[%s674_s1 + $0x8] sm:$0xff]   ;;  %v331_v18 = vunpack.c.l.bf16 %v493_v8  ;;  %v332_v19 = vunpack.c.h.bf16 %v493_v8  ;;  %v501_v25 = vld [vmem:[%s674_s1 + $0x10] sm:$0xff]  }
   0x3   :  { %v390_v2 = vld [vmem:[%s675_s2] sm:$0xff]   ;;  %v359_v5 = vunpack.c.l.bf16 %v358_v1  ;;  %v360_v6 = vunpack.c.h.bf16 %v358_v1  ;;  %v507_v14 = vld [vmem:[%s675_s2 + $0x8] sm:$0xff]   ;;  %v363_v21 = vunpack.c.l.bf16 %v500_v9  ;;  %v364_v22 = vunpack.c.h.bf16 %v500_v9  ;;  %v508_v30 = vld [vmem:[%s675_s2 + $0x10] sm:$0xff]  }
   0x4   :  { %v422_v7 = vld [vmem:[%s676_s3] sm:$0xff]   ;;  %v391_v10 = vunpack.c.l.bf16 %v390_v2  ;;  %v392_v11 = vunpack.c.h.bf16 %v390_v2  ;;  %v514_v15 = vld [vmem:[%s676_s3 + $0x8] sm:$0xff]   ;;  %v395_v23 = vunpack.c.l.bf16 %v507_v14  ;;  %v396_v24 = vunpack.c.h.bf16 %v507_v14  ;;  %v515_v39 = vld [vmem:[%s676_s3 + $0x10] sm:$0xff]  }
   0x5   :  { %v423_v12 = vunpack.c.l.bf16 %v422_v7  ;;  %v424_v13 = vunpack.c.h.bf16 %v422_v7  ;;  %v81_v16 = vadd.f32 %v359_v5, %v327_v3  ;;  %v82_v17 = vadd.f32 %v360_v6, %v328_v4  ;;  %v495_v44 = vld [vmem:[%s673_s0 + $0x18] sm:$0xff]   ;;  %v496_v4 = vld [vmem:[%s673_s0 + $0x20] sm:$0xff]  }
   0x6   :  { %v427_v28 = vunpack.c.l.bf16 %v514_v15  ;;  %v428_v29 = vunpack.c.h.bf16 %v514_v15  ;;  %v83_v31 = vadd.f32 %v363_v21, %v331_v18  ;;  %v84_v32 = vadd.f32 %v364_v22, %v332_v19  ;;  %v502_v49 = vld [vmem:[%s674_s1 + $0x18] sm:$0xff]   ;;  %v503_v5 = vld [vmem:[%s674_s1 + $0x20] sm:$0xff]  }
   0x7   :  { %v129_v26 = vadd.f32 %v391_v10, %v81_v16  ;;  %v130_v27 = vadd.f32 %v392_v11, %v82_v17  ;;  %v335_v33 = vunpack.c.l.bf16 %v494_v20  ;;  %v336_v34 = vunpack.c.h.bf16 %v494_v20  ;;  %v509_v54 = vld [vmem:[%s675_s2 + $0x18] sm:$0xff]   ;;  %v510_v10 = vld [vmem:[%s675_s2 + $0x20] sm:$0xff]   ;;  %v497_v20 = vld [vmem:[%s673_s0 + $0x28] sm:$0xff]  }
   0x8   :  { %v367_v37 = vunpack.c.l.bf16 %v501_v25  ;;  %v368_v38 = vunpack.c.h.bf16 %v501_v25  ;;  %v131_v40 = vadd.f32 %v395_v23, %v83_v31  ;;  %v132_v41 = vadd.f32 %v396_v24, %v84_v32  ;;  %v516_v59 = vld [vmem:[%s676_s3 + $0x18] sm:$0xff]   ;;  %v517_v15 = vld [vmem:[%s676_s3 + $0x20] sm:$0xff]   ;;  %v504_v25 = vld [vmem:[%s674_s1 + $0x28] sm:$0xff]  }
   0x9   :  { %v177_v35 = vadd.f32 %v423_v12, %v129_v26  ;;  %v178_v36 = vadd.f32 %v424_v13, %v130_v27  ;;  %v399_v42 = vunpack.c.l.bf16 %v508_v30  ;;  %v400_v43 = vunpack.c.h.bf16 %v508_v30  ;;  %v511_v30 = vld [vmem:[%s675_s2 + $0x28] sm:$0xff]  }
   0xa   :  { %v85_v47 = vadd.f32 %v367_v37, %v335_v33  ;;  %v86_v48 = vadd.f32 %v368_v38, %v336_v34  ;;  %v179_v50 = vadd.f32 %v427_v28, %v131_v40  ;;  %v180_v51 = vadd.f32 %v428_v29, %v132_v41 }
   0xb   :  { %v193_v45 = vmax.f32 %v177_v35, 0.0  ;;  %v194_v46 = vmax.f32 %v178_v36, 0.0  ;;  %v431_v52 = vunpack.c.l.bf16 %v515_v39  ;;  %v432_v53 = vunpack.c.h.bf16 %v515_v39  ;;  %v518_v35 = vld [vmem:[%s676_s3 + $0x28] sm:$0xff]  }
   0xc   :  { %v133_v56 = vadd.f32 %v399_v42, %v85_v47  ;;  %v134_v57 = vadd.f32 %v400_v43, %v86_v48  ;;  %v339_v58 = vunpack.c.l.bf16 %v495_v44  ;;  %v195_v60 = vmax.f32 %v179_v50, 0.0 }
   0xd   :  { %v456_v55 = vpack.c.bf16 %v194_v46, %v193_v45  ;;  %v196_v61 = vmax.f32 %v180_v51, 0.0  ;;  %v340_v62 = vunpack.c.h.bf16 %v495_v44  ;;  %v371_v63 = vunpack.c.l.bf16 %v502_v49  ;;  %v498_v44 = vld [vmem:[%s673_s0 + $0x30] sm:$0xff]  }
   0xe   :  { %v181_v0 = vadd.f32 %v431_v52, %v133_v56  ;;  %v182_v1 = vadd.f32 %v432_v53, %v134_v57  ;;  %v372_v2 = vunpack.c.h.bf16 %v502_v49  ;;  %v403_v3 = vunpack.c.l.bf16 %v509_v54  ;;  %v505_v49 = vld [vmem:[%s674_s1 + $0x30] sm:$0xff]  }
   0xf   :  { %457 = vst [vmem:[%s677_s4] sm:$0xff] %v456_v55   ;;  %v461_v6 = vpack.c.bf16 %v196_v61, %v195_v60  ;;  %v87_v7 = vadd.f32 %v371_v63, %v339_v58  ;;  %v404_v8 = vunpack.c.h.bf16 %v509_v54  ;;  %v435_v9 = vunpack.c.l.bf16 %v516_v59  ;;  %v512_v54 = vld [vmem:[%s675_s2 + $0x30] sm:$0xff]  }
  0x10   :  { %v197_v11 = vmax.f32 %v181_v0, 0.0  ;;  %v198_v12 = vmax.f32 %v182_v1, 0.0  ;;  %v88_v13 = vadd.f32 %v372_v2, %v340_v62  ;;  %v436_v14 = vunpack.c.h.bf16 %v516_v59  ;;  %v519_v55 = vld [vmem:[%s676_s3 + $0x30] sm:$0xff]   ;;  %v499_v0 = vld [vmem:[%s673_s0 + $0x38] sm:$0xff]  }
  0x11   :  { %521 = vst [vmem:[%s677_s4 + $0x8] sm:$0xff] %v461_v6   ;;  %v135_v16 = vadd.f32 %v403_v3, %v87_v7  ;;  %v343_v17 = vunpack.c.l.bf16 %v496_v4  ;;  %v344_v18 = vunpack.c.h.bf16 %v496_v4  ;;  %v375_v19 = vunpack.c.l.bf16 %v503_v5 }
  0x12   :  { %v466_v21 = vpack.c.bf16 %v198_v12, %v197_v11  ;;  %v136_v22 = vadd.f32 %v404_v8, %v88_v13  ;;  %v376_v23 = vunpack.c.h.bf16 %v503_v5  ;;  %v407_v24 = vunpack.c.l.bf16 %v510_v10  ;;  %v506_v5 = vld [vmem:[%s674_s1 + $0x38] sm:$0xff]  }
  0x13   :  { %v183_v26 = vadd.f32 %v435_v9, %v135_v16  ;;  %v89_v27 = vadd.f32 %v375_v19, %v343_v17  ;;  %v408_v28 = vunpack.c.h.bf16 %v510_v10  ;;  %v439_v29 = vunpack.c.l.bf16 %v517_v15  ;;  %v513_v10 = vld [vmem:[%s675_s2 + $0x38] sm:$0xff]  }
  0x14   :  { %522 = vst [vmem:[%s677_s4 + $0x10] sm:$0xff] %v466_v21   ;;  %v184_v31 = vadd.f32 %v436_v14, %v136_v22  ;;  %v90_v32 = vadd.f32 %v376_v23, %v344_v18  ;;  %v440_v33 = vunpack.c.h.bf16 %v517_v15  ;;  %v347_v34 = vunpack.c.l.bf16 %v497_v20  ;;  %v520_v11 = vld [vmem:[%s676_s3 + $0x38] sm:$0xff]  }
  0x15   :  { %v199_v36 = vmax.f32 %v183_v26, 0.0  ;;  %v137_v37 = vadd.f32 %v407_v24, %v89_v27  ;;  %v348_v38 = vunpack.c.h.bf16 %v497_v20  ;;  %v379_v39 = vunpack.c.l.bf16 %v504_v25 }
  0x16   :  { %v200_v40 = vmax.f32 %v184_v31, 0.0  ;;  %v138_v41 = vadd.f32 %v408_v28, %v90_v32  ;;  %v380_v42 = vunpack.c.h.bf16 %v504_v25  ;;  %v411_v43 = vunpack.c.l.bf16 %v511_v30 }
  0x17   :  { %v185_v45 = vadd.f32 %v439_v29, %v137_v37  ;;  %v91_v46 = vadd.f32 %v379_v39, %v347_v34  ;;  %v412_v47 = vunpack.c.h.bf16 %v511_v30  ;;  %v443_v48 = vunpack.c.l.bf16 %v518_v35 }
  0x18   :  { %v471_v50 = vpack.c.bf16 %v200_v40, %v199_v36  ;;  %v186_v51 = vadd.f32 %v440_v33, %v138_v41  ;;  %v92_v52 = vadd.f32 %v380_v42, %v348_v38  ;;  %v444_v53 = vunpack.c.h.bf16 %v518_v35 }
  0x19   :  { %v201_v56 = vmax.f32 %v185_v45, 0.0  ;;  %v139_v57 = vadd.f32 %v411_v43, %v91_v46  ;;  %v351_v58 = vunpack.c.l.bf16 %v498_v44  ;;  %v352_v59 = vunpack.c.h.bf16 %v498_v44 }
  0x1a   :  { %523 = vst [vmem:[%s677_s4 + $0x18] sm:$0xff] %v471_v50   ;;  %v202_v60 = vmax.f32 %v186_v51, 0.0  ;;  %v140_v61 = vadd.f32 %v412_v47, %v92_v52  ;;  %v383_v62 = vunpack.c.l.bf16 %v505_v49  ;;  %v384_v63 = vunpack.c.h.bf16 %v505_v49 }
  0x1b   :  { %v187_v1 = vadd.f32 %v443_v48, %v139_v57  ;;  %v415_v2 = vunpack.c.l.bf16 %v512_v54  ;;  %v416_v3 = vunpack.c.h.bf16 %v512_v54  ;;  %v447_v4 = vunpack.c.l.bf16 %v519_v55 }
  0x1c   :  { %v476_v6 = vpack.c.bf16 %v202_v60, %v201_v56  ;;  %v188_v7 = vadd.f32 %v444_v53, %v140_v61  ;;  %v93_v8 = vadd.f32 %v383_v62, %v351_v58  ;;  %v94_v9 = vadd.f32 %v384_v63, %v352_v59 }
  0x1d   :  { %v203_v12 = vmax.f32 %v187_v1, 0.0  ;;  %v448_v13 = vunpack.c.h.bf16 %v519_v55  ;;  %v355_v14 = vunpack.c.l.bf16 %v499_v0  ;;  %v356_v15 = vunpack.c.h.bf16 %v499_v0 }
  0x1e   :  { %524 = vst [vmem:[%s677_s4 + $0x20] sm:$0xff] %v476_v6   ;;  %v204_v16 = vmax.f32 %v188_v7, 0.0  ;;  %v141_v17 = vadd.f32 %v415_v2, %v93_v8  ;;  %v142_v18 = vadd.f32 %v416_v3, %v94_v9  ;;  %v387_v19 = vunpack.c.l.bf16 %v506_v5 }
  0x1f   :  { %v388_v20 = vunpack.c.h.bf16 %v506_v5  ;;  %v419_v21 = vunpack.c.l.bf16 %v513_v10  ;;  %v420_v22 = vunpack.c.h.bf16 %v513_v10  ;;  %v451_v23 = vunpack.c.l.bf16 %v520_v11 }
  0x20   :  { %v481_v24 = vpack.c.bf16 %v204_v16, %v203_v12  ;;  %v189_v25 = vadd.f32 %v447_v4, %v141_v17  ;;  %v190_v26 = vadd.f32 %v448_v13, %v142_v18  ;;  %v95_v27 = vadd.f32 %v387_v19, %v355_v14 }
  0x21   :  { %v96_v28 = vadd.f32 %v388_v20, %v356_v15  ;;  %v452_v29 = vunpack.c.h.bf16 %v520_v11 }
  0x22   :  { %525 = vst [vmem:[%s677_s4 + $0x28] sm:$0xff] %v481_v24   ;;  %v205_v30 = vmax.f32 %v189_v25, 0.0  ;;  %v206_v31 = vmax.f32 %v190_v26, 0.0  ;;  %v143_v32 = vadd.f32 %v419_v21, %v95_v27 }
  0x23   :  { %v144_v33 = vadd.f32 %v420_v22, %v96_v28 }
  0x24   :  { %v486_v34 = vpack.c.bf16 %v206_v31, %v205_v30  ;;  %v191_v35 = vadd.f32 %v451_v23, %v143_v32 }
  0x25   :  { %v192_v36 = vadd.f32 %v452_v29, %v144_v33 }
  0x26   :  { %526 = vst [vmem:[%s677_s4 + $0x30] sm:$0xff] %v486_v34   ;;  %v207_v37 = vmax.f32 %v191_v35, 0.0 }
  0x27   :  { %v208_v38 = vmax.f32 %v192_v36, 0.0 }
  0x29   :  { %v491_v39 = vpack.c.bf16 %v208_v38, %v207_v37 }
  0x2b   :  { %527 = vst [vmem:[%s677_s4 + $0x38] sm:$0xff] %v491_v39  }

// kernel: _lambda_.111
= control target key start
LH: loop header
LB: loop body
LE: loop exit
PB: predicated region body
PF: predicated region fallthrough
CT: control target
= control target key end

     0   :  { %s621_s1 = inlined_call_operand.vmem [shape: bf16[128,128], index: 1, kind: input, shape index: {}]   ;;  %s622_s0 = inlined_call_operand.vmem [shape: bf16[128,128], index: 0, kind: input, shape index: {}]   ;;  %s623_s2 = inlined_call_operand.vmem [shape: f32[1,128], index: 2, kind: input, shape index: {}]   ;;  %s624_s3 = inlined_call_operand.vmem [shape: f32[1,128], index: 3, kind: input, shape index: {}]   ;;  %s625_s4 = inlined_call_operand.vmem [shape: f32[128,128], index: 4, kind: output, shape index: {}]  }
   0x1   :  { %v478_v0 = vld [vmem:[%s621_s1 + $0x38] sm:$0xff]   ;;  %v479_v1 = vld [vmem:[%s621_s1 + $0x30] sm:$0xff]   ;;  %v480_v2 = vld [vmem:[%s621_s1 + $0x28] sm:$0xff]  }
   0x2   :  { %430 = vmatprep.subr.bf16.mxu0 %v478_v0  ;;  %462 = vmatprep.subr.bf16.mxu1 %v478_v0  ;;  %v481_v3 = vld [vmem:[%s621_s1 + $0x20] sm:$0xff]   ;;  %v482_v6 = vld [vmem:[%s621_s1 + $0x18] sm:$0xff]   ;;  %v483_v7 = vld [vmem:[%s621_s1 + $0x10] sm:$0xff]  }
   0x3   :  { %431 = vmatpush3.bf16.msra.mxu0 %v478_v0  ;;  %470 = vmatpush3.bf16.msra.mxu1 %v478_v0  ;;  %v486_v4 = vld [vmem:[%s622_s0] sm:$0xff]   ;;  %v484_v8 = vld [vmem:[%s621_s1 + $0x8] sm:$0xff]   ;;  %v490_v12 = vld [vmem:[%s622_s0 + $0x10] sm:$0xff]  }
   0x4   :  { %432 = vmatprep.subr.bf16.mxu0 %v479_v1  ;;  %463 = vmatprep.subr.bf16.mxu1 %v479_v1  ;;  %v487_v5 = vld [vmem:[%s622_s0 + $0x20] sm:$0xff]   ;;  %v488_v10 = vld [vmem:[%s622_s0 + $0x8] sm:$0xff]   ;;  %v491_v13 = vld [vmem:[%s622_s0 + $0x30] sm:$0xff]  }
   0x5   :  { %446 = vmatprep.mubr.bf16.mxu0 %v486_v4  ;;  %454 = vmatprep.mubr.bf16.mxu1 %v487_v5  ;;  %v485_v9 = vld [vmem:[%s621_s1] sm:$0xff]   ;;  %v489_v11 = vld [vmem:[%s622_s0 + $0x28] sm:$0xff]   ;;  %v492_v14 = vld [vmem:[%s622_s0 + $0x18] sm:$0xff]  }
   0x6   :  { %v493_v15 = vld [vmem:[%s622_s0 + $0x38] sm:$0xff]   ;;  %v412_v16 = vld [vmem:[%s623_s2] ss:$0 sm:$0xff] }
   0x7   :  { %433 = vmatpush3.bf16.msra.mxu0 %v479_v1  ;;  %471 = vmatpush3.bf16.msra.mxu1 %v479_v1  ;;  %v413_v18 = vld [vmem:[%s624_s3] ss:$0 sm:$0xff] }
   0x8   :  { %434 = vmatprep.subr.bf16.mxu0 %v480_v2  ;;  %464 = vmatprep.subr.bf16.mxu1 %v480_v2 }
   0xb   :  { %435 = vmatpush3.bf16.msra.mxu0 %v480_v2  ;;  %472 = vmatpush3.bf16.msra.mxu1 %v480_v2 }
   0xc   :  { %436 = vmatprep.subr.bf16.mxu0 %v481_v3  ;;  %465 = vmatprep.subr.bf16.mxu1 %v481_v3 }
   0xf   :  { %437 = vmatpush3.bf16.msra.mxu0 %v481_v3  ;;  %473 = vmatpush3.bf16.msra.mxu1 %v481_v3 }
  0x10   :  { %438 = vmatprep.subr.bf16.mxu0 %v482_v6  ;;  %466 = vmatprep.subr.bf16.mxu1 %v482_v6 }
  0x13   :  { %439 = vmatpush3.bf16.msra.mxu0 %v482_v6  ;;  %474 = vmatpush3.bf16.msra.mxu1 %v482_v6 }
  0x14   :  { %440 = vmatprep.subr.bf16.mxu0 %v483_v7  ;;  %467 = vmatprep.subr.bf16.mxu1 %v483_v7 }
  0x17   :  { %441 = vmatpush3.bf16.msra.mxu0 %v483_v7  ;;  %475 = vmatpush3.bf16.msra.mxu1 %v483_v7 }
  0x18   :  { %442 = vmatprep.subr.bf16.mxu0 %v484_v8  ;;  %468 = vmatprep.subr.bf16.mxu1 %v484_v8 }
  0x1b   :  { %443 = vmatpush3.bf16.msra.mxu0 %v484_v8  ;;  %476 = vmatpush3.bf16.msra.mxu1 %v484_v8 }
  0x1c   :  { %444 = vmatprep.subr.bf16.mxu0 %v485_v9  ;;  %469 = vmatprep.subr.bf16.mxu1 %v485_v9 }
  0x1f   :  { %445 = vmatpush3.bf16.msra.mxu0 %v485_v9  ;;  %477 = vmatpush3.bf16.msra.mxu1 %v485_v9 }
  0x22   :  { %447 = vmatmul.mubr.bf16.vlgmr.msra.gmra.mxu0 %v488_v10  ;;  %455 = vmatmul.mubr.bf16.vlgmr.msra.gmra.mxu1 %v489_v11 }
  0x23   :  { %450 = vmatprep.mubr.bf16.mxu0 %v490_v12  ;;  %458 = vmatprep.mubr.bf16.mxu1 %v491_v13 }
  0x2a   :  { %451 = vmatmul.mubr.bf16.gmra.mxu0 %v492_v14  ;;  %459 = vmatmul.mubr.bf16.gmra.mxu1 %v493_v15 }
  0xe2   :  { %v448_v17 = vpop.f32.mrf.mxu0  ;;  %v456_v19 = vpop.f32.mrf.mxu1 }
  0xe3   :  { %v339_v20 = vmul.f32 %v448_v17, %v412_v16  ;;  %v347_v21 = vmul.f32 %v456_v19, %v412_v16 }
  0xe4   :  { %v216_v22 = vpop.f32.mrf.mxu0  ;;  %v248_v23 = vpop.f32.mrf.mxu1 }
  0xe5   :  { %v362_v24 = vadd.f32 %v413_v18, %v339_v20  ;;  %v370_v25 = vadd.f32 %v413_v18, %v347_v21  ;;  %v337_v26 = vmul.f32 %v412_v16, %v216_v22  ;;  %v345_v27 = vmul.f32 %v412_v16, %v248_v23 }
  0xe6   :  { %v449_v28 = vpop.f32.mrf.mxu0  ;;  %v457_v29 = vpop.f32.mrf.mxu1 }
  0xe7   :  { %378 = vst [vmem:[%s625_s4 + $0x10] sm:$0xff] %v362_v24  ;;  %386 = vst [vmem:[%s625_s4 + $0x50] sm:$0xff] %v370_v25  ;;  %v360_v30 = vadd.f32 %v413_v18, %v337_v26  ;;  %v368_v31 = vadd.f32 %v413_v18, %v345_v27  ;;  %v340_v32 = vmul.f32 %v449_v28, %v412_v16 }
  0xe8   :  { %v348_v33 = vmul.f32 %v457_v29, %v412_v16  ;;  %v219_v34 = vpop.f32.mrf.mxu0  ;;  %v251_v35 = vpop.f32.mrf.mxu1 }
  0xe9   :  { %376 = vst [vmem:[%s625_s4] sm:$0xff] %v360_v30  ;;  %384 = vst [vmem:[%s625_s4 + $0x40] sm:$0xff] %v368_v31  ;;  %v363_v36 = vadd.f32 %v413_v18, %v340_v32  ;;  %v338_v38 = vmul.f32 %v412_v16, %v219_v34  ;;  %v346_v39 = vmul.f32 %v412_v16, %v251_v35 }
  0xea   :  { %v371_v37 = vadd.f32 %v413_v18, %v348_v33  ;;  %v452_v40 = vpop.f32.mrf.mxu0  ;;  %v460_v41 = vpop.f32.mrf.mxu1 }
  0xeb   :  { %379 = vst [vmem:[%s625_s4 + $0x18] sm:$0xff] %v363_v36  ;;  %v361_v42 = vadd.f32 %v413_v18, %v338_v38  ;;  %v369_v43 = vadd.f32 %v413_v18, %v346_v39  ;;  %v343_v44 = vmul.f32 %v452_v40, %v412_v16  ;;  %v351_v45 = vmul.f32 %v460_v41, %v412_v16 }
  0xec   :  { %387 = vst [vmem:[%s625_s4 + $0x58] sm:$0xff] %v371_v37  ;;  %v232_v46 = vpop.f32.mrf.mxu0  ;;  %v264_v47 = vpop.f32.mrf.mxu1 }
  0xed   :  { %377 = vst [vmem:[%s625_s4 + $0x8] sm:$0xff] %v361_v42  ;;  %385 = vst [vmem:[%s625_s4 + $0x48] sm:$0xff] %v369_v43  ;;  %v366_v48 = vadd.f32 %v413_v18, %v343_v44  ;;  %v374_v49 = vadd.f32 %v413_v18, %v351_v45  ;;  %v341_v50 = vmul.f32 %v412_v16, %v232_v46 }
  0xee   :  { %v349_v51 = vmul.f32 %v412_v16, %v264_v47  ;;  %v453_v52 = vpop.f32.mrf.mxu0  ;;  %v461_v53 = vpop.f32.mrf.mxu1 }
  0xef   :  { %382 = vst [vmem:[%s625_s4 + $0x30] sm:$0xff] %v366_v48  ;;  %390 = vst [vmem:[%s625_s4 + $0x70] sm:$0xff] %v374_v49  ;;  %v364_v54 = vadd.f32 %v413_v18, %v341_v50  ;;  %v344_v56 = vmul.f32 %v453_v52, %v412_v16  ;;  %v352_v57 = vmul.f32 %v461_v53, %v412_v16 }
  0xf0   :  { %v372_v55 = vadd.f32 %v413_v18, %v349_v51  ;;  %v235_v58 = vpop.f32.mrf.mxu0  ;;  %v267_v59 = vpop.f32.mrf.mxu1 }
  0xf1   :  { %380 = vst [vmem:[%s625_s4 + $0x20] sm:$0xff] %v364_v54  ;;  %v367_v60 = vadd.f32 %v413_v18, %v344_v56  ;;  %v375_v61 = vadd.f32 %v413_v18, %v352_v57  ;;  %v342_v62 = vmul.f32 %v412_v16, %v235_v58  ;;  %v350_v63 = vmul.f32 %v412_v16, %v267_v59 }
  0xf2   :  { %388 = vst [vmem:[%s625_s4 + $0x60] sm:$0xff] %v372_v55 }
  0xf3   :  { %383 = vst [vmem:[%s625_s4 + $0x38] sm:$0xff] %v367_v60  ;;  %391 = vst [vmem:[%s625_s4 + $0x78] sm:$0xff] %v375_v61  ;;  %v365_v0 = vadd.f32 %v413_v18, %v342_v62  ;;  %v373_v1 = vadd.f32 %v413_v18, %v350_v63 }
  0xf5   :  { %381 = vst [vmem:[%s625_s4 + $0x28] sm:$0xff] %v365_v0  ;;  %389 = vst [vmem:[%s625_s4 + $0x68] sm:$0xff] %v373_v1 }

</bundles_post_ra>
